<compile_context>
chip_gen: v7x
topology: tpu7x:2x2x1
jax: 0.10.0
libtpu: 0.0.40
codegen_flags: <defaults>
</compile_context>

<pallas_src>
import functools

import jax
import jax.numpy as jnp
from jax.experimental import pallas as pl
from jax.experimental.pallas import tpu as pltpu


def _masknet_kernel(x_ref, w1_ref, b1_ref, w2_ref, b2_ref,
                    out_ref, cnt_ref, xpad_ref, ypad_ref,
                    *, H, W, C_IN, C_MID, B, WPP):
    """One block of B batch elements per grid step.

    x_ref   : (B, H, W, C_IN)       input block, NHWC (channel-minor)
    w1_ref  : (9*C_IN, C_MID)       conv1 weights, im2col-packed
    b1_ref  : (1, C_MID)            conv1 bias
    w2_ref  : (3*C_MID, 3*C_IN)     conv2 weights, dh folded into K, dw into N
    b2_ref  : (1, W*C_IN)           conv2 bias, pre-tiled to lane-dense layout
    out_ref : (B, H, W*C_IN)        masked output, lane-dense
    cnt_ref : (1, 1, 128)           per-grid-step zero count (int32 splat)
    xpad_ref: (B, H+2, WPP, C_IN)   VMEM scratch: zero-padded input slab
    ypad_ref: (B, H+2, WPP, C_MID)  VMEM scratch: zero-padded hidden slab
    """
    f32 = jnp.float32
    Hp = H + 2

    # ---- zero-padded input slab (padding fused in-kernel).  xpad is tiny,
    #      so one dense zero store of the whole slab + interior overwrite. ----
    x_cm = x_ref[...]                                       # (B, H, W, C_IN)
    xpad_ref[...] = jnp.zeros((B, Hp, WPP, C_IN), f32)
    xpad_ref[:, 1:H + 1, 1:W + 1, :] = x_cm

    # ---- conv1: all 9 taps folded into the contraction dim (im2col). -------
    # xw[b, hp, w, dw*C + c] = xpad[b, hp, w + dw, c]
    xw = jnp.concatenate(
        [xpad_ref[:, :, 0:W, :],
         xpad_ref[:, :, 1:W + 1, :],
         xpad_ref[:, :, 2:W + 2, :]], axis=-1)              # (B, Hp, W, 3*C_IN)
    # lhs1[b, h, w, dh*3C + dw*C + c] = xpad[b, h+dh, w+dw, c]
    lhs1 = jnp.concatenate(
        [xw[:, 0:H], xw[:, 1:H + 1], xw[:, 2:H + 2]],
        axis=-1)                                            # (B, H, W, 9*C_IN)
    # One MXU matmul, K = 9*C_IN; accumulation stays inside the MXU.
    y = jnp.dot(lhs1.reshape(B * H * W, 9 * C_IN), w1_ref[...],
                preferred_element_type=f32)                 # (B*H*W, C_MID)
    y = jnp.maximum(y + b1_ref[...], 0.0)                   # bias + ReLU, lane-dense
    y = y.reshape(B, H, W, C_MID)

    # ---- zero-padded hidden slab: only the border conv2 actually reads is
    #      zeroed (alignment columns >= W+2 feed matmul rows that are never
    #      read back, so they can stay uninitialized). -----------------------
    ypad_ref[:, 0:1, :, :] = jnp.zeros((B, 1, WPP, C_MID), f32)
    ypad_ref[:, H + 1:Hp, :, :] = jnp.zeros((B, 1, WPP, C_MID), f32)
    ypad_ref[:, 1:H + 1, 0:1, :] = jnp.zeros((B, H, 1, C_MID), f32)
    ypad_ref[:, 1:H + 1, W + 1:W + 2, :] = jnp.zeros((B, H, 1, C_MID), f32)
    ypad_ref[:, 1:H + 1, 1:W + 1, :] = y

    # ---- conv2: dh folded into K (aligned 128-lane concat), dw folded into N.
    lhs2 = jnp.concatenate(
        [ypad_ref[:, 0:H, :, :],
         ypad_ref[:, 1:H + 1, :, :],
         ypad_ref[:, 2:H + 2, :, :]], axis=-1)              # (B, H, WPP, 3*C_MID)
    t = jnp.dot(lhs2.reshape(B * H * WPP, 3 * C_MID), w2_ref[...],
                preferred_element_type=f32)                 # (B*H*WPP, 3*C_IN)
    t = t.reshape(B, H, WPP, 3 * C_IN)
    # Only 3 narrow (C_IN-wide) shifted adds remain; shifts touch small data.
    conv2 = (t[:, :, 0:W, 0:C_IN]
             + t[:, :, 1:W + 1, C_IN:2 * C_IN]
             + t[:, :, 2:W + 2, 2 * C_IN:3 * C_IN])         # (B, H, W, C_IN)

    # ---- mask + output, entirely lane-dense (W*C_IN lanes). ----------------
    x_flat = x_cm.reshape(B, H, W * C_IN)                   # single repack of x
    z = conv2.reshape(B, H, W * C_IN) + b2_ref[...] + jnp.abs(x_flat)
    # mask = relu(sign(z)) == 1{z > 0}, one compare+select.
    mask = jnp.where(z > 0.0, jnp.float32(1.0), jnp.float32(0.0))
    out_ref[...] = x_flat * mask
    # Per-step zero count (f32 sum is exact: block size is VMEM-bounded far
    # below 2^24 elements), emitted as int32 so the wrapper total stays exact.
    n_zero = f32(B * H * W * C_IN) - jnp.sum(mask)
    cnt_ref[...] = (jnp.zeros((1, 1, 128), f32) + n_zero).astype(jnp.int32)


def _num_tensorcores_per_chip():
    # v7x has 2 TensorCores per chip; v5e/v6e have 1.  Best-effort detection.
    try:
        kind = jax.devices()[0].device_kind.lower()
        return 2 if "v7" in kind else 1
    except Exception:
        return 1


def _vmem_bytes_per_batch_elem(H, W, C, C_MID, WPP):
    """Rough f32 VMEM footprint of one batch element (minor dims lane-padded)."""
    lane = lambda c: max(c, 128)
    Hp = H + 2
    words = 0
    words += 2 * 2 * H * lane(W * C)        # x / out blocks, double-buffered
    words += Hp * WPP * lane(C)             # xpad scratch
    words += Hp * WPP * lane(C_MID)         # ypad scratch
    words += Hp * W * lane(3 * C)           # xw
    words += H * W * lane(9 * C)            # lhs1
    words += H * W * lane(C_MID)            # y
    words += H * WPP * 3 * C_MID            # lhs2
    words += H * WPP * lane(3 * C)          # t
    words += 6 * H * lane(W * C)            # conv2 / mask temporaries
    return 4 * words


def _pick_batch_block(N, H, W, C, C_MID, WPP):
    budget = 20 * 1024 * 1024               # conservative across v5e/v6e/v7x
    per_elem = _vmem_bytes_per_batch_elem(H, W, C, C_MID, WPP)
    b = max(1, min(N, budget // max(per_elem, 1)))
    # v7x: keep >= 2 grid steps so the "parallel" batch axis feeds both
    # TensorCores; single-TC chips take the largest block that fits instead.
    if _num_tensorcores_per_chip() >= 2 and N >= 2:
        b = min(b, N // 2)
    b = max(1, b)
    while N % b:
        b -= 1
    return b


@jax.jit
def masknet_forward(x_nchw, params):
    """Returns (masked x in NCHW, number of zero mask elements, int32)."""
    w1, b1, w2, b2 = params
    N, C, H, W = x_nchw.shape
    C_MID = w1.shape[-1]
    WPP = ((W + 2 + 7) // 8) * 8            # padded width, multiple of 8 sublanes

    b_blk = _pick_batch_block(N, H, W, C, C_MID, WPP)
    G = N // b_blk

    x_nhwc = jnp.transpose(x_nchw, (0, 2, 3, 1)).astype(jnp.float32)

    # Matmul-ready packed weights / biases (tiny one-time XLA ops).
    w1p = w1.reshape(9 * C, C_MID).astype(jnp.float32)                # (72, 128)
    w2p = jnp.transpose(w2, (0, 2, 1, 3)).reshape(3 * C_MID, 3 * C)
    w2p = w2p.astype(jnp.float32)                                     # (384, 24)
    b1r = b1.reshape(1, C_MID).astype(jnp.float32)
    b2t = jnp.tile(b2.reshape(1, C), (1, W)).astype(jnp.float32)      # (1, W*C)

    kernel = functools.partial(_masknet_kernel, H=H, W=W, C_IN=C,
                               C_MID=C_MID, B=b_blk, WPP=WPP)

    out_flat, cnt = pl.pallas_call(
        kernel,
        out_shape=(
            jax.ShapeDtypeStruct((N, H, W * C), jnp.float32),
            jax.ShapeDtypeStruct((G, 1, 128), jnp.int32),
        ),
        grid_spec=pltpu.PrefetchScalarGridSpec(
            num_scalar_prefetch=0,
            grid=(G,),
            in_specs=[
                pl.BlockSpec((b_blk, H, W, C), lambda n: (n, 0, 0, 0)),
                pl.BlockSpec((9 * C, C_MID), lambda n: (0, 0)),
                pl.BlockSpec((1, C_MID), lambda n: (0, 0)),
                pl.BlockSpec((3 * C_MID, 3 * C), lambda n: (0, 0)),
                pl.BlockSpec((1, W * C), lambda n: (0, 0)),
            ],
            out_specs=[
                pl.BlockSpec((b_blk, H, W * C), lambda n: (n, 0, 0)),
                pl.BlockSpec((1, 1, 128), lambda n: (n, 0, 0)),
            ],
            scratch_shapes=[
                pltpu.VMEM((b_blk, H + 2, WPP, C), jnp.float32),
                pltpu.VMEM((b_blk, H + 2, WPP, C_MID), jnp.float32),
            ],
        ),
        compiler_params=pltpu.CompilerParams(
            dimension_semantics=("parallel",),   # no cross-step state at all
            vmem_limit_bytes=48 * 1024 * 1024,
        ),
    )(x_nhwc, w1p, b1r, w2p, b2t)

    out_nchw = jnp.transpose(out_flat.reshape(N, H, W, C), (0, 3, 1, 2))
    zero_cnt = jnp.sum(cnt[:, 0, 0])             # one int32 per grid step
    return out_nchw, zero_cnt


class MaskNet:
    """JAX/Pallas port of the PyTorch MaskNet module (deterministic init)."""

    def __init__(self, input_dim=32, key=None):
        key = jax.random.PRNGKey(0) if key is None else key
        k1, k2, k3, k4 = jax.random.split(key, 4)
        c_mid = 128
        lim1 = 1.0 / float(input_dim * 9) ** 0.5   # conv1 fan_in = Cin*3*3
        lim2 = 1.0 / float(c_mid * 9) ** 0.5       # conv2 fan_in = 128*3*3
        # HWIO weight layout (kh, kw, c_in, c_out)
        self.w1 = jax.random.uniform(k1, (3, 3, input_dim, c_mid),
                                     jnp.float32, -lim1, lim1)
        self.b1 = jax.random.uniform(k2, (1, c_mid), jnp.float32, -lim1, lim1)
        self.w2 = jax.random.uniform(k3, (3, 3, c_mid, input_dim),
                                     jnp.float32, -lim2, lim2)
        self.b2 = jax.random.uniform(k4, (1, input_dim), jnp.float32, -lim2, lim2)
        self.total_mask_percentage = 0.0

    def __call__(self, x_nchw):
        out, zero_cnt = masknet_forward(
            x_nchw, (self.w1, self.b1, self.w2, self.b2))
        total_elements = x_nchw.size
        # TODO(synk): float(zero_cnt) forces a device->host sync (parity with
        # the PyTorch `.item()` + print); in a training loop accumulate the
        # count on-device and only materialize it occasionally.
        mask_percentage = float(zero_cnt) / total_elements * 100.0
        print(f'Proportion of masking area:: {mask_percentage:.2f}%')
        self.total_mask_percentage += mask_percentage
        return out


if __name__ == "__main__":
    key = jax.random.PRNGKey(0)
    k_in, k_par = jax.random.split(key)

    # Small shapes consistent with the module: NCHW input with C == input_dim
    # (W*C = 128 makes the output store and the mask section exactly lane-dense).
    N, C, H, W = 2, 8, 16, 16
    x = jax.random.normal(k_in, (N, C, H, W), jnp.float32)

    net = MaskNet(input_dim=C, key=k_par)
    out = net(x)
    jax.block_until_ready(out)

    assert out.shape == (N, C, H, W)
    print("KERNEL_OK")
</pallas_src>

<mosaic_0001>
module attributes {stable_mosaic.version = 11 : i64} {
  func.func @_masknet_kernel(%arg0: i32, %arg1: memref<2x16x16x8xf32, #tpu.memory_space<vmem>>, %arg2: memref<72x128xf32, #tpu.memory_space<vmem>>, %arg3: memref<1x128xf32, #tpu.memory_space<vmem>>, %arg4: memref<384x24xf32, #tpu.memory_space<vmem>>, %arg5: memref<1x128xf32, #tpu.memory_space<vmem>>, %arg6: memref<2x16x128xf32, #tpu.memory_space<vmem>>, %arg7: memref<1x1x128xi32, #tpu.memory_space<vmem>>, %arg8: memref<2x18x24x8xf32, #tpu.memory_space<vmem>>, %arg9: memref<2x18x24x128xf32, #tpu.memory_space<vmem>>) attributes {dimension_semantics = [#tpu.dimension_semantics<parallel>], iteration_bounds = array<i64: 1>, scalar_prefetch = 0 : i64, scratch_operands = 2 : i64, tpu.core_type = #tpu.core_type<tc>, window_params = [{transform_indices = @transform_0, window_bounds = array<i64: 2, 16, 16, 8>}, {pipeline_mode = #tpu.pipeline_mode<synchronous>, transform_indices = @transform_1, window_bounds = array<i64: 72, 128>}, {pipeline_mode = #tpu.pipeline_mode<synchronous>, transform_indices = @transform_2, window_bounds = array<i64: 1, 128>}, {pipeline_mode = #tpu.pipeline_mode<synchronous>, transform_indices = @transform_3, window_bounds = array<i64: 384, 24>}, {pipeline_mode = #tpu.pipeline_mode<synchronous>, transform_indices = @transform_4, window_bounds = array<i64: 1, 128>}, {transform_indices = @transform_5, window_bounds = array<i64: 2, 16, 128>}, {transform_indices = @transform_6, window_bounds = array<i64: 1, 1, 128>}]} {
    %c0 = arith.constant 0 : index
    %c0_0 = arith.constant 0 : index
    %c0_1 = arith.constant 0 : index
    %c0_2 = arith.constant 0 : index
    %0 = vector.load %arg1[%c0, %c0_0, %c0_1, %c0_2] : memref<2x16x16x8xf32, #tpu.memory_space<vmem>>, vector<2x16x16x8xf32>
    %cst = arith.constant 0.000000e+00 : f32
    %1 = vector.broadcast %cst : f32 to vector<2x18x24x8xf32>
    %c0_3 = arith.constant 0 : index
    %c0_4 = arith.constant 0 : index
    %c0_5 = arith.constant 0 : index
    %c0_6 = arith.constant 0 : index
    %2 = vector.load %arg8[%c0_3, %c0_4, %c0_5, %c0_6] : memref<2x18x24x8xf32, #tpu.memory_space<vmem>>, vector<2x18x24x8xf32>
    tpu.vector_store %arg8[%c0_3, %c0_4, %c0_5, %c0_6], %1 {strides = array<i32>} : memref<2x18x24x8xf32, #tpu.memory_space<vmem>>, vector<2x18x24x8xf32>,
    %c0_7 = arith.constant 0 : index
    %c1 = arith.constant 1 : index
    %c1_8 = arith.constant 1 : index
    %c0_9 = arith.constant 0 : index
    %3 = vector.load %arg8[%c0_7, %c1, %c1_8, %c0_9] : memref<2x18x24x8xf32, #tpu.memory_space<vmem>>, vector<2x16x16x8xf32>
    tpu.vector_store %arg8[%c0_7, %c1, %c1_8, %c0_9], %0 {strides = array<i32>} : memref<2x18x24x8xf32, #tpu.memory_space<vmem>>, vector<2x16x16x8xf32>,
    %c0_10 = arith.constant 0 : index
    %c0_11 = arith.constant 0 : index
    %c0_12 = arith.constant 0 : index
    %c0_13 = arith.constant 0 : index
    %4 = vector.load %arg8[%c0_10, %c0_11, %c0_12, %c0_13] : memref<2x18x24x8xf32, #tpu.memory_space<vmem>>, vector<2x18x16x8xf32>
    %c0_14 = arith.constant 0 : index
    %c0_15 = arith.constant 0 : index
    %c1_16 = arith.constant 1 : index
    %c0_17 = arith.constant 0 : index
    %5 = vector.load %arg8[%c0_14, %c0_15, %c1_16, %c0_17] : memref<2x18x24x8xf32, #tpu.memory_space<vmem>>, vector<2x18x16x8xf32>
    %c0_18 = arith.constant 0 : index
    %c0_19 = arith.constant 0 : index
    %c2 = arith.constant 2 : index
    %c0_20 = arith.constant 0 : index
    %6 = vector.load %arg8[%c0_18, %c0_19, %c2, %c0_20] : memref<2x18x24x8xf32, #tpu.memory_space<vmem>>, vector<2x18x16x8xf32>
    %7 = tpu.concatenate %4, %5, %6 in 3 : vector<2x18x16x8xf32>, vector<2x18x16x8xf32>, vector<2x18x16x8xf32> -> vector<2x18x16x24xf32>
    %8 = vector.extract_strided_slice %7 {offsets = [0, 0, 0, 0], sizes = [2, 16, 16, 24], strides = [1, 1, 1, 1]} : vector<2x18x16x24xf32> to vector<2x16x16x24xf32>
    %9 = vector.extract_strided_slice %7 {offsets = [0, 1, 0, 0], sizes = [2, 16, 16, 24], strides = [1, 1, 1, 1]} : vector<2x18x16x24xf32> to vector<2x16x16x24xf32>
    %10 = vector.extract_strided_slice %7 {offsets = [0, 2, 0, 0], sizes = [2, 16, 16, 24], strides = [1, 1, 1, 1]} : vector<2x18x16x24xf32> to vector<2x16x16x24xf32>
    %11 = tpu.concatenate %8, %9, %10 in 3 : vector<2x16x16x24xf32>, vector<2x16x16x24xf32>, vector<2x16x16x24xf32> -> vector<2x16x16x72xf32>
    %12 = vector.shape_cast %11 : vector<2x16x16x72xf32> to vector<512x72xf32>
    %c0_21 = arith.constant 0 : index
    %c0_22 = arith.constant 0 : index
    %13 = vector.load %arg2[%c0_21, %c0_22] : memref<72x128xf32, #tpu.memory_space<vmem>>, vector<72x128xf32>
    %cst_23 = arith.constant dense<0.000000e+00> : vector<512x128xf32>
    %14 = tpu.matmul %12, %13, %cst_23 {dimension_numbers = #tpu.dot_dimension_numbers<[1], [0], [0], [1], [0, 0, 1, 1], [], []>} : vector<512x72xf32>, vector<72x128xf32>, vector<512x128xf32> -> vector<512x128xf32>
    %c0_24 = arith.constant 0 : index
    %c0_25 = arith.constant 0 : index
    %15 = vector.load %arg3[%c0_24, %c0_25] : memref<1x128xf32, #tpu.memory_space<vmem>>, vector<1x128xf32>
    %16 = vector.broadcast %15 : vector<1x128xf32> to vector<512x128xf32>
    %17 = arith.addf %14, %16 : vector<512x128xf32>
    %cst_26 = arith.constant 0.000000e+00 : f32
    %18 = vector.broadcast %cst_26 : f32 to vector<512x128xf32>
    %19 = arith.maximumf %17, %18 : vector<512x128xf32>
    %20 = vector.shape_cast %19 : vector<512x128xf32> to vector<2x16x16x128xf32>
    %cst_27 = arith.constant 0.000000e+00 : f32
    %21 = vector.broadcast %cst_27 : f32 to vector<2x1x24x128xf32>
    %c0_28 = arith.constant 0 : index
    %c0_29 = arith.constant 0 : index
    %c0_30 = arith.constant 0 : index
    %c0_31 = arith.constant 0 : index
    %22 = vector.load %arg9[%c0_28, %c0_29, %c0_30, %c0_31] : memref<2x18x24x128xf32, #tpu.memory_space<vmem>>, vector<2x1x24x128xf32>
    tpu.vector_store %arg9[%c0_28, %c0_29, %c0_30, %c0_31], %21 {strides = array<i32>} : memref<2x18x24x128xf32, #tpu.memory_space<vmem>>, vector<2x1x24x128xf32>,
    %cst_32 = arith.constant 0.000000e+00 : f32
    %23 = vector.broadcast %cst_32 : f32 to vector<2x1x24x128xf32>
    %c0_33 = arith.constant 0 : index
    %c17 = arith.constant 17 : index
    %c0_34 = arith.constant 0 : index
    %c0_35 = arith.constant 0 : index
    %24 = vector.load %arg9[%c0_33, %c17, %c0_34, %c0_35] : memref<2x18x24x128xf32, #tpu.memory_space<vmem>>, vector<2x1x24x128xf32>
    tpu.vector_store %arg9[%c0_33, %c17, %c0_34, %c0_35], %23 {strides = array<i32>} : memref<2x18x24x128xf32, #tpu.memory_space<vmem>>, vector<2x1x24x128xf32>,
    %cst_36 = arith.constant 0.000000e+00 : f32
    %25 = vector.broadcast %cst_36 : f32 to vector<2x16x1x128xf32>
    %c0_37 = arith.constant 0 : index
    %c1_38 = arith.constant 1 : index
    %c0_39 = arith.constant 0 : index
    %c0_40 = arith.constant 0 : index
    %26 = vector.load %arg9[%c0_37, %c1_38, %c0_39, %c0_40] : memref<2x18x24x128xf32, #tpu.memory_space<vmem>>, vector<2x16x1x128xf32>
    tpu.vector_store %arg9[%c0_37, %c1_38, %c0_39, %c0_40], %25 {strides = array<i32>} : memref<2x18x24x128xf32, #tpu.memory_space<vmem>>, vector<2x16x1x128xf32>,
    %cst_41 = arith.constant 0.000000e+00 : f32
    %27 = vector.broadcast %cst_41 : f32 to vector<2x16x1x128xf32>
    %c0_42 = arith.constant 0 : index
    %c1_43 = arith.constant 1 : index
    %c17_44 = arith.constant 17 : index
    %c0_45 = arith.constant 0 : index
    %28 = vector.load %arg9[%c0_42, %c1_43, %c17_44, %c0_45] : memref<2x18x24x128xf32, #tpu.memory_space<vmem>>, vector<2x16x1x128xf32>
    tpu.vector_store %arg9[%c0_42, %c1_43, %c17_44, %c0_45], %27 {strides = array<i32>} : memref<2x18x24x128xf32, #tpu.memory_space<vmem>>, vector<2x16x1x128xf32>,
    %c0_46 = arith.constant 0 : index
    %c1_47 = arith.constant 1 : index
    %c1_48 = arith.constant 1 : index
    %c0_49 = arith.constant 0 : index
    %29 = vector.load %arg9[%c0_46, %c1_47, %c1_48, %c0_49] : memref<2x18x24x128xf32, #tpu.memory_space<vmem>>, vector<2x16x16x128xf32>
    tpu.vector_store %arg9[%c0_46, %c1_47, %c1_48, %c0_49], %20 {strides = array<i32>} : memref<2x18x24x128xf32, #tpu.memory_space<vmem>>, vector<2x16x16x128xf32>,
    %c0_50 = arith.constant 0 : index
    %c0_51 = arith.constant 0 : index
    %c0_52 = arith.constant 0 : index
    %c0_53 = arith.constant 0 : index
    %30 = vector.load %arg9[%c0_50, %c0_51, %c0_52, %c0_53] : memref<2x18x24x128xf32, #tpu.memory_space<vmem>>, vector<2x16x24x128xf32>
    %c0_54 = arith.constant 0 : index
    %c1_55 = arith.constant 1 : index
    %c0_56 = arith.constant 0 : index
    %c0_57 = arith.constant 0 : index
    %31 = vector.load %arg9[%c0_54, %c1_55, %c0_56, %c0_57] : memref<2x18x24x128xf32, #tpu.memory_space<vmem>>, vector<2x16x24x128xf32>
    %c0_58 = arith.constant 0 : index
    %c2_59 = arith.constant 2 : index
    %c0_60 = arith.constant 0 : index
    %c0_61 = arith.constant 0 : index
    %32 = vector.load %arg9[%c0_58, %c2_59, %c0_60, %c0_61] : memref<2x18x24x128xf32, #tpu.memory_space<vmem>>, vector<2x16x24x128xf32>
    %33 = tpu.concatenate %30, %31, %32 in 3 : vector<2x16x24x128xf32>, vector<2x16x24x128xf32>, vector<2x16x24x128xf32> -> vector<2x16x24x384xf32>
    %34 = vector.shape_cast %33 : vector<2x16x24x384xf32> to vector<768x384xf32>
    %c0_62 = arith.constant 0 : index
    %c0_63 = arith.constant 0 : index
    %35 = vector.load %arg4[%c0_62, %c0_63] : memref<384x24xf32, #tpu.memory_space<vmem>>, vector<384x24xf32>
    %cst_64 = arith.constant dense<0.000000e+00> : vector<768x24xf32>
    %36 = tpu.matmul %34, %35, %cst_64 {dimension_numbers = #tpu.dot_dimension_numbers<[1], [0], [0], [1], [0, 0, 1, 1], [], []>} : vector<768x384xf32>, vector<384x24xf32>, vector<768x24xf32> -> vector<768x24xf32>
    %37 = vector.shape_cast %36 : vector<768x24xf32> to vector<2x16x24x24xf32>
    %38 = vector.extract_strided_slice %37 {offsets = [0, 0, 0, 0], sizes = [2, 16, 16, 8], strides = [1, 1, 1, 1]} : vector<2x16x24x24xf32> to vector<2x16x16x8xf32>
    %39 = vector.extract_strided_slice %37 {offsets = [0, 0, 1, 8], sizes = [2, 16, 16, 8], strides = [1, 1, 1, 1]} : vector<2x16x24x24xf32> to vector<2x16x16x8xf32>
    %40 = arith.addf %38, %39 : vector<2x16x16x8xf32>
    %41 = vector.extract_strided_slice %37 {offsets = [0, 0, 2, 16], sizes = [2, 16, 16, 8], strides = [1, 1, 1, 1]} : vector<2x16x24x24xf32> to vector<2x16x16x8xf32>
    %42 = arith.addf %40, %41 : vector<2x16x16x8xf32>
    %43 = vector.shape_cast %0 : vector<2x16x16x8xf32> to vector<2x16x128xf32>
    %44 = vector.shape_cast %42 : vector<2x16x16x8xf32> to vector<2x16x128xf32>
    %c0_65 = arith.constant 0 : index
    %c0_66 = arith.constant 0 : index
    %45 = vector.load %arg5[%c0_65, %c0_66] : memref<1x128xf32, #tpu.memory_space<vmem>>, vector<1x128xf32>
    %46 = vector.shape_cast %45 : vector<1x128xf32> to vector<1x1x128xf32>
    %47 = vector.broadcast %46 : vector<1x1x128xf32> to vector<2x16x128xf32>
    %48 = arith.addf %44, %47 : vector<2x16x128xf32>
    %49 = math.absf %43 : vector<2x16x128xf32>
    %50 = arith.addf %48, %49 : vector<2x16x128xf32>
    %cst_67 = arith.constant 0.000000e+00 : f32
    %51 = vector.broadcast %cst_67 : f32 to vector<2x16x128xf32>
    %52 = arith.cmpf ogt, %50, %51 : vector<2x16x128xf32>
    %cst_68 = arith.constant 1.000000e+00 : f32
    %cst_69 = arith.constant 0.000000e+00 : f32
    %53 = vector.broadcast %cst_68 : f32 to vector<2x16x128xf32>
    %54 = vector.broadcast %cst_69 : f32 to vector<2x16x128xf32>
    %55 = arith.select %52, %53, %54 : vector<2x16x128xi1>, vector<2x16x128xf32>
    %56 = arith.mulf %43, %55 : vector<2x16x128xf32>
    %c0_70 = arith.constant 0 : index
    %c0_71 = arith.constant 0 : index
    %c0_72 = arith.constant 0 : index
    %57 = vector.load %arg6[%c0_70, %c0_71, %c0_72] : memref<2x16x128xf32, #tpu.memory_space<vmem>>, vector<2x16x128xf32>
    tpu.vector_store %arg6[%c0_70, %c0_71, %c0_72], %56 {strides = array<i32>} : memref<2x16x128xf32, #tpu.memory_space<vmem>>, vector<2x16x128xf32>,
    %58 = vector.shape_cast %55 : vector<2x16x128xf32> to vector<1x2x16x128xf32>
    %cst_73 = arith.constant dense<0.000000e+00> : vector<1xf32>
    %59 = vector.multi_reduction <add>, %58, %cst_73 [1, 2, 3] : vector<1x2x16x128xf32> to vector<1xf32>
    %60 = vector.shape_cast %59 : vector<1xf32> to vector<1x1x1x1xf32>
    %61 = vector.extract %60[0, 0, 0, 0] : f32 from vector<1x1x1x1xf32>
    %cst_74 = arith.constant 4.096000e+03 : f32
    %62 = arith.subf %cst_74, %61 : f32
    %cst_75 = arith.constant 0.000000e+00 : f32
    %63 = vector.broadcast %cst_75 : f32 to vector<1x1x128xf32>
    %64 = vector.broadcast %62 : f32 to vector<1x1x128xf32>
    %65 = arith.addf %63, %64 : vector<1x1x128xf32>
    %66 = arith.fptosi %65 : vector<1x1x128xf32> to vector<1x1x128xi32>
    %c0_76 = arith.constant 0 : index
    %c0_77 = arith.constant 0 : index
    %c0_78 = arith.constant 0 : index
    %67 = vector.load %arg7[%c0_76, %c0_77, %c0_78] : memref<1x1x128xi32, #tpu.memory_space<vmem>>, vector<1x1x128xi32>
    tpu.vector_store %arg7[%c0_76, %c0_77, %c0_78], %66 {strides = array<i32>} : memref<1x1x128xi32, #tpu.memory_space<vmem>>, vector<1x1x128xi32>,
    return
  }
  func.func @transform_0(%arg0: i32) -> (i32, i32, i32, i32) {
    %c0_i32 = arith.constant 0 : i32
    %c0_i32_0 = arith.constant 0 : i32
    %c0_i32_1 = arith.constant 0 : i32
    %c0_i32_2 = arith.constant 0 : i32
    return %arg0, %c0_i32, %c0_i32_0, %c0_i32_1 : i32, i32, i32, i32
  }
  func.func @transform_1(%arg0: i32) -> (i32, i32) {
    %c0_i32 = arith.constant 0 : i32
    %c0_i32_0 = arith.constant 0 : i32
    %c0_i32_1 = arith.constant 0 : i32
    return %c0_i32, %c0_i32_0 : i32, i32
  }
  func.func @transform_2(%arg0: i32) -> (i32, i32) {
    %c0_i32 = arith.constant 0 : i32
    %c0_i32_0 = arith.constant 0 : i32
    %c0_i32_1 = arith.constant 0 : i32
    return %c0_i32, %c0_i32_0 : i32, i32
  }
  func.func @transform_3(%arg0: i32) -> (i32, i32) {
    %c0_i32 = arith.constant 0 : i32
    %c0_i32_0 = arith.constant 0 : i32
    %c0_i32_1 = arith.constant 0 : i32
    return %c0_i32, %c0_i32_0 : i32, i32
  }
  func.func @transform_4(%arg0: i32) -> (i32, i32) {
    %c0_i32 = arith.constant 0 : i32
    %c0_i32_0 = arith.constant 0 : i32
    %c0_i32_1 = arith.constant 0 : i32
    return %c0_i32, %c0_i32_0 : i32, i32
  }
  func.func @transform_5(%arg0: i32) -> (i32, i32, i32) {
    %c0_i32 = arith.constant 0 : i32
    %c0_i32_0 = arith.constant 0 : i32
    %c0_i32_1 = arith.constant 0 : i32
    return %arg0, %c0_i32, %c0_i32_0 : i32, i32, i32
  }
  func.func @transform_6(%arg0: i32) -> (i32, i32, i32) {
    %c0_i32 = arith.constant 0 : i32
    %c0_i32_0 = arith.constant 0 : i32
    %c0_i32_1 = arith.constant 0 : i32
    return %arg0, %c0_i32, %c0_i32_0 : i32, i32, i32
  }
}

</mosaic_0001>

<bundles_post_ra>
// kernel: masknet_forward.1
= control target key start
LH: loop header
LB: loop body
LE: loop exit
PB: predicated region body
PF: predicated region fallthrough
CT: control target
= control target key end

     0   :  { %vm87_vm0 = vcmask 64512   ;;  %v8515_v3 = vmov 0.0   ;;  %s13449_s0 = inlined_call_operand.vmem [shape: f32[2,16,16,8], index: 0, kind: input, shape index: {}]   ;;  %s13450_s1 = inlined_call_operand.vmem [shape: f32[72,128], index: 1, kind: input, shape index: {}]   ;;  %s13451_s2 = inlined_call_operand.vmem [shape: f32[1,128], index: 2, kind: input, shape index: {}]   ;;  %s13452_s3 = inlined_call_operand.vmem [shape: f32[384,24], index: 3, kind: input, shape index: {}]   ;;  %s13453_s4 = inlined_call_operand.vmem [shape: f32[1,128], index: 4, kind: input, shape index: {}]   ;;  %s13454_s5 = inlined_call_operand.vmem [shape: f32[2,16,128], index: 5, kind: output, shape index: {0}]   ;;  %s13455_s6 = inlined_call_operand.hbm [shape: s32[1,1,128], index: 6, kind: output, shape index: {1}]  }
   0x1   :  { %v8573_v0 = vld [vmem:[%s13449_s0 + $0x10] sm:$0xff]  ;;  %v8578_v1 = vld [vmem:[%s13449_s0] sm:$0xff]  ;;  %v8583_v2 = vld [vmem:[%s13449_s0 + $0x8] sm:$0xff]  ;;  %94 = vst.msk [vmem:[#allocation2 + $0x30] sm:$0xff] %vm87_vm0, %v8515_v3 }
   0x2   :  { %13635 = vst [vmem:[#allocation7_spill] sm:$0xff] %v8583_v2  ;;  %95 = vst.msk [vmem:[#allocation2 + $0x38] sm:$0xff] %vm87_vm0, %v8515_v3  ;;  %v8869_v4 = vld [vmem:[%s13449_s0 + $0x18] sm:$0xff]  ;;  %v8874_v5 = vld [vmem:[%s13449_s0 + $0x28] sm:$0xff] }
   0x3   :  { %88 = vst.msk [vmem:[#allocation2] sm:$0xff] %vm87_vm0, %v8515_v3  ;;  %89 = vst.msk [vmem:[#allocation2 + $0x8] sm:$0xff] %vm87_vm0, %v8515_v3  ;;  %v8879_v6 = vld [vmem:[%s13449_s0 + $0x20] sm:$0xff]  ;;  %v8896_v7 = vld [vmem:[%s13449_s0 + $0x38] sm:$0xff] }
   0x4   :  { %90 = vst.msk [vmem:[#allocation2 + $0x10] sm:$0xff] %vm87_vm0, %v8515_v3  ;;  %91 = vst.msk [vmem:[#allocation2 + $0x18] sm:$0xff] %vm87_vm0, %v8515_v3  ;;  %v8901_v8 = vld [vmem:[%s13449_s0 + $0x30] sm:$0xff]  ;;  %v8906_v9 = vld [vmem:[%s13449_s0 + $0x48] sm:$0xff] }
   0x5   :  { %92 = vst.msk [vmem:[#allocation2 + $0x20] sm:$0xff] %vm87_vm0, %v8515_v3  ;;  %93 = vst.msk [vmem:[#allocation2 + $0x28] sm:$0xff] %vm87_vm0, %v8515_v3  ;;  %v8917_v10 = vld [vmem:[%s13449_s0 + $0x40] sm:$0xff]  ;;  %v8922_v11 = vld [vmem:[%s13449_s0 + $0x58] sm:$0xff] }
   0x6   :  { %96 = vst.msk [vmem:[#allocation2 + $0x40] sm:$0xff] %vm87_vm0, %v8515_v3  ;;  %97 = vst.msk [vmem:[#allocation2 + $0x48] sm:$0xff] %vm87_vm0, %v8515_v3  ;;  %v8927_v12 = vld [vmem:[%s13449_s0 + $0x50] sm:$0xff]  ;;  %v8938_v13 = vld [vmem:[%s13449_s0 + $0x60] sm:$0xff] }
   0x7   :  { %98 = vst.msk [vmem:[#allocation2 + $0x50] sm:$0xff] %vm87_vm0, %v8515_v3  ;;  %99 = vst.msk [vmem:[#allocation2 + $0x58] sm:$0xff] %vm87_vm0, %v8515_v3  ;;  %v8943_v14 = vld [vmem:[%s13449_s0 + $0x68] sm:$0xff]  ;;  %v8948_v15 = vld [vmem:[%s13449_s0 + $0x70] sm:$0xff] }
   0x8   :  { %100 = vst.msk [vmem:[#allocation2 + $0x60] sm:$0xff] %vm87_vm0, %v8515_v3  ;;  %101 = vst.msk [vmem:[#allocation2 + $0x68] sm:$0xff] %vm87_vm0, %v8515_v3  ;;  %v8959_v16 = vld [vmem:[%s13449_s0 + $0x78] sm:$0xff]  ;;  %v8964_v17 = vld [vmem:[%s13449_s0 + $0x88] sm:$0xff] }
   0x9   :  { %102 = vst.msk [vmem:[#allocation2 + $0x70] sm:$0xff] %vm87_vm0, %v8515_v3  ;;  %103 = vst.msk [vmem:[#allocation2 + $0x78] sm:$0xff] %vm87_vm0, %v8515_v3  ;;  %v8969_v18 = vld [vmem:[%s13449_s0 + $0x80] sm:$0xff]  ;;  %v8980_v19 = vld [vmem:[%s13449_s0 + $0x90] sm:$0xff] }
   0xa   :  { %104 = vst.msk [vmem:[#allocation2 + $0x80] sm:$0xff] %vm87_vm0, %v8515_v3  ;;  %105 = vst.msk [vmem:[#allocation2 + $0x88] sm:$0xff] %vm87_vm0, %v8515_v3  ;;  %v8985_v20 = vld [vmem:[%s13449_s0 + $0x98] sm:$0xff]  ;;  %v8990_v21 = vld [vmem:[%s13449_s0 + $0xa0] sm:$0xff] }
   0xb   :  { %106 = vst.msk [vmem:[#allocation2 + $0x90] sm:$0xff] %vm87_vm0, %v8515_v3  ;;  %107 = vst.msk [vmem:[#allocation2 + $0x98] sm:$0xff] %vm87_vm0, %v8515_v3  ;;  %v9001_v22 = vld [vmem:[%s13449_s0 + $0xa8] sm:$0xff] }
   0xc   :  { %108 = vst.msk [vmem:[#allocation2 + $0xa0] sm:$0xff] %vm87_vm0, %v8515_v3  ;;  %109 = vst.msk [vmem:[#allocation2 + $0xa8] sm:$0xff] %vm87_vm0, %v8515_v3 }
   0xd   :  { %110 = vst.msk [vmem:[#allocation2 + $0xb0] sm:$0xff] %vm87_vm0, %v8515_v3  ;;  %111 = vst.msk [vmem:[#allocation2 + $0xb8] sm:$0xff] %vm87_vm0, %v8515_v3 }
   0xe   :  { %112 = vst.msk [vmem:[#allocation2 + $0xc0] sm:$0xff] %vm87_vm0, %v8515_v3  ;;  %113 = vst.msk [vmem:[#allocation2 + $0xc8] sm:$0xff] %vm87_vm0, %v8515_v3 }
   0xf   :  { %114 = vst.msk [vmem:[#allocation2 + $0xd0] sm:$0xff] %vm87_vm0, %v8515_v3  ;;  %115 = vst.msk [vmem:[#allocation2 + $0xd8] sm:$0xff] %vm87_vm0, %v8515_v3 }
  0x10   :  { %116 = vst.msk [vmem:[#allocation2 + $0xe0] sm:$0xff] %vm87_vm0, %v8515_v3  ;;  %117 = vst.msk [vmem:[#allocation2 + $0xe8] sm:$0xff] %vm87_vm0, %v8515_v3 }
  0x11   :  { %118 = vst.msk [vmem:[#allocation2 + $0xf0] sm:$0xff] %vm87_vm0, %v8515_v3  ;;  %119 = vst.msk [vmem:[#allocation2 + $0xf8] sm:$0xff] %vm87_vm0, %v8515_v3 }
  0x12   :  { %120 = vst.msk [vmem:[#allocation2 + $0x100] sm:$0xff] %vm87_vm0, %v8515_v3  ;;  %121 = vst.msk [vmem:[#allocation2 + $0x108] sm:$0xff] %vm87_vm0, %v8515_v3 }
  0x13   :  { %122 = vst.msk [vmem:[#allocation2 + $0x110] sm:$0xff] %vm87_vm0, %v8515_v3  ;;  %123 = vst.msk [vmem:[#allocation2 + $0x118] sm:$0xff] %vm87_vm0, %v8515_v3 }
  0x14   :  { %124 = vst.msk [vmem:[#allocation2 + $0x120] sm:$0xff] %vm87_vm0, %v8515_v3  ;;  %125 = vst.msk [vmem:[#allocation2 + $0x128] sm:$0xff] %vm87_vm0, %v8515_v3 }
  0x15   :  { %126 = vst.msk [vmem:[#allocation2 + $0x130] sm:$0xff] %vm87_vm0, %v8515_v3  ;;  %127 = vst.msk [vmem:[#allocation2 + $0x138] sm:$0xff] %vm87_vm0, %v8515_v3 }
  0x16   :  { %128 = vst.msk [vmem:[#allocation2 + $0x140] sm:$0xff] %vm87_vm0, %v8515_v3  ;;  %129 = vst.msk [vmem:[#allocation2 + $0x148] sm:$0xff] %vm87_vm0, %v8515_v3 }
  0x17   :  { %130 = vst.msk [vmem:[#allocation2 + $0x150] sm:$0xff] %vm87_vm0, %v8515_v3  ;;  %131 = vst.msk [vmem:[#allocation2 + $0x158] sm:$0xff] %vm87_vm0, %v8515_v3 }
  0x18   :  { %132 = vst.msk [vmem:[#allocation2 + $0x160] sm:$0xff] %vm87_vm0, %v8515_v3  ;;  %133 = vst.msk [vmem:[#allocation2 + $0x168] sm:$0xff] %vm87_vm0, %v8515_v3 }
  0x19   :  { %134 = vst.msk [vmem:[#allocation2 + $0x170] sm:$0xff] %vm87_vm0, %v8515_v3  ;;  %135 = vst.msk [vmem:[#allocation2 + $0x178] sm:$0xff] %vm87_vm0, %v8515_v3 }
  0x1a   :  { %136 = vst.msk [vmem:[#allocation2 + $0x180] sm:$0xff] %vm87_vm0, %v8515_v3  ;;  %137 = vst.msk [vmem:[#allocation2 + $0x188] sm:$0xff] %vm87_vm0, %v8515_v3 }
  0x1b   :  { %138 = vst.msk [vmem:[#allocation2 + $0x190] sm:$0xff] %vm87_vm0, %v8515_v3  ;;  %139 = vst.msk [vmem:[#allocation2 + $0x198] sm:$0xff] %vm87_vm0, %v8515_v3 }
  0x1c   :  { %140 = vst.msk [vmem:[#allocation2 + $0x1a0] sm:$0xff] %vm87_vm0, %v8515_v3  ;;  %141 = vst.msk [vmem:[#allocation2 + $0x1a8] sm:$0xff] %vm87_vm0, %v8515_v3 }
  0x1d   :  { %142 = vst.msk [vmem:[#allocation2 + $0x1b0] sm:$0xff] %vm87_vm0, %v8515_v3  ;;  %143 = vst.msk [vmem:[#allocation2 + $0x1b8] sm:$0xff] %vm87_vm0, %v8515_v3 }
  0x1e   :  { %144 = vst.msk [vmem:[#allocation2 + $0x1c0] sm:$0xff] %vm87_vm0, %v8515_v3  ;;  %145 = vst.msk [vmem:[#allocation2 + $0x1c8] sm:$0xff] %vm87_vm0, %v8515_v3 }
  0x1f   :  { %146 = vst.msk [vmem:[#allocation2 + $0x1d0] sm:$0xff] %vm87_vm0, %v8515_v3  ;;  %147 = vst.msk [vmem:[#allocation2 + $0x1d8] sm:$0xff] %vm87_vm0, %v8515_v3 }
  0x20   :  { %148 = vst.msk [vmem:[#allocation2 + $0x1e0] sm:$0xff] %vm87_vm0, %v8515_v3  ;;  %149 = vst.msk [vmem:[#allocation2 + $0x1e8] sm:$0xff] %vm87_vm0, %v8515_v3 }
  0x21   :  { %150 = vst.msk [vmem:[#allocation2 + $0x1f0] sm:$0xff] %vm87_vm0, %v8515_v3  ;;  %151 = vst.msk [vmem:[#allocation2 + $0x1f8] sm:$0xff] %vm87_vm0, %v8515_v3 }
  0x22   :  { %152 = vst.msk [vmem:[#allocation2 + $0x200] sm:$0xff] %vm87_vm0, %v8515_v3  ;;  %153 = vst.msk [vmem:[#allocation2 + $0x208] sm:$0xff] %vm87_vm0, %v8515_v3 }
  0x23   :  { %154 = vst.msk [vmem:[#allocation2 + $0x210] sm:$0xff] %vm87_vm0, %v8515_v3  ;;  %155 = vst.msk [vmem:[#allocation2 + $0x218] sm:$0xff] %vm87_vm0, %v8515_v3 }
  0x24   :  { %156 = vst.msk [vmem:[#allocation2 + $0x220] sm:$0xff] %vm87_vm0, %v8515_v3  ;;  %157 = vst.msk [vmem:[#allocation2 + $0x228] sm:$0xff] %vm87_vm0, %v8515_v3 }
  0x25   :  { %158 = vst.msk [vmem:[#allocation2 + $0x230] sm:$0xff] %vm87_vm0, %v8515_v3  ;;  %159 = vst.msk [vmem:[#allocation2 + $0x238] sm:$0xff] %vm87_vm0, %v8515_v3 }
  0x26   :  { %160 = vst.msk [vmem:[#allocation2 + $0x240] sm:$0xff] %vm87_vm0, %v8515_v3  ;;  %161 = vst.msk [vmem:[#allocation2 + $0x248] sm:$0xff] %vm87_vm0, %v8515_v3 }
  0x27   :  { %162 = vst.msk [vmem:[#allocation2 + $0x250] sm:$0xff] %vm87_vm0, %v8515_v3  ;;  %163 = vst.msk [vmem:[#allocation2 + $0x258] sm:$0xff] %vm87_vm0, %v8515_v3 }
  0x28   :  { %164 = vst.msk [vmem:[#allocation2 + $0x260] sm:$0xff] %vm87_vm0, %v8515_v3  ;;  %165 = vst.msk [vmem:[#allocation2 + $0x268] sm:$0xff] %vm87_vm0, %v8515_v3 }
  0x29   :  { %166 = vst.msk [vmem:[#allocation2 + $0x270] sm:$0xff] %vm87_vm0, %v8515_v3  ;;  %167 = vst.msk [vmem:[#allocation2 + $0x278] sm:$0xff] %vm87_vm0, %v8515_v3 }
  0x2a   :  { %168 = vst.msk [vmem:[#allocation2 + $0x280] sm:$0xff] %vm87_vm0, %v8515_v3  ;;  %169 = vst.msk [vmem:[#allocation2 + $0x288] sm:$0xff] %vm87_vm0, %v8515_v3 }
  0x2b   :  { %170 = vst.msk [vmem:[#allocation2 + $0x290] sm:$0xff] %vm87_vm0, %v8515_v3  ;;  %171 = vst.msk [vmem:[#allocation2 + $0x298] sm:$0xff] %vm87_vm0, %v8515_v3 }
  0x2c   :  { %172 = vst.msk [vmem:[#allocation2 + $0x2a0] sm:$0xff] %vm87_vm0, %v8515_v3  ;;  %173 = vst.msk [vmem:[#allocation2 + $0x2a8] sm:$0xff] %vm87_vm0, %v8515_v3 }
  0x2d   :  { %174 = vst.msk [vmem:[#allocation2 + $0x2b0] sm:$0xff] %vm87_vm0, %v8515_v3  ;;  %175 = vst.msk [vmem:[#allocation2 + $0x2b8] sm:$0xff] %vm87_vm0, %v8515_v3 }
  0x2e   :  { %176 = vst.msk [vmem:[#allocation2 + $0x2c0] sm:$0xff] %vm87_vm0, %v8515_v3  ;;  %177 = vst.msk [vmem:[#allocation2 + $0x2c8] sm:$0xff] %vm87_vm0, %v8515_v3 }
  0x2f   :  { %178 = vst.msk [vmem:[#allocation2 + $0x2d0] sm:$0xff] %vm87_vm0, %v8515_v3  ;;  %179 = vst.msk [vmem:[#allocation2 + $0x2d8] sm:$0xff] %vm87_vm0, %v8515_v3 }
  0x30   :  { %180 = vst.msk [vmem:[#allocation2 + $0x2e0] sm:$0xff] %vm87_vm0, %v8515_v3  ;;  %181 = vst.msk [vmem:[#allocation2 + $0x2e8] sm:$0xff] %vm87_vm0, %v8515_v3 }
  0x31   :  { %182 = vst.msk [vmem:[#allocation2 + $0x2f0] sm:$0xff] %vm87_vm0, %v8515_v3  ;;  %183 = vst.msk [vmem:[#allocation2 + $0x2f8] sm:$0xff] %vm87_vm0, %v8515_v3 }
  0x32   :  { %184 = vst.msk [vmem:[#allocation2 + $0x300] sm:$0xff] %vm87_vm0, %v8515_v3  ;;  %185 = vst.msk [vmem:[#allocation2 + $0x308] sm:$0xff] %vm87_vm0, %v8515_v3 }
  0x33   :  { %186 = vst.msk [vmem:[#allocation2 + $0x310] sm:$0xff] %vm87_vm0, %v8515_v3  ;;  %187 = vst.msk [vmem:[#allocation2 + $0x318] sm:$0xff] %vm87_vm0, %v8515_v3 }
  0x34   :  { %188 = vst.msk [vmem:[#allocation2 + $0x320] sm:$0xff] %vm87_vm0, %v8515_v3  ;;  %189 = vst.msk [vmem:[#allocation2 + $0x328] sm:$0xff] %vm87_vm0, %v8515_v3 }
  0x35   :  { %190 = vst.msk [vmem:[#allocation2 + $0x330] sm:$0xff] %vm87_vm0, %v8515_v3  ;;  %191 = vst.msk [vmem:[#allocation2 + $0x338] sm:$0xff] %vm87_vm0, %v8515_v3 }
  0x36   :  { %192 = vst.msk [vmem:[#allocation2 + $0x340] sm:$0xff] %vm87_vm0, %v8515_v3  ;;  %193 = vst.msk [vmem:[#allocation2 + $0x348] sm:$0xff] %vm87_vm0, %v8515_v3 }
  0x37   :  { %194 = vst.msk [vmem:[#allocation2 + $0x350] sm:$0xff] %vm87_vm0, %v8515_v3  ;;  %195 = vst.msk [vmem:[#allocation2 + $0x358] sm:$0xff] %vm87_vm0, %v8515_v3 }
  0x38   :  { %2438 = vst [vmem:[#allocation3] sm:$0xff] %v8515_v3  ;;  %2452 = vst [vmem:[#allocation3 + $0x18] sm:$0x1] %v8515_v3 }
  0x39   :  { %2453 = vst [vmem:[#allocation3 + $0x30] sm:$0x1] %v8515_v3  ;;  %2454 = vst [vmem:[#allocation3 + $0x48] sm:$0x1] %v8515_v3 }
  0x3a   :  { %2455 = vst [vmem:[#allocation3 + $0x60] sm:$0x1] %v8515_v3  ;;  %2456 = vst [vmem:[#allocation3 + $0x78] sm:$0x1] %v8515_v3 }
  0x3b   :  { %2457 = vst [vmem:[#allocation3 + $0x90] sm:$0x1] %v8515_v3  ;;  %2458 = vst [vmem:[#allocation3 + $0xa8] sm:$0x1] %v8515_v3 }
  0x3c   :  { %2459 = vst [vmem:[#allocation3 + $0xc0] sm:$0x1] %v8515_v3  ;;  %2460 = vst [vmem:[#allocation3 + $0xd8] sm:$0x1] %v8515_v3 }
  0x3d   :  { %2461 = vst [vmem:[#allocation3 + $0xf0] sm:$0x1] %v8515_v3  ;;  %2462 = vst [vmem:[#allocation3 + $0x108] sm:$0x1] %v8515_v3 }
  0x3e   :  { %2463 = vst [vmem:[#allocation3 + $0x120] sm:$0x1] %v8515_v3  ;;  %2464 = vst [vmem:[#allocation3 + $0x138] sm:$0x1] %v8515_v3 }
  0x3f   :  { %2465 = vst [vmem:[#allocation3 + $0x150] sm:$0x1] %v8515_v3  ;;  %2466 = vst [vmem:[#allocation3 + $0x168] sm:$0x1] %v8515_v3 }
  0x40   :  { %2467 = vst [vmem:[#allocation3 + $0x180] sm:$0x1] %v8515_v3  ;;  %2468 = vst [vmem:[#allocation3 + $0x1c8] sm:$0x1] %v8515_v3 }
  0x41   :  { %2469 = vst [vmem:[#allocation3 + $0x1e0] sm:$0x1] %v8515_v3  ;;  %2470 = vst [vmem:[#allocation3 + $0x1f8] sm:$0x1] %v8515_v3 }
  0x42   :  { %2471 = vst [vmem:[#allocation3 + $0x210] sm:$0x1] %v8515_v3  ;;  %2472 = vst [vmem:[#allocation3 + $0x228] sm:$0x1] %v8515_v3 }
  0x43   :  { %2473 = vst [vmem:[#allocation3 + $0x240] sm:$0x1] %v8515_v3  ;;  %2474 = vst [vmem:[#allocation3 + $0x258] sm:$0x1] %v8515_v3 }
  0x44   :  { %2475 = vst [vmem:[#allocation3 + $0x270] sm:$0x1] %v8515_v3  ;;  %2476 = vst [vmem:[#allocation3 + $0x288] sm:$0x1] %v8515_v3 }
  0x45   :  { %2477 = vst [vmem:[#allocation3 + $0x2a0] sm:$0x1] %v8515_v3  ;;  %2478 = vst [vmem:[#allocation3 + $0x2b8] sm:$0x1] %v8515_v3 }
  0x46   :  { %2479 = vst [vmem:[#allocation3 + $0x2d0] sm:$0x1] %v8515_v3  ;;  %2480 = vst [vmem:[#allocation3 + $0x2e8] sm:$0x1] %v8515_v3 }
  0x47   :  { %2481 = vst [vmem:[#allocation3 + $0x300] sm:$0x1] %v8515_v3  ;;  %2482 = vst [vmem:[#allocation3 + $0x318] sm:$0x1] %v8515_v3 }
  0x48   :  { %2483 = vst [vmem:[#allocation3 + $0x330] sm:$0x1] %v8515_v3  ;;  %2484 = vst [vmem:[#allocation3 + $0x29] sm:$0x1] %v8515_v3 }
  0x49   :  { %2485 = vst [vmem:[#allocation3 + $0x41] sm:$0x1] %v8515_v3  ;;  %2486 = vst [vmem:[#allocation3 + $0x59] sm:$0x1] %v8515_v3 }
  0x4a   :  { %2487 = vst [vmem:[#allocation3 + $0x71] sm:$0x1] %v8515_v3  ;;  %2488 = vst [vmem:[#allocation3 + $0x89] sm:$0x1] %v8515_v3 }
  0x4b   :  { %2489 = vst [vmem:[#allocation3 + $0xa1] sm:$0x1] %v8515_v3  ;;  %2490 = vst [vmem:[#allocation3 + $0xb9] sm:$0x1] %v8515_v3 }
  0x4c   :  { %2491 = vst [vmem:[#allocation3 + $0xd1] sm:$0x1] %v8515_v3  ;;  %2492 = vst [vmem:[#allocation3 + $0xe9] sm:$0x1] %v8515_v3 }
  0x4d   :  { %2493 = vst [vmem:[#allocation3 + $0x101] sm:$0x1] %v8515_v3  ;;  %2494 = vst [vmem:[#allocation3 + $0x119] sm:$0x1] %v8515_v3 }
  0x4e   :  { %2495 = vst [vmem:[#allocation3 + $0x131] sm:$0x1] %v8515_v3  ;;  %2496 = vst [vmem:[#allocation3 + $0x149] sm:$0x1] %v8515_v3 }
  0x4f   :  { %2497 = vst [vmem:[#allocation3 + $0x161] sm:$0x1] %v8515_v3  ;;  %2498 = vst [vmem:[#allocation3 + $0x179] sm:$0x1] %v8515_v3 }
  0x50   :  { %2499 = vst [vmem:[#allocation3 + $0x191] sm:$0x1] %v8515_v3  ;;  %2500 = vst [vmem:[#allocation3 + $0x1d9] sm:$0x1] %v8515_v3 }
  0x51   :  { %2501 = vst [vmem:[#allocation3 + $0x1f1] sm:$0x1] %v8515_v3  ;;  %2502 = vst [vmem:[#allocation3 + $0x209] sm:$0x1] %v8515_v3 }
  0x52   :  { %2503 = vst [vmem:[#allocation3 + $0x221] sm:$0x1] %v8515_v3  ;;  %2504 = vst [vmem:[#allocation3 + $0x239] sm:$0x1] %v8515_v3 }
  0x53   :  { %2505 = vst [vmem:[#allocation3 + $0x251] sm:$0x1] %v8515_v3  ;;  %2506 = vst [vmem:[#allocation3 + $0x269] sm:$0x1] %v8515_v3 }
  0x54   :  { %2507 = vst [vmem:[#allocation3 + $0x281] sm:$0x1] %v8515_v3  ;;  %2508 = vst [vmem:[#allocation3 + $0x299] sm:$0x1] %v8515_v3 }
  0x55   :  { %2509 = vst [vmem:[#allocation3 + $0x2b1] sm:$0x1] %v8515_v3  ;;  %2510 = vst [vmem:[#allocation3 + $0x2c9] sm:$0x1] %v8515_v3 }
  0x56   :  { %2511 = vst [vmem:[#allocation3 + $0x2e1] sm:$0x1] %v8515_v3  ;;  %2512 = vst [vmem:[#allocation3 + $0x2f9] sm:$0x1] %v8515_v3 }
  0x57   :  { %2513 = vst [vmem:[#allocation3 + $0x311] sm:$0x1] %v8515_v3  ;;  %2514 = vst [vmem:[#allocation3 + $0x329] sm:$0x1] %v8515_v3 }
  0x58   :  { %2515 = vst [vmem:[#allocation3 + $0x341] sm:$0x1] %v8515_v3  ;;  %13636 = vst [vmem:[#allocation8_spill] sm:$0xff] %v8869_v4 }
  0x59   :  { %13637 = vst [vmem:[#allocation9_spill] sm:$0xff] %v8874_v5  ;;  %199 = vst.msk [vmem:[#allocation2 + $0x31] sm:$0xff] %vm87_vm0, %v8573_v0 }
  0x5a   :  { %197 = vst.msk [vmem:[#allocation2 + $0x19] sm:$0xff] %vm87_vm0, %v8578_v1  ;;  %198 = vst.msk [vmem:[#allocation2 + $0x21] sm:$0xff] %vm87_vm0, %v8583_v2 }
  0x5b   :  { %200 = vst.msk [vmem:[#allocation2 + $0x39] sm:$0xff] %vm87_vm0, %v8869_v4  ;;  %202 = vst.msk [vmem:[#allocation2 + $0x51] sm:$0xff] %vm87_vm0, %v8874_v5 }
  0x5c   :  { %201 = vst.msk [vmem:[#allocation2 + $0x49] sm:$0xff] %vm87_vm0, %v8879_v6  ;;  %13638 = vst [vmem:[#allocation10_spill] sm:$0xff] %v8896_v7 }
  0x5d   :  { %13639 = vst [vmem:[#allocation11_spill] sm:$0xff] %v8906_v9  ;;  %204 = vst.msk [vmem:[#allocation2 + $0x69] sm:$0xff] %vm87_vm0, %v8896_v7 }
  0x5e   :  { %203 = vst.msk [vmem:[#allocation2 + $0x61] sm:$0xff] %vm87_vm0, %v8901_v8  ;;  %206 = vst.msk [vmem:[#allocation2 + $0x81] sm:$0xff] %vm87_vm0, %v8906_v9 }
  0x5f   :  { %13640 = vst [vmem:[#allocation12_spill] sm:$0xff] %v8922_v11  ;;  %205 = vst.msk [vmem:[#allocation2 + $0x79] sm:$0xff] %vm87_vm0, %v8917_v10 }
  0x60   :  { %208 = vst.msk [vmem:[#allocation2 + $0x99] sm:$0xff] %vm87_vm0, %v8922_v11  ;;  %207 = vst.msk [vmem:[#allocation2 + $0x91] sm:$0xff] %vm87_vm0, %v8927_v12 }
  0x61   :  { %13641 = vst [vmem:[#allocation13_spill] sm:$0xff] %v8943_v14  ;;  %209 = vst.msk [vmem:[#allocation2 + $0xa9] sm:$0xff] %vm87_vm0, %v8938_v13 }
  0x62   :  { %210 = vst.msk [vmem:[#allocation2 + $0xb1] sm:$0xff] %vm87_vm0, %v8943_v14  ;;  %211 = vst.msk [vmem:[#allocation2 + $0xc1] sm:$0xff] %vm87_vm0, %v8948_v15 }
  0x63   :  { %13642 = vst [vmem:[#allocation14_spill] sm:$0xff] %v8959_v16  ;;  %13643 = vst [vmem:[#allocation15_spill] sm:$0xff] %v8964_v17 }
  0x64   :  { %212 = vst.msk [vmem:[#allocation2 + $0xc9] sm:$0xff] %vm87_vm0, %v8959_v16  ;;  %214 = vst.msk [vmem:[#allocation2 + $0xe1] sm:$0xff] %vm87_vm0, %v8964_v17 }
  0x65   :  { %213 = vst.msk [vmem:[#allocation2 + $0xd9] sm:$0xff] %vm87_vm0, %v8969_v18  ;;  %13644 = vst [vmem:[#allocation16_spill] sm:$0xff] %v8985_v20 }
  0x66   :  { %215 = vst.msk [vmem:[#allocation2 + $0xf1] sm:$0xff] %vm87_vm0, %v8980_v19  ;;  %216 = vst.msk [vmem:[#allocation2 + $0xf9] sm:$0xff] %vm87_vm0, %v8985_v20 }
  0x67   :  { %217 = vst.msk [vmem:[#allocation2 + $0x109] sm:$0xff] %vm87_vm0, %v8990_v21  ;;  %13645 = vst [vmem:[#allocation17_spill] sm:$0xff] %v9001_v22 }
  0x68   :  { %12 = vsyncpa [#allocation5], 0  ;;  %218 = vst.msk [vmem:[#allocation2 + $0x111] sm:$0xff] %vm87_vm0, %v9001_v22  ;;  %v337_v23 = vld [vmem:[#allocation2 + $0x31] sm:$0xff]  ;;  %v335_v24 = vld [vmem:[#allocation2 + $0x19] sm:$0xff]  ;;  %s8516_s17 = smov 8  }
  0x69   :  { %557 = vrot.lane.b32.xlu1 %v337_v23, %s8516_s17  ;;  %553 = vrot.lane.b32.xlu0 %v335_v24, %s8516_s17  ;;  %v407_v25 = vld [vmem:[#allocation2 + $0x1a] sm:$0xff]  ;;  %s8517_s18 = smov 16   ;;  %v408_v27 = vld [vmem:[#allocation2 + $0x22] sm:$0xff]  ;;  %v409_v30 = vld [vmem:[#allocation2 + $0x32] sm:$0xff]  ;;  %vm1125_vm1 = vcmask 130048   ;;  %s8518_s11 = smov 24  }
  0x6a   :  { %v336_v26 = vld [vmem:[#allocation2 + $0x21] sm:$0xff]  ;;  %v338_v28 = vld [vmem:[#allocation2 + $0x39] sm:$0xff]  ;;  %v340_v31 = vld [vmem:[#allocation2 + $0x51] sm:$0xff]  ;;  %vm1650_vm2 = vcmask 195584   ;;  %vm1715_vm3 = vcmask 392192   ;;  %vm1796_vm4 = vcmask 588800  }
  0x6b   :  { %v410_v29 = vld [vmem:[#allocation2 + $0x3a] sm:$0xff]  ;;  %v339_v32 = vld [vmem:[#allocation2 + $0x49] sm:$0xff]  ;;  %v412_v33 = vld [vmem:[#allocation2 + $0x52] sm:$0xff]  ;;  %s8523_s23 = smov 32   ;;  %s8524_s28 = smov 40   ;;  %vm4103_vm5 = vcmask 1046528  }
  0x6c   :  { %v411_v34 = vld [vmem:[#allocation2 + $0x4a] sm:$0xff]  ;;  %v341_v36 = vld [vmem:[#allocation2 + $0x61] sm:$0xff]  ;;  %v343_v41 = vld [vmem:[#allocation2 + $0x79] sm:$0xff]  ;;  %s8525_s14 = smov 56   ;;  %s8526_s20 = smov 64   ;;  %vm4520_vm6 = vcmask 1045504  }
  0x6d   :  { %841 = vrot.lane.b32.xlu1 %v407_v25, %s8517_s18  ;;  %555 = vrot.lane.b32.xlu0 %v336_v26, %s8516_s17  ;;  %v342_v35 = vld [vmem:[#allocation2 + $0x69] sm:$0xff]  ;;  %v344_v40 = vld [vmem:[#allocation2 + $0x81] sm:$0xff]  ;;  %v9033_v44 = vld [vmem:[%s13449_s0 + $0xb8] sm:$0xff]  ;;  %s8527_s12 = smov 72   ;;  %s8529_s15 = smov 88   ;;  %vm6277_vm7 = vcmask 261120  }
  0x6e   :  { %v414_v37 = vld [vmem:[#allocation2 + $0x6a] sm:$0xff]  ;;  %v413_v38 = vld [vmem:[#allocation2 + $0x62] sm:$0xff]  ;;  %v415_v43 = vld [vmem:[#allocation2 + $0x7a] sm:$0xff]  ;;  %13646 = vst [vmem:[#allocation18_spill] sm:$0xff] %v9033_v44  ;;  %s8531_s16 = smov 104   ;;  %s8532_s19 = smov 112  }
  0x6f   :  { %v9022_v39 = vld [vmem:[%s13449_s0 + $0xb0] sm:$0xff]  ;;  %v416_v42 = vld [vmem:[#allocation2 + $0x82] sm:$0xff]  ;;  %220 = vst.msk [vmem:[#allocation2 + $0x129] sm:$0xff] %vm87_vm0, %v9033_v44  ;;  %v346_v45 = vld [vmem:[#allocation2 + $0x99] sm:$0xff]  ;;  %s8533_s21 = smov 120   ;;  %vm6282_vm8 = vcmask 326656  }
  0x70   :  { %219 = vst.msk [vmem:[#allocation2 + $0x121] sm:$0xff] %vm87_vm0, %v9022_v39  ;;  %v345_v46 = vld [vmem:[#allocation2 + $0x91] sm:$0xff]  ;;  %v418_v47 = vld [vmem:[#allocation2 + $0x9a] sm:$0xff]  ;;  %v347_v50 = vld [vmem:[#allocation2 + $0xa9] sm:$0xff]  ;;  %vm6291_vm9 = vcmask 457728   ;;  %vm6296_vm10 = vcmask 523264  }
  0x71   :  { %843 = vrot.lane.b32.xlu1 %v408_v27, %s8517_s18  ;;  %559 = vrot.lane.b32.xlu0 %v338_v28, %s8516_s17  ;;  %v417_v48 = vld [vmem:[#allocation2 + $0x92] sm:$0xff]  ;;  %v9046_v49 = vld [vmem:[%s13449_s0 + $0xc0] sm:$0xff]  ;;  %v419_v52 = vld [vmem:[#allocation2 + $0xaa] sm:$0xff]  ;;  %vm6305_vm11 = vcmask 654336   ;;  %vm6310_vm12 = vcmask 719872   ;;  %vm6315_vm13 = vcmask 785408  }
  0x72   :  { %v348_v51 = vld [vmem:[#allocation2 + $0xb1] sm:$0xff]  ;;  %221 = vst.msk [vmem:[#allocation2 + $0x139] sm:$0xff] %vm87_vm0, %v9046_v49  ;;  %v9057_v54 = vld [vmem:[%s13449_s0 + $0xc8] sm:$0xff]  ;;  %v351_v61 = vld [vmem:[#allocation2 + $0xd9] sm:$0xff]  ;;  %vm6320_vm14 = vcmask 850944   ;;  %vm6325_vm15 = vcmask 916480  }
  0x73   :  { %v420_v53 = vld [vmem:[#allocation2 + $0xb2] sm:$0xff]  ;;  %13647 = vst [vmem:[#allocation19_spill] sm:$0xff] %v9057_v54  ;;  %v349_v55 = vld [vmem:[#allocation2 + $0xc1] sm:$0xff]  ;;  %v350_v56 = vld [vmem:[#allocation2 + $0xc9] sm:$0xff]  ;;  %s8534_s26 = smov [#allocation4]  }
  0x74   :  { %222 = vst.msk [vmem:[#allocation2 + $0x141] sm:$0xff] %vm87_vm0, %v9057_v54  ;;  %v421_v57 = vld [vmem:[#allocation2 + $0xc2] sm:$0xff]  ;;  %v422_v58 = vld [vmem:[#allocation2 + $0xca] sm:$0xff]  ;;  %v423_v63 = vld [vmem:[#allocation2 + $0xda] sm:$0xff]  ;;  %s7783_s27 = sshll.u32 %s8534_s26, 4  ;;  %s7784_s27 = int_to_ptr.vmem [resolvable:$true] %s7783_s27 }
  0x75   :  { %847 = vrot.lane.b32.xlu1 %v410_v29, %s8517_s18  ;;  %845 = vrot.lane.b32.xlu0 %v409_v30, %s8517_s18  ;;  %v9068_v59 = vld [vmem:[%s13449_s0 + $0xd0] sm:$0xff]  ;;  %v352_v60 = vld [vmem:[#allocation2 + $0xe1] sm:$0xff]  ;;  %v9079_v3 = vld [vmem:[%s13449_s0 + $0xd8] sm:$0xff]  ;;  %s8491_s29 = scalar_lea.vmem %s7784_s27, 16  ;;  %p8496_p1 = scmp.lt.s32.totalorder %s7784_s27, %s7784_s27 }
  0x76   :  { %223 = vst.msk [vmem:[#allocation2 + $0x151] sm:$0xff] %vm87_vm0, %v9068_v59  ;;  %v424_v62 = vld [vmem:[#allocation2 + $0xe2] sm:$0xff]  ;;  %13648 = vst [vmem:[#allocation20_spill] sm:$0xff] %v9079_v3  ;;  %v406_v25 = vld [vmem:[#allocation2 + $0xa] sm:$0xff]  ;;  %p8492_p0 = scmp.ne.s32.totalorder %s7784_s27, %s8491_s29 }
  0x77   :  { %v334_v23 = vld [vmem:[#allocation2 + $0x9] sm:$0xff]  ;;  %v333_v24 = vld [vmem:[#allocation2 + $0x1] sm:$0xff]  ;;  %224 = vst.msk [vmem:[#allocation2 + $0x159] sm:$0xff] %vm87_vm0, %v9079_v3  ;;  %v353_v28 = vld [vmem:[#allocation2 + $0xf1] sm:$0xff] }
  0x78   :  { %v405_v26 = vld [vmem:[#allocation2 + $0x2] sm:$0xff]  ;;  %v354_v29 = vld [vmem:[#allocation2 + $0xf9] sm:$0xff] }
  0x79   :  { %563 = vrot.lane.b32.xlu1 %v340_v31, %s8516_s17  ;;  %561 = vrot.lane.b32.xlu0 %v339_v32, %s8516_s17  ;;  %v9090_v27 = vld [vmem:[%s13449_s0 + $0xe0] sm:$0xff]  ;;  %v425_v30 = vld [vmem:[#allocation2 + $0xf2] sm:$0xff]  ;;  %v9101_v32 = vld [vmem:[%s13449_s0 + $0xe8] sm:$0xff] }
  0x7a   :  { %225 = vst.msk [vmem:[#allocation2 + $0x169] sm:$0xff] %vm87_vm0, %v9090_v27  ;;  %v356_v31 = vld [vmem:[#allocation2 + $0x111] sm:$0xff]  ;;  %13649 = vst [vmem:[#allocation21_spill] sm:$0xff] %v9101_v32  ;;  %v9383_v44 = vld [vmem:[%s13449_s0 + $0x148] sm:$0xff] }
  0x7b   :  { %226 = vst.msk [vmem:[#allocation2 + $0x171] sm:$0xff] %vm87_vm0, %v9101_v32  ;;  %13655 = vst [vmem:[#allocation27_spill] sm:$0xff] %v9383_v44 }
  0x7c   :  { %238 = vst.msk [vmem:[#allocation2 + $0x231] sm:$0xff] %vm87_vm0, %v9383_v44 }
  0x7d   :  { %851 = vrot.lane.b32.xlu1 %v412_v33, %s8517_s18  ;;  %849 = vrot.lane.b32.xlu0 %v411_v34, %s8517_s18  ;;  %v426_v33 = vld [vmem:[#allocation2 + $0xfa] sm:$0xff]  ;;  %v355_v34 = vld [vmem:[#allocation2 + $0x109] sm:$0xff] }
  0x81   :  { %567 = vrot.lane.b32.xlu1 %v342_v35, %s8516_s17  ;;  %565 = vrot.lane.b32.xlu0 %v341_v36, %s8516_s17  ;;  %v9110_v35 = vld [vmem:[%s13449_s0 + $0xf0] sm:$0xff] }
  0x82   :  { %v427_v36 = vld [vmem:[#allocation2 + $0x10a] sm:$0xff]  ;;  %227 = vst.msk [vmem:[#allocation2 + $0x181] sm:$0xff] %vm87_vm0, %v9110_v35 }
  0x85   :  { %855 = vrot.lane.b32.xlu1 %v414_v37, %s8517_s18  ;;  %853 = vrot.lane.b32.xlu0 %v413_v38, %s8517_s18  ;;  %v1780_v37 = vld [vmem:[%s13450_s1] sm:$0xff]  ;;  %v428_v38 = vld [vmem:[#allocation2 + $0x112] sm:$0xff] }
  0x89   :  { %571 = vrot.lane.b32.xlu1 %v344_v40, %s8516_s17  ;;  %569 = vrot.lane.b32.xlu0 %v343_v41, %s8516_s17  ;;  %v1781_v40 = vld [vmem:[%s13450_s1 + $0x8] sm:$0xff] }
  0x8a   :  { %v8334_v41 = vpack.c.bf16 %v1781_v40, %v1780_v37  ;;  %v365_v17 = vld [vmem:[#allocation2 + $0x181] sm:$0xff] }
  0x8c   :  { %8335 = vmatprep.subr.bf16.mxu0 %v8334_v41 }
  0x8d   :  { %859 = vrot.lane.b32.xlu1 %v416_v42, %s8517_s18  ;;  %857 = vrot.lane.b32.xlu0 %v415_v43, %s8517_s18  ;;  %v1782_v42 = vld [vmem:[%s13450_s1 + $0x10] sm:$0xff]  ;;  %v1783_v43 = vld [vmem:[%s13450_s1 + $0x18] sm:$0xff] }
  0x8e   :  { %8337 = vmatpush3.bf16.msra.mxu0 %v8334_v41 }
  0x91   :  { %575 = vrot.lane.b32.xlu1 %v346_v45, %s8516_s17  ;;  %573 = vrot.lane.b32.xlu0 %v345_v46, %s8516_s17  ;;  %v9131_v45 = vld [vmem:[%s13449_s0 + $0xf8] sm:$0xff]  ;;  %v8338_v46 = vpack.c.bf16 %v1783_v43, %v1782_v42  ;;  %v268_v42 = vld [vmem:[#allocation2 + $0x50] sm:$0xff]  ;;  %v267_v43 = vld [vmem:[#allocation2 + $0x48] sm:$0xff] }
  0x92   :  { %13650 = vst [vmem:[#allocation22_spill] sm:$0xff] %v9131_v45  ;;  %228 = vst.msk [vmem:[#allocation2 + $0x189] sm:$0xff] %vm87_vm0, %v9131_v45  ;;  %v9349_v45 = vld [vmem:[%s13449_s0 + $0x138] sm:$0xff] }
  0x93   :  { %8339 = vmatprep.subr.bf16.mxu0 %v8338_v46  ;;  %13654 = vst [vmem:[#allocation26_spill] sm:$0xff] %v9349_v45  ;;  %236 = vst.msk [vmem:[#allocation2 + $0x219] sm:$0xff] %vm87_vm0, %v9349_v45  ;;  %v283_v45 = vld [vmem:[#allocation2 + $0x108] sm:$0xff] }
  0x94   :  { %8341 = vmatpush3.bf16.msra.mxu0 %v8338_v46 }
  0x95   :  { %863 = vrot.lane.b32.xlu1 %v418_v47, %s8517_s18  ;;  %861 = vrot.lane.b32.xlu0 %v417_v48, %s8517_s18  ;;  %v1784_v47 = vld [vmem:[%s13450_s1 + $0x20] sm:$0xff]  ;;  %v1785_v48 = vld [vmem:[%s13450_s1 + $0x28] sm:$0xff] }
  0x99   :  { %577 = vrot.lane.b32.xlu0 %v347_v50, %s8516_s17  ;;  %579 = vrot.lane.b32.xlu1 %v348_v51, %s8516_s17  ;;  %v8342_v50 = vpack.c.bf16 %v1785_v48, %v1784_v47  ;;  %v1786_v51 = vld [vmem:[%s13450_s1 + $0x30] sm:$0xff] }
  0x9a   :  { %v366_v44 = vld [vmem:[#allocation2 + $0x189] sm:$0xff] }
  0x9b   :  { %8343 = vmatprep.subr.bf16.mxu0 %v8342_v50 }
  0x9c   :  { %8345 = vmatpush3.bf16.msra.mxu0 %v8342_v50 }
  0x9d   :  { %865 = vrot.lane.b32.xlu0 %v419_v52, %s8517_s18  ;;  %867 = vrot.lane.b32.xlu1 %v420_v53, %s8517_s18  ;;  %v1787_v52 = vld [vmem:[%s13450_s1 + $0x38] sm:$0xff] }
  0x9e   :  { %v8346_v53 = vpack.c.bf16 %v1787_v52, %v1786_v51 }
  0xa0   :  { %8347 = vmatprep.subr.bf16.mxu0 %v8346_v53 }
  0xa1   :  { %581 = vrot.lane.b32.xlu0 %v349_v55, %s8516_s17  ;;  %583 = vrot.lane.b32.xlu1 %v350_v56, %s8516_s17 }
  0xa2   :  { %8349 = vmatpush3.bf16.msra.mxu0 %v8346_v53 }
  0xa5   :  { %869 = vrot.lane.b32.xlu0 %v421_v57, %s8517_s18  ;;  %871 = vrot.lane.b32.xlu1 %v422_v58, %s8517_s18  ;;  %v1788_v57 = vld [vmem:[%s13450_s1 + $0x40] sm:$0xff]  ;;  %v263_v58 = vld [vmem:[#allocation2 + $0x18] sm:$0xff]  ;;  %s8519_s1 = smov 48  }
  0xa6   :  { %8060 = vmatprep.subr.mxu0 %v1788_v57 }
  0xa7   :  { %8061 = vmatpush3.msra.mxu0 %v1788_v57  ;;  %v269_v57 = vld [vmem:[#allocation2 + $0x60] sm:$0xff] }
  0xa9   :  { %587 = vrot.lane.b32.xlu1 %v352_v60, %s8516_s17  ;;  %585 = vrot.lane.b32.xlu0 %v351_v61, %s8516_s17 }
  0xad   :  { %875 = vrot.lane.b32.xlu1 %v424_v62, %s8517_s18  ;;  %873 = vrot.lane.b32.xlu0 %v423_v63, %s8517_s18  ;;  %v264_v63 = vld [vmem:[#allocation2 + $0x20] sm:$0xff] }
  0xb1   :  { %551 = vrot.lane.b32.xlu1 %v334_v23, %s8516_s17  ;;  %549 = vrot.lane.b32.xlu0 %v333_v24, %s8516_s17 }
  0xb5   :  { %839 = vrot.lane.b32.xlu1 %v406_v25, %s8517_s18  ;;  %837 = vrot.lane.b32.xlu0 %v405_v26, %s8517_s18 }
  0xb9   :  { %589 = vrot.lane.b32.xlu1 %v353_v28, %s8516_s17  ;;  %591 = vrot.lane.b32.xlu0 %v354_v29, %s8516_s17  ;;  %v265_v28 = vld [vmem:[#allocation2 + $0x30] sm:$0xff]  ;;  %v266_v29 = vld [vmem:[#allocation2 + $0x38] sm:$0xff] }
  0xbd   :  { %877 = vrot.lane.b32.xlu1 %v425_v30, %s8517_s18  ;;  %595 = vrot.lane.b32.xlu0 %v356_v31, %s8516_s17 }
  0xc1   :  { %879 = vrot.lane.b32.xlu1 %v426_v33, %s8517_s18 }
  0xc5   :  { %593 = vrot.lane.b32.xlu1 %v355_v34, %s8516_s17 }
  0xc9   :  { %881 = vrot.lane.b32.xlu1 %v427_v36, %s8517_s18 }
  0xcd   :  { %883 = vrot.lane.b32.xlu1 %v428_v38, %s8517_s18 }
  0xdb   :  { %v558_v55 = vpop.permute.xlu1 %557  ;;  %v554_v56 = vpop.permute.xlu0 %553 }
  0xdc   :  { %v1055_v60 = vsel %vm87_vm0, %v263_v58, %v554_v56  ;;  %v1057_v31 = vsel %vm87_vm0, %v265_v28, %v558_v55  ;;  %v270_v56 = vld [vmem:[#allocation2 + $0x68] sm:$0xff]  ;;  %v271_v28 = vld [vmem:[#allocation2 + $0x78] sm:$0xff] }
  0xdf   :  { %v842_v61 = vpop.permute.xlu1 %841  ;;  %v556_v62 = vpop.permute.xlu0 %555 }
  0xe0   :  { %v9152_v23 = vsel %vm1125_vm1, %v1055_v60, %v842_v61  ;;  %v1056_v24 = vsel %vm87_vm0, %v264_v63, %v556_v62 }
  0xe1   :  { %1262 = vrot.lane.b32.xlu0 %v9152_v23, %s8518_s11 }
  0xe3   :  { %v844_v25 = vpop.permute.xlu1 %843  ;;  %v560_v26 = vpop.permute.xlu0 %559 }
  0xe4   :  { %v9158_v30 = vsel %vm1125_vm1, %v1056_v24, %v844_v25  ;;  %v1058_v33 = vsel %vm87_vm0, %v266_v29, %v560_v26 }
  0xe5   :  { %1264 = vrot.lane.b32.xlu0 %v9158_v30, %s8518_s11 }
  0xe7   :  { %v848_v34 = vpop.permute.xlu1 %847  ;;  %v846_v36 = vpop.permute.xlu0 %845 }
  0xe8   :  { %v9165_v37 = vsel %vm1125_vm1, %v1057_v31, %v846_v36  ;;  %v9168_v38 = vsel %vm1125_vm1, %v1058_v33, %v848_v34  ;;  %v272_v34 = vld [vmem:[#allocation2 + $0x80] sm:$0xff] }
  0xe9   :  { %1458 = vrot.lane.b32.xlu1 %v9165_v37, %s8519_s1  ;;  %1460 = vrot.lane.b32.xlu0 %v9168_v38, %s8519_s1 }
  0xeb   :  { %v564_v40 = vpop.permute.xlu1 %563  ;;  %v562_v41 = vpop.permute.xlu0 %561 }
  0xec   :  { %v1060_v46 = vsel %vm87_vm0, %v268_v42, %v564_v40  ;;  %v1059_v47 = vsel %vm87_vm0, %v267_v43, %v562_v41  ;;  %v274_v43 = vld [vmem:[#allocation2 + $0x98] sm:$0xff] }
  0xed   :  { %1268 = vrot.lane.b32.xlu1 %v9168_v38, %s8518_s11  ;;  %1266 = vrot.lane.b32.xlu0 %v9165_v37, %s8518_s11 }
  0xef   :  { %v852_v48 = vpop.permute.xlu1 %851  ;;  %v850_v50 = vpop.permute.xlu0 %849 }
  0xf0   :  { %v9181_v51 = vsel %vm1125_vm1, %v1060_v46, %v852_v48  ;;  %v9184_v52 = vsel %vm1125_vm1, %v1059_v47, %v850_v50 }
  0xf1   :  { %1464 = vrot.lane.b32.xlu1 %v9181_v51, %s8519_s1  ;;  %1462 = vrot.lane.b32.xlu0 %v9184_v52, %s8519_s1 }
  0xf3   :  { %v568_v53 = vpop.permute.xlu1 %567  ;;  %v566_v55 = vpop.permute.xlu0 %565 }
  0xf4   :  { %v1062_v58 = vsel %vm87_vm0, %v270_v56, %v568_v53  ;;  %v1061_v60 = vsel %vm87_vm0, %v269_v57, %v566_v55  ;;  %v273_v53 = vld [vmem:[#allocation2 + $0x90] sm:$0xff]  ;;  %v9235_v56 = vld [vmem:[%s13449_s0 + $0x100] sm:$0xff] }
  0xf5   :  { %1272 = vrot.lane.b32.xlu1 %v9181_v51, %s8518_s11  ;;  %1270 = vrot.lane.b32.xlu0 %v9184_v52, %s8518_s11  ;;  %v357_v57 = vld [vmem:[#allocation2 + $0x121] sm:$0xff]  ;;  %229 = vst.msk [vmem:[#allocation2 + $0x1c9] sm:$0xff] %vm87_vm0, %v9235_v56 }
  0xf7   :  { %v856_v61 = vpop.permute.xlu1 %855  ;;  %v854_v62 = vpop.permute.xlu0 %853 }
  0xf8   :  { %v9197_v63 = vsel %vm1125_vm1, %v1062_v58, %v856_v61  ;;  %v9200_v24 = vsel %vm1125_vm1, %v1061_v60, %v854_v62  ;;  %v275_v62 = vld [vmem:[#allocation2 + $0xa8] sm:$0xff] }
  0xf9   :  { %1468 = vrot.lane.b32.xlu1 %v9197_v63, %s8519_s1  ;;  %1466 = vrot.lane.b32.xlu0 %v9200_v24, %s8519_s1 }
  0xfb   :  { %v572_v25 = vpop.permute.xlu1 %571  ;;  %v570_v26 = vpop.permute.xlu0 %569 }
  0xfc   :  { %v1063_v29 = vsel %vm87_vm0, %v271_v28, %v570_v26  ;;  %v1064_v40 = vsel %vm87_vm0, %v272_v34, %v572_v25  ;;  %v9249_v26 = vld [vmem:[%s13449_s0 + $0x108] sm:$0xff]  ;;  %v9260_v34 = vld [vmem:[%s13449_s0 + $0x110] sm:$0xff] }
  0xfd   :  { %1274 = vrot.lane.b32.xlu0 %v9200_v24, %s8518_s11  ;;  %13651 = vst [vmem:[#allocation23_spill] sm:$0xff] %v9249_v26  ;;  %230 = vst.msk [vmem:[#allocation2 + $0x1d1] sm:$0xff] %vm87_vm0, %v9249_v26  ;;  %v361_v26 = vld [vmem:[#allocation2 + $0x151] sm:$0xff] }
  0xfe   :  { %231 = vst.msk [vmem:[#allocation2 + $0x1e1] sm:$0xff] %vm87_vm0, %v9260_v34 }
  0xff   :  { %v860_v31 = vpop.permute.xlu1 %859  ;;  %v858_v33 = vpop.permute.xlu0 %857 }
 0x100   :  { %v9210_v36 = vsel %vm1125_vm1, %v1063_v29, %v858_v33  ;;  %v9218_v46 = vsel %vm1125_vm1, %v1064_v40, %v860_v31  ;;  %v429_v40 = vld [vmem:[#allocation2 + $0x122] sm:$0xff] }
 0x101   :  { %1470 = vrot.lane.b32.xlu1 %v9210_v36, %s8519_s1  ;;  %1276 = vrot.lane.b32.xlu0 %v9197_v63, %s8518_s11 }
 0x103   :  { %v576_v41 = vpop.permute.xlu1 %575  ;;  %v574_v42 = vpop.permute.xlu0 %573 }
 0x104   :  { %v1066_v47 = vsel %vm87_vm0, %v274_v43, %v576_v41  ;;  %v1065_v58 = vsel %vm87_vm0, %v273_v53, %v574_v42  ;;  %v276_v42 = vld [vmem:[#allocation2 + $0xb0] sm:$0xff] }
 0x105   :  { %1280 = vrot.lane.b32.xlu1 %v9218_v46, %s8518_s11  ;;  %1472 = vrot.lane.b32.xlu0 %v9218_v46, %s8519_s1 }
 0x107   :  { %v864_v48 = vpop.permute.xlu1 %863  ;;  %v862_v50 = vpop.permute.xlu0 %861 }
 0x108   :  { %v9226_v55 = vsel %vm1125_vm1, %v1066_v47, %v864_v48  ;;  %v9241_v25 = vsel %vm1125_vm1, %v1065_v58, %v862_v50  ;;  %v358_v47 = vld [vmem:[#allocation2 + $0x129] sm:$0xff]  ;;  %v9275_v58 = vld [vmem:[%s13449_s0 + $0x118] sm:$0xff] }
 0x109   :  { %1476 = vrot.lane.b32.xlu1 %v9226_v55, %s8519_s1  ;;  %1278 = vrot.lane.b32.xlu0 %v9210_v36, %s8518_s11  ;;  %v430_v48 = vld [vmem:[#allocation2 + $0x12a] sm:$0xff]  ;;  %13652 = vst [vmem:[#allocation24_spill] sm:$0xff] %v9275_v58  ;;  %232 = vst.msk [vmem:[#allocation2 + $0x1e9] sm:$0xff] %vm87_vm0, %v9275_v58 }
 0x10a   :  { %v9313_v58 = vld [vmem:[%s13449_s0 + $0x128] sm:$0xff] }
 0x10b   :  { %v578_v60 = vpop.permute.xlu0 %577  ;;  %v580_v61 = vpop.permute.xlu1 %579  ;;  %13653 = vst [vmem:[#allocation25_spill] sm:$0xff] %v9313_v58  ;;  %234 = vst.msk [vmem:[#allocation2 + $0x201] sm:$0xff] %vm87_vm0, %v9313_v58 }
 0x10c   :  { %v1067_v28 = vsel %vm87_vm0, %v275_v62, %v578_v60  ;;  %v1068_v50 = vsel %vm87_vm0, %v276_v42, %v580_v61  ;;  %v359_v62 = vld [vmem:[#allocation2 + $0x139] sm:$0xff] }
 0x10d   :  { %597 = vrot.lane.b32.xlu1 %v357_v57, %s8516_s17  ;;  %1474 = vrot.lane.b32.xlu0 %v9241_v25, %s8519_s1  ;;  %v277_v57 = vld [vmem:[#allocation2 + $0xc0] sm:$0xff] }
 0x10f   :  { %v866_v29 = vpop.permute.xlu0 %865  ;;  %v868_v31 = vpop.permute.xlu1 %867 }
 0x110   :  { %v9255_v33 = vsel %vm1125_vm1, %v1067_v28, %v866_v29  ;;  %v9282_v60 = vsel %vm1125_vm1, %v1068_v50, %v868_v31  ;;  %v431_v31 = vld [vmem:[#allocation2 + $0x13a] sm:$0xff] }
 0x111   :  { %1478 = vrot.lane.b32.xlu1 %v9255_v33, %s8519_s1  ;;  %1282 = vrot.lane.b32.xlu0 %v9241_v25, %s8518_s11  ;;  %v360_v50 = vld [vmem:[#allocation2 + $0x141] sm:$0xff] }
 0x113   :  { %v584_v41 = vpop.permute.xlu1 %583  ;;  %v582_v43 = vpop.permute.xlu0 %581 }
 0x114   :  { %v1069_v61 = vsel %vm87_vm0, %v277_v57, %v582_v43  ;;  %v9298_v43 = vld [vmem:[%s13449_s0 + $0x120] sm:$0xff] }
 0x115   :  { %885 = vrot.lane.b32.xlu1 %v429_v40, %s8517_s18  ;;  %1284 = vrot.lane.b32.xlu0 %v9226_v55, %s8518_s11  ;;  %233 = vst.msk [vmem:[#allocation2 + $0x1f9] sm:$0xff] %vm87_vm0, %v9298_v43  ;;  %v432_v57 = vld [vmem:[#allocation2 + $0x142] sm:$0xff] }
 0x117   :  { %v872_v53 = vpop.permute.xlu1 %871  ;;  %v870_v28 = vpop.permute.xlu0 %869 }
 0x118   :  { %v9289_v40 = vsel %vm1125_vm1, %v1069_v61, %v870_v28  ;;  %v279_v61 = vld [vmem:[#allocation2 + $0xd8] sm:$0xff] }
 0x119   :  { %599 = vrot.lane.b32.xlu0 %v358_v47, %s8516_s17  ;;  %887 = vrot.lane.b32.xlu1 %v430_v48, %s8517_s18  ;;  %v278_v47 = vld [vmem:[#allocation2 + $0xc8] sm:$0xff] }
 0x11b   :  { %v588_v29 = vpop.permute.xlu1 %587  ;;  %v586_v48 = vpop.permute.xlu0 %585 }
 0x11d   :  { %1480 = vrot.lane.b32.xlu0 %v9282_v60, %s8519_s1  ;;  %601 = vrot.lane.b32.xlu1 %v359_v62, %s8516_s17  ;;  %v1070_v62 = vsel %vm87_vm0, %v278_v47, %v584_v41  ;;  %v1071_v41 = vsel %vm87_vm0, %v279_v61, %v586_v48  ;;  %v9336_v48 = vld [vmem:[%s13449_s0 + $0x130] sm:$0xff]  ;;  %v362_v61 = vld [vmem:[#allocation2 + $0x159] sm:$0xff] }
 0x11e   :  { %235 = vst.msk [vmem:[#allocation2 + $0x211] sm:$0xff] %vm87_vm0, %v9336_v48 }
 0x11f   :  { %v876_v42 = vpop.permute.xlu1 %875  ;;  %v874_v47 = vpop.permute.xlu0 %873 }
 0x121   :  { %1286 = vrot.lane.b32.xlu0 %v9255_v33, %s8518_s11  ;;  %1482 = vrot.lane.b32.xlu1 %v9289_v40, %s8519_s1 }
 0x123   :  { %v9308_v28 = vpop.permute.xlu1 %551  ;;  %v550_v58 = vpop.permute.xlu0 %549 }
 0x125   :  { %1288 = vrot.lane.b32.xlu0 %v9282_v60, %s8518_s11  ;;  %889 = vrot.lane.b32.xlu1 %v431_v31, %s8517_s18  ;;  %v9316_v31 = vsel %vm1125_vm1, %v1070_v62, %v872_v53  ;;  %v433_v53 = vld [vmem:[#allocation2 + $0x152] sm:$0xff]  ;;  %v280_v62 = vld [vmem:[#allocation2 + $0xe0] sm:$0xff] }
 0x126   :  { %v1072_v3 = vsel %vm87_vm0, %v280_v62, %v588_v29 }
 0x127   :  { %v9355_v20 = vsel %vm1125_vm1, %v1072_v3, %v876_v42  ;;  %v838_v62 = vpop.permute.xlu0 %837  ;;  %v9370_v42 = vld [vmem:[%s13449_s0 + $0x140] sm:$0xff] }
 0x128   :  { %237 = vst.msk [vmem:[#allocation2 + $0x229] sm:$0xff] %vm87_vm0, %v9370_v42 }
 0x129   :  { %603 = vrot.lane.b32.xlu0 %v360_v50, %s8516_s17  ;;  %891 = vrot.lane.b32.xlu1 %v432_v57, %s8517_s18  ;;  %v9325_v50 = vsel %vm1125_vm1, %v1071_v41, %v874_v47  ;;  %v9327_v57 = vpop.permute.xlu1 %839  ;;  %v434_v41 = vld [vmem:[#allocation2 + $0x15a] sm:$0xff]  ;;  %v281_v47 = vld [vmem:[#allocation2 + $0xf0] sm:$0xff] }
 0x12b   :  { %v592_v3 = vpop.permute.xlu0 %591 }
 0x12d   :  { %1484 = vrot.lane.b32.xlu0 %v9316_v31, %s8519_s1  ;;  %605 = vrot.lane.b32.xlu1 %v361_v26, %s8516_s17  ;;  %v590_v26 = vpop.permute.xlu1 %589 }
 0x12e   :  { %v1073_v54 = vsel %vm87_vm0, %v281_v47, %v590_v26  ;;  %v435_v26 = vld [vmem:[#allocation2 + $0x16a] sm:$0xff]  ;;  %v436_v47 = vld [vmem:[#allocation2 + $0x172] sm:$0xff] }
 0x131   :  { %1290 = vrot.lane.b32.xlu0 %v9289_v40, %s8518_s11  ;;  %1486 = vrot.lane.b32.xlu1 %v9325_v50, %s8519_s1  ;;  %v878_v32 = vpop.permute.xlu1 %877 }
 0x132   :  { %v9361_v29 = vsel %vm1125_vm1, %v1073_v54, %v878_v32  ;;  %v364_v32 = vld [vmem:[#allocation2 + $0x171] sm:$0xff] }
 0x135   :  { %1292 = vrot.lane.b32.xlu0 %v9316_v31, %s8518_s11  ;;  %893 = vrot.lane.b32.xlu1 %v433_v53, %s8517_s18  ;;  %v363_v53 = vld [vmem:[#allocation2 + $0x169] sm:$0xff] }
 0x139   :  { %607 = vrot.lane.b32.xlu0 %v362_v61, %s8516_s17  ;;  %895 = vrot.lane.b32.xlu1 %v434_v41, %s8517_s18  ;;  %v880_v61 = vpop.permute.xlu1 %879  ;;  %v282_v41 = vld [vmem:[#allocation2 + $0xf8] sm:$0xff] }
 0x13d   :  { %1488 = vrot.lane.b32.xlu0 %v9355_v20, %s8519_s1  ;;  %609 = vrot.lane.b32.xlu1 %v363_v53, %s8516_s17  ;;  %v594_v54 = vpop.permute.xlu1 %593  ;;  %v1074_v53 = vsel %vm87_vm0, %v282_v41, %v592_v3  ;;  %v596_v3 = vpop.permute.xlu0 %595 }
 0x13e   :  { %v1075_v22 = vsel %vm87_vm0, %v283_v45, %v594_v54  ;;  %v261_v45 = vld [vmem:[#allocation2] sm:$0xff]  ;;  %v284_v54 = vld [vmem:[#allocation2 + $0x110] sm:$0xff] }
 0x13f   :  { %v1053_v11 = vsel %vm87_vm0, %v261_v45, %v550_v58  ;;  %v1076_v9 = vsel %vm87_vm0, %v284_v54, %v596_v3  ;;  %v367_v45 = vld [vmem:[#allocation2 + $0x199] sm:$0xff] }
 0x140   :  { %v1126_v14 = vsel %vm1125_vm1, %v1053_v11, %v838_v62 }
 0x141   :  { %1294 = vrot.lane.b32.xlu0 %v9325_v50, %s8518_s11  ;;  %1490 = vrot.lane.b32.xlu1 %v9361_v29, %s8519_s1  ;;  %v882_v41 = vpop.permute.xlu1 %881 }
 0x145   :  { %1296 = vrot.lane.b32.xlu0 %v9355_v20, %s8518_s11  ;;  %897 = vrot.lane.b32.xlu1 %v435_v26, %s8517_s18  ;;  %v9386_v26 = vsel %vm1125_vm1, %v1074_v53, %v880_v61  ;;  %v437_v61 = vld [vmem:[#allocation2 + $0x182] sm:$0xff] }
 0x146   :  { %v262_v53 = vld [vmem:[#allocation2 + $0x8] sm:$0xff] }
 0x149   :  { %611 = vrot.lane.b32.xlu0 %v364_v32, %s8516_s17  ;;  %899 = vrot.lane.b32.xlu1 %v436_v47, %s8517_s18  ;;  %v9395_v32 = vsel %vm1125_vm1, %v1075_v22, %v882_v41  ;;  %v438_v22 = vld [vmem:[#allocation2 + $0x18a] sm:$0xff]  ;;  %v1054_v41 = vsel %vm87_vm0, %v262_v53, %v9308_v28 }
 0x14d   :  { %1492 = vrot.lane.b32.xlu0 %v9386_v26, %s8519_s1  ;;  %613 = vrot.lane.b32.xlu1 %v365_v17, %s8516_s17  ;;  %v884_v17 = vpop.permute.xlu1 %883 }
 0x14e   :  { %v9416_v3 = vsel %vm1125_vm1, %v1076_v9, %v884_v17  ;;  %v368_v17 = vld [vmem:[#allocation2 + $0x1a1] sm:$0xff] }
 0x151   :  { %1298 = vrot.lane.b32.xlu0 %v9361_v29, %s8518_s11  ;;  %1494 = vrot.lane.b32.xlu1 %v9395_v32, %s8519_s1 }
 0x153   :  { %v1263_v47 = vpop.permute.xlu0 %1262 }
 0x154   :  { %v1651_v4 = vsel %vm1650_vm2, %v1126_v14, %v1263_v47 }
 0x155   :  { %1300 = vrot.lane.b32.xlu0 %v9386_v26, %s8518_s11  ;;  %901 = vrot.lane.b32.xlu1 %v437_v61, %s8517_s18  ;;  %v1127_v61 = vsel %vm1125_vm1, %v1054_v41, %v9327_v57 }
 0x157   :  { %v1265_v16 = vpop.permute.xlu0 %1264 }
 0x158   :  { %v1652_v28 = vsel %vm1650_vm2, %v1127_v61, %v1265_v16 }
 0x159   :  { %615 = vrot.lane.b32.xlu0 %v366_v44, %s8516_s17  ;;  %903 = vrot.lane.b32.xlu1 %v438_v22, %s8517_s18 }
 0x15b   :  { %v1459_v58 = vpop.permute.xlu1 %1458  ;;  %v1461_v53 = vpop.permute.xlu0 %1460 }
 0x15c   :  { %v1717_v44 = vsel %vm1715_vm3, %v1652_v28, %v1461_v53  ;;  %v1716_v54 = vsel %vm1715_vm3, %v1651_v4, %v1459_v58 }
 0x15d   :  { %1496 = vrot.lane.b32.xlu0 %v9416_v3, %s8519_s1  ;;  %8062 = vmatprep.mubr.msk.f32.mxu0 %vm1796_vm4, %v1716_v54 }
 0x15e   :  { %8063 = vmatmul.mubr.msk.f32.vlgmr.msra.gmra.mrb[0].mxu0 %vm1796_vm4, %v1717_v44  ;;  %617 = vrot.lane.b32.xlu1 %v367_v45, %s8516_s17 }
 0x15f   :  { %v1269_v11 = vpop.permute.xlu1 %1268  ;;  %v1267_v14 = vpop.permute.xlu0 %1266 }
 0x160   :  { %v1654_v9 = vsel %vm1650_vm2, %v9158_v30, %v1269_v11  ;;  %v1653_v4 = vsel %vm1650_vm2, %v9152_v23, %v1267_v14 }
 0x161   :  { %1302 = vrot.lane.b32.xlu0 %v9395_v32, %s8518_s11 }
 0x163   :  { %v1465_v16 = vpop.permute.xlu1 %1464  ;;  %v1463_v57 = vpop.permute.xlu0 %1462 }
 0x164   :  { %v1719_v62 = vsel %vm1715_vm3, %v1654_v9, %v1465_v16  ;;  %v1718_v47 = vsel %vm1715_vm3, %v1653_v4, %v1463_v57  ;;  %v9463_v16 = vld [vmem:[%s13449_s0 + $0x158] sm:$0xff] }
 0x165   :  { %1304 = vrot.lane.b32.xlu0 %v9416_v3, %s8518_s11  ;;  %8065 = vmatprep.mubr.msk.f32.mxu0 %vm1796_vm4, %v1718_v47  ;;  %13656 = vst [vmem:[#allocation28_spill] sm:$0xff] %v9463_v16  ;;  %240 = vst.msk [vmem:[#allocation2 + $0x249] sm:$0xff] %vm87_vm0, %v9463_v16 }
 0x166   :  { %8066 = vmatmul.mubr.msk.f32.gmra.mrb[2].mxu0 %vm1796_vm4, %v1719_v62 }
 0x167   :  { %v1273_v22 = vpop.permute.xlu1 %1272  ;;  %v1271_v41 = vpop.permute.xlu0 %1270 }
 0x168   :  { %v1656_v23 = vsel %vm1650_vm2, %v9168_v38, %v1273_v22  ;;  %v1655_v30 = vsel %vm1650_vm2, %v9165_v37, %v1271_v41  ;;  %v9452_v37 = vld [vmem:[%s13449_s0 + $0x150] sm:$0xff] }
 0x169   :  { %619 = vrot.lane.b32.xlu0 %v368_v17, %s8516_s17  ;;  %239 = vst.msk [vmem:[#allocation2 + $0x241] sm:$0xff] %vm87_vm0, %v9452_v37 }
 0x16b   :  { %v1469_v61 = vpop.permute.xlu1 %1468  ;;  %v1467_v28 = vpop.permute.xlu0 %1466 }
 0x16c   :  { %v1721_v58 = vsel %vm1715_vm3, %v1656_v23, %v1469_v61  ;;  %v1720_v53 = vsel %vm1715_vm3, %v1655_v30, %v1467_v28  ;;  %v285_v28 = vld [vmem:[#allocation2 + $0x120] sm:$0xff] }
 0x16d   :  { %8068 = vmatprep.mubr.msk.f32.mxu0 %vm1796_vm4, %v1720_v53 }
 0x16e   :  { %8069 = vmatmul.mubr.msk.f32.gmra.mrb[4].mxu0 %vm1796_vm4, %v1721_v58 }
 0x16f   :  { %v1275_v45 = vpop.permute.xlu0 %1274 }
 0x170   :  { %v1657_v44 = vsel %vm1650_vm2, %v9184_v52, %v1275_v45 }
 0x173   :  { %v1471_v54 = vpop.permute.xlu1 %1470  ;;  %v1277_v11 = vpop.permute.xlu0 %1276 }
 0x174   :  { %v1722_v38 = vsel %vm1715_vm3, %v1657_v44, %v1471_v54  ;;  %v1658_v14 = vsel %vm1650_vm2, %v9181_v51, %v1277_v11  ;;  %v286_v54 = vld [vmem:[#allocation2 + $0x128] sm:$0xff]  ;;  %v439_v11 = vld [vmem:[#allocation2 + $0x19a] sm:$0xff] }
 0x175   :  { %8071 = vmatprep.mubr.msk.f32.mxu0 %vm1796_vm4, %v1722_v38 }
 0x177   :  { %v1281_v9 = vpop.permute.xlu1 %1280  ;;  %v1473_v4 = vpop.permute.xlu0 %1472 }
 0x178   :  { %v1723_v52 = vsel %vm1715_vm3, %v1658_v14, %v1473_v4  ;;  %v1660_v22 = vsel %vm1650_vm2, %v9197_v63, %v1281_v9  ;;  %v9490_v9 = vld [vmem:[%s13449_s0 + $0x160] sm:$0xff] }
 0x179   :  { %8072 = vmatmul.mubr.msk.f32.gmra.mrb[6].mxu0 %vm1796_vm4, %v1723_v52  ;;  %241 = vst.msk [vmem:[#allocation2 + $0x259] sm:$0xff] %vm87_vm0, %v9490_v9  ;;  %v440_v52 = vld [vmem:[#allocation2 + $0x1a2] sm:$0xff] }
 0x17b   :  { %v1477_v57 = vpop.permute.xlu1 %1476  ;;  %v1279_v62 = vpop.permute.xlu0 %1278 }
 0x17c   :  { %v1659_v47 = vsel %vm1650_vm2, %v9200_v24, %v1279_v62  ;;  %v1725_v23 = vsel %vm1715_vm3, %v1660_v22, %v1477_v57  ;;  %v9508_v22 = vld [vmem:[%s13449_s0 + $0x168] sm:$0xff] }
 0x17d   :  { %13657 = vst [vmem:[#allocation29_spill] sm:$0xff] %v9508_v22  ;;  %242 = vst.msk [vmem:[#allocation2 + $0x261] sm:$0xff] %vm87_vm0, %v9508_v22 }
 0x17f   :  { %v598_v51 = vpop.permute.xlu1 %597  ;;  %v1475_v17 = vpop.permute.xlu0 %1474 }
 0x180   :  { %v1724_v41 = vsel %vm1715_vm3, %v1659_v47, %v1475_v17  ;;  %v1077_v63 = vsel %vm87_vm0, %v285_v28, %v598_v51  ;;  %v371_v51 = vld [vmem:[#allocation2 + $0x1c9] sm:$0xff]  ;;  %v373_v28 = vld [vmem:[#allocation2 + $0x1e1] sm:$0xff] }
 0x181   :  { %8074 = vmatprep.mubr.msk.f32.mxu0 %vm1796_vm4, %v1724_v41 }
 0x182   :  { %8075 = vmatmul.mubr.msk.f32.gmra.mrb[8].mxu0 %vm1796_vm4, %v1725_v23  ;;  %v372_v23 = vld [vmem:[#allocation2 + $0x1d1] sm:$0xff] }
 0x183   :  { %v1479_v30 = vpop.permute.xlu1 %1478  ;;  %v1283_v61 = vpop.permute.xlu0 %1282 }
 0x184   :  { %v1661_v58 = vsel %vm1650_vm2, %v9210_v36, %v1283_v61 }
 0x185   :  { %v1726_v24 = vsel %vm1715_vm3, %v1661_v58, %v1479_v30  ;;  %v287_v58 = vld [vmem:[#allocation2 + $0x138] sm:$0xff] }
 0x186   :  { %8077 = vmatprep.mubr.msk.f32.mxu0 %vm1796_vm4, %v1726_v24 }
 0x187   :  { %v886_v53 = vpop.permute.xlu1 %885  ;;  %v1285_v45 = vpop.permute.xlu0 %1284 }
 0x188   :  { %v9482_v44 = vsel %vm1125_vm1, %v1077_v63, %v886_v53  ;;  %v1662_v57 = vsel %vm1650_vm2, %v9218_v46, %v1285_v45  ;;  %v443_v53 = vld [vmem:[#allocation2 + $0x1ca] sm:$0xff] }
 0x189   :  { %1498 = vrot.lane.b32.xlu1 %v9482_v44, %s8519_s1 }
 0x18b   :  { %v600_v38 = vpop.permute.xlu0 %599  ;;  %v888_v14 = vpop.permute.xlu1 %887 }
 0x18c   :  { %v1078_v36 = vsel %vm87_vm0, %v286_v54, %v600_v38 }
 0x18d   :  { %v9493_v4 = vsel %vm1125_vm1, %v1078_v36, %v888_v14  ;;  %905 = vrot.lane.b32.xlu1 %v439_v11, %s8517_s18  ;;  %v9526_v11 = vld [vmem:[%s13449_s0 + $0x170] sm:$0xff]  ;;  %v288_v14 = vld [vmem:[#allocation2 + $0x140] sm:$0xff] }
 0x18e   :  { %1500 = vrot.lane.b32.xlu0 %v9493_v4, %s8519_s1  ;;  %243 = vst.msk [vmem:[#allocation2 + $0x271] sm:$0xff] %vm87_vm0, %v9526_v11  ;;  %v374_v36 = vld [vmem:[#allocation2 + $0x1e9] sm:$0xff] }
 0x18f   :  { %v1481_v62 = vpop.permute.xlu0 %1480  ;;  %v602_v47 = vpop.permute.xlu1 %601 }
 0x190   :  { %v1727_v17 = vsel %vm1715_vm3, %v1662_v57, %v1481_v62  ;;  %v1079_v45 = vsel %vm87_vm0, %v287_v58, %v602_v47  ;;  %v444_v47 = vld [vmem:[#allocation2 + $0x1d2] sm:$0xff] }
 0x191   :  { %907 = vrot.lane.b32.xlu1 %v440_v52, %s8517_s18  ;;  %8078 = vmatmul.mubr.msk.f32.gmra.mrb[10].mxu0 %vm1796_vm4, %v1727_v17 }
 0x192   :  { %625 = vrot.lane.b32.xlu0 %v371_v51, %s8516_s17 }
 0x193   :  { %v1287_v46 = vpop.permute.xlu0 %1286  ;;  %v1483_v41 = vpop.permute.xlu1 %1482 }
 0x194   :  { %v1663_v30 = vsel %vm1650_vm2, %v9241_v25, %v1287_v46  ;;  %v9546_v46 = vld [vmem:[%s13449_s0 + $0x178] sm:$0xff] }
 0x195   :  { %v1728_v61 = vsel %vm1715_vm3, %v1663_v30, %v1483_v41  ;;  %1306 = vrot.lane.b32.xlu1 %v9482_v44, %s8518_s11  ;;  %13658 = vst [vmem:[#allocation30_spill] sm:$0xff] %v9546_v46  ;;  %v445_v41 = vld [vmem:[#allocation2 + $0x1e2] sm:$0xff]  ;;  %244 = vst.msk [vmem:[#allocation2 + $0x279] sm:$0xff] %vm87_vm0, %v9546_v46  ;;  %v10006_v46 = vld [vmem:[%s13449_s0 + $0x1f8] sm:$0xff] }
 0x196   :  { %627 = vrot.lane.b32.xlu0 %v372_v23, %s8516_s17  ;;  %8080 = vmatprep.mubr.msk.f32.mxu0 %vm1796_vm4, %v1728_v61  ;;  %v2870_v23 = vld [vmem:[%s13452_s3 + $0x8] sm:$0xff]  ;;  %13673 = vst [vmem:[#allocation45_spill] sm:$0xff] %v10006_v46  ;;  %260 = vst.msk [vmem:[#allocation2 + $0x339] sm:$0xff] %vm87_vm0, %v10006_v46 }
 0x197   :  { %v1289_v24 = vpop.permute.xlu0 %1288  ;;  %v890_v63 = vpop.permute.xlu1 %889 }
 0x198   :  { %v9529_v38 = vsel %vm1125_vm1, %v1079_v45, %v890_v63  ;;  %v1664_v52 = vsel %vm1650_vm2, %v9226_v55, %v1289_v24  ;;  %v2869_v55 = vld [vmem:[%s13452_s3] sm:$0xff]  ;;  %v8520_v63 = vmov 0.0|0.0   ;;  %v446_v45 = vld [vmem:[#allocation2 + $0x1ea] sm:$0xff] }
 0x199   :  { %629 = vrot.lane.b32.xlu1 %v373_v28, %s8516_s17  ;;  %v8351_v58 = vpack.c.bf16 %v2870_v23, %v2869_v55  ;;  %8430 = vmatprep.subr.bf16.mxu1 %v8520_v63  ;;  %v9590_v23 = vld [vmem:[%s13449_s0 + $0x180] sm:$0xff] }
 0x19a   :  { %913 = vrot.lane.b32.xlu0 %v443_v53, %s8517_s18  ;;  %8350 = vmatprep.subr.bf16.mxu0 %v8520_v63  ;;  %13659 = vst [vmem:[#allocation31_spill] sm:$0xff] %v9590_v23  ;;  %245 = vst.msk [vmem:[#allocation2 + $0x289] sm:$0xff] %vm87_vm0, %v9590_v23 }
 0x19b   :  { %v604_v25 = vpop.permute.xlu0 %603  ;;  %v892_v54 = vpop.permute.xlu1 %891  ;;  %8446 = vmatpush1.bf16.msra.mxu1 %v8351_v58  ;;  %8352 = vmatpush1.bf16.msra.mxu0 %v8351_v58  ;;  %v2875_v58 = vld [vmem:[%s13452_s3 + $0x30] sm:$0xff] }
 0x19c   :  { %v1080_v51 = vsel %vm87_vm0, %v288_v14, %v604_v25  ;;  %v2872_v25 = vld [vmem:[%s13452_s3 + $0x18] sm:$0xff]  ;;  %8431 = vmatprep.subr.bf16.mxu1 %v8520_v63  ;;  %8353 = vmatprep.subr.bf16.mxu0 %v8520_v63 }
 0x19d   :  { %1308 = vrot.lane.b32.xlu1 %v9493_v4, %s8518_s11  ;;  %v9558_v30 = vsel %vm1125_vm1, %v1080_v51, %v892_v54  ;;  %v2874_v51 = vld [vmem:[%s13452_s3 + $0x28] sm:$0xff] }
 0x19e   :  { %1502 = vrot.lane.b32.xlu0 %v9529_v38, %s8519_s1 }
 0x19f   :  { %v1485_v57 = vpop.permute.xlu0 %1484  ;;  %v606_v62 = vpop.permute.xlu1 %605 }
 0x1a0   :  { %v1729_v17 = vsel %vm1715_vm3, %v1664_v52, %v1485_v57  ;;  %v289_v52 = vld [vmem:[#allocation2 + $0x150] sm:$0xff]  ;;  %v375_v57 = vld [vmem:[#allocation2 + $0x1f9] sm:$0xff] }
 0x1a1   :  { %631 = vrot.lane.b32.xlu1 %v374_v36, %s8516_s17  ;;  %8081 = vmatmul.mubr.msk.f32.gmra.mrb[12].mxu0 %vm1796_vm4, %v1729_v17 }
 0x1a2   :  { %915 = vrot.lane.b32.xlu0 %v444_v47, %s8517_s18  ;;  %v2873_v47 = vld [vmem:[%s13452_s3 + $0x20] sm:$0xff] }
 0x1a3   :  { %v1291_v61 = vpop.permute.xlu0 %1290  ;;  %v1487_v28 = vpop.permute.xlu1 %1486  ;;  %v8357_v55 = vpack.c.bf16 %v2874_v51, %v2873_v47  ;;  %v2878_v47 = vld [vmem:[%s13452_s3 + $0x48] sm:$0xff] }
 0x1a4   :  { %v1665_v24 = vsel %vm1650_vm2, %v9255_v33, %v1291_v61  ;;  %v2871_v33 = vld [vmem:[%s13452_s3 + $0x10] sm:$0xff]  ;;  %v1081_v61 = vsel %vm87_vm0, %v289_v52, %v606_v62  ;;  %v2876_v62 = vld [vmem:[%s13452_s3 + $0x38] sm:$0xff] }
 0x1a5   :  { %v1730_v53 = vsel %vm1715_vm3, %v1665_v24, %v1487_v28  ;;  %917 = vrot.lane.b32.xlu1 %v445_v41, %s8517_s18  ;;  %v8354_v36 = vpack.c.bf16 %v2872_v25, %v2871_v33  ;;  %v290_v28 = vld [vmem:[#allocation2 + $0x158] sm:$0xff]  ;;  %v376_v33 = vld [vmem:[#allocation2 + $0x201] sm:$0xff]  ;;  %v8360_v25 = vpack.c.bf16 %v2876_v62, %v2875_v58  ;;  %v2879_v62 = vld [vmem:[%s13452_s3 + $0x50] sm:$0xff] }
 0x1a6   :  { %1504 = vrot.lane.b32.xlu0 %v9558_v30, %s8519_s1  ;;  %8083 = vmatprep.mubr.msk.f32.mxu0 %vm1796_vm4, %v1730_v53 }
 0x1a7   :  { %v1293_v54 = vpop.permute.xlu0 %1292  ;;  %v894_v14 = vpop.permute.xlu1 %893  ;;  %8447 = vmatpush1.bf16.msra.mxu1 %v8354_v36  ;;  %8355 = vmatpush1.bf16.msra.mxu0 %v8354_v36 }
 0x1a8   :  { %8432 = vmatprep.subr.bf16.mxu1 %v8520_v63  ;;  %8356 = vmatprep.subr.bf16.mxu0 %v8520_v63  ;;  %v1666_v24 = vsel %vm1650_vm2, %v9282_v60, %v1293_v54  ;;  %v9609_v36 = vsel %vm1125_vm1, %v1081_v61, %v894_v14  ;;  %v9620_v60 = vld [vmem:[%s13449_s0 + $0x188] sm:$0xff]  ;;  %v447_v54 = vld [vmem:[#allocation2 + $0x1fa] sm:$0xff] }
 0x1a9   :  { %919 = vrot.lane.b32.xlu1 %v446_v45, %s8517_s18  ;;  %13660 = vst [vmem:[#allocation32_spill] sm:$0xff] %v9620_v60  ;;  %v2877_v14 = vld [vmem:[%s13452_s3 + $0x40] sm:$0xff]  ;;  %246 = vst.msk [vmem:[#allocation2 + $0x291] sm:$0xff] %vm87_vm0, %v9620_v60 }
 0x1aa   :  { %1310 = vrot.lane.b32.xlu0 %v9529_v38, %s8518_s11  ;;  %v8363_v61 = vpack.c.bf16 %v2878_v47, %v2877_v14 }
 0x1ab   :  { %v608_v17 = vpop.permute.xlu0 %607  ;;  %v896_v41 = vpop.permute.xlu1 %895  ;;  %8448 = vmatpush1.bf16.msra.mxu1 %v8357_v55  ;;  %8358 = vmatpush1.bf16.msra.mxu0 %v8357_v55 }
 0x1ac   :  { %8433 = vmatprep.subr.bf16.mxu1 %v8520_v63  ;;  %v1082_v52 = vsel %vm87_vm0, %v290_v28, %v608_v17  ;;  %8359 = vmatprep.subr.bf16.mxu0 %v8520_v63 }
 0x1ad   :  { %633 = vrot.lane.b32.xlu1 %v375_v57, %s8516_s17  ;;  %v9632_v51 = vsel %vm1125_vm1, %v1082_v52, %v896_v41  ;;  %v448_v41 = vld [vmem:[#allocation2 + $0x202] sm:$0xff]  ;;  %v377_v52 = vld [vmem:[#allocation2 + $0x211] sm:$0xff] }
 0x1ae   :  { %1312 = vrot.lane.b32.xlu0 %v9558_v30, %s8518_s11 }
 0x1af   :  { %v1489_v53 = vpop.permute.xlu0 %1488  ;;  %v610_v45 = vpop.permute.xlu1 %609  ;;  %8449 = vmatpush1.bf16.msra.mxu1 %v8360_v25  ;;  %8361 = vmatpush1.bf16.msra.mxu0 %v8360_v25  ;;  %v291_v25 = vld [vmem:[#allocation2 + $0x168] sm:$0xff] }
 0x1b0   :  { %v1731_v57 = vsel %vm1715_vm3, %v1666_v24, %v1489_v53  ;;  %8434 = vmatprep.subr.bf16.mxu1 %v8520_v63  ;;  %8362 = vmatprep.subr.bf16.mxu0 %v8520_v63 }
 0x1b1   :  { %1506 = vrot.lane.b32.xlu1 %v9609_v36, %s8519_s1  ;;  %8084 = vmatmul.mubr.msk.f32.gmra.mrb[14].mxu0 %vm1796_vm4, %v1731_v57  ;;  %v2881_v57 = vld [vmem:[%s13452_s3 + $0x60] sm:$0xff] }
 0x1b2   :  { %635 = vrot.lane.b32.xlu0 %v376_v33, %s8516_s17 }
 0x1b3   :  { %v1295_v17 = vpop.permute.xlu0 %1294  ;;  %v1491_v55 = vpop.permute.xlu1 %1490  ;;  %8450 = vmatpush1.bf16.msra.mxu1 %v8363_v61  ;;  %8364 = vmatpush1.bf16.msra.mxu0 %v8363_v61  ;;  %v1083_v61 = vsel %vm87_vm0, %v291_v25, %v610_v45 }
 0x1b4   :  { %v1667_v28 = vsel %vm1650_vm2, %v9289_v40, %v1295_v17  ;;  %v2880_v40 = vld [vmem:[%s13452_s3 + $0x58] sm:$0xff]  ;;  %8435 = vmatprep.subr.bf16.mxu1 %v8520_v63  ;;  %8365 = vmatprep.subr.bf16.mxu0 %v8520_v63 }
 0x1b5   :  { %v1732_v58 = vsel %vm1715_vm3, %v1667_v28, %v1491_v55  ;;  %921 = vrot.lane.b32.xlu1 %v447_v54, %s8517_s18  ;;  %v8366_v33 = vpack.c.bf16 %v2880_v40, %v2879_v62  ;;  %v2882_v54 = vld [vmem:[%s13452_s3 + $0x68] sm:$0xff]  ;;  %v9664_v55 = vld [vmem:[%s13449_s0 + $0x190] sm:$0xff] }
 0x1b6   :  { %1508 = vrot.lane.b32.xlu0 %v9632_v51, %s8519_s1  ;;  %8086 = vmatprep.mubr.msk.f32.mxu0 %vm1796_vm4, %v1732_v58  ;;  %v8369_v17 = vpack.c.bf16 %v2882_v54, %v2881_v57  ;;  %13661 = vst [vmem:[#allocation33_spill] sm:$0xff] %v9664_v55  ;;  %v292_v28 = vld [vmem:[#allocation2 + $0x170] sm:$0xff]  ;;  %247 = vst.msk [vmem:[#allocation2 + $0x2a1] sm:$0xff] %vm87_vm0, %v9664_v55 }
 0x1b7   :  { %v1297_v24 = vpop.permute.xlu0 %1296  ;;  %v898_v53 = vpop.permute.xlu1 %897  ;;  %8451 = vmatpush1.bf16.msra.mxu1 %v8366_v33  ;;  %8367 = vmatpush1.bf16.msra.mxu0 %v8366_v33  ;;  %v2883_v58 = vld [vmem:[%s13452_s3 + $0x70] sm:$0xff]  ;;  %v378_v33 = vld [vmem:[#allocation2 + $0x219] sm:$0xff] }
 0x1b8   :  { %8436 = vmatprep.subr.bf16.mxu1 %v8520_v63  ;;  %8368 = vmatprep.subr.bf16.mxu0 %v8520_v63  ;;  %v1668_v45 = vsel %vm1650_vm2, %v9316_v31, %v1297_v24  ;;  %v9694_v31 = vld [vmem:[%s13449_s0 + $0x198] sm:$0xff] }
 0x1b9   :  { %923 = vrot.lane.b32.xlu1 %v448_v41, %s8517_s18  ;;  %v2884_v41 = vld [vmem:[%s13452_s3 + $0x78] sm:$0xff]  ;;  %13662 = vst [vmem:[#allocation34_spill] sm:$0xff] %v9694_v31  ;;  %248 = vst.msk [vmem:[#allocation2 + $0x2a9] sm:$0xff] %vm87_vm0, %v9694_v31  ;;  %v305_v31 = vld [vmem:[#allocation2 + $0x210] sm:$0xff] }
 0x1ba   :  { %1314 = vrot.lane.b32.xlu0 %v9609_v36, %s8518_s11  ;;  %v8372_v25 = vpack.c.bf16 %v2884_v41, %v2883_v58  ;;  %v449_v24 = vld [vmem:[#allocation2 + $0x212] sm:$0xff] }
 0x1bb   :  { %v612_v14 = vpop.permute.xlu0 %611  ;;  %v900_v47 = vpop.permute.xlu1 %899  ;;  %8452 = vmatpush1.bf16.msra.mxu1 %v8369_v17  ;;  %8370 = vmatpush1.bf16.msra.mxu0 %v8369_v17 }
 0x1bc   :  { %v1084_v57 = vsel %vm87_vm0, %v292_v28, %v612_v14  ;;  %8437 = vmatprep.subr.bf16.mxu1 %v8520_v63  ;;  %8371 = vmatprep.subr.bf16.mxu0 %v8520_v63  ;;  %v2886_v14 = vld [vmem:[%s13452_s3 + $0x88] sm:$0xff] }
 0x1bd   :  { %637 = vrot.lane.b32.xlu1 %v377_v52, %s8516_s17  ;;  %v9682_v52 = vsel %vm1125_vm1, %v1083_v61, %v898_v53  ;;  %v2885_v53 = vld [vmem:[%s13452_s3 + $0x80] sm:$0xff]  ;;  %v9706_v17 = vsel %vm1125_vm1, %v1084_v57, %v900_v47 }
 0x1be   :  { %1316 = vrot.lane.b32.xlu0 %v9632_v51, %s8518_s11  ;;  %v8375_v58 = vpack.c.bf16 %v2886_v14, %v2885_v53  ;;  %v450_v47 = vld [vmem:[#allocation2 + $0x21a] sm:$0xff]  ;;  %v2890_v53 = vld [vmem:[%s13452_s3 + $0xa8] sm:$0xff] }
 0x1bf   :  { %v1493_v62 = vpop.permute.xlu0 %1492  ;;  %v614_v40 = vpop.permute.xlu1 %613  ;;  %8453 = vmatpush1.bf16.msra.mxu1 %v8372_v25  ;;  %8373 = vmatpush1.bf16.msra.mxu0 %v8372_v25  ;;  %v293_v57 = vld [vmem:[#allocation2 + $0x180] sm:$0xff] }
 0x1c0   :  { %v1733_v54 = vsel %vm1715_vm3, %v1668_v45, %v1493_v62  ;;  %8438 = vmatprep.subr.bf16.mxu1 %v8520_v63  ;;  %8374 = vmatprep.subr.bf16.mxu0 %v8520_v63  ;;  %v2887_v62 = vld [vmem:[%s13452_s3 + $0x90] sm:$0xff] }
 0x1c1   :  { %1510 = vrot.lane.b32.xlu1 %v9682_v52, %s8519_s1  ;;  %8087 = vmatmul.mubr.msk.f32.gmra.mrb[16].mxu0 %vm1796_vm4, %v1733_v54  ;;  %v379_v54 = vld [vmem:[#allocation2 + $0x229] sm:$0xff] }
 0x1c2   :  { %639 = vrot.lane.b32.xlu0 %v378_v33, %s8516_s17 }
 0x1c3   :  { %v1299_v61 = vpop.permute.xlu0 %1298  ;;  %v1495_v28 = vpop.permute.xlu1 %1494  ;;  %8454 = vmatpush1.bf16.msra.mxu1 %v8375_v58  ;;  %8376 = vmatpush1.bf16.msra.mxu0 %v8375_v58  ;;  %v1085_v58 = vsel %vm87_vm0, %v293_v57, %v614_v40 }
 0x1c4   :  { %v1669_v41 = vsel %vm1650_vm2, %v9325_v50, %v1299_v61  ;;  %v2888_v50 = vld [vmem:[%s13452_s3 + $0x98] sm:$0xff]  ;;  %8439 = vmatprep.subr.bf16.mxu1 %v8520_v63  ;;  %8377 = vmatprep.subr.bf16.mxu0 %v8520_v63 }
 0x1c5   :  { %v1734_v45 = vsel %vm1715_vm3, %v1669_v41, %v1495_v28  ;;  %925 = vrot.lane.b32.xlu1 %v449_v24, %s8517_s18  ;;  %v8378_v25 = vpack.c.bf16 %v2888_v50, %v2887_v62  ;;  %v2889_v24 = vld [vmem:[%s13452_s3 + $0xa0] sm:$0xff]  ;;  %v294_v41 = vld [vmem:[#allocation2 + $0x188] sm:$0xff] }
 0x1c6   :  { %1512 = vrot.lane.b32.xlu0 %v9706_v17, %s8519_s1  ;;  %8089 = vmatprep.mubr.msk.f32.mxu0 %vm1796_vm4, %v1734_v45  ;;  %v8381_v61 = vpack.c.bf16 %v2890_v53, %v2889_v24  ;;  %v2891_v45 = vld [vmem:[%s13452_s3 + $0xb0] sm:$0xff] }
 0x1c7   :  { %v1301_v33 = vpop.permute.xlu0 %1300  ;;  %8455 = vmatpush1.bf16.msra.mxu1 %v8378_v25  ;;  %8379 = vmatpush1.bf16.msra.mxu0 %v8378_v25  ;;  %v902_v28 = vpop.permute.xlu1 %901  ;;  %v380_v25 = vld [vmem:[#allocation2 + $0x231] sm:$0xff] }
 0x1c8   :  { %8440 = vmatprep.subr.bf16.mxu1 %v8520_v63  ;;  %8380 = vmatprep.subr.bf16.mxu0 %v8520_v63  ;;  %v1670_v62 = vsel %vm1650_vm2, %v9355_v20, %v1301_v33  ;;  %v1158_v57 = vsel %vm1125_vm1, %v1085_v58, %v902_v28  ;;  %v451_v20 = vld [vmem:[#allocation2 + $0x22a] sm:$0xff]  ;;  %v2893_v33 = vld [vmem:[%s13452_s3 + $0xc0] sm:$0xff]  ;;  %v452_v58 = vld [vmem:[#allocation2 + $0x232] sm:$0xff] }
 0x1c9   :  { %927 = vrot.lane.b32.xlu1 %v450_v47, %s8517_s18  ;;  %v2892_v47 = vld [vmem:[%s13452_s3 + $0xb8] sm:$0xff] }
 0x1ca   :  { %1318 = vrot.lane.b32.xlu0 %v9682_v52, %s8518_s11  ;;  %v8384_v40 = vpack.c.bf16 %v2892_v47, %v2891_v45  ;;  %v2896_v45 = vld [vmem:[%s13452_s3 + $0xd8] sm:$0xff] }
 0x1cb   :  { %v616_v14 = vpop.permute.xlu0 %615  ;;  %8456 = vmatpush1.bf16.msra.mxu1 %v8381_v61  ;;  %8382 = vmatpush1.bf16.msra.mxu0 %v8381_v61  ;;  %v904_v53 = vpop.permute.xlu1 %903 }
 0x1cc   :  { %8441 = vmatprep.subr.bf16.mxu1 %v8520_v63  ;;  %8383 = vmatprep.subr.bf16.mxu0 %v8520_v63 }
 0x1cd   :  { %641 = vrot.lane.b32.xlu1 %v379_v54, %s8516_s17  ;;  %v1086_v54 = vsel %vm87_vm0, %v294_v41, %v616_v14  ;;  %v2894_v14 = vld [vmem:[%s13452_s3 + $0xc8] sm:$0xff]  ;;  %v2895_v41 = vld [vmem:[%s13452_s3 + $0xd0] sm:$0xff] }
 0x1ce   :  { %1320 = vrot.lane.b32.xlu0 %v9706_v17, %s8518_s11  ;;  %v1159_v61 = vsel %vm1125_vm1, %v1086_v54, %v904_v53  ;;  %v8387_v28 = vpack.c.bf16 %v2894_v14, %v2893_v33  ;;  %v8390_v47 = vpack.c.bf16 %v2896_v45, %v2895_v41  ;;  %v2899_v54 = vld [vmem:[%s13452_s3 + $0xf0] sm:$0xff]  ;;  %v9806_v14 = vld [vmem:[%s13449_s0 + $0x1a8] sm:$0xff]  ;;  %v295_v45 = vld [vmem:[#allocation2 + $0x198] sm:$0xff] }
 0x1cf   :  { %v1497_v50 = vpop.permute.xlu0 %1496  ;;  %8457 = vmatpush1.bf16.msra.mxu1 %v8384_v40  ;;  %8385 = vmatpush1.bf16.msra.mxu0 %v8384_v40  ;;  %13663 = vst [vmem:[#allocation35_spill] sm:$0xff] %v9806_v14  ;;  %250 = vst.msk [vmem:[#allocation2 + $0x2c1] sm:$0xff] %vm87_vm0, %v9806_v14 }
 0x1d0   :  { %v1735_v24 = vsel %vm1715_vm3, %v1670_v62, %v1497_v50  ;;  %8442 = vmatprep.subr.bf16.mxu1 %v8520_v63  ;;  %8386 = vmatprep.subr.bf16.mxu0 %v8520_v63  ;;  %v381_v62 = vld [vmem:[#allocation2 + $0x241] sm:$0xff] }
 0x1d1   :  { %1514 = vrot.lane.b32.xlu1 %v1158_v57, %s8519_s1  ;;  %8090 = vmatmul.mubr.msk.f32.gmra.mrb[18].mxu0 %vm1796_vm4, %v1735_v24  ;;  %v2897_v50 = vld [vmem:[%s13452_s3 + $0xe0] sm:$0xff]  ;;  %v382_v24 = vld [vmem:[#allocation2 + $0x249] sm:$0xff] }
 0x1d2   :  { %643 = vrot.lane.b32.xlu0 %v380_v25, %s8516_s17  ;;  %v2898_v25 = vld [vmem:[%s13452_s3 + $0xe8] sm:$0xff] }
 0x1d3   :  { %8458 = vmatpush1.bf16.msra.mxu1 %v8387_v28  ;;  %8388 = vmatpush1.bf16.msra.mxu0 %v8387_v28  ;;  %v8393_v40 = vpack.c.bf16 %v2898_v25, %v2897_v50  ;;  %v1303_v33 = vpop.permute.xlu0 %1302 }
 0x1d4   :  { %8443 = vmatprep.subr.bf16.mxu1 %v8520_v63  ;;  %8389 = vmatprep.subr.bf16.mxu0 %v8520_v63 }
 0x1d5   :  { %929 = vrot.lane.b32.xlu1 %v451_v20, %s8517_s18  ;;  %v9799_v20 = vld [vmem:[%s13449_s0 + $0x1a0] sm:$0xff] }
 0x1d6   :  { %1516 = vrot.lane.b32.xlu0 %v1159_v61, %s8519_s1  ;;  %249 = vst.msk [vmem:[#allocation2 + $0x2b9] sm:$0xff] %vm87_vm0, %v9799_v20 }
 0x1d7   :  { %8459 = vmatpush1.bf16.msra.mxu1 %v8390_v47  ;;  %8391 = vmatpush1.bf16.msra.mxu0 %v8390_v47 }
 0x1d8   :  { %8444 = vmatprep.subr.bf16.mxu1 %v8520_v63  ;;  %8392 = vmatprep.subr.bf16.mxu0 %v8520_v63 }
 0x1d9   :  { %931 = vrot.lane.b32.xlu1 %v452_v58, %s8517_s18  ;;  %v1671_v58 = vsel %vm1650_vm2, %v9361_v29, %v1303_v33 }
 0x1da   :  { %1322 = vrot.lane.b32.xlu0 %v1158_v57, %s8518_s11  ;;  %v2900_v57 = vld [vmem:[%s13452_s3 + $0xf8] sm:$0xff] }
 0x1db   :  { %8460 = vmatpush1.bf16.msra.mxu1 %v8393_v40  ;;  %v8396_v53 = vpack.c.bf16 %v2900_v57, %v2899_v54  ;;  %8394 = vmatpush1.bf16.msra.mxu0 %v8393_v40 }
 0x1dc   :  { %8445 = vmatprep.subr.bf16.mxu1 %v8520_v63  ;;  %8395 = vmatprep.subr.bf16.mxu0 %v8520_v63  ;;  %v618_v63 = vpop.permute.xlu1 %617 }
 0x1dd   :  { %645 = vrot.lane.b32.xlu1 %v381_v62, %s8516_s17  ;;  %v296_v62 = vld [vmem:[#allocation2 + $0x1a0] sm:$0xff]  ;;  %v1087_v50 = vsel %vm87_vm0, %v295_v45, %v618_v63  ;;  %v299_v45 = vld [vmem:[#allocation2 + $0x1c8] sm:$0xff] }
 0x1de   :  { %1324 = vrot.lane.b32.xlu0 %v1159_v61, %s8518_s11  ;;  %v1305_v61 = vpop.permute.xlu0 %1304 }
 0x1df   :  { %8461 = vmatpush1.bf16.msra.mxu1 %v8396_v53  ;;  %8397 = vmatpush1.bf16.msra.mxu0 %v8396_v53  ;;  %v1672_v40 = vsel %vm1650_vm2, %v9386_v26, %v1305_v61  ;;  %v453_v53 = vld [vmem:[#allocation2 + $0x242] sm:$0xff]  ;;  %v9826_v26 = vld [vmem:[%s13449_s0 + $0x1b0] sm:$0xff] }
 0x1e0   :  { %13664 = vst [vmem:[#allocation36_spill] sm:$0xff] %v9826_v26  ;;  %251 = vst.msk [vmem:[#allocation2 + $0x2d1] sm:$0xff] %vm87_vm0, %v9826_v26  ;;  %v454_v61 = vld [vmem:[#allocation2 + $0x24a] sm:$0xff] }
 0x1e2   :  { %647 = vrot.lane.b32.xlu0 %v382_v24, %s8516_s17  ;;  %v620_v28 = vpop.permute.xlu0 %619 }
 0x1e3   :  { %v1088_v24 = vsel %vm87_vm0, %v296_v62, %v620_v28  ;;  %v369_v28 = vld [vmem:[#allocation2 + $0x1b1] sm:$0xff] }
 0x1e4   :  { %v9835_v62 = vld [vmem:[%s13449_s0 + $0x1b8] sm:$0xff] }
 0x1e5   :  { %13665 = vst [vmem:[#allocation37_spill] sm:$0xff] %v9835_v62  ;;  %252 = vst.msk [vmem:[#allocation2 + $0x2d9] sm:$0xff] %vm87_vm0, %v9835_v62 }
 0x1fb   :  { %v1499_v41 = vpop.permute.xlu1 %1498 }
 0x1fc   :  { %v1736_v47 = vsel %vm1715_vm3, %v1671_v58, %v1499_v41 }
 0x1fd   :  { %8092 = vmatprep.mubr.msk.f32.mxu0 %vm1796_vm4, %v1736_v47 }
 0x1ff   :  { %v906_v25 = vpop.permute.xlu1 %905 }
 0x200   :  { %v1160_v54 = vsel %vm1125_vm1, %v1087_v50, %v906_v25  ;;  %v1501_v57 = vpop.permute.xlu0 %1500  ;;  %v370_v50 = vld [vmem:[#allocation2 + $0x1b9] sm:$0xff] }
 0x201   :  { %v1737_v29 = vsel %vm1715_vm3, %v1672_v40, %v1501_v57  ;;  %1518 = vrot.lane.b32.xlu1 %v1160_v54, %s8519_s1  ;;  %v441_v25 = vld [vmem:[#allocation2 + $0x1b2] sm:$0xff] }
 0x202   :  { %8093 = vmatmul.mubr.msk.f32.gmra.mrb[20].mxu0 %vm1796_vm4, %v1737_v29  ;;  %v442_v29 = vld [vmem:[#allocation2 + $0x1ba] sm:$0xff] }
 0x203   :  { %v908_v33 = vpop.permute.xlu1 %907 }
 0x204   :  { %v1161_v58 = vsel %vm1125_vm1, %v1088_v24, %v908_v33  ;;  %v626_v63 = vpop.permute.xlu0 %625 }
 0x205   :  { %933 = vrot.lane.b32.xlu1 %v453_v53, %s8517_s18  ;;  %1520 = vrot.lane.b32.xlu0 %v1161_v58, %s8519_s1  ;;  %v1091_v40 = vsel %vm87_vm0, %v299_v45, %v626_v63  ;;  %v383_v63 = vld [vmem:[#allocation2 + $0x259] sm:$0xff] }
 0x207   :  { %v1307_v41 = vpop.permute.xlu1 %1306 }
 0x208   :  { %v628_v47 = vpop.permute.xlu0 %627  ;;  %v1673_v33 = vsel %vm1650_vm2, %v9395_v32, %v1307_v41  ;;  %v9858_v32 = vld [vmem:[%s13449_s0 + $0x1c0] sm:$0xff] }
 0x209   :  { %935 = vrot.lane.b32.xlu1 %v454_v61, %s8517_s18  ;;  %621 = vrot.lane.b32.xlu0 %v369_v28, %s8516_s17  ;;  %v300_v61 = vld [vmem:[#allocation2 + $0x1d0] sm:$0xff]  ;;  %13666 = vst [vmem:[#allocation38_spill] sm:$0xff] %v9858_v32  ;;  %253 = vst.msk [vmem:[#allocation2 + $0x2e9] sm:$0xff] %vm87_vm0, %v9858_v32 }
 0x20b   :  { %v630_v54 = vpop.permute.xlu1 %629 }
 0x20c   :  { %v914_v57 = vpop.permute.xlu0 %913 }
 0x20d   :  { %623 = vrot.lane.b32.xlu1 %v370_v50, %s8516_s17  ;;  %909 = vrot.lane.b32.xlu0 %v441_v25, %s8517_s18  ;;  %v9845_v24 = vsel %vm1125_vm1, %v1091_v40, %v914_v57  ;;  %v1092_v50 = vsel %vm87_vm0, %v300_v61, %v628_v47  ;;  %v301_v25 = vld [vmem:[#allocation2 + $0x1e0] sm:$0xff] }
 0x20e   :  { %v1093_v47 = vsel %vm87_vm0, %v301_v25, %v630_v54 }
 0x20f   :  { %v1309_v53 = vpop.permute.xlu1 %1308 }
 0x210   :  { %v1503_v58 = vpop.permute.xlu0 %1502 }
 0x211   :  { %v1738_v28 = vsel %vm1715_vm3, %v1673_v33, %v1503_v58  ;;  %911 = vrot.lane.b32.xlu1 %v442_v29, %s8517_s18  ;;  %1326 = vrot.lane.b32.xlu0 %v9845_v24, %s8518_s11  ;;  %v384_v29 = vld [vmem:[#allocation2 + $0x261] sm:$0xff]  ;;  %v1674_v33 = vsel %vm1650_vm2, %v9416_v3, %v1309_v53 }
 0x212   :  { %8095 = vmatprep.mubr.msk.f32.mxu0 %vm1796_vm4, %v1738_v28  ;;  %v302_v58 = vld [vmem:[#allocation2 + $0x1e8] sm:$0xff]  ;;  %v455_v3 = vld [vmem:[#allocation2 + $0x25a] sm:$0xff] }
 0x213   :  { %v632_v45 = vpop.permute.xlu1 %631 }
 0x214   :  { %v916_v40 = vpop.permute.xlu0 %915  ;;  %v1094_v54 = vsel %vm87_vm0, %v302_v58, %v632_v45 }
 0x215   :  { %v9861_v41 = vsel %vm1125_vm1, %v1092_v50, %v916_v40  ;;  %649 = vrot.lane.b32.xlu1 %v383_v63, %s8516_s17  ;;  %v9880_v50 = vld [vmem:[%s13449_s0 + $0x1c8] sm:$0xff] }
 0x216   :  { %1328 = vrot.lane.b32.xlu0 %v9861_v41, %s8518_s11  ;;  %13667 = vst [vmem:[#allocation39_spill] sm:$0xff] %v9880_v50  ;;  %254 = vst.msk [vmem:[#allocation2 + $0x2f1] sm:$0xff] %vm87_vm0, %v9880_v50 }
 0x217   :  { %v918_v57 = vpop.permute.xlu1 %917 }
 0x218   :  { %v9872_v61 = vsel %vm1125_vm1, %v1093_v47, %v918_v57  ;;  %v1505_v28 = vpop.permute.xlu0 %1504  ;;  %v456_v47 = vld [vmem:[#allocation2 + $0x262] sm:$0xff] }
 0x219   :  { %v1739_v63 = vsel %vm1715_vm3, %v1674_v33, %v1505_v28  ;;  %1522 = vrot.lane.b32.xlu1 %v9872_v61, %s8519_s1  ;;  %v385_v33 = vld [vmem:[#allocation2 + $0x271] sm:$0xff] }
 0x21a   :  { %651 = vrot.lane.b32.xlu0 %v384_v29, %s8516_s17  ;;  %8096 = vmatmul.mubr.msk.f32.gmra.mrb[22].mxu0 %vm1796_vm4, %v1739_v63  ;;  %v303_v28 = vld [vmem:[#allocation2 + $0x1f8] sm:$0xff] }
 0x21b   :  { %v920_v53 = vpop.permute.xlu1 %919 }
 0x21c   :  { %v9888_v25 = vsel %vm1125_vm1, %v1094_v54, %v920_v53  ;;  %v1311_v40 = vpop.permute.xlu0 %1310  ;;  %v9904_v54 = vld [vmem:[%s13449_s0 + $0x1d0] sm:$0xff]  ;;  %v304_v53 = vld [vmem:[#allocation2 + $0x200] sm:$0xff] }
 0x21d   :  { %937 = vrot.lane.b32.xlu1 %v455_v3, %s8517_s18  ;;  %v1675_v45 = vsel %vm1650_vm2, %v9482_v44, %v1311_v40  ;;  %13668 = vst [vmem:[#allocation40_spill] sm:$0xff] %v9904_v54  ;;  %255 = vst.msk [vmem:[#allocation2 + $0x301] sm:$0xff] %vm87_vm0, %v9904_v54 }
 0x21e   :  { %1524 = vrot.lane.b32.xlu0 %v9888_v25, %s8519_s1 }
 0x21f   :  { %v634_v57 = vpop.permute.xlu1 %633 }
 0x220   :  { %v1313_v29 = vpop.permute.xlu0 %1312  ;;  %v1095_v44 = vsel %vm87_vm0, %v303_v28, %v634_v57  ;;  %v9923_v57 = vld [vmem:[%s13449_s0 + $0x1d8] sm:$0xff] }
 0x221   :  { %939 = vrot.lane.b32.xlu1 %v456_v47, %s8517_s18  ;;  %v386_v47 = vld [vmem:[#allocation2 + $0x279] sm:$0xff]  ;;  %13669 = vst [vmem:[#allocation41_spill] sm:$0xff] %v9923_v57  ;;  %256 = vst.msk [vmem:[#allocation2 + $0x309] sm:$0xff] %vm87_vm0, %v9923_v57 }
 0x222   :  { %1330 = vrot.lane.b32.xlu0 %v9872_v61, %s8518_s11 }
 0x223   :  { %v1507_v58 = vpop.permute.xlu1 %1506 }
 0x224   :  { %v1740_v63 = vsel %vm1715_vm3, %v1675_v45, %v1507_v58  ;;  %v636_v3 = vpop.permute.xlu0 %635 }
 0x225   :  { %653 = vrot.lane.b32.xlu1 %v385_v33, %s8516_s17  ;;  %8098 = vmatprep.mubr.msk.f32.mxu0 %vm1796_vm4, %v1740_v63  ;;  %v1676_v33 = vsel %vm1650_vm2, %v9493_v4, %v1313_v29  ;;  %v1096_v63 = vsel %vm87_vm0, %v304_v53, %v636_v3  ;;  %v457_v4 = vld [vmem:[#allocation2 + $0x272] sm:$0xff]  ;;  %v458_v53 = vld [vmem:[#allocation2 + $0x27a] sm:$0xff] }
 0x226   :  { %1332 = vrot.lane.b32.xlu0 %v9888_v25, %s8518_s11 }
 0x227   :  { %v922_v40 = vpop.permute.xlu1 %921 }
 0x228   :  { %v9914_v45 = vsel %vm1125_vm1, %v1095_v44, %v922_v40  ;;  %v1509_v58 = vpop.permute.xlu0 %1508 }
 0x229   :  { %v1741_v50 = vsel %vm1715_vm3, %v1676_v33, %v1509_v58  ;;  %1526 = vrot.lane.b32.xlu1 %v9914_v45, %s8519_s1 }
 0x22a   :  { %655 = vrot.lane.b32.xlu0 %v386_v47, %s8516_s17  ;;  %8099 = vmatmul.mubr.msk.f32.gmra.mrb[24].mxu0 %vm1796_vm4, %v1741_v50  ;;  %v9938_v50 = vld [vmem:[%s13451_s2] ss:$0 sm:$0xff] }
 0x22b   :  { %v924_v29 = vpop.permute.xlu1 %923 }
 0x22c   :  { %v9930_v28 = vsel %vm1125_vm1, %v1096_v63, %v924_v29  ;;  %v1315_v3 = vpop.permute.xlu0 %1314  ;;  %v387_v63 = vld [vmem:[#allocation2 + $0x289] sm:$0xff] }
 0x22d   :  { %941 = vrot.lane.b32.xlu1 %v457_v4, %s8517_s18  ;;  %v1677_v4 = vsel %vm1650_vm2, %v9529_v38, %v1315_v3  ;;  %v306_v38 = vld [vmem:[#allocation2 + $0x218] sm:$0xff] }
 0x22e   :  { %1528 = vrot.lane.b32.xlu0 %v9930_v28, %s8519_s1 }
 0x22f   :  { %v638_v44 = vpop.permute.xlu1 %637 }
 0x230   :  { %v1317_v40 = vpop.permute.xlu0 %1316 }
 0x231   :  { %v8064_v47 = vpop.f32.mrb[0].mxu0  ;;  %943 = vrot.lane.b32.xlu1 %v458_v53, %s8517_s18  ;;  %v9953_v53 = vld [vmem:[%s13449_s0 + $0x1e0] sm:$0xff] }
 0x232   :  { %v2061_v33 = vadd.f32 %v8064_v47, %v9938_v50  ;;  %v2055_v58 = vpop.f32.mrb[1].mxu0  ;;  %1334 = vrot.lane.b32.xlu0 %v9914_v45, %s8518_s11  ;;  %13670 = vst [vmem:[#allocation42_spill] sm:$0xff] %v9953_v53  ;;  %257 = vst.msk [vmem:[#allocation2 + $0x319] sm:$0xff] %vm87_vm0, %v9953_v53  ;;  %v388_v47 = vld [vmem:[#allocation2 + $0x291] sm:$0xff] }
 0x233   :  { %v2056_v29 = vadd.f32 %v9938_v50, %v2055_v58  ;;  %v1511_v57 = vpop.permute.xlu1 %1510 }
 0x234   :  { %v2375_v62 = vmax.f32 %v2061_v33, 0.0  ;;  %v1742_v60 = vsel %vm1715_vm3, %v1677_v4, %v1511_v57  ;;  %v640_v14 = vpop.permute.xlu0 %639  ;;  %v1097_v57 = vsel %vm87_vm0, %v305_v31, %v638_v44  ;;  %v459_v44 = vld [vmem:[#allocation2 + $0x28a] sm:$0xff] }
 0x235   :  { %v2374_v16 = vmax.f32 %v2056_v29, 0.0  ;;  %657 = vrot.lane.b32.xlu1 %v387_v63, %s8516_s17  ;;  %8101 = vmatprep.mubr.msk.f32.mxu0 %vm1796_vm4, %v1742_v60  ;;  %v1678_v60 = vsel %vm1650_vm2, %v9558_v30, %v1317_v40 }
 0x236   :  { %2517 = vst [vmem:[#allocation3 + $0x21] sm:$0xff] %v2375_v62  ;;  %1336 = vrot.lane.b32.xlu0 %v9930_v28, %s8518_s11  ;;  %v1098_v62 = vsel %vm87_vm0, %v306_v38, %v640_v14 }
 0x237   :  { %2516 = vst [vmem:[#allocation3 + $0x19] sm:$0xff] %v2374_v16  ;;  %v926_v3 = vpop.permute.xlu1 %925  ;;  %v9972_v16 = vld [vmem:[%s13449_s0 + $0x1e8] sm:$0xff] }
 0x238   :  { %v9963_v33 = vsel %vm1125_vm1, %v1097_v57, %v926_v3  ;;  %v1513_v58 = vpop.permute.xlu0 %1512  ;;  %13671 = vst [vmem:[#allocation43_spill] sm:$0xff] %v9972_v16  ;;  %258 = vst.msk [vmem:[#allocation2 + $0x321] sm:$0xff] %vm87_vm0, %v9972_v16 }
 0x239   :  { %v1743_v63 = vsel %vm1715_vm3, %v1678_v60, %v1513_v58  ;;  %v8067_v4 = vpop.f32.mrb[2].mxu0  ;;  %1530 = vrot.lane.b32.xlu1 %v9963_v33, %s8519_s1 }
 0x23a   :  { %v2071_v31 = vadd.f32 %v8067_v4, %v9938_v50  ;;  %v2065_v30 = vpop.f32.mrb[3].mxu0  ;;  %659 = vrot.lane.b32.xlu0 %v388_v47, %s8516_s17  ;;  %8102 = vmatmul.mubr.msk.f32.gmra.mrb[26].mxu0 %vm1796_vm4, %v1743_v63  ;;  %v460_v47 = vld [vmem:[#allocation2 + $0x292] sm:$0xff] }
 0x23b   :  { %v2066_v14 = vadd.f32 %v9938_v50, %v2065_v30  ;;  %v928_v40 = vpop.permute.xlu1 %927  ;;  %v389_v30 = vld [vmem:[#allocation2 + $0x2a1] sm:$0xff] }
 0x23c   :  { %v2377_v29 = vmax.f32 %v2071_v31, 0.0  ;;  %v9981_v38 = vsel %vm1125_vm1, %v1098_v62, %v928_v40  ;;  %v1319_v57 = vpop.permute.xlu0 %1318  ;;  %v9990_v62 = vld [vmem:[%s13449_s0 + $0x1f0] sm:$0xff]  ;;  %s8530_s0 = smov 96  }
 0x23d   :  { %v2376_v3 = vmax.f32 %v2066_v14, 0.0  ;;  %945 = vrot.lane.b32.xlu1 %v459_v44, %s8517_s18  ;;  %13672 = vst [vmem:[#allocation44_spill] sm:$0xff] %v9990_v62  ;;  %259 = vst.msk [vmem:[#allocation2 + $0x331] sm:$0xff] %vm87_vm0, %v9990_v62  ;;  %v1679_v44 = vsel %vm1650_vm2, %v9609_v36, %v1319_v57  ;;  %v308_v36 = vld [vmem:[#allocation2 + $0x230] sm:$0xff] }
 0x23e   :  { %2519 = vst [vmem:[#allocation3 + $0x39] sm:$0xff] %v2377_v29  ;;  %1532 = vrot.lane.b32.xlu0 %v9981_v38, %s8519_s1  ;;  %v307_v29 = vld [vmem:[#allocation2 + $0x228] sm:$0xff] }
 0x23f   :  { %2518 = vst [vmem:[#allocation3 + $0x31] sm:$0xff] %v2376_v3  ;;  %v642_v60 = vpop.permute.xlu1 %641 }
 0x240   :  { %v1321_v58 = vpop.permute.xlu0 %1320  ;;  %v1099_v57 = vsel %vm87_vm0, %v307_v29, %v642_v60  ;;  %v461_v60 = vld [vmem:[#allocation2 + $0x2a2] sm:$0xff] }
 0x241   :  { %v8070_v63 = vpop.f32.mrb[4].mxu0  ;;  %947 = vrot.lane.b32.xlu1 %v460_v47, %s8517_s18 }
 0x242   :  { %v2081_v4 = vadd.f32 %v8070_v63, %v9938_v50  ;;  %v2075_v31 = vpop.f32.mrb[5].mxu0  ;;  %1338 = vrot.lane.b32.xlu0 %v9963_v33, %s8518_s11 }
 0x243   :  { %v2076_v14 = vadd.f32 %v9938_v50, %v2075_v31  ;;  %v1515_v40 = vpop.permute.xlu1 %1514  ;;  %v390_v31 = vld [vmem:[#allocation2 + $0x2a9] sm:$0xff] }
 0x244   :  { %v2379_v3 = vmax.f32 %v2081_v4, 0.0  ;;  %v1744_v47 = vsel %vm1715_vm3, %v1679_v44, %v1515_v40  ;;  %v644_v16 = vpop.permute.xlu0 %643 }
 0x245   :  { %v2378_v63 = vmax.f32 %v2076_v14, 0.0  ;;  %661 = vrot.lane.b32.xlu1 %v389_v30, %s8516_s17  ;;  %8104 = vmatprep.mubr.msk.f32.mxu0 %vm1796_vm4, %v1744_v47  ;;  %v1680_v30 = vsel %vm1650_vm2, %v9632_v51, %v1321_v58  ;;  %v1100_v40 = vsel %vm87_vm0, %v308_v36, %v644_v16  ;;  %v462_v36 = vld [vmem:[#allocation2 + $0x2aa] sm:$0xff] }
 0x246   :  { %2521 = vst [vmem:[#allocation3 + $0x51] sm:$0xff] %v2379_v3  ;;  %1340 = vrot.lane.b32.xlu0 %v9981_v38, %s8518_s11 }
 0x247   :  { %2520 = vst [vmem:[#allocation3 + $0x49] sm:$0xff] %v2378_v63  ;;  %v930_v4 = vpop.permute.xlu1 %929 }
 0x248   :  { %v10016_v44 = vsel %vm1125_vm1, %v1099_v57, %v930_v4  ;;  %v1517_v14 = vpop.permute.xlu0 %1516 }
 0x249   :  { %v1745_v3 = vsel %vm1715_vm3, %v1680_v30, %v1517_v14  ;;  %1534 = vrot.lane.b32.xlu1 %v10016_v44, %s8519_s1 }
 0x24a   :  { %663 = vrot.lane.b32.xlu0 %v390_v31, %s8516_s17  ;;  %8105 = vmatmul.mubr.msk.f32.gmra.mrb[28].mxu0 %vm1796_vm4, %v1745_v3  ;;  %v391_v31 = vld [vmem:[#allocation2 + $0x2b9] sm:$0xff] }
 0x24b   :  { %v932_v29 = vpop.permute.xlu1 %931 }
 0x24c   :  { %v8073_v47 = vpop.f32.mrb[6].mxu0  ;;  %v10025_v51 = vsel %vm1125_vm1, %v1100_v40, %v932_v29 }
 0x24d   :  { %v2091_v58 = vadd.f32 %v8073_v47, %v9938_v50  ;;  %v2085_v63 = vpop.f32.mrb[7].mxu0  ;;  %949 = vrot.lane.b32.xlu1 %v461_v60, %s8517_s18  ;;  %v392_v60 = vld [vmem:[#allocation2 + $0x2c1] sm:$0xff] }
 0x24e   :  { %v2086_v16 = vadd.f32 %v9938_v50, %v2085_v63  ;;  %1536 = vrot.lane.b32.xlu0 %v10025_v51, %s8519_s1 }
 0x24f   :  { %v2381_v57 = vmax.f32 %v2091_v58, 0.0 }
 0x250   :  { %v2380_v4 = vmax.f32 %v2086_v16, 0.0 }
 0x251   :  { %2523 = vst [vmem:[#allocation3 + $0x69] sm:$0xff] %v2381_v57  ;;  %951 = vrot.lane.b32.xlu1 %v462_v36, %s8517_s18 }
 0x252   :  { %2522 = vst [vmem:[#allocation3 + $0x61] sm:$0xff] %v2380_v4  ;;  %1342 = vrot.lane.b32.xlu0 %v10016_v44, %s8518_s11 }
 0x255   :  { %v8076_v30 = vpop.f32.mrb[8].mxu0  ;;  %665 = vrot.lane.b32.xlu1 %v391_v31, %s8516_s17 }
 0x256   :  { %v2101_v14 = vadd.f32 %v8076_v30, %v9938_v50  ;;  %v2095_v40 = vpop.f32.mrb[9].mxu0  ;;  %1344 = vrot.lane.b32.xlu0 %v10025_v51, %s8518_s11  ;;  %v1323_v30 = vpop.permute.xlu0 %1322 }
 0x257   :  { %v2096_v3 = vadd.f32 %v9938_v50, %v2095_v40 }
 0x258   :  { %v2383_v29 = vmax.f32 %v2101_v14, 0.0  ;;  %v2594_v14 = vld [vmem:[#allocation3 + $0x70] sm:$0xff] }
 0x259   :  { %v2382_v47 = vmax.f32 %v2096_v3, 0.0  ;;  %v2593_v63 = vld [vmem:[#allocation3 + $0x68] sm:$0xff] }
 0x25a   :  { %2525 = vst [vmem:[#allocation3 + $0x81] sm:$0xff] %v2383_v29  ;;  %667 = vrot.lane.b32.xlu0 %v392_v60, %s8516_s17  ;;  %v1325_v60 = vpop.permute.xlu0 %1324  ;;  %v646_v29 = vpop.permute.xlu1 %645 }
 0x25b   :  { %2524 = vst [vmem:[#allocation3 + $0x79] sm:$0xff] %v2382_v47  ;;  %v1682_v5 = vsel %vm1650_vm2, %v9706_v17, %v1325_v60  ;;  %v463_v17 = vld [vmem:[#allocation2 + $0x2ba] sm:$0xff] }
 0x25e   :  { %v648_v46 = vpop.permute.xlu0 %647 }
 0x261   :  { %v2690_v36 = vld [vmem:[#allocation3 + $0x88] sm:$0xff] }
 0x262   :  { %v2689_v58 = vld [vmem:[#allocation3 + $0x80] sm:$0xff] }
 0x263   :  { %3046 = vmatprep.mubr.f32.mxu1 %v2689_v58 }
 0x264   :  { %v8079_v16 = vpop.f32.mrb[10].mxu0  ;;  %3047 = vmatmul.mubr.f32.vlgmr.msra.gmra.mrb[0].mxu1 %v2593_v63  ;;  %v2595_v63 = vld [vmem:[#allocation3 + $0x78] sm:$0xff] }
 0x265   :  { %v2111_v57 = vadd.f32 %v8079_v16, %v9938_v50  ;;  %v2105_v4 = vpop.f32.mrb[11].mxu0  ;;  %3051 = vmatprep.mubr.f32.mxu1 %v2690_v36  ;;  %v1681_v16 = vsel %vm1650_vm2, %v9682_v52, %v1323_v30 }
 0x266   :  { %v2106_v31 = vadd.f32 %v9938_v50, %v2105_v4  ;;  %v309_v4 = vld [vmem:[#allocation2 + $0x240] sm:$0xff] }
 0x267   :  { %v2385_v40 = vmax.f32 %v2111_v57, 0.0  ;;  %v1101_v52 = vsel %vm87_vm0, %v309_v4, %v646_v29 }
 0x268   :  { %v2384_v3 = vmax.f32 %v2106_v31, 0.0  ;;  %3052 = vmatmul.mubr.f32.gmra.mrb[2].mxu1 %v2594_v14  ;;  %v310_v14 = vld [vmem:[#allocation2 + $0x248] sm:$0xff] }
 0x269   :  { %2527 = vst [vmem:[#allocation3 + $0x99] sm:$0xff] %v2385_v40 }
 0x26a   :  { %2526 = vst [vmem:[#allocation3 + $0x91] sm:$0xff] %v2384_v3 }
 0x271   :  { %v2691_v47 = vld [vmem:[#allocation3 + $0x90] sm:$0xff]  ;;  %v2692_v7 = vld [vmem:[#allocation3 + $0x98] sm:$0xff] }
 0x272   :  { %3056 = vmatprep.mubr.f32.mxu1 %v2691_v47 }
 0x273   :  { %v1519_v22 = vpop.permute.xlu1 %1518  ;;  %3057 = vmatmul.mubr.f32.gmra.mrb[4].mxu1 %v2595_v63 }
 0x274   :  { %v1746_v57 = vsel %vm1715_vm3, %v1681_v16, %v1519_v22  ;;  %v8082_v2 = vpop.f32.mrb[12].mxu0  ;;  %3061 = vmatprep.mubr.f32.mxu1 %v2692_v7  ;;  %v2693_v22 = vld [vmem:[#allocation3 + $0xa0] sm:$0xff] }
 0x275   :  { %v2121_v31 = vadd.f32 %v8082_v2, %v9938_v50  ;;  %v2115_v40 = vpop.f32.mrb[13].mxu0  ;;  %8107 = vmatprep.mubr.msk.f32.mxu0 %vm1796_vm4, %v1746_v57  ;;  %v1102_v57 = vsel %vm87_vm0, %v310_v14, %v648_v46 }
 0x276   :  { %v2116_v3 = vadd.f32 %v9938_v50, %v2115_v40 }
 0x277   :  { %v2387_v30 = vmax.f32 %v2121_v31, 0.0  ;;  %v934_v63 = vpop.permute.xlu1 %933  ;;  %3062 = vmatmul.mubr.f32.gmra.mrb[6].mxu1 %v2689_v58  ;;  %v1521_v54 = vpop.permute.xlu0 %1520  ;;  %v297_v31 = vld [vmem:[#allocation2 + $0x1b0] sm:$0xff] }
 0x278   :  { %v2386_v16 = vmax.f32 %v2116_v3, 0.0  ;;  %v10053_v62 = vsel %vm1125_vm1, %v1101_v52, %v934_v63  ;;  %v1747_v2 = vsel %vm1715_vm3, %v1682_v5, %v1521_v54  ;;  %3066 = vmatprep.mubr.f32.mxu1 %v2693_v22  ;;  %v464_v5 = vld [vmem:[#allocation2 + $0x2c2] sm:$0xff] }
 0x279   :  { %2529 = vst [vmem:[#allocation3 + $0xb1] sm:$0xff] %v2387_v30  ;;  %1538 = vrot.lane.b32.xlu1 %v10053_v62, %s8519_s1  ;;  %8108 = vmatmul.mubr.msk.f32.gmra.mrb[30].mxu0 %vm1796_vm4, %v1747_v2 }
 0x27a   :  { %2528 = vst [vmem:[#allocation3 + $0xa9] sm:$0xff] %v2386_v16 }
 0x27b   :  { %v936_v58 = vpop.permute.xlu1 %935  ;;  %3067 = vmatmul.mubr.f32.gmra.mrb[8].mxu1 %v2690_v36  ;;  %v622_v60 = vpop.permute.xlu0 %621  ;;  %v393_v36 = vld [vmem:[#allocation2 + $0x2d1] sm:$0xff] }
 0x27c   :  { %v10061_v29 = vsel %vm1125_vm1, %v1102_v57, %v936_v58  ;;  %v1089_v30 = vsel %vm87_vm0, %v297_v31, %v622_v60  ;;  %v394_v57 = vld [vmem:[#allocation2 + $0x2d9] sm:$0xff] }
 0x27d   :  { %953 = vrot.lane.b32.xlu1 %v463_v17, %s8517_s18  ;;  %1540 = vrot.lane.b32.xlu0 %v10061_v29, %s8519_s1  ;;  %v298_v31 = vld [vmem:[#allocation2 + $0x1b8] sm:$0xff] }
 0x27f   :  { %v624_v46 = vpop.permute.xlu1 %623  ;;  %v910_v54 = vpop.permute.xlu0 %909 }
 0x281   :  { %955 = vrot.lane.b32.xlu1 %v464_v5, %s8517_s18  ;;  %1346 = vrot.lane.b32.xlu0 %v10053_v62, %s8518_s11  ;;  %v2694_v4 = vld [vmem:[#allocation3 + $0xa8] sm:$0xff]  ;;  %v2695_v3 = vld [vmem:[#allocation3 + $0xb0] sm:$0xff]  ;;  %v1162_v5 = vsel %vm1125_vm1, %v1089_v30, %v910_v54  ;;  %v312_v54 = vld [vmem:[#allocation2 + $0x260] sm:$0xff] }
 0x282   :  { %3071 = vmatprep.mubr.f32.mxu1 %v2694_v4 }
 0x283   :  { %v912_v40 = vpop.permute.xlu1 %911  ;;  %3072 = vmatmul.mubr.f32.gmra.mrb[10].mxu1 %v2691_v47  ;;  %v1327_v14 = vpop.permute.xlu0 %1326  ;;  %v2696_v47 = vld [vmem:[#allocation3 + $0xb8] sm:$0xff] }
 0x284   :  { %v8085_v52 = vpop.f32.mrb[14].mxu0  ;;  %3076 = vmatprep.mubr.f32.mxu1 %v2695_v3 }
 0x285   :  { %v2131_v63 = vadd.f32 %v8085_v52, %v9938_v50  ;;  %v2125_v16 = vpop.f32.mrb[15].mxu0  ;;  %1348 = vrot.lane.b32.xlu0 %v10061_v29, %s8518_s11  ;;  %669 = vrot.lane.b32.xlu1 %v393_v36, %s8516_s17  ;;  %v1683_v52 = vsel %vm1650_vm2, %v1162_v5, %v1327_v14 }
 0x286   :  { %v2126_v2 = vadd.f32 %v9938_v50, %v2125_v16  ;;  %v311_v16 = vld [vmem:[#allocation2 + $0x258] sm:$0xff] }
 0x287   :  { %v2389_v17 = vmax.f32 %v2131_v63, 0.0  ;;  %v650_v58 = vpop.permute.xlu1 %649  ;;  %3077 = vmatmul.mubr.f32.gmra.mrb[12].mxu1 %v2692_v7  ;;  %v1090_v7 = vsel %vm87_vm0, %v298_v31, %v624_v46 }
 0x288   :  { %v2388_v32 = vmax.f32 %v2126_v2, 0.0  ;;  %3081 = vmatprep.mubr.f32.mxu1 %v2696_v47  ;;  %v1329_v60 = vpop.permute.xlu0 %1328  ;;  %v1163_v30 = vsel %vm1125_vm1, %v1090_v7, %v912_v40  ;;  %v1103_v2 = vsel %vm87_vm0, %v311_v16, %v650_v58  ;;  %v465_v40 = vld [vmem:[#allocation2 + $0x2d2] sm:$0xff]  ;;  %v466_v7 = vld [vmem:[#allocation2 + $0x2da] sm:$0xff] }
 0x289   :  { %2531 = vst [vmem:[#allocation3 + $0xc9] sm:$0xff] %v2389_v17  ;;  %671 = vrot.lane.b32.xlu0 %v394_v57, %s8516_s17 }
 0x28a   :  { %2530 = vst [vmem:[#allocation3 + $0xc1] sm:$0xff] %v2388_v32  ;;  %v1684_v32 = vsel %vm1650_vm2, %v1163_v30, %v1329_v60 }
 0x28b   :  { %v1523_v36 = vpop.permute.xlu1 %1522  ;;  %3082 = vmatmul.mubr.f32.gmra.mrb[14].mxu1 %v2693_v22 }
 0x28c   :  { %v1748_v63 = vsel %vm1715_vm3, %v1683_v52, %v1523_v36  ;;  %v652_v53 = vpop.permute.xlu0 %651 }
 0x28d   :  { %8110 = vmatprep.mubr.msk.f32.mxu0 %vm1796_vm4, %v1748_v63  ;;  %v1104_v17 = vsel %vm87_vm0, %v312_v54, %v652_v53 }
 0x28f   :  { %v938_v57 = vpop.permute.xlu1 %937 }
 0x290   :  { %v10085_v14 = vsel %vm1125_vm1, %v1103_v2, %v938_v57  ;;  %v1525_v22 = vpop.permute.xlu0 %1524  ;;  %v2699_v30 = vld [vmem:[#allocation3 + $0xd0] sm:$0xff] }
 0x291   :  { %v1749_v5 = vsel %vm1715_vm3, %v1684_v32, %v1525_v22  ;;  %1542 = vrot.lane.b32.xlu1 %v10085_v14, %s8519_s1  ;;  %v2697_v46 = vld [vmem:[#allocation3 + $0xc0] sm:$0xff]  ;;  %v2698_v31 = vld [vmem:[#allocation3 + $0xc8] sm:$0xff] }
 0x292   :  { %8111 = vmatmul.mubr.msk.f32.gmra.mrb[32].mxu0 %vm1796_vm4, %v1749_v5  ;;  %3086 = vmatprep.mubr.f32.mxu1 %v2697_v46  ;;  %v395_v32 = vld [vmem:[#allocation2 + $0x2e9] sm:$0xff] }
 0x293   :  { %v940_v58 = vpop.permute.xlu1 %939  ;;  %3087 = vmatmul.mubr.f32.gmra.mrb[16].mxu1 %v2694_v4  ;;  %v313_v5 = vld [vmem:[#allocation2 + $0x270] sm:$0xff] }
 0x294   :  { %v10093_v60 = vsel %vm1125_vm1, %v1104_v17, %v940_v58  ;;  %v8088_v52 = vpop.f32.mrb[16].mxu0  ;;  %3091 = vmatprep.mubr.f32.mxu1 %v2698_v31  ;;  %v1331_v36 = vpop.permute.xlu0 %1330  ;;  %v314_v58 = vld [vmem:[#allocation2 + $0x278] sm:$0xff] }
 0x295   :  { %v2141_v53 = vadd.f32 %v8088_v52, %v9938_v50  ;;  %957 = vrot.lane.b32.xlu1 %v465_v40, %s8517_s18  ;;  %v2135_v16 = vpop.f32.mrb[17].mxu0  ;;  %1544 = vrot.lane.b32.xlu0 %v10093_v60, %s8519_s1  ;;  %v1685_v22 = vsel %vm1650_vm2, %v9845_v24, %v1331_v36  ;;  %v396_v52 = vld [vmem:[#allocation2 + $0x2f1] sm:$0xff] }
 0x296   :  { %v2136_v63 = vadd.f32 %v9938_v50, %v2135_v16 }
 0x297   :  { %v2391_v54 = vmax.f32 %v2141_v53, 0.0  ;;  %v654_v4 = vpop.permute.xlu1 %653  ;;  %3092 = vmatmul.mubr.f32.gmra.mrb[18].mxu1 %v2695_v3 }
 0x298   :  { %v2390_v2 = vmax.f32 %v2136_v63, 0.0  ;;  %3096 = vmatprep.mubr.f32.mxu1 %v2699_v30  ;;  %v1333_v57 = vpop.permute.xlu0 %1332  ;;  %v1105_v53 = vsel %vm87_vm0, %v313_v5, %v654_v4  ;;  %v467_v4 = vld [vmem:[#allocation2 + $0x2ea] sm:$0xff] }
 0x299   :  { %2533 = vst [vmem:[#allocation3 + $0xe1] sm:$0xff] %v2391_v54  ;;  %959 = vrot.lane.b32.xlu1 %v466_v7, %s8517_s18  ;;  %1350 = vrot.lane.b32.xlu0 %v10085_v14, %s8518_s11  ;;  %v1686_v24 = vsel %vm1650_vm2, %v9861_v41, %v1333_v57 }
 0x29a   :  { %2532 = vst [vmem:[#allocation3 + $0xd9] sm:$0xff] %v2390_v2 }
 0x29b   :  { %v1527_v17 = vpop.permute.xlu1 %1526  ;;  %3097 = vmatmul.mubr.f32.gmra.mrb[20].mxu1 %v2696_v47 }
 0x29c   :  { %v1750_v3 = vsel %vm1715_vm3, %v1685_v22, %v1527_v17  ;;  %v656_v40 = vpop.permute.xlu0 %655 }
 0x29d   :  { %673 = vrot.lane.b32.xlu1 %v395_v32, %s8516_s17  ;;  %1352 = vrot.lane.b32.xlu0 %v10093_v60, %s8518_s11  ;;  %v1106_v63 = vsel %vm87_vm0, %v314_v58, %v656_v40  ;;  %v468_v40 = vld [vmem:[#allocation2 + $0x2f2] sm:$0xff] }
 0x29e   :  { %8113 = vmatprep.mubr.msk.f32.mxu0 %vm1796_vm4, %v1750_v3 }
 0x29f   :  { %v942_v16 = vpop.permute.xlu1 %941 }
 0x2a0   :  { %v10114_v47 = vsel %vm1125_vm1, %v1105_v53, %v942_v16  ;;  %v1529_v36 = vpop.permute.xlu0 %1528 }
 0x2a1   :  { %v1751_v7 = vsel %vm1715_vm3, %v1686_v24, %v1529_v36  ;;  %1546 = vrot.lane.b32.xlu1 %v10114_v47, %s8519_s1  ;;  %675 = vrot.lane.b32.xlu0 %v396_v52, %s8516_s17  ;;  %v2700_v54 = vld [vmem:[#allocation3 + $0xd8] sm:$0xff]  ;;  %v2701_v41 = vld [vmem:[#allocation3 + $0xe0] sm:$0xff]  ;;  %v2702_v52 = vld [vmem:[#allocation3 + $0xe8] sm:$0xff] }
 0x2a2   :  { %8114 = vmatmul.mubr.msk.f32.gmra.mrb[34].mxu0 %vm1796_vm4, %v1751_v7  ;;  %3101 = vmatprep.mubr.f32.mxu1 %v2700_v54  ;;  %v397_v24 = vld [vmem:[#allocation2 + $0x301] sm:$0xff] }
 0x2a3   :  { %v944_v2 = vpop.permute.xlu1 %943  ;;  %3102 = vmatmul.mubr.f32.gmra.mrb[22].mxu1 %v2697_v46  ;;  %v315_v7 = vld [vmem:[#allocation2 + $0x288] sm:$0xff] }
 0x2a4   :  { %v10123_v57 = vsel %vm1125_vm1, %v1106_v63, %v944_v2  ;;  %v8091_v32 = vpop.f32.mrb[18].mxu0  ;;  %3106 = vmatprep.mubr.f32.mxu1 %v2701_v41  ;;  %v1335_v22 = vpop.permute.xlu0 %1334  ;;  %v316_v2 = vld [vmem:[#allocation2 + $0x290] sm:$0xff] }
 0x2a5   :  { %v2151_v17 = vadd.f32 %v8091_v32, %v9938_v50  ;;  %961 = vrot.lane.b32.xlu1 %v467_v4, %s8517_s18  ;;  %v2145_v5 = vpop.f32.mrb[19].mxu0  ;;  %1548 = vrot.lane.b32.xlu0 %v10123_v57, %s8519_s1  ;;  %v1687_v36 = vsel %vm1650_vm2, %v9872_v61, %v1335_v22  ;;  %v398_v32 = vld [vmem:[#allocation2 + $0x309] sm:$0xff] }
 0x2a6   :  { %v2146_v3 = vadd.f32 %v9938_v50, %v2145_v5 }
 0x2a7   :  { %v2393_v58 = vmax.f32 %v2151_v17, 0.0  ;;  %v658_v46 = vpop.permute.xlu1 %657  ;;  %3107 = vmatmul.mubr.f32.gmra.mrb[24].mxu1 %v2698_v31 }
 0x2a8   :  { %v2392_v53 = vmax.f32 %v2146_v3, 0.0  ;;  %3111 = vmatprep.mubr.f32.mxu1 %v2702_v52  ;;  %v1337_v16 = vpop.permute.xlu0 %1336  ;;  %v1107_v17 = vsel %vm87_vm0, %v315_v7, %v658_v46 }
 0x2a9   :  { %2535 = vst [vmem:[#allocation3 + $0xf9] sm:$0xff] %v2393_v58  ;;  %963 = vrot.lane.b32.xlu1 %v468_v40, %s8517_s18  ;;  %1354 = vrot.lane.b32.xlu0 %v10114_v47, %s8518_s11  ;;  %v1688_v61 = vsel %vm1650_vm2, %v9888_v25, %v1337_v16  ;;  %v469_v25 = vld [vmem:[#allocation2 + $0x302] sm:$0xff] }
 0x2aa   :  { %2534 = vst [vmem:[#allocation3 + $0xf1] sm:$0xff] %v2392_v53 }
 0x2ab   :  { %v1531_v63 = vpop.permute.xlu1 %1530  ;;  %3112 = vmatmul.mubr.f32.gmra.mrb[26].mxu1 %v2699_v30 }
 0x2ac   :  { %v1752_v31 = vsel %vm1715_vm3, %v1687_v36, %v1531_v63  ;;  %v660_v4 = vpop.permute.xlu0 %659  ;;  %v470_v36 = vld [vmem:[#allocation2 + $0x30a] sm:$0xff] }
 0x2ad   :  { %677 = vrot.lane.b32.xlu1 %v397_v24, %s8516_s17  ;;  %1356 = vrot.lane.b32.xlu0 %v10123_v57, %s8518_s11  ;;  %v1108_v3 = vsel %vm87_vm0, %v316_v2, %v660_v4 }
 0x2ae   :  { %8116 = vmatprep.mubr.msk.f32.mxu0 %vm1796_vm4, %v1752_v31  ;;  %v399_v31 = vld [vmem:[#allocation2 + $0x319] sm:$0xff] }
 0x2af   :  { %v946_v5 = vpop.permute.xlu1 %945 }
 0x2b0   :  { %v10144_v30 = vsel %vm1125_vm1, %v1107_v17, %v946_v5  ;;  %v1533_v22 = vpop.permute.xlu0 %1532  ;;  %v10164_v7 = vld [vmem:[#allocation3 + $0x100] sm:$0xff]  ;;  %v318_v5 = vld [vmem:[#allocation2 + $0x2a8] sm:$0xff] }
 0x2b1   :  { %v1753_v40 = vsel %vm1715_vm3, %v1688_v61, %v1533_v22  ;;  %1550 = vrot.lane.b32.xlu1 %v10144_v30, %s8519_s1  ;;  %679 = vrot.lane.b32.xlu0 %v398_v32, %s8516_s17  ;;  %v10151_v58 = vld [vmem:[#allocation3 + $0xf0] sm:$0xff]  ;;  %v10155_v53 = vld [vmem:[#allocation3 + $0xf8] sm:$0xff]  ;;  %v317_v32 = vld [vmem:[#allocation2 + $0x2a0] sm:$0xff] }
 0x2b2   :  { %8117 = vmatmul.mubr.msk.f32.gmra.mrb[36].mxu0 %vm1796_vm4, %v1753_v40  ;;  %3116 = vmatprep.mubr.f32.mxu1 %v10151_v58  ;;  %v400_v61 = vld [vmem:[#allocation2 + $0x321] sm:$0xff] }
 0x2b3   :  { %v948_v46 = vpop.permute.xlu1 %947  ;;  %3117 = vmatmul.mubr.f32.gmra.mrb[28].mxu1 %v2700_v54 }
 0x2b4   :  { %v10158_v16 = vsel %vm1125_vm1, %v1108_v3, %v948_v46  ;;  %3121 = vmatprep.mubr.f32.mxu1 %v10155_v53  ;;  %v1339_v24 = vpop.permute.xlu0 %1338 }
 0x2b5   :  { %965 = vrot.lane.b32.xlu1 %v469_v25, %s8517_s18  ;;  %1552 = vrot.lane.b32.xlu0 %v10158_v16, %s8519_s1  ;;  %v1689_v4 = vsel %vm1650_vm2, %v9914_v45, %v1339_v24  ;;  %v471_v24 = vld [vmem:[#allocation2 + $0x31a] sm:$0xff] }
 0x2b7   :  { %v662_v63 = vpop.permute.xlu1 %661  ;;  %3122 = vmatmul.mubr.f32.gmra.mrb[30].mxu1 %v2701_v41 }
 0x2b8   :  { %3126 = vmatprep.mubr.f32.mxu1 %v10164_v7  ;;  %v1341_v54 = vpop.permute.xlu0 %1340  ;;  %v1109_v22 = vsel %vm87_vm0, %v317_v32, %v662_v63  ;;  %v403_v32 = vld [vmem:[#allocation2 + $0x349] sm:$0xff] }
 0x2b9   :  { %967 = vrot.lane.b32.xlu1 %v470_v36, %s8517_s18  ;;  %1358 = vrot.lane.b32.xlu0 %v10144_v30, %s8518_s11  ;;  %v1690_v45 = vsel %vm1650_vm2, %v9930_v28, %v1341_v54  ;;  %v472_v28 = vld [vmem:[#allocation2 + $0x322] sm:$0xff]  ;;  %v401_v54 = vld [vmem:[#allocation2 + $0x331] sm:$0xff] }
 0x2bb   :  { %v1535_v2 = vpop.permute.xlu1 %1534  ;;  %3127 = vmatmul.mubr.f32.gmra.mrb[32].mxu1 %v2702_v52 }
 0x2bc   :  { %v1754_v17 = vsel %vm1715_vm3, %v1689_v4, %v1535_v2  ;;  %v664_v41 = vpop.permute.xlu0 %663  ;;  %v473_v4 = vld [vmem:[#allocation2 + $0x332] sm:$0xff]  ;;  %v474_v2 = vld [vmem:[#allocation2 + $0x33a] sm:$0xff] }
 0x2bd   :  { %681 = vrot.lane.b32.xlu1 %v399_v31, %s8516_s17  ;;  %1360 = vrot.lane.b32.xlu0 %v10158_v16, %s8518_s11  ;;  %v1110_v25 = vsel %vm87_vm0, %v318_v5, %v664_v41  ;;  %v402_v31 = vld [vmem:[#allocation2 + $0x339] sm:$0xff]  ;;  %v475_v41 = vld [vmem:[#allocation2 + $0x34a] sm:$0xff] }
 0x2be   :  { %8119 = vmatprep.mubr.msk.f32.mxu0 %vm1796_vm4, %v1754_v17  ;;  %v404_v17 = vld [vmem:[#allocation2 + $0x351] sm:$0xff] }
 0x2bf   :  { %v950_v3 = vpop.permute.xlu1 %949 }
 0x2c0   :  { %v10181_v52 = vsel %vm1125_vm1, %v1109_v22, %v950_v3  ;;  %v1537_v40 = vpop.permute.xlu0 %1536  ;;  %v476_v3 = vld [vmem:[#allocation2 + $0x352] sm:$0xff] }
 0x2c1   :  { %v1755_v46 = vsel %vm1715_vm3, %v1690_v45, %v1537_v40  ;;  %1554 = vrot.lane.b32.xlu1 %v10181_v52, %s8519_s1  ;;  %683 = vrot.lane.b32.xlu0 %v400_v61, %s8516_s17 }
 0x2c2   :  { %8120 = vmatmul.mubr.msk.f32.gmra.mrb[38].mxu0 %vm1796_vm4, %v1755_v46 }
 0x2c3   :  { %v952_v36 = vpop.permute.xlu1 %951 }
 0x2c4   :  { %v10190_v63 = vsel %vm1125_vm1, %v1110_v25, %v952_v36  ;;  %v1343_v46 = vpop.permute.xlu0 %1342 }
 0x2c5   :  { %969 = vrot.lane.b32.xlu1 %v471_v24, %s8517_s18  ;;  %1556 = vrot.lane.b32.xlu0 %v10190_v63, %s8519_s1 }
 0x2c9   :  { %971 = vrot.lane.b32.xlu1 %v472_v28, %s8517_s18  ;;  %685 = vrot.lane.b32.xlu0 %v401_v54, %s8516_s17  ;;  %v1345_v28 = vpop.permute.xlu0 %1344  ;;  %v666_v54 = vpop.permute.xlu1 %665 }
 0x2cd   :  { %687 = vrot.lane.b32.xlu1 %v402_v31, %s8516_s17  ;;  %973 = vrot.lane.b32.xlu0 %v473_v4, %s8517_s18  ;;  %v668_v4 = vpop.permute.xlu0 %667 }
 0x2d1   :  { %975 = vrot.lane.b32.xlu1 %v474_v2, %s8517_s18  ;;  %689 = vrot.lane.b32.xlu0 %v403_v32, %s8516_s17  ;;  %v319_v2 = vld [vmem:[#allocation2 + $0x2b8] sm:$0xff]  ;;  %v1691_v32 = vsel %vm1650_vm2, %v9963_v33, %v1343_v46 }
 0x2d5   :  { %691 = vrot.lane.b32.xlu1 %v404_v17, %s8516_s17  ;;  %v8094_v5 = vpop.f32.mrb[20].mxu0  ;;  %977 = vrot.lane.b32.xlu0 %v475_v41, %s8517_s18 }
 0x2d6   :  { %v2161_v61 = vadd.f32 %v8094_v5, %v9938_v50  ;;  %v2155_v22 = vpop.f32.mrb[21].mxu0 }
 0x2d7   :  { %v2156_v45 = vadd.f32 %v9938_v50, %v2155_v22 }
 0x2d8   :  { %v2395_v40 = vmax.f32 %v2161_v61, 0.0  ;;  %v320_v61 = vld [vmem:[#allocation2 + $0x2c0] sm:$0xff] }
 0x2d9   :  { %v2394_v25 = vmax.f32 %v2156_v45, 0.0  ;;  %979 = vrot.lane.b32.xlu1 %v476_v3, %s8517_s18  ;;  %1362 = vrot.lane.b32.xlu0 %v10181_v52, %s8518_s11  ;;  %v1692_v3 = vsel %vm1650_vm2, %v9981_v38, %v1345_v28 }
 0x2da   :  { %2537 = vst [vmem:[#allocation3 + $0x111] sm:$0xff] %v2395_v40 }
 0x2db   :  { %2536 = vst [vmem:[#allocation3 + $0x109] sm:$0xff] %v2394_v25 }
 0x2dd   :  { %1364 = vrot.lane.b32.xlu1 %v10190_v63, %s8518_s11 }
 0x2e1   :  { %v2708_v31 = vld [vmem:[#allocation3 + $0x118] sm:$0xff] }
 0x2e2   :  { %v2706_v24 = vld [vmem:[#allocation3 + $0x108] sm:$0xff]  ;;  %v2707_v36 = vld [vmem:[#allocation3 + $0x110] sm:$0xff] }
 0x2e3   :  { %3131 = vmatprep.mubr.f32.mxu1 %v2706_v24 }
 0x2e4   :  { %3132 = vmatmul.mubr.f32.gmra.mrb[34].mxu1 %v10151_v58  ;;  %v1111_v58 = vsel %vm87_vm0, %v319_v2, %v666_v54  ;;  %v1112_v54 = vsel %vm87_vm0, %v320_v61, %v668_v4 }
 0x2e5   :  { %3136 = vmatprep.mubr.f32.mxu1 %v2707_v36 }
 0x2e8   :  { %3137 = vmatmul.mubr.f32.gmra.mrb[36].mxu1 %v10155_v53 }
 0x2e9   :  { %3141 = vmatprep.mubr.f32.mxu1 %v2708_v31 }
 0x2eb   :  { %v1539_v17 = vpop.permute.xlu1 %1538 }
 0x2ec   :  { %v1756_v41 = vsel %vm1715_vm3, %v1691_v32, %v1539_v17  ;;  %3142 = vmatmul.mubr.f32.gmra.mrb[38].mxu1 %v10164_v7 }
 0x2ed   :  { %v8097_v5 = vpop.f32.mrb[22].mxu0  ;;  %8122 = vmatprep.mubr.msk.f32.mxu0 %vm1796_vm4, %v1756_v41 }
 0x2ee   :  { %v2171_v53 = vadd.f32 %v8097_v5, %v9938_v50  ;;  %v2165_v22 = vpop.f32.mrb[23].mxu0 }
 0x2ef   :  { %v2166_v45 = vadd.f32 %v9938_v50, %v2165_v22  ;;  %v954_v33 = vpop.permute.xlu1 %953  ;;  %v1541_v40 = vpop.permute.xlu0 %1540 }
 0x2f0   :  { %v2397_v25 = vmax.f32 %v2171_v53, 0.0  ;;  %v10223_v46 = vsel %vm1125_vm1, %v1111_v58, %v954_v33  ;;  %v1757_v7 = vsel %vm1715_vm3, %v1692_v3, %v1541_v40 }
 0x2f1   :  { %v2396_v2 = vmax.f32 %v2166_v45, 0.0  ;;  %1558 = vrot.lane.b32.xlu0 %v10223_v46, %s8519_s1  ;;  %8123 = vmatmul.mubr.msk.f32.gmra.mrb[40].mxu0 %vm1796_vm4, %v1757_v7  ;;  %v321_v7 = vld [vmem:[#allocation2 + $0x2d0] sm:$0xff] }
 0x2f2   :  { %2539 = vst [vmem:[#allocation3 + $0x129] sm:$0xff] %v2397_v25 }
 0x2f3   :  { %2538 = vst [vmem:[#allocation3 + $0x121] sm:$0xff] %v2396_v2  ;;  %v956_v38 = vpop.permute.xlu1 %955  ;;  %v1347_v32 = vpop.permute.xlu0 %1346 }
 0x2f4   :  { %v10231_v28 = vsel %vm1125_vm1, %v1112_v54, %v956_v38  ;;  %v1693_v25 = vsel %vm1650_vm2, %v10016_v44, %v1347_v32 }
 0x2f5   :  { %1366 = vrot.lane.b32.xlu0 %v10223_v46, %s8518_s11  ;;  %1560 = vrot.lane.b32.xlu1 %v10231_v28, %s8519_s1 }
 0x2f7   :  { %v1349_v17 = vpop.permute.xlu0 %1348  ;;  %v670_v5 = vpop.permute.xlu1 %669 }
 0x2f8   :  { %v1694_v2 = vsel %vm1650_vm2, %v10025_v51, %v1349_v17 }
 0x2f9   :  { %1368 = vrot.lane.b32.xlu1 %v10231_v28, %s8518_s11  ;;  %v2711_v45 = vld [vmem:[#allocation3 + $0x130] sm:$0xff] }
 0x2fa   :  { %v2709_v4 = vld [vmem:[#allocation3 + $0x120] sm:$0xff]  ;;  %v2710_v41 = vld [vmem:[#allocation3 + $0x128] sm:$0xff] }
 0x2fb   :  { %3146 = vmatprep.mubr.f32.mxu1 %v2709_v4  ;;  %v672_v40 = vpop.permute.xlu0 %671 }
 0x2fc   :  { %3147 = vmatmul.mubr.f32.gmra.mrb[40].mxu1 %v2706_v24 }
 0x2fd   :  { %v8100_v58 = vpop.f32.mrb[24].mxu0  ;;  %3151 = vmatprep.mubr.f32.mxu1 %v2710_v41 }
 0x2fe   :  { %v2181_v61 = vadd.f32 %v8100_v58, %v9938_v50  ;;  %v2175_v53 = vpop.f32.mrb[25].mxu0 }
 0x2ff   :  { %v2176_v22 = vadd.f32 %v9938_v50, %v2175_v53 }
 0x300   :  { %v2399_v3 = vmax.f32 %v2181_v61, 0.0  ;;  %3152 = vmatmul.mubr.f32.gmra.mrb[42].mxu1 %v2707_v36  ;;  %v1113_v36 = vsel %vm87_vm0, %v321_v7, %v670_v5  ;;  %v322_v61 = vld [vmem:[#allocation2 + $0x2d8] sm:$0xff] }
 0x301   :  { %v2398_v33 = vmax.f32 %v2176_v22, 0.0  ;;  %3156 = vmatprep.mubr.f32.mxu1 %v2711_v45  ;;  %v1114_v32 = vsel %vm87_vm0, %v322_v61, %v672_v40  ;;  %v323_v61 = vld [vmem:[#allocation2 + $0x2e8] sm:$0xff] }
 0x302   :  { %2541 = vst [vmem:[#allocation3 + $0x141] sm:$0xff] %v2399_v3 }
 0x303   :  { %2540 = vst [vmem:[#allocation3 + $0x139] sm:$0xff] %v2398_v33  ;;  %v1543_v24 = vpop.permute.xlu1 %1542 }
 0x304   :  { %v1758_v54 = vsel %vm1715_vm3, %v1693_v25, %v1543_v24  ;;  %3157 = vmatmul.mubr.f32.gmra.mrb[44].mxu1 %v2708_v31 }
 0x305   :  { %8125 = vmatprep.mubr.msk.f32.mxu0 %vm1796_vm4, %v1758_v54 }
 0x307   :  { %v958_v38 = vpop.permute.xlu1 %957  ;;  %v1545_v58 = vpop.permute.xlu0 %1544 }
 0x308   :  { %v10249_v53 = vsel %vm1125_vm1, %v1113_v36, %v958_v38  ;;  %v1759_v44 = vsel %vm1715_vm3, %v1694_v2, %v1545_v58 }
 0x309   :  { %1562 = vrot.lane.b32.xlu0 %v10249_v53, %s8519_s1  ;;  %8126 = vmatmul.mubr.msk.f32.gmra.mrb[42].mxu0 %vm1796_vm4, %v1759_v44  ;;  %v2714_v2 = vld [vmem:[#allocation3 + $0x148] sm:$0xff] }
 0x30a   :  { %v2712_v31 = vld [vmem:[#allocation3 + $0x138] sm:$0xff]  ;;  %v2713_v5 = vld [vmem:[#allocation3 + $0x140] sm:$0xff] }
 0x30b   :  { %v960_v22 = vpop.permute.xlu1 %959  ;;  %3161 = vmatprep.mubr.f32.mxu1 %v2712_v31  ;;  %v1351_v51 = vpop.permute.xlu0 %1350 }
 0x30c   :  { %v10257_v17 = vsel %vm1125_vm1, %v1114_v32, %v960_v22  ;;  %3162 = vmatmul.mubr.f32.gmra.mrb[46].mxu1 %v2709_v4  ;;  %v1695_v36 = vsel %vm1650_vm2, %v10053_v62, %v1351_v51 }
 0x30d   :  { %v8103_v3 = vpop.f32.mrb[26].mxu0  ;;  %3166 = vmatprep.mubr.f32.mxu1 %v2713_v5  ;;  %1370 = vrot.lane.b32.xlu0 %v10249_v53, %s8518_s11 }
 0x30e   :  { %v2191_v33 = vadd.f32 %v8103_v3, %v9938_v50  ;;  %1564 = vrot.lane.b32.xlu1 %v10257_v17, %s8519_s1  ;;  %v2185_v25 = vpop.f32.mrb[27].mxu0  ;;  %v324_v3 = vld [vmem:[#allocation2 + $0x2f0] sm:$0xff] }
 0x30f   :  { %v2186_v40 = vadd.f32 %v9938_v50, %v2185_v25  ;;  %v674_v24 = vpop.permute.xlu1 %673  ;;  %v1353_v7 = vpop.permute.xlu0 %1352 }
 0x310   :  { %v2401_v54 = vmax.f32 %v2191_v33, 0.0  ;;  %3167 = vmatmul.mubr.f32.gmra.mrb[48].mxu1 %v2710_v41  ;;  %v1115_v41 = vsel %vm87_vm0, %v323_v61, %v674_v24  ;;  %v1696_v44 = vsel %vm1650_vm2, %v10061_v29, %v1353_v7 }
 0x311   :  { %v2400_v4 = vmax.f32 %v2186_v40, 0.0  ;;  %3171 = vmatprep.mubr.f32.mxu1 %v2714_v2 }
 0x312   :  { %2543 = vst [vmem:[#allocation3 + $0x159] sm:$0xff] %v2401_v54  ;;  %1372 = vrot.lane.b32.xlu1 %v10257_v17, %s8518_s11  ;;  %v10290_v54 = vld [vmem:[%s13451_s2] ss:$0 sm:$0xff] }
 0x313   :  { %2542 = vst [vmem:[#allocation3 + $0x151] sm:$0xff] %v2400_v4  ;;  %v1547_v38 = vpop.permute.xlu1 %1546  ;;  %v676_v58 = vpop.permute.xlu0 %675  ;;  %13674 = vst [vmem:[#allocation46_spill] sm:$0xff] %v10290_v54 }
 0x314   :  { %v1760_v50 = vsel %vm1715_vm3, %v1695_v36, %v1547_v38  ;;  %3172 = vmatmul.mubr.f32.gmra.mrb[50].mxu1 %v2711_v45  ;;  %v1116_v51 = vsel %vm87_vm0, %v324_v3, %v676_v58  ;;  %v325_v3 = vld [vmem:[#allocation2 + $0x300] sm:$0xff] }
 0x315   :  { %8128 = vmatprep.mubr.msk.f32.mxu0 %vm1796_vm4, %v1760_v50 }
 0x317   :  { %v962_v32 = vpop.permute.xlu1 %961  ;;  %v1549_v22 = vpop.permute.xlu0 %1548 }
 0x318   :  { %v10275_v33 = vsel %vm1125_vm1, %v1115_v41, %v962_v32  ;;  %v1761_v62 = vsel %vm1715_vm3, %v1696_v44, %v1549_v22 }
 0x319   :  { %1566 = vrot.lane.b32.xlu0 %v10275_v33, %s8519_s1  ;;  %8129 = vmatmul.mubr.msk.f32.gmra.mrb[44].mxu0 %vm1796_vm4, %v1761_v62  ;;  %v2717_v50 = vld [vmem:[#allocation3 + $0x160] sm:$0xff] }
 0x31a   :  { %v2715_v45 = vld [vmem:[#allocation3 + $0x150] sm:$0xff]  ;;  %v2716_v24 = vld [vmem:[#allocation3 + $0x158] sm:$0xff] }
 0x31b   :  { %v964_v25 = vpop.permute.xlu1 %963  ;;  %3176 = vmatprep.mubr.f32.mxu1 %v2715_v45  ;;  %v1355_v40 = vpop.permute.xlu0 %1354 }
 0x31c   :  { %v10283_v29 = vsel %vm1125_vm1, %v1116_v51, %v964_v25  ;;  %3177 = vmatmul.mubr.f32.gmra.mrb[52].mxu1 %v2712_v31  ;;  %v1697_v44 = vsel %vm1650_vm2, %v10085_v14, %v1355_v40 }
 0x31d   :  { %v8106_v7 = vpop.f32.mrb[28].mxu0  ;;  %3181 = vmatprep.mubr.f32.mxu1 %v2716_v24  ;;  %1374 = vrot.lane.b32.xlu0 %v10275_v33, %s8518_s11 }
 0x31e   :  { %v2201_v4 = vadd.f32 %v10290_v54, %v8106_v7  ;;  %1568 = vrot.lane.b32.xlu1 %v10283_v29, %s8519_s1  ;;  %v2195_v36 = vpop.f32.mrb[29].mxu0 }
 0x31f   :  { %v2196_v38 = vadd.f32 %v10290_v54, %v2195_v36  ;;  %v678_v31 = vpop.permute.xlu1 %677  ;;  %v1357_v58 = vpop.permute.xlu0 %1356 }
 0x320   :  { %v2403_v61 = vmax.f32 %v2201_v4, 0.0  ;;  %3182 = vmatmul.mubr.f32.gmra.mrb[54].mxu1 %v2713_v5  ;;  %v1117_v5 = vsel %vm87_vm0, %v325_v3, %v678_v31  ;;  %v1698_v51 = vsel %vm1650_vm2, %v10093_v60, %v1357_v58  ;;  %v326_v4 = vld [vmem:[#allocation2 + $0x308] sm:$0xff]  ;;  %v327_v3 = vld [vmem:[#allocation2 + $0x318] sm:$0xff] }
 0x321   :  { %v2402_v41 = vmax.f32 %v2196_v38, 0.0  ;;  %3186 = vmatprep.mubr.f32.mxu1 %v2717_v50 }
 0x322   :  { %2545 = vst [vmem:[#allocation3 + $0x171] sm:$0xff] %v2403_v61  ;;  %1376 = vrot.lane.b32.xlu1 %v10283_v29, %s8518_s11 }
 0x323   :  { %2544 = vst [vmem:[#allocation3 + $0x169] sm:$0xff] %v2402_v41  ;;  %v1551_v32 = vpop.permute.xlu1 %1550  ;;  %v680_v22 = vpop.permute.xlu0 %679 }
 0x324   :  { %v1762_v62 = vsel %vm1715_vm3, %v1697_v44, %v1551_v32  ;;  %3187 = vmatmul.mubr.f32.gmra.mrb[56].mxu1 %v2714_v2  ;;  %v1118_v40 = vsel %vm87_vm0, %v326_v4, %v680_v22 }
 0x325   :  { %8131 = vmatprep.mubr.msk.f32.mxu0 %vm1796_vm4, %v1762_v62 }
 0x327   :  { %v966_v25 = vpop.permute.xlu1 %965  ;;  %v1553_v7 = vpop.permute.xlu0 %1552 }
 0x328   :  { %v10306_v36 = vsel %vm1125_vm1, %v1117_v5, %v966_v25  ;;  %v1763_v14 = vsel %vm1715_vm3, %v1698_v51, %v1553_v7  ;;  %v328_v7 = vld [vmem:[#allocation2 + $0x320] sm:$0xff] }
 0x329   :  { %1570 = vrot.lane.b32.xlu0 %v10306_v36, %s8519_s1  ;;  %8132 = vmatmul.mubr.msk.f32.gmra.mrb[46].mxu0 %vm1796_vm4, %v1763_v14  ;;  %v10326_v44 = vld [vmem:[#allocation3 + $0x178] sm:$0xff] }
 0x32a   :  { %v10312_v2 = vld [vmem:[#allocation3 + $0x168] sm:$0xff]  ;;  %v10319_v58 = vld [vmem:[#allocation3 + $0x170] sm:$0xff] }
 0x32b   :  { %v968_v38 = vpop.permute.xlu1 %967  ;;  %3191 = vmatprep.mubr.f32.mxu1 %v10312_v2  ;;  %v1359_v60 = vpop.permute.xlu0 %1358 }
 0x32c   :  { %v10317_v31 = vsel %vm1125_vm1, %v1118_v40, %v968_v38  ;;  %3192 = vmatmul.mubr.f32.gmra.mrb[58].mxu1 %v2715_v45  ;;  %v1699_v45 = vsel %vm1650_vm2, %v10114_v47, %v1359_v60 }
 0x32d   :  { %13675 = vst [vmem:[#allocation47_spill] sm:$0xff] %v10317_v31  ;;  %3196 = vmatprep.mubr.f32.mxu1 %v10319_v58  ;;  %1378 = vrot.lane.b32.xlu0 %v10306_v36, %s8518_s11 }
 0x32e   :  { %1572 = vrot.lane.b32.xlu1 %v10317_v31, %s8519_s1 }
 0x32f   :  { %v682_v61 = vpop.permute.xlu1 %681  ;;  %v1361_v41 = vpop.permute.xlu0 %1360 }
 0x330   :  { %3197 = vmatmul.mubr.f32.gmra.mrb[60].mxu1 %v2716_v24  ;;  %v1119_v24 = vsel %vm87_vm0, %v327_v3, %v682_v61  ;;  %v1700_v25 = vsel %vm1650_vm2, %v10123_v57, %v1361_v41  ;;  %v329_v61 = vld [vmem:[#allocation2 + $0x330] sm:$0xff] }
 0x331   :  { %3201 = vmatprep.mubr.f32.mxu1 %v10326_v44 }
 0x332   :  { %1380 = vrot.lane.b32.xlu1 %v10317_v31, %s8518_s11 }
 0x333   :  { %v1555_v32 = vpop.permute.xlu1 %1554  ;;  %v684_v22 = vpop.permute.xlu0 %683 }
 0x334   :  { %v1764_v62 = vsel %vm1715_vm3, %v1699_v45, %v1555_v32  ;;  %3202 = vmatmul.mubr.f32.gmra.mrb[62].mxu1 %v2717_v50  ;;  %v1120_v50 = vsel %vm87_vm0, %v328_v7, %v684_v22  ;;  %v331_v7 = vld [vmem:[#allocation2 + $0x348] sm:$0xff] }
 0x335   :  { %8134 = vmatprep.mubr.msk.f32.mxu0 %vm1796_vm4, %v1764_v62  ;;  %v330_v62 = vld [vmem:[#allocation2 + $0x338] sm:$0xff] }
 0x337   :  { %v10336_v5 = vpop.f32.mrb[0].mxu1  ;;  %v970_v51 = vpop.permute.xlu1 %969 }
 0x338   :  { %13676 = vst [vmem:[#allocation48_spill] sm:$0xff] %v10336_v5  ;;  %v10341_v4 = vsel %vm1125_vm1, %v1119_v24, %v970_v51  ;;  %v1557_v47 = vpop.permute.xlu0 %1556  ;;  %v3050_v14 = vpop.f32.mrb[1].mxu1 }
 0x339   :  { %13677 = vst [vmem:[#allocation49_spill] sm:$0xff] %v10341_v4  ;;  %v1765_v40 = vsel %vm1715_vm3, %v1700_v25, %v1557_v47  ;;  %1574 = vrot.lane.b32.xlu0 %v10341_v4, %s8519_s1 }
 0x33a   :  { %8135 = vmatmul.mubr.msk.f32.gmra.mrb[48].mxu0 %vm1796_vm4, %v1765_v40 }
 0x33b   :  { %v10348_v38 = vpop.f32.mrb[2].mxu1  ;;  %v972_v60 = vpop.permute.xlu1 %971 }
 0x33c   :  { %13678 = vst [vmem:[#allocation50_spill] sm:$0xff] %v10348_v38  ;;  %v10351_v57 = vsel %vm1125_vm1, %v1120_v50, %v972_v60  ;;  %v686_v41 = vpop.permute.xlu0 %685  ;;  %v3055_v45 = vpop.f32.mrb[3].mxu1 }
 0x33d   :  { %13679 = vst [vmem:[#allocation51_spill] sm:$0xff] %v10351_v57  ;;  %1382 = vrot.lane.b32.xlu0 %v10341_v4, %s8518_s11  ;;  %1576 = vrot.lane.b32.xlu1 %v10351_v57, %s8519_s1  ;;  %v1121_v32 = vsel %vm87_vm0, %v329_v61, %v686_v41  ;;  %v332_v41 = vld [vmem:[#allocation2 + $0x350] sm:$0xff] }
 0x33f   :  { %v688_v3 = vpop.permute.xlu1 %687 }
 0x340   :  { %v974_v22 = vpop.permute.xlu0 %973  ;;  %v1122_v51 = vsel %vm87_vm0, %v330_v62, %v688_v3  ;;  %v2901_v3 = vld [vmem:[%s13452_s3 + $0x100] sm:$0xff]  ;;  %v2902_v62 = vld [vmem:[%s13452_s3 + $0x108] sm:$0xff] }
 0x341   :  { %v1194_v24 = vsel %vm1125_vm1, %v1121_v32, %v974_v22  ;;  %1384 = vrot.lane.b32.xlu1 %v10351_v57, %s8518_s11 }
 0x342   :  { %1578 = vrot.lane.b32.xlu0 %v1194_v24, %s8519_s1 }
 0x343   :  { %v976_v25 = vpop.permute.xlu1 %975 }
 0x344   :  { %v1195_v47 = vsel %vm1125_vm1, %v1122_v51, %v976_v25  ;;  %v690_v14 = vpop.permute.xlu0 %689 }
 0x345   :  { %1580 = vrot.lane.b32.xlu1 %v1195_v47, %s8519_s1  ;;  %v1123_v40 = vsel %vm87_vm0, %v331_v7, %v690_v14 }
 0x346   :  { %1386 = vrot.lane.b32.xlu0 %v1194_v24, %s8518_s11  ;;  %v10367_v50 = vpop.f32.mrb[4].mxu1  ;;  %v10380_v24 = vpack.c.bf16 %v2902_v62, %v2901_v3 }
 0x347   :  { %13680 = vst [vmem:[#allocation52_spill] sm:$0xff] %v10367_v50  ;;  %v692_v60 = vpop.permute.xlu1 %691  ;;  %v3060_v61 = vpop.f32.mrb[5].mxu1 }
 0x348   :  { %v978_v45 = vpop.permute.xlu0 %977  ;;  %13682 = vst [vmem:[#allocation54_spill] sm:$0xff] %v10380_v24  ;;  %v1124_v51 = vsel %vm87_vm0, %v332_v41, %v692_v60  ;;  %8399 = vmatprep.subr.bf16.mxu0 %v10380_v24  ;;  %v5089_v24 = vcombine.low %v8980_v19, %v9022_v39 }
 0x349   :  { %v1196_v32 = vsel %vm1125_vm1, %v1123_v40, %v978_v45  ;;  %1388 = vrot.lane.b32.xlu1 %v1195_v47, %s8518_s11 }
 0x34a   :  { %1582 = vrot.lane.b32.xlu0 %v1196_v32, %s8519_s1  ;;  %v10378_v22 = vpop.f32.mrb[6].mxu1 }
 0x34b   :  { %13681 = vst [vmem:[#allocation53_spill] sm:$0xff] %v10378_v22  ;;  %v980_v25 = vpop.permute.xlu1 %979  ;;  %v3065_v7 = vpop.f32.mrb[7].mxu1 }
 0x34c   :  { %v1197_v47 = vsel %vm1125_vm1, %v1124_v51, %v980_v25  ;;  %v8109_v14 = vpop.f32.mrb[30].mxu0 }
 0x34d   :  { %v2211_v40 = vadd.f32 %v10290_v54, %v8109_v14  ;;  %v2205_v61 = vpop.f32.mrb[31].mxu0  ;;  %1584 = vrot.lane.b32.xlu1 %v1197_v47, %s8519_s1 }
 0x34e   :  { %v2206_v45 = vadd.f32 %v10290_v54, %v2205_v61  ;;  %v10388_v32 = vpop.f32.mrb[8].mxu1  ;;  %v1363_v61 = vpop.permute.xlu0 %1362 }
 0x34f   :  { %13683 = vst [vmem:[#allocation55_spill] sm:$0xff] %v10388_v32  ;;  %v2405_v3 = vmax.f32 %v2211_v40, 0.0  ;;  %v3070_v62 = vpop.f32.mrb[9].mxu1 }
 0x350   :  { %v2404_v22 = vmax.f32 %v2206_v45, 0.0 }
 0x351   :  { %2547 = vst [vmem:[#allocation3 + $0x189] sm:$0xff] %v2405_v3  ;;  %v1365_v3 = vpop.permute.xlu1 %1364 }
 0x352   :  { %2546 = vst [vmem:[#allocation3 + $0x181] sm:$0xff] %v2404_v22  ;;  %v1701_v22 = vsel %vm1650_vm2, %v10144_v30, %v1363_v61 }
 0x356   :  { %v10390_v60 = vpop.f32.mrb[10].mxu1 }
 0x357   :  { %13684 = vst [vmem:[#allocation56_spill] sm:$0xff] %v10390_v60  ;;  %v3075_v41 = vpop.f32.mrb[11].mxu1 }
 0x358   :  { %v2723_v45 = vld [vmem:[#allocation3 + $0x190] sm:$0xff] }
 0x359   :  { %v2721_v51 = vld [vmem:[#allocation3 + $0x180] sm:$0xff]  ;;  %v2722_v47 = vld [vmem:[#allocation3 + $0x188] sm:$0xff] }
 0x35a   :  { %v10392_v25 = vpop.f32.mrb[12].mxu1  ;;  %3206 = vmatprep.mubr.f32.mxu1 %v2721_v51 }
 0x35b   :  { %13685 = vst [vmem:[#allocation57_spill] sm:$0xff] %v10392_v25  ;;  %v3080_v7 = vpop.f32.mrb[13].mxu1  ;;  %3207 = vmatmul.mubr.f32.gmra.mrb[64].mxu1 %v10312_v2 }
 0x35c   :  { %3211 = vmatprep.mubr.f32.mxu1 %v2722_v47 }
 0x35e   :  { %v10395_v14 = vpop.f32.mrb[14].mxu1 }
 0x35f   :  { %13686 = vst [vmem:[#allocation58_spill] sm:$0xff] %v10395_v14  ;;  %v3085_v40 = vpop.f32.mrb[15].mxu1  ;;  %3212 = vmatmul.mubr.f32.gmra.mrb[66].mxu1 %v10319_v58  ;;  %v1702_v58 = vsel %vm1650_vm2, %v10158_v16, %v1365_v3  ;;  %v10415_v16 = vld [vmem:[#allocation3] sm:$0xff] }
 0x360   :  { %3216 = vmatprep.mubr.f32.mxu1 %v2723_v45  ;;  %13690 = vst [vmem:[#allocation62_spill] sm:$0xff] %v10415_v16 }
 0x363   :  { %3217 = vmatmul.mubr.f32.gmra.mrb[68].mxu1 %v10326_v44  ;;  %v1559_v62 = vpop.permute.xlu0 %1558 }
 0x364   :  { %v1766_v41 = vsel %vm1715_vm3, %v1701_v22, %v1559_v62 }
 0x365   :  { %v8112_v2 = vpop.f32.mrb[32].mxu0  ;;  %8137 = vmatprep.mubr.msk.f32.mxu0 %vm1796_vm4, %v1766_v41 }
 0x366   :  { %v2221_v51 = vadd.f32 %v10290_v54, %v8112_v2  ;;  %v2215_v7 = vpop.f32.mrb[33].mxu0  ;;  %v10404_v47 = vpop.f32.mrb[16].mxu1 }
 0x367   :  { %13687 = vst [vmem:[#allocation59_spill] sm:$0xff] %v10404_v47  ;;  %v2216_v40 = vadd.f32 %v10290_v54, %v2215_v7  ;;  %v3090_v30 = vpop.f32.mrb[17].mxu1  ;;  %v1561_v61 = vpop.permute.xlu1 %1560 }
 0x368   :  { %v2407_v45 = vmax.f32 %v2221_v51, 0.0  ;;  %v1767_v44 = vsel %vm1715_vm3, %v1702_v58, %v1561_v61  ;;  %v1367_v30 = vpop.permute.xlu0 %1366 }
 0x369   :  { %v2406_v14 = vmax.f32 %v2216_v40, 0.0  ;;  %8138 = vmatmul.mubr.msk.f32.gmra.mrb[50].mxu0 %vm1796_vm4, %v1767_v44 }
 0x36a   :  { %2549 = vst [vmem:[#allocation3 + $0x1d1] sm:$0xff] %v2407_v45  ;;  %v10411_v22 = vpop.f32.mrb[18].mxu1 }
 0x36b   :  { %13688 = vst [vmem:[#allocation60_spill] sm:$0xff] %v10411_v22  ;;  %2548 = vst [vmem:[#allocation3 + $0x1c9] sm:$0xff] %v2406_v14  ;;  %v3095_v62 = vpop.f32.mrb[19].mxu1  ;;  %v1703_v22 = vsel %vm1650_vm2, %v10181_v52, %v1367_v30 }
 0x36e   :  { %v10413_v41 = vpop.f32.mrb[20].mxu1 }
 0x36f   :  { %13689 = vst [vmem:[#allocation61_spill] sm:$0xff] %v10413_v41  ;;  %v3100_v2 = vpop.f32.mrb[21].mxu1 }
 0x371   :  { %v2726_v44 = vld [vmem:[#allocation3 + $0x1d8] sm:$0xff] }
 0x372   :  { %v2724_v47 = vld [vmem:[#allocation3 + $0x1c8] sm:$0xff]  ;;  %v2725_v3 = vld [vmem:[#allocation3 + $0x1d0] sm:$0xff] }
 0x373   :  { %3221 = vmatprep.mubr.f32.mxu1 %v2724_v47 }
 0x374   :  { %3222 = vmatmul.mubr.f32.gmra.mrb[70].mxu1 %v10415_v16 }
 0x375   :  { %v8115_v51 = vpop.f32.mrb[34].mxu0  ;;  %3226 = vmatprep.mubr.f32.mxu1 %v2725_v3 }
 0x376   :  { %v2231_v7 = vadd.f32 %v10290_v54, %v8115_v51  ;;  %v2225_v58 = vpop.f32.mrb[35].mxu0  ;;  %v10419_v40 = vpop.f32.mrb[22].mxu1 }
 0x377   :  { %13691 = vst [vmem:[#allocation63_spill] sm:$0xff] %v10419_v40  ;;  %v2226_v14 = vadd.f32 %v10290_v54, %v2225_v58  ;;  %v3105_v61 = vpop.f32.mrb[23].mxu1  ;;  %v1369_v40 = vpop.permute.xlu1 %1368 }
 0x378   :  { %v2409_v45 = vmax.f32 %v2231_v7, 0.0  ;;  %3227 = vmatmul.mubr.f32.gmra.mrb[72].mxu1 %v10415_v16 }
 0x379   :  { %v2408_v62 = vmax.f32 %v2226_v14, 0.0  ;;  %3231 = vmatprep.mubr.f32.mxu1 %v2726_v44  ;;  %v1704_v14 = vsel %vm1650_vm2, %v10190_v63, %v1369_v40 }
 0x37a   :  { %2551 = vst [vmem:[#allocation3 + $0x1e9] sm:$0xff] %v2409_v45  ;;  %v10423_v2 = vpop.f32.mrb[24].mxu1 }
 0x37b   :  { %13692 = vst [vmem:[#allocation64_spill] sm:$0xff] %v10423_v2  ;;  %2550 = vst [vmem:[#allocation3 + $0x1e1] sm:$0xff] %v2408_v62  ;;  %v3110_v51 = vpop.f32.mrb[25].mxu1  ;;  %v1563_v41 = vpop.permute.xlu0 %1562 }
 0x37c   :  { %v1768_v60 = vsel %vm1715_vm3, %v1703_v22, %v1563_v41  ;;  %3232 = vmatmul.mubr.f32.gmra.mrb[74].mxu1 %v10415_v16 }
 0x37d   :  { %8140 = vmatprep.mubr.msk.f32.mxu0 %vm1796_vm4, %v1768_v60 }
 0x37e   :  { %v10430_v7 = vpop.f32.mrb[26].mxu1 }
 0x37f   :  { %13693 = vst [vmem:[#allocation65_spill] sm:$0xff] %v10430_v7  ;;  %v3115_v58 = vpop.f32.mrb[27].mxu1  ;;  %v1371_v51 = vpop.permute.xlu0 %1370 }
 0x380   :  { %v1565_v61 = vpop.permute.xlu1 %1564 }
 0x381   :  { %v1769_v45 = vsel %vm1715_vm3, %v1704_v14, %v1565_v61  ;;  %v10440_v14 = vld [vmem:[#allocation3 + $0x1f0] sm:$0xff] }
 0x382   :  { %8141 = vmatmul.mubr.msk.f32.gmra.mrb[52].mxu0 %vm1796_vm4, %v1769_v45  ;;  %v2727_v52 = vld [vmem:[#allocation3 + $0x1e0] sm:$0xff]  ;;  %v2728_v30 = vld [vmem:[#allocation3 + $0x1e8] sm:$0xff]  ;;  %v1705_v45 = vsel %vm1650_vm2, %v10223_v46, %v1371_v51 }
 0x383   :  { %3236 = vmatprep.mubr.f32.mxu1 %v2727_v52 }
 0x384   :  { %3237 = vmatmul.mubr.f32.gmra.mrb[76].mxu1 %v2724_v47 }
 0x385   :  { %v8118_v22 = vpop.f32.mrb[36].mxu0  ;;  %3241 = vmatprep.mubr.f32.mxu1 %v2728_v30 }
 0x386   :  { %v2241_v41 = vadd.f32 %v10290_v54, %v8118_v22  ;;  %v2235_v60 = vpop.f32.mrb[37].mxu0  ;;  %v10437_v62 = vpop.f32.mrb[28].mxu1 }
 0x387   :  { %13694 = vst [vmem:[#allocation66_spill] sm:$0xff] %v10437_v62  ;;  %v2236_v58 = vadd.f32 %v10290_v54, %v2235_v60  ;;  %v3120_v63 = vpop.f32.mrb[29].mxu1  ;;  %v1373_v62 = vpop.permute.xlu1 %1372 }
 0x388   :  { %v2411_v40 = vmax.f32 %v2241_v41, 0.0  ;;  %3242 = vmatmul.mubr.f32.gmra.mrb[78].mxu1 %v2725_v3 }
 0x389   :  { %v2410_v61 = vmax.f32 %v2236_v58, 0.0  ;;  %3246 = vmatprep.mubr.f32.mxu1 %v10440_v14  ;;  %v8521_v58 = vmov 1983009808  }
 0x38a   :  { %2553 = vst [vmem:[#allocation3 + $0x201] sm:$0xff] %v2411_v40  ;;  %v10443_v47 = vpop.f32.mrb[30].mxu1  ;;  %v4940_v63 = vunpack.c.l.s4 %v8521_v58  ;;  %v4942_v40 = vlaneseq }
 0x38b   :  { %13695 = vst [vmem:[#allocation67_spill] sm:$0xff] %v10443_v47  ;;  %2552 = vst [vmem:[#allocation3 + $0x1f9] sm:$0xff] %v2410_v61  ;;  %v3125_v22 = vpop.f32.mrb[31].mxu1  ;;  %v1567_v7 = vpop.permute.xlu0 %1566  ;;  %v1706_v47 = vsel %vm1650_vm2, %v10231_v28, %v1373_v62  ;;  %v4953_v28 = vcombine.low %v8573_v0, %v8901_v8 }
 0x38c   :  { %v1770_v60 = vsel %vm1715_vm3, %v1705_v45, %v1567_v7  ;;  %3247 = vmatmul.mubr.f32.gmra.mrb[80].mxu1 %v2726_v44  ;;  %v4941_v51 = vunpack.c.0.s8 %v4940_v63  ;;  %v4943_v61 = vshrl.u32 %v4942_v40, 7  ;;  %v4937_v45 = vcombine.low %v8578_v1, %v8879_v6 }
 0x38d   :  { %8143 = vmatprep.mubr.msk.f32.mxu0 %vm1796_vm4, %v1770_v60  ;;  %v8522_v60 = vmov 1934713408  }
 0x38e   :  { %v10449_v3 = vpop.f32.mrb[32].mxu1  ;;  %v10460_v22 = vsub.s32 %v4941_v51, %v4943_v61 }
 0x38f   :  { %13696 = vst [vmem:[#allocation68_spill] sm:$0xff] %v10449_v3  ;;  %v3130_v41 = vpop.f32.mrb[33].mxu1  ;;  %v1375_v44 = vpop.permute.xlu0 %1374 }
 0x390   :  { %v1569_v2 = vpop.permute.xlu1 %1568  ;;  %13697 = vst [vmem:[#allocation69_spill] sm:$0xff] %v10460_v22  ;;  %v5004_v41 = vunpack.c.l.s4 %v8522_v60  ;;  %v10472_v63 = vrot.slane %v4937_v45, %v10460_v22  ;;  %v4961_v40 = vrot.slane %v4953_v28, %v10460_v22  ;;  %v5481_v45 = vcombine.low %v9235_v56, %v9298_v43 }
 0x391   :  { %v1771_v46 = vsel %vm1715_vm3, %v1706_v47, %v1569_v2  ;;  %v4969_v2 = vcombine.low %v8917_v10, %v8938_v13  ;;  %v4985_v47 = vcombine.low %v8927_v12, %v8948_v15  ;;  %v5497_v28 = vcombine.low %v9260_v34, %v9336_v48  ;;  %v10488_v50 = vld [vmem:[#allocation3 + $0x208] sm:$0xff] }
 0x392   :  { %8144 = vmatmul.mubr.msk.f32.gmra.mrb[54].mxu0 %vm1796_vm4, %v1771_v46  ;;  %v10455_v7 = vld [vmem:[#allocation3 + $0x1f8] sm:$0xff]  ;;  %v10466_v62 = vld [vmem:[#allocation3 + $0x200] sm:$0xff]  ;;  %v5005_v60 = vunpack.c.0.s8 %v5004_v41  ;;  %v5001_v38 = vcombine.low %v10472_v63, %v4961_v40  ;;  %v5489_v41 = vrot.slane %v5481_v45, %v10460_v22  ;;  %v5097_v57 = vrot.slane %v5089_v24, %v10460_v22 }
 0x393   :  { %3251 = vmatprep.mubr.f32.mxu1 %v10455_v7  ;;  %v10476_v46 = vrot.slane %v4969_v2, %v10460_v22  ;;  %v4993_v25 = vrot.slane %v4985_v47, %v10460_v22  ;;  %v5513_v47 = vcombine.low %v9370_v42, %v9490_v9  ;;  %v5002_v24 = vcombine.high %v10472_v63, %v4961_v40 }
 0x394   :  { %3252 = vmatmul.mubr.f32.gmra.mrb[82].mxu1 %v2727_v52  ;;  %v1707_v52 = vsel %vm1650_vm2, %v10249_v53, %v1375_v44  ;;  %v10490_v53 = vsub.s32 %v5005_v60, %v4943_v61 }
 0x395   :  { %v8121_v58 = vpop.f32.mrb[38].mxu0  ;;  %3256 = vmatprep.mubr.f32.mxu1 %v10466_v62  ;;  %v5033_v44 = vcombine.low %v10476_v46, %v4993_v25  ;;  %v5521_v60 = vrot.slane %v5513_v47, %v10460_v22 }
 0x396   :  { %v2251_v51 = vadd.f32 %v10290_v54, %v8121_v58  ;;  %v2245_v3 = vpop.f32.mrb[39].mxu0  ;;  %13698 = vst [vmem:[#allocation70_spill] sm:$0xff] %v10490_v53  ;;  %v5505_v58 = vrot.slane %v5497_v28, %v10460_v22  ;;  %v5016_v63 = vrot.slane %v5002_v24, %v10490_v53 }
 0x397   :  { %v2246_v32 = vadd.f32 %v10290_v54, %v2245_v3  ;;  %v10504_v61 = vrot.slane %v5033_v44, %v10490_v53 }
 0x398   :  { %v2413_v2 = vmax.f32 %v2251_v51, 0.0  ;;  %3257 = vmatmul.mubr.f32.gmra.mrb[84].mxu1 %v2728_v30  ;;  %v5529_v51 = vcombine.low %v9452_v37, %v9526_v11  ;;  %v10501_v30 = vrot.slane %v5001_v38, %v10490_v53  ;;  %v5545_v28 = vcombine.low %v5489_v41, %v5505_v58 }
 0x399   :  { %v2412_v3 = vmax.f32 %v2246_v32, 0.0  ;;  %3261 = vmatprep.mubr.f32.mxu1 %v10488_v50  ;;  %13700 = vst [vmem:[#allocation72_spill] sm:$0xff] %v10504_v61  ;;  %v5073_v32 = vcombine.low %v8969_v18, %v8990_v21  ;;  %v5105_v38 = vcombine.low %v9046_v49, %v9090_v27  ;;  %v5546_v24 = vcombine.high %v5489_v41, %v5505_v58 }
 0x39a   :  { %2555 = vst [vmem:[#allocation3 + $0x219] sm:$0xff] %v2413_v2  ;;  %13699 = vst [vmem:[#allocation71_spill] sm:$0xff] %v10501_v30  ;;  %v5537_v45 = vrot.slane %v5529_v51, %v10460_v22  ;;  %v1377_v2 = vpop.permute.xlu1 %1376  ;;  %v5066_v47 = vcombine.high %v10501_v30, %v10504_v61  ;;  %v5121_v51 = vcombine.low %v9068_v59, %v9110_v35  ;;  %v13702_v30 = vld [vmem:[#allocation42_spill] sm:$0xff] }
 0x39b   :  { %2554 = vst [vmem:[#allocation3 + $0x211] sm:$0xff] %v2412_v3  ;;  %v1571_v5 = vpop.permute.xlu0 %1570  ;;  %v5081_v3 = vrot.slane %v5073_v32, %v10460_v22  ;;  %v10523_v16 = vrot.slane %v5545_v28, %v10490_v53  ;;  %v5633_v32 = vcombine.low %v9664_v55, %v9826_v26 }
 0x39c   :  { %v1772_v44 = vsel %vm1715_vm3, %v1707_v52, %v1571_v5  ;;  %3262 = vmatmul.mubr.f32.gmra.mrb[86].mxu1 %v10440_v14  ;;  %v5577_v54 = vcombine.low %v5521_v60, %v5537_v45  ;;  %v5113_v5 = vrot.slane %v5105_v38, %v10460_v22  ;;  %6029 = vrot.lane.b32.xlu0 %v5066_v47, %s8516_s17 }
 0x39d   :  { %8146 = vmatprep.mubr.msk.f32.mxu0 %vm1796_vm4, %v1772_v44  ;;  %13701 = vst [vmem:[#allocation73_spill] sm:$0xff] %v10523_v16  ;;  %v5129_v14 = vrot.slane %v5121_v51, %v10460_v22  ;;  %v5617_v52 = vcombine.low %v9590_v23, %v9799_v20  ;;  %v13703_v44 = vld [vmem:[#allocation38_spill] sm:$0xff]  ;;  %v5137_v4 = vcombine.low %v5081_v3, %v5097_v57 }
 0x39e   :  { %v5649_v61 = vcombine.low %v13703_v44, %v13702_v30  ;;  %v10536_v28 = vrot.slane %v5577_v54, %v10490_v53  ;;  %v5034_v38 = vcombine.high %v10476_v46, %v4993_v25  ;;  %v1708_v47 = vsel %vm1650_vm2, %v10257_v17, %v1377_v2  ;;  %v13707_v2 = vld [vmem:[#allocation44_spill] sm:$0xff] }
 0x39f   :  { %v5169_v31 = vcombine.low %v5113_v5, %v5129_v14  ;;  %v5625_v23 = vrot.slane %v5617_v52, %v10460_v22  ;;  %v5641_v55 = vrot.slane %v5633_v32, %v10460_v22  ;;  %v10548_v44 = vrot.slane %v5137_v4, %v10490_v53  ;;  %v13708_v52 = vld [vmem:[#allocation40_spill] sm:$0xff] }
 0x3a0   :  { %13704 = vst [vmem:[#allocation42_spill] sm:$0xff] %v10536_v28  ;;  %v1573_v51 = vpop.permute.xlu1 %1572  ;;  %v5610_v54 = vcombine.high %v10523_v16, %v10536_v28  ;;  %v5048_v40 = vrot.slane %v5034_v38, %v10490_v53  ;;  %v5657_v46 = vrot.slane %v5649_v61, %v10460_v22  ;;  %v5665_v32 = vcombine.low %v13708_v52, %v13707_v2 }
 0x3a1   :  { %v1773_v26 = vsel %vm1715_vm3, %v1708_v47, %v1573_v51  ;;  %13705 = vst [vmem:[#allocation74_spill] sm:$0xff] %v10548_v44  ;;  %v10555_v17 = vrot.slane %v5169_v31, %v10490_v53  ;;  %v5681_v4 = vcombine.low %v5625_v23, %v5641_v55  ;;  %v5578_v47 = vcombine.high %v5521_v60, %v5537_v45  ;;  %v1379_v45 = vpop.permute.xlu0 %1378 }
 0x3a2   :  { %8147 = vmatmul.mubr.msk.f32.gmra.mrb[56].mxu0 %vm1796_vm4, %v1773_v26  ;;  %v10552_v25 = vld [vmem:[#allocation3 + $0x210] sm:$0xff]  ;;  %6033 = vrot.lane.b32.xlu0 %v5610_v54, %s8516_s17  ;;  %v10564_v26 = vld [vmem:[#allocation3 + $0x218] sm:$0xff]  ;;  %v5067_v38 = vcombine.low %v5016_v63, %v5048_v40  ;;  %v5673_v61 = vrot.slane %v5665_v32, %v10460_v22  ;;  %v5560_v51 = vrot.slane %v5546_v24, %v10490_v53  ;;  %v10578_v32 = vld [vmem:[#allocation3 + $0x220] sm:$0xff] }
 0x3a3   :  { %13706 = vst [vmem:[#allocation75_spill] sm:$0xff] %v10555_v17  ;;  %3266 = vmatprep.mubr.f32.mxu1 %v10552_v25  ;;  %v5202_v31 = vcombine.high %v10548_v44, %v10555_v17  ;;  %v5592_v16 = vrot.slane %v5578_v47, %v10490_v53  ;;  %v10574_v41 = vrot.slane %v5681_v4, %v10490_v53 }
 0x3a4   :  { %3267 = vmatmul.mubr.f32.gmra.mrb[88].mxu1 %v10455_v7  ;;  %v5713_v7 = vcombine.low %v5657_v46, %v5673_v61  ;;  %v5138_v58 = vcombine.high %v5081_v3, %v5097_v57  ;;  %v5170_v60 = vcombine.high %v5113_v5, %v5129_v14  ;;  %v5682_v57 = vcombine.high %v5625_v23, %v5641_v55 }
 0x3a5   :  { %3271 = vmatprep.mubr.f32.mxu1 %v10564_v26  ;;  %6031 = vrot.lane.b32.xlu1 %v5202_v31, %s8516_s17  ;;  %13709 = vst [vmem:[#allocation44_spill] sm:$0xff] %v10574_v41  ;;  %v5611_v54 = vcombine.low %v5560_v51, %v5592_v16  ;;  %v5714_v3 = vcombine.high %v5657_v46, %v5673_v61 }
 0x3a6   :  { %6045 = vrot.lane.b32.xlu0 %v5067_v38, %s8517_s18  ;;  %v10581_v24 = vrot.slane %v5713_v7, %v10490_v53  ;;  %v10584_v47 = vrot.slane %v5138_v58, %v10490_v53  ;;  %v10587_v4 = vrot.slane %v5170_v60, %v10490_v53  ;;  %v1709_v5 = vsel %vm1650_vm2, %v10275_v33, %v1379_v45  ;;  %v1381_v38 = vpop.permute.xlu1 %1380 }
 0x3a7   :  { %v5068_v31 = vcombine.high %v5016_v63, %v5048_v40  ;;  %v10598_v58 = vrot.slane %v5682_v57, %v10490_v53  ;;  %v10601_v23 = vrot.slane %v5714_v3, %v10490_v53  ;;  %v4938_v55 = vcombine.high %v8578_v1, %v8879_v6 }
 0x3a8   :  { %3272 = vmatmul.mubr.f32.gmra.mrb[90].mxu1 %v10466_v62  ;;  %13710 = vst [vmem:[#allocation40_spill] sm:$0xff] %v10581_v24  ;;  %v5746_v62 = vcombine.high %v10574_v41, %v10581_v24  ;;  %v5203_v14 = vcombine.low %v10584_v47, %v10587_v4  ;;  %v4954_v33 = vcombine.high %v8573_v0, %v8901_v8 }
 0x3a9   :  { %3276 = vmatprep.mubr.f32.mxu1 %v10578_v32  ;;  %v4970_v63 = vcombine.high %v8917_v10, %v8938_v13  ;;  %v4986_v40 = vcombine.high %v8927_v12, %v8948_v15  ;;  %v10616_v61 = vrot.slane %v4938_v55, %v10460_v22  ;;  %v1710_v0 = vsel %vm1650_vm2, %v10283_v29, %v1381_v38 }
 0x3aa   :  { %6049 = vrot.lane.b32.xlu0 %v5611_v54, %s8517_s18  ;;  %6035 = vrot.lane.b32.xlu1 %v5746_v62, %s8516_s17  ;;  %v10619_v1 = vrot.slane %v4954_v33, %v10460_v22  ;;  %v5612_v12 = vcombine.high %v5560_v51, %v5592_v16  ;;  %v5498_v29 = vcombine.high %v9260_v34, %v9336_v48 }
 0x3ab   :  { %v1575_v7 = vpop.permute.xlu0 %1574  ;;  %v10624_v6 = vrot.slane %v4970_v63, %v10460_v22  ;;  %v10627_v8 = vrot.slane %v4986_v40, %v10460_v22  ;;  %v5747_v45 = vcombine.low %v10598_v58, %v10601_v23  ;;  %v5514_v16 = vcombine.high %v9370_v42, %v9490_v9 }
 0x3ac   :  { %v1774_v46 = vsel %vm1715_vm3, %v1709_v5, %v1575_v7  ;;  %3277 = vmatmul.mubr.f32.gmra.mrb[92].mxu1 %v10488_v50  ;;  %v5017_v15 = vcombine.low %v10616_v61, %v10619_v1  ;;  %v5482_v50 = vcombine.high %v9235_v56, %v9298_v43  ;;  %v10654_v43 = vrot.slane %v5498_v29, %v10460_v22 }
 0x3ad   :  { %8149 = vmatprep.mubr.msk.f32.mxu0 %vm1796_vm4, %v1774_v46  ;;  %v5049_v54 = vcombine.low %v10624_v6, %v10627_v8  ;;  %v10660_v57 = vrot.slane %v5514_v16, %v10460_v22  ;;  %v5530_v42 = vcombine.high %v9452_v37, %v9526_v11  ;;  %v5074_v9 = vcombine.high %v8969_v18, %v8990_v21 }
 0x3ae   :  { %6061 = vrot.lane.b32.xlu0 %v5068_v31, %s8518_s11  ;;  %6047 = vrot.lane.b32.xlu1 %v5203_v14, %s8517_s18  ;;  %v10648_v56 = vrot.slane %v5017_v15, %v10490_v53  ;;  %v10651_v34 = vrot.slane %v5482_v50, %v10460_v22  ;;  %v5090_v5 = vcombine.high %v8980_v19, %v9022_v39 }
 0x3af   :  { %v1577_v10 = vpop.permute.xlu1 %1576  ;;  %v1383_v13 = vpop.permute.xlu0 %1382  ;;  %v10657_v48 = vrot.slane %v5049_v54, %v10490_v53  ;;  %v5106_v62 = vcombine.high %v9046_v49, %v9090_v27  ;;  %v5122_v14 = vcombine.high %v9068_v59, %v9110_v35  ;;  %v5204_v18 = vcombine.high %v10584_v47, %v10587_v4  ;;  %v13711_v47 = vld [vmem:[#allocation47_spill] sm:$0xff]  ;;  %v13714_v54 = vld [vmem:[#allocation49_spill] sm:$0xff] }
 0x3b0   :  { %v1775_v60 = vsel %vm1715_vm3, %v1710_v0, %v1577_v10  ;;  %v1711_v51 = vsel %vm1650_vm2, %v10306_v36, %v1383_v13  ;;  %v5561_v3 = vcombine.low %v10651_v34, %v10654_v43  ;;  %v10681_v37 = vrot.slane %v5530_v42, %v10460_v22 }
 0x3b1   :  { %8150 = vmatmul.mubr.msk.f32.gmra.mrb[58].mxu0 %vm1796_vm4, %v1775_v60  ;;  %v5069_v21 = vcombine.low %v10648_v56, %v10657_v48  ;;  %v5088_v19 = vrot.slane %v5074_v9, %v10460_v22  ;;  %v5104_v49 = vrot.slane %v5090_v5, %v10460_v22  ;;  %v5120_v35 = vrot.slane %v5106_v62, %v10460_v22  ;;  %v13715_v5 = vld [vmem:[#allocation51_spill] sm:$0xff] }
 0x3b2   :  { %6065 = vrot.lane.b32.xlu0 %v5612_v12, %s8518_s11  ;;  %6051 = vrot.lane.b32.xlu1 %v5747_v45, %s8517_s18  ;;  %v10688_v59 = vrot.slane %v5561_v3, %v10490_v53  ;;  %v5593_v27 = vcombine.low %v10660_v57, %v10681_v37  ;;  %v5136_v11 = vrot.slane %v5122_v14, %v10460_v22 }
 0x3b3   :  { %v1385_v36 = vpop.permute.xlu1 %1384  ;;  %v5153_v55 = vcombine.low %v5088_v19, %v5104_v49  ;;  %v5748_v40 = vcombine.high %v10598_v58, %v10601_v23  ;;  %v5154_v60 = vcombine.high %v5088_v19, %v5104_v49  ;;  %v5070_v14 = vcombine.high %v10648_v56, %v10657_v48  ;;  %v2904_v49 = vld [vmem:[%s13452_s3 + $0x118] sm:$0xff]  ;;  %v13717_v48 = vld [vmem:[#allocation31_spill] sm:$0xff] }
 0x3b4   :  { %v1579_v31 = vpop.permute.xlu0 %1578  ;;  %v1712_v4 = vsel %vm1650_vm2, %v13711_v47, %v1385_v36  ;;  %v10704_v0 = vrot.slane %v5593_v27, %v10490_v53  ;;  %v5185_v10 = vcombine.low %v5120_v35, %v5136_v11  ;;  %v5186_v45 = vcombine.high %v5120_v35, %v5136_v11  ;;  %v13719_v27 = vld [vmem:[#allocation33_spill] sm:$0xff] }
 0x3b5   :  { %v1776_v39 = vsel %vm1715_vm3, %v1711_v51, %v1579_v31  ;;  %v5161_v13 = vrot.slane %v5153_v55, %v10490_v53  ;;  %v10719_v36 = vrot.slane %v5154_v60, %v10490_v53  ;;  %v5018_v31 = vcombine.high %v10616_v61, %v10619_v1  ;;  %v13718_v1 = vld [vmem:[#allocation36_spill] sm:$0xff]  ;;  %v13723_v60 = vld [vmem:[#allocation10_spill] sm:$0xff] }
 0x3b6   :  { %8152 = vmatprep.mubr.msk.f32.mxu0 %vm1796_vm4, %v1776_v39  ;;  %6077 = vrot.lane.b32.xlu0 %v5069_v21, %s8523_s23  ;;  %v5613_v12 = vcombine.low %v10688_v59, %v10704_v0  ;;  %v5193_v15 = vrot.slane %v5185_v10, %v10490_v53  ;;  %v10722_v3 = vrot.slane %v5186_v45, %v10490_v53  ;;  %v2903_v39 = vld [vmem:[%s13452_s3 + $0x110] sm:$0xff]  ;;  %v2906_v10 = vld [vmem:[%s13452_s3 + $0x128] sm:$0xff] }
 0x3b7   :  { %v10696_v38 = vpop.f32.mrb[34].mxu1  ;;  %v1581_v7 = vpop.permute.xlu1 %1580  ;;  %6063 = vrot.lane.b32.xlu1 %v5204_v18, %s8518_s11  ;;  %v5050_v18 = vcombine.high %v10624_v6, %v10627_v8  ;;  %v5618_v61 = vcombine.high %v13717_v48, %v9799_v20  ;;  %v5634_v6 = vcombine.high %v13719_v27, %v13718_v1  ;;  %v13720_v8 = vld [vmem:[#allocation38_spill] sm:$0xff]  ;;  %v13724_v45 = vld [vmem:[#allocation8_spill] sm:$0xff] }
 0x3b8   :  { %13712 = vst [vmem:[#allocation47_spill] sm:$0xff] %v10696_v38  ;;  %v1777_v33 = vsel %vm1715_vm3, %v1712_v4, %v1581_v7  ;;  %v1387_v46 = vpop.permute.xlu0 %1386  ;;  %v3135_v63 = vpop.f32.mrb[35].mxu1  ;;  %v5205_v51 = vcombine.low %v5161_v13, %v5193_v15  ;;  %v5206_v42 = vcombine.high %v5161_v13, %v5193_v15  ;;  %v5207_v56 = vcombine.low %v10719_v36, %v10722_v3  ;;  %v10755_v20 = vld [vmem:[#allocation3 + $0x18] sm:$0xff]  ;;  %v2907_v27 = vld [vmem:[%s13452_s3 + $0x130] sm:$0xff] }
 0x3b9   :  { %8153 = vmatmul.mubr.msk.f32.gmra.mrb[60].mxu0 %vm1796_vm4, %v1777_v33  ;;  %v1713_v58 = vsel %vm1650_vm2, %v13714_v54, %v1387_v46  ;;  %v5650_v35 = vcombine.high %v13720_v8, %v13702_v30  ;;  %v5032_v4 = vrot.slane %v5018_v31, %v10490_v53  ;;  %v5064_v7 = vrot.slane %v5050_v18, %v10490_v53  ;;  %v13729_v31 = vld [vmem:[#allocation46_spill] sm:$0xff] }
 0x3ba   :  { %6081 = vrot.lane.b32.xlu0 %v5613_v12, %s8523_s23  ;;  %v10758_v55 = vrot.slane %v5618_v61, %v10460_v22  ;;  %v10761_v30 = vrot.slane %v5634_v6, %v10460_v22  ;;  %v5666_v46 = vcombine.high %v13708_v52, %v13707_v2  ;;  %v8402_v63 = vpack.c.bf16 %v2904_v49, %v2903_v39  ;;  %v13722_v2 = vld [vmem:[#allocation7_spill] sm:$0xff]  ;;  %v13730_v39 = vld [vmem:[#allocation62_spill] sm:$0xff] }
 0x3bb   :  { %v10711_v50 = vpop.f32.mrb[36].mxu1  ;;  %v1389_v29 = vpop.permute.xlu1 %1388  ;;  %6067 = vrot.lane.b32.xlu1 %v5748_v40, %s8518_s11  ;;  %v10764_v33 = vrot.slane %v5650_v35, %v10460_v22  ;;  %v2905_v40 = vld [vmem:[%s13452_s3 + $0x120] sm:$0xff]  ;;  %v5071_v13 = vcombine.low %v5032_v4, %v5064_v7  ;;  %v5225_v54 = vcombine.low %v13724_v45, %v13723_v60  ;;  %v2908_v6 = vld [vmem:[%s13452_s3 + $0x138] sm:$0xff] }
 0x3bc   :  { %13713 = vst [vmem:[#allocation76_spill] sm:$0xff] %v10711_v50  ;;  %v1583_v23 = vpop.permute.xlu0 %1582  ;;  %v3140_v16 = vpop.f32.mrb[37].mxu1  ;;  %v1714_v62 = vsel %vm1650_vm2, %v13715_v5, %v1389_v29  ;;  %v10776_v12 = vrot.slane %v5666_v46, %v10460_v22  ;;  %v5697_v15 = vcombine.low %v10758_v55, %v10761_v30  ;;  %v13721_v29 = vld [vmem:[#allocation9_spill] sm:$0xff]  ;;  %v13728_v5 = vld [vmem:[#allocation12_spill] sm:$0xff]  ;;  %v10792_v49 = vld [vmem:[#allocation3 + $0x20] sm:$0xff]  ;;  %v8406_v48 = vpack.c.bf16 %v2906_v10, %v2905_v40 }
 0x3bd   :  { %v1778_v9 = vsel %vm1715_vm3, %v1713_v58, %v1583_v23  ;;  %v5209_v52 = vcombine.low %v13722_v2, %v13721_v29  ;;  %v5072_v23 = vcombine.high %v5032_v4, %v5064_v7  ;;  %v13725_v16 = vld [vmem:[#allocation13_spill] sm:$0xff]  ;;  %v13731_v1 = vld [vmem:[#allocation54_spill] sm:$0xff]  ;;  %v10812_v35 = vrot.slane %v5225_v54, %v10460_v22 }
 0x3be   :  { %8155 = vmatprep.mubr.msk.f32.mxu0 %vm1796_vm4, %v1778_v9  ;;  %6095 = vrot.lane.b32.xlu0 %v5206_v42, %s8524_s28  ;;  %v13727_v9 = vld [vmem:[#allocation14_spill] sm:$0xff]  ;;  %v10795_v61 = vrot.slane %v5697_v15, %v10490_v53  ;;  %v5614_v40 = vcombine.high %v10688_v59, %v10704_v0  ;;  %v10830_v15 = vld [vmem:[#allocation3 + $0x28] sm:$0xff]  ;;  %v5594_v0 = vcombine.high %v10660_v57, %v10681_v37 }
 0x3bf   :  { %v10733_v21 = vpop.f32.mrb[38].mxu1  ;;  %v1585_v19 = vpop.permute.xlu1 %1584  ;;  %6079 = vrot.lane.b32.xlu1 %v5205_v51, %s8523_s23  ;;  %v13726_v51 = vld [vmem:[#allocation11_spill] sm:$0xff]  ;;  %v10809_v8 = vrot.slane %v5209_v52, %v10460_v22  ;;  %v8410_v52 = vpack.c.bf16 %v2908_v6, %v2907_v27  ;;  %v10866_v27 = vld [vmem:[#allocation3 + $0x30] sm:$0xff]  ;;  %v5698_v24 = vcombine.high %v10758_v55, %v10761_v30 }
 0x3c0   :  { %13716 = vst [vmem:[#allocation49_spill] sm:$0xff] %v10733_v21  ;;  %v1779_v11 = vsel %vm1715_vm3, %v1714_v62, %v1585_v19  ;;  %v3145_v47 = vpop.f32.mrb[39].mxu1  ;;  %v5241_v42 = vcombine.low %v13726_v51, %v13725_v16  ;;  %v5257_v62 = vcombine.low %v13728_v5, %v13727_v9  ;;  %v2909_v6 = vld [vmem:[%s13452_s3 + $0x140] sm:$0xff] }
 0x3c1   :  { %8156 = vmatmul.mubr.msk.f32.gmra.mrb[62].mxu0 %vm1796_vm4, %v1779_v11  ;;  %v5273_v10 = vcombine.low %v10809_v8, %v10812_v35 }
 0x3c2   :  { %2981 = vmatprep.mubr.f32.mxu0 %v10755_v20  ;;  %6111 = vrot.lane.b32.xlu0 %v5207_v56, %s8519_s1  ;;  %v10818_v4 = vrot.slane %v5241_v42, %v10460_v22  ;;  %v10821_v7 = vrot.slane %v5257_v62, %v10460_v22  ;;  %v13733_v42 = vld [vmem:[#allocation15_spill] sm:$0xff] }
 0x3c3   :  { %6093 = vrot.lane.b32.xlu1 %v5070_v14, %s8524_s28  ;;  %v5729_v14 = vcombine.low %v10764_v33, %v10776_v12  ;;  %v10840_v59 = vrot.slane %v5273_v10, %v10490_v53 }
 0x3c4   :  { %v8124_v58 = vpop.f32.mrb[40].mxu0 }
 0x3c5   :  { %v2261_v18 = vadd.f32 %v13729_v31, %v8124_v58  ;;  %v2255_v19 = vpop.f32.mrb[41].mxu0  ;;  %2982 = vmatmul.mubr.f32.vlgmr.msra.gmra.mrb[64].mxu0 %v13730_v39  ;;  %v10815_v47 = vrot.slane %v5729_v14, %v10490_v53  ;;  %v5562_v58 = vcombine.high %v10651_v34, %v10654_v43  ;;  %v13734_v34 = vld [vmem:[#allocation18_spill] sm:$0xff]  ;;  %v13735_v43 = vld [vmem:[#allocation16_spill] sm:$0xff]  ;;  %v13737_v14 = vld [vmem:[#allocation19_spill] sm:$0xff] }
 0x3c6   :  { %v2256_v56 = vadd.f32 %v13729_v31, %v2255_v19  ;;  %8401 = vmatpush3.bf16.msra.mxu0 %v13731_v1  ;;  %2986 = vmatprep.mubr.f32.mxu0 %v10792_v49  ;;  %v5208_v31 = vcombine.high %v10719_v36, %v10722_v3  ;;  %v5361_v19 = vcombine.low %v13735_v43, %v13734_v34  ;;  %v13738_v36 = vld [vmem:[#allocation22_spill] sm:$0xff]  ;;  %v13739_v3 = vld [vmem:[#allocation20_spill] sm:$0xff] }
 0x3c7   :  { %v2415_v11 = vmax.f32 %v2261_v18, 0.0  ;;  %8403 = vmatprep.subr.bf16.mxu0 %v8402_v63  ;;  %6109 = vrot.lane.b32.xlu1 %v5071_v13, %s8519_s1  ;;  %v5749_v54 = vcombine.low %v10795_v61, %v10815_v47  ;;  %v5305_v13 = vcombine.low %v10818_v4, %v10821_v7  ;;  %v10858_v57 = vrot.slane %v5562_v58, %v10490_v53 }
 0x3c8   :  { %v2414_v46 = vmax.f32 %v2256_v56, 0.0  ;;  %6125 = vrot.lane.b32.xlu0 %v5072_v23, %s8525_s14  ;;  %v13732_v23 = vld [vmem:[#allocation17_spill] sm:$0xff]  ;;  %v5393_v1 = vcombine.low %v13739_v3, %v13738_v36  ;;  %v10880_v10 = vrot.slane %v5361_v19, %v10460_v22 }
 0x3c9   :  { %2557 = vst [vmem:[#allocation3 + $0x231] sm:$0xff] %v2415_v11  ;;  %2987 = vmatmul.mubr.f32.gmra.mrb[66].mxu0 %v13730_v39  ;;  %v5345_v62 = vcombine.low %v13733_v42, %v13732_v23  ;;  %v10849_v18 = vrot.slane %v5305_v13, %v10490_v53  ;;  %v2910_v11 = vld [vmem:[%s13452_s3 + $0x148] sm:$0xff] }
 0x3ca   :  { %2556 = vst [vmem:[#allocation3 + $0x229] sm:$0xff] %v2414_v46  ;;  %2991 = vmatprep.mubr.f32.mxu0 %v10830_v15  ;;  %8405 = vmatpush3.bf16.msra.mxu0 %v8402_v63  ;;  %v13736_v63 = vld [vmem:[#allocation21_spill] sm:$0xff]  ;;  %v8414_v19 = vpack.c.bf16 %v2910_v11, %v2909_v6 }
 0x3cb   :  { %8407 = vmatprep.subr.bf16.mxu0 %v8406_v48  ;;  %v5377_v56 = vcombine.low %v13737_v14, %v13736_v63  ;;  %6097 = vrot.lane.b32.xlu1 %v5614_v40, %s8524_s28  ;;  %v10861_v37 = vrot.slane %v5345_v62, %v10460_v22  ;;  %v5337_v46 = vcombine.low %v10840_v59, %v10849_v18  ;;  %v10893_v62 = vld [vmem:[#allocation3 + $0x38] sm:$0xff] }
 0x3cc   :  { %6083 = vrot.lane.b32.xlu0 %v5749_v54, %s8523_s23  ;;  %v10877_v40 = vrot.slane %v5594_v0, %v10490_v53  ;;  %v10887_v54 = vrot.slane %v5393_v1, %v10460_v22  ;;  %13741 = vst [vmem:[#allocation31_spill] sm:$0xff] %v10893_v62  ;;  %v2911_v1 = vld [vmem:[%s13452_s3 + $0x150] sm:$0xff]  ;;  %v2912_v6 = vld [vmem:[%s13452_s3 + $0x158] sm:$0xff]  ;;  %v5338_v30 = vcombine.high %v10840_v59, %v10849_v18  ;;  %v13749_v18 = vld [vmem:[#allocation27_spill] sm:$0xff] }
 0x3cd   :  { %2992 = vmatmul.mubr.f32.gmra.mrb[68].mxu0 %v13730_v39  ;;  %v10883_v39 = vrot.slane %v5377_v56, %v10460_v22  ;;  %v5409_v58 = vcombine.low %v10861_v37, %v10880_v10  ;;  %v13748_v59 = vld [vmem:[#allocation29_spill] sm:$0xff] }
 0x3ce   :  { %2996 = vmatprep.mubr.f32.mxu0 %v10866_v27  ;;  %8409 = vmatpush3.bf16.msra.mxu0 %v8406_v48 }
 0x3cf   :  { %v10889_v13 = vpop.f32.mrb[40].mxu1  ;;  %8411 = vmatprep.subr.bf16.mxu0 %v8410_v52  ;;  %6127 = vrot.lane.b32.xlu1 %v5208_v31, %s8525_s14  ;;  %v5441_v48 = vcombine.low %v10883_v39, %v10887_v54  ;;  %v5615_v31 = vcombine.low %v10858_v57, %v10877_v40  ;;  %v10911_v11 = vrot.slane %v5409_v58, %v10490_v53 }
 0x3d0   :  { %13740 = vst [vmem:[#allocation51_spill] sm:$0xff] %v10889_v13  ;;  %v3150_v0 = vpop.f32.mrb[41].mxu1  ;;  %6141 = vrot.lane.b32.xlu0 %v5337_v46, %s8526_s20  ;;  %v8418_v58 = vpack.c.bf16 %v2912_v6, %v2911_v1  ;;  %v13745_v1 = vld [vmem:[#allocation23_spill] sm:$0xff] }
 0x3d1   :  { %2997 = vmatmul.mubr.f32.gmra.mrb[70].mxu0 %v10755_v20  ;;  %v10900_v56 = vld [vmem:[#allocation3 + $0x228] sm:$0xff]  ;;  %v5750_v20 = vcombine.high %v10795_v61, %v10815_v47  ;;  %v10918_v46 = vrot.slane %v5441_v48, %v10490_v53  ;;  %v10923_v28 = vld [vmem:[#allocation3 + $0x230] sm:$0xff]  ;;  %v5730_v61 = vcombine.high %v10764_v33, %v10776_v12  ;;  %v10931_v47 = vld [vmem:[#allocation3 + $0x40] sm:$0xff]  ;;  %v10947_v33 = vrot.slane %v5698_v24, %v10490_v53 }
 0x3d2   :  { %3001 = vmatprep.mubr.f32.mxu0 %v10893_v62  ;;  %3281 = vmatprep.mubr.f32.mxu1 %v10900_v56  ;;  %v13744_v48 = vld [vmem:[#allocation25_spill] sm:$0xff]  ;;  %v5785_v24 = vcombine.low %v13749_v18, %v13748_v59 }
 0x3d3   :  { %v10920_v0 = vpop.f32.mrb[42].mxu1  ;;  %3282 = vmatmul.mubr.f32.gmra.mrb[94].mxu1 %v10552_v25  ;;  %8413 = vmatpush3.bf16.msra.mxu0 %v8410_v52  ;;  %v2913_v25 = vld [vmem:[%s13452_s3 + $0x160] sm:$0xff]  ;;  %v5473_v55 = vcombine.low %v10911_v11, %v10918_v46  ;;  %v10950_v12 = vrot.slane %v5730_v61, %v10490_v53  ;;  %v10955_v52 = vld [vmem:[#allocation3 + $0x238] sm:$0xff]  ;;  %v5753_v6 = vcombine.low %v13745_v1, %v13744_v48 }
 0x3d4   :  { %13742 = vst [vmem:[#allocation36_spill] sm:$0xff] %v10920_v0  ;;  %v3155_v41 = vpop.f32.mrb[43].mxu1  ;;  %3286 = vmatprep.mubr.f32.mxu1 %v10923_v28  ;;  %8415 = vmatprep.subr.bf16.mxu0 %v8414_v19  ;;  %v10969_v0 = vld [vmem:[#allocation3 + $0x48] sm:$0xff] }
 0x3d5   :  { %3002 = vmatmul.mubr.f32.gmra.mrb[72].mxu0 %v10792_v49  ;;  %v2914_v41 = vld [vmem:[%s13452_s3 + $0x168] sm:$0xff]  ;;  %6113 = vrot.lane.b32.xlu1 %v5615_v31, %s8519_s1  ;;  %v13746_v31 = vld [vmem:[#allocation26_spill] sm:$0xff] }
 0x3d6   :  { %3006 = vmatprep.mubr.f32.mxu0 %v10931_v47  ;;  %6099 = vrot.lane.b32.xlu0 %v5750_v20, %s8524_s28  ;;  %v13747_v20 = vld [vmem:[#allocation24_spill] sm:$0xff]  ;;  %v8422_v61 = vpack.c.bf16 %v2914_v41, %v2913_v25 }
 0x3d7   :  { %v10952_v49 = vpop.f32.mrb[44].mxu1  ;;  %3287 = vmatmul.mubr.f32.gmra.mrb[96].mxu1 %v10564_v26  ;;  %8417 = vmatpush3.bf16.msra.mxu0 %v8414_v19  ;;  %v5769_v44 = vcombine.low %v13747_v20, %v13746_v31  ;;  %v5274_v26 = vcombine.high %v10809_v8, %v10812_v35  ;;  %v5306_v19 = vcombine.high %v10818_v4, %v10821_v7 }
 0x3d8   :  { %13743 = vst [vmem:[#allocation33_spill] sm:$0xff] %v10952_v49  ;;  %v3160_v17 = vpop.f32.mrb[45].mxu1  ;;  %3291 = vmatprep.mubr.f32.mxu1 %v10955_v52  ;;  %8419 = vmatprep.subr.bf16.mxu0 %v8418_v58  ;;  %v2915_v49 = vld [vmem:[%s13452_s3 + $0x170] sm:$0xff]  ;;  %v5616_v8 = vcombine.high %v10858_v57, %v10877_v40  ;;  %v10981_v35 = vrot.slane %v5753_v6, %v10460_v22  ;;  %v13750_v57 = vld [vmem:[#allocation30_spill] sm:$0xff] }
 0x3d9   :  { %3007 = vmatmul.mubr.f32.gmra.mrb[74].mxu0 %v10830_v15  ;;  %v2916_v17 = vld [vmem:[%s13452_s3 + $0x178] sm:$0xff]  ;;  %6143 = vrot.lane.b32.xlu1 %v5473_v55, %s8526_s20  ;;  %v10984_v4 = vrot.slane %v5769_v44, %v10460_v22  ;;  %v5751_v7 = vcombine.low %v10947_v33, %v10950_v12  ;;  %v10991_v15 = vrot.slane %v5274_v26, %v10490_v53  ;;  %v13751_v40 = vld [vmem:[#allocation28_spill] sm:$0xff] }
 0x3da   :  { %3011 = vmatprep.mubr.f32.mxu0 %v10969_v0  ;;  %6157 = vrot.lane.b32.xlu0 %v5338_v30, %s8527_s12  ;;  %v10994_v25 = vrot.slane %v5306_v19, %v10490_v53  ;;  %v10998_v44 = vrot.slane %v5785_v24, %v10460_v22  ;;  %v5801_v41 = vcombine.low %v13751_v40, %v13750_v57  ;;  %v11013_v19 = vld [vmem:[#allocation3 + $0x50] sm:$0xff] }
 0x3db   :  { %3292 = vmatmul.mubr.f32.gmra.mrb[98].mxu1 %v10578_v32  ;;  %8421 = vmatpush3.bf16.msra.mxu0 %v8418_v58  ;;  %v5817_v55 = vcombine.low %v10981_v35, %v10984_v4  ;;  %v8426_v6 = vpack.c.bf16 %v2916_v17, %v2915_v49  ;;  %v5474_v26 = vcombine.high %v10911_v11, %v10918_v46  ;;  %v11009_v32 = vld [vmem:[%s13451_s2] ss:$0 sm:$0xff]  ;;  %s8528_s2 = smov 80  }
 0x3dc   :  { %v8127_v30 = vpop.f32.mrb[42].mxu0  ;;  %8423 = vmatprep.subr.bf16.mxu0 %v8422_v61  ;;  %v5339_v49 = vcombine.low %v10991_v15, %v10994_v25  ;;  %v11019_v17 = vrot.slane %v5801_v41, %v10460_v22  ;;  %v5410_v46 = vcombine.high %v10861_v37, %v10880_v10  ;;  %v11042_v10 = vld [vmem:[#allocation3 + $0x58] sm:$0xff] }
 0x3dd   :  { %v2271_v58 = vadd.f32 %v11009_v32, %v8127_v30  ;;  %v2265_v24 = vpop.f32.mrb[43].mxu0  ;;  %3012 = vmatmul.mubr.f32.gmra.mrb[76].mxu0 %v10866_v27  ;;  %6129 = vrot.lane.b32.xlu1 %v5616_v8, %s8525_s14  ;;  %v5442_v30 = vcombine.high %v10883_v39, %v10887_v54  ;;  %v11031_v13 = vrot.slane %v5817_v55, %v10490_v53  ;;  %v13753_v54 = vld [vmem:[#allocation35_spill] sm:$0xff]  ;;  %v13755_v55 = vld [vmem:[#allocation37_spill] sm:$0xff] }
 0x3de   :  { %v2266_v11 = vadd.f32 %v11009_v32, %v2265_v24  ;;  %3016 = vmatprep.mubr.f32.mxu0 %v11013_v19  ;;  %6115 = vrot.lane.b32.xlu0 %v5751_v7, %s8519_s1  ;;  %v5849_v41 = vcombine.low %v10998_v44, %v11019_v17  ;;  %v11036_v7 = vrot.slane %v5410_v46, %v10490_v53  ;;  %v13757_v46 = vld [vmem:[#allocation43_spill] sm:$0xff] }
 0x3df   :  { %v2417_v21 = vmax.f32 %v2271_v58, 0.0  ;;  %v11028_v8 = vpop.f32.mrb[46].mxu1  ;;  %8425 = vmatpush3.bf16.msra.mxu0 %v8422_v61  ;;  %v11039_v37 = vrot.slane %v5442_v30, %v10490_v53  ;;  %v13754_v61 = vld [vmem:[#allocation32_spill] sm:$0xff]  ;;  %v13756_v58 = vld [vmem:[#allocation34_spill] sm:$0xff] }
 0x3e0   :  { %13752 = vst [vmem:[#allocation38_spill] sm:$0xff] %v11028_v8  ;;  %v2416_v24 = vmax.f32 %v2266_v11, 0.0  ;;  %v3165_v38 = vpop.f32.mrb[47].mxu1  ;;  %8427 = vmatprep.subr.bf16.mxu0 %v8426_v6  ;;  %v11046_v39 = vrot.slane %v5849_v41, %v10490_v53  ;;  %v5905_v11 = vcombine.low %v13756_v58, %v13755_v55  ;;  %v13759_v41 = vld [vmem:[#allocation45_spill] sm:$0xff] }
 0x3e1   :  { %2559 = vst [vmem:[#allocation3 + $0x249] sm:$0xff] %v2417_v21  ;;  %3017 = vmatmul.mubr.f32.gmra.mrb[78].mxu0 %v10893_v62  ;;  %6159 = vrot.lane.b32.xlu1 %v5474_v26, %s8527_s12  ;;  %v5889_v38 = vcombine.low %v13754_v61, %v13753_v54  ;;  %v5752_v21 = vcombine.high %v10947_v33, %v10950_v12  ;;  %v13758_v26 = vld [vmem:[#allocation39_spill] sm:$0xff]  ;;  %v13760_v8 = vld [vmem:[#allocation41_spill] sm:$0xff] }
 0x3e2   :  { %2558 = vst [vmem:[#allocation3 + $0x241] sm:$0xff] %v2416_v24  ;;  %3021 = vmatprep.mubr.f32.mxu0 %v11042_v10  ;;  %6173 = vrot.lane.b32.xlu0 %v5339_v49, %s8528_s2  ;;  %v5921_v30 = vcombine.low %v13758_v26, %v13757_v46  ;;  %v5937_v50 = vcombine.low %v13760_v8, %v13759_v41 }
 0x3e3   :  { %v11060_v62 = vpop.f32.mrb[48].mxu1  ;;  %8429 = vmatpush3.bf16.msra.mxu0 %v8426_v6  ;;  %v5881_v24 = vcombine.low %v11031_v13, %v11046_v39  ;;  %v11065_v58 = vrot.slane %v5889_v38, %v10460_v22  ;;  %v11068_v49 = vrot.slane %v5905_v11, %v10460_v22  ;;  %v5475_v33 = vcombine.low %v11036_v7, %v11039_v37  ;;  %v11081_v38 = vld [vmem:[#allocation3 + $0x60] sm:$0xff] }
 0x3e4   :  { %v3170_v55 = vpop.f32.mrb[49].mxu1  ;;  %v11073_v12 = vrot.slane %v5921_v30, %v10460_v22  ;;  %v11076_v8 = vrot.slane %v5937_v50, %v10460_v22  ;;  %v5210_v6 = vcombine.high %v13722_v2, %v13721_v29  ;;  %v5226_v11 = vcombine.high %v13724_v45, %v13723_v60 }
 0x3e5   :  { %3022 = vmatmul.mubr.f32.gmra.mrb[80].mxu0 %v10931_v47  ;;  %6145 = vrot.lane.b32.xlu1 %v5881_v24, %s8526_s20  ;;  %v5953_v55 = vcombine.low %v11065_v58, %v11068_v49  ;;  %v5242_v30 = vcombine.high %v13726_v51, %v13725_v16  ;;  %v5340_v50 = vcombine.high %v10991_v15, %v10994_v25 }
 0x3e6   :  { %3026 = vmatprep.mubr.f32.mxu0 %v11081_v38  ;;  %6131 = vrot.lane.b32.xlu0 %v5752_v21, %s8525_s14  ;;  %v5985_v29 = vcombine.low %v11073_v12, %v11076_v8  ;;  %v11097_v2 = vrot.slane %v5210_v6, %v10460_v22  ;;  %v11105_v45 = vrot.slane %v5226_v11, %v10460_v22  ;;  %v11116_v21 = vld [vmem:[#allocation3 + $0x68] sm:$0xff] }
 0x3e7   :  { %v11099_v24 = vpop.f32.mrb[50].mxu1  ;;  %v11102_v60 = vrot.slane %v5953_v55, %v10490_v53  ;;  %v11108_v16 = vrot.slane %v5242_v30, %v10460_v22  ;;  %v5258_v51 = vcombine.high %v13728_v5, %v13727_v9  ;;  %v5882_v55 = vcombine.high %v11031_v13, %v11046_v39 }
 0x3e8   :  { %v3175_v15 = vpop.f32.mrb[51].mxu1  ;;  %v11113_v25 = vrot.slane %v5985_v29, %v10490_v53  ;;  %v5289_v9 = vcombine.low %v11097_v2, %v11105_v45  ;;  %v5476_v30 = vcombine.high %v11036_v7, %v11039_v37  ;;  %v5378_v37 = vcombine.high %v13737_v14, %v13736_v63 }
 0x3e9   :  { %3027 = vmatmul.mubr.f32.gmra.mrb[82].mxu0 %v10969_v0  ;;  %v11118_v6 = vld [vmem:[#allocation3 + $0x240] sm:$0xff]  ;;  %6175 = vrot.lane.b32.xlu1 %v5475_v33, %s8528_s2  ;;  %v11124_v11 = vrot.slane %v5258_v51, %v10460_v22  ;;  %v5818_v33 = vcombine.high %v10981_v35, %v10984_v4  ;;  %v11137_v13 = vld [vmem:[#allocation3 + $0x248] sm:$0xff]  ;;  %v5850_v51 = vcombine.high %v10998_v44, %v11019_v17  ;;  %v11159_v44 = vld [vmem:[#allocation3 + $0x70] sm:$0xff] }
 0x3ea   :  { %3031 = vmatprep.mubr.f32.mxu0 %v11116_v21  ;;  %3296 = vmatprep.mubr.f32.mxu1 %v11118_v6  ;;  %v6017_v5 = vcombine.low %v11102_v60, %v11113_v25  ;;  %v11141_v39 = vrot.slane %v5289_v9, %v10490_v53  ;;  %v5362_v4 = vcombine.high %v13735_v43, %v13734_v34 }
 0x3eb   :  { %3297 = vmatmul.mubr.f32.gmra.mrb[100].mxu1 %v10900_v56  ;;  %6189 = vrot.lane.b32.xlu0 %v5340_v50, %s8529_s15  ;;  %v5321_v29 = vcombine.low %v11108_v16, %v11124_v11  ;;  %v11149_v35 = vrot.slane %v5818_v33, %v10490_v53  ;;  %v5346_v56 = vcombine.high %v13733_v42, %v13732_v23 }
 0x3ec   :  { %v8130_v7 = vpop.f32.mrb[44].mxu0  ;;  %3301 = vmatprep.mubr.f32.mxu1 %v11137_v13  ;;  %v11166_v23 = vrot.slane %v5850_v51, %v10490_v53  ;;  %v11174_v43 = vrot.slane %v5362_v4, %v10460_v22  ;;  %v11185_v33 = vrot.slane %v5378_v37, %v10460_v22 }
 0x3ed   :  { %v2281_v50 = vadd.f32 %v11009_v32, %v8130_v7  ;;  %v2275_v15 = vpop.f32.mrb[45].mxu0  ;;  %3032 = vmatmul.mubr.f32.gmra.mrb[84].mxu0 %v11013_v19  ;;  %6161 = vrot.lane.b32.xlu1 %v5882_v55, %s8527_s12  ;;  %v11163_v17 = vrot.slane %v5321_v29, %v10490_v53  ;;  %v11171_v34 = vrot.slane %v5346_v56, %v10460_v22  ;;  %v11179_v55 = vld [vmem:[#allocation3 + $0x250] sm:$0xff] }
 0x3ee   :  { %v2276_v42 = vadd.f32 %v11009_v32, %v2275_v15  ;;  %3036 = vmatprep.mubr.f32.mxu0 %v11159_v44  ;;  %v5394_v29 = vcombine.high %v13739_v3, %v13738_v36  ;;  %v5883_v56 = vcombine.low %v11149_v35, %v11166_v23  ;;  %v6018_v3 = vcombine.high %v11102_v60, %v11113_v25 }
 0x3ef   :  { %v2419_v63 = vmax.f32 %v2281_v50, 0.0  ;;  %v11176_v14 = vpop.f32.mrb[52].mxu1  ;;  %3302 = vmatmul.mubr.f32.gmra.mrb[102].mxu1 %v10923_v28  ;;  %6147 = vrot.lane.b32.xlu0 %v6017_v5, %s8526_s20  ;;  %v5341_v9 = vcombine.low %v11141_v39, %v11163_v17  ;;  %v5425_v28 = vcombine.low %v11171_v34, %v11174_v43  ;;  %v11193_v5 = vld [vmem:[#allocation3 + $0x78] sm:$0xff]  ;;  %v5954_v15 = vcombine.high %v11065_v58, %v11068_v49 }
 0x3f0   :  { %v2418_v51 = vmax.f32 %v2276_v42, 0.0  ;;  %v3180_v7 = vpop.f32.mrb[53].mxu1  ;;  %3306 = vmatprep.mubr.f32.mxu1 %v11179_v55  ;;  %v11199_v4 = vrot.slane %v5394_v29, %v10460_v22  ;;  %v5986_v42 = vcombine.high %v11073_v12, %v11076_v8  ;;  %v5342_v60 = vcombine.high %v11141_v39, %v11163_v17 }
 0x3f1   :  { %2561 = vst [vmem:[#allocation3 + $0x261] sm:$0xff] %v2419_v63  ;;  %3037 = vmatmul.mubr.f32.gmra.mrb[86].mxu0 %v11042_v10  ;;  %6191 = vrot.lane.b32.xlu1 %v5476_v30, %s8529_s15  ;;  %v11209_v30 = vrot.slane %v5425_v28, %v10490_v53  ;;  %v11224_v25 = vrot.slane %v5954_v15, %v10490_v53 }
 0x3f2   :  { %2560 = vst [vmem:[#allocation3 + $0x259] sm:$0xff] %v2418_v51  ;;  %3041 = vmatprep.mubr.f32.mxu0 %v11193_v5  ;;  %v5457_v37 = vcombine.low %v11185_v33, %v11199_v4  ;;  %v11227_v63 = vrot.slane %v5986_v42, %v10490_v53  ;;  %v5754_v8 = vcombine.high %v13745_v1, %v13744_v48 }
 0x3f3   :  { %v11202_v36 = vpop.f32.mrb[54].mxu1  ;;  %3307 = vmatmul.mubr.f32.gmra.mrb[104].mxu1 %v10955_v52  ;;  %6205 = vrot.lane.b32.xlu0 %v5341_v9, %s8530_s0  ;;  %13761 = vst [vmem:[#allocation9_spill] sm:$0xff] %v11224_v25  ;;  %v5786_v12 = vcombine.high %v13749_v18, %v13748_v59  ;;  %v5802_v39 = vcombine.high %v13751_v40, %v13750_v57 }
 0x3f4   :  { %v3185_v50 = vpop.f32.mrb[55].mxu1  ;;  %v5465_v52 = vrot.slane %v5457_v37, %v10490_v53  ;;  %13762 = vst [vmem:[#allocation7_spill] sm:$0xff] %v11227_v63  ;;  %v5884_v9 = vcombine.high %v11149_v35, %v11166_v23  ;;  %v5290_v48 = vcombine.high %v11097_v2, %v11105_v45  ;;  %v5322_v1 = vcombine.high %v11108_v16, %v11124_v11 }
 0x3f5   :  { %3042 = vmatmul.mubr.f32.gmra.mrb[88].mxu0 %v11081_v38  ;;  %6177 = vrot.lane.b32.xlu1 %v5883_v56, %s8528_s2  ;;  %v11248_v29 = vrot.slane %v5754_v8, %v10460_v22  ;;  %v11256_v18 = vrot.slane %v5786_v12, %v10460_v22  ;;  %v11259_v57 = vrot.slane %v5802_v39, %v10460_v22  ;;  %v2784_v8 = vld [vmem:[#allocation3 + $0x88] sm:$0xff] }
 0x3f6   :  { %8190 = vmatprep.mubr.f32.mxu0 %v10866_v27  ;;  %v5477_v49 = vcombine.low %v11209_v30, %v5465_v52  ;;  %v5770_v27 = vcombine.high %v13747_v20, %v13746_v31  ;;  %v13764_v31 = vld [vmem:[#allocation31_spill] sm:$0xff]  ;;  %v6019_v40 = vcombine.low %v11224_v25, %v11227_v63  ;;  %v11265_v2 = vrot.slane %v5290_v48, %v10490_v53 }
 0x3f7   :  { %v11231_v58 = vpop.f32.mrb[56].mxu1  ;;  %6163 = vrot.lane.b32.xlu0 %v6018_v3, %s8527_s12  ;;  %13763 = vst [vmem:[#allocation10_spill] sm:$0xff] %v11248_v29  ;;  %13766 = vst [vmem:[#allocation13_spill] sm:$0xff] %v11256_v18  ;;  %v11272_v16 = vrot.slane %v5322_v1, %v10490_v53  ;;  %v5478_v23 = vcombine.high %v11209_v30, %v5465_v52  ;;  %v5426_v42 = vcombine.high %v11171_v34, %v11174_v43  ;;  %v2787_v1 = vld [vmem:[#allocation3 + $0xa0] sm:$0xff] }
 0x3f8   :  { %v3190_v17 = vpop.f32.mrb[57].mxu1  ;;  %v11253_v59 = vrot.slane %v5770_v27, %v10460_v22  ;;  %13767 = vst [vmem:[#allocation11_spill] sm:$0xff] %v11259_v57  ;;  %13768 = vst [vmem:[#allocation14_spill] sm:$0xff] %v11265_v2  ;;  %v2744_v30 = vld [vmem:[#allocation3 + $0x268] sm:$0xff]  ;;  %v2785_v27 = vld [vmem:[#allocation3 + $0x90] sm:$0xff] }
 0x3f9   :  { %8191 = vmatmul.mubr.f32.vlgmr.msra.gmra.mrb[90].mxu0 %v13764_v31  ;;  %v2742_v20 = vld [vmem:[#allocation3 + $0x258] sm:$0xff]  ;;  %6207 = vrot.lane.b32.xlu1 %v5477_v49, %s8530_s0  ;;  %v11268_v45 = vld [vmem:[#allocation3 + $0x260] sm:$0xff]  ;;  %13769 = vst [vmem:[#allocation12_spill] sm:$0xff] %v11272_v16  ;;  %v11307_v52 = vrot.slane %v5426_v42, %v10490_v53  ;;  %v2788_v31 = vld [vmem:[#allocation3 + $0xa8] sm:$0xff] }
 0x3fa   :  { %13765 = vst [vmem:[#allocation8_spill] sm:$0xff] %v11253_v59  ;;  %3311 = vmatprep.mubr.f32.mxu1 %v2742_v20  ;;  %8193 = vmatprep.mubr.f32.mxu0 %v10931_v47  ;;  %v5833_v11 = vcombine.low %v11248_v29, %v11253_v59  ;;  %v5865_v47 = vcombine.low %v11256_v18, %v11259_v57  ;;  %v2801_v42 = vld [vmem:[#allocation3 + $0x110] sm:$0xff] }
 0x3fb   :  { %3312 = vmatmul.mubr.f32.gmra.mrb[106].mxu1 %v11118_v6  ;;  %6221 = vrot.lane.b32.xlu0 %v5342_v60, %s8531_s16  ;;  %13772 = vst [vmem:[#allocation54_spill] sm:$0xff] %v11307_v52 }
 0x3fc   :  { %v8133_v35 = vpop.f32.mrb[46].mxu0  ;;  %3316 = vmatprep.mubr.f32.mxu1 %v11268_v45  ;;  %v11284_v7 = vrot.slane %v5833_v11, %v10490_v53  ;;  %v11287_v28 = vrot.slane %v5865_v47, %v10490_v53  ;;  %v2791_v11 = vld [vmem:[#allocation3 + $0xc0] sm:$0xff] }
 0x3fd   :  { %v2291_v6 = vadd.f32 %v11009_v32, %v8133_v35  ;;  %v2285_v51 = vpop.f32.mrb[47].mxu0  ;;  %8194 = vmatmul.mubr.f32.gmra.mrb[92].mxu0 %v10969_v0  ;;  %6193 = vrot.lane.b32.xlu1 %v5884_v9, %s8529_s15  ;;  %v5343_v0 = vcombine.low %v11265_v2, %v11272_v16  ;;  %v2786_v9 = vld [vmem:[#allocation3 + $0x98] sm:$0xff]  ;;  %v2792_v35 = vld [vmem:[#allocation3 + $0xc8] sm:$0xff] }
 0x3fe   :  { %13770 = vst [vmem:[#allocation46_spill] sm:$0xff] %v11284_v7  ;;  %13771 = vst [vmem:[#allocation62_spill] sm:$0xff] %v11287_v28  ;;  %v2286_v56 = vadd.f32 %v11009_v32, %v2285_v51  ;;  %8196 = vmatprep.mubr.f32.mxu0 %v11013_v19  ;;  %v5458_v19 = vcombine.high %v11185_v33, %v11199_v4  ;;  %v2794_v51 = vld [vmem:[#allocation3 + $0xd8] sm:$0xff] }
 0x3ff   :  { %v2421_v3 = vmax.f32 %v2291_v6, 0.0  ;;  %v11291_v37 = vpop.f32.mrb[58].mxu1  ;;  %3317 = vmatmul.mubr.f32.gmra.mrb[108].mxu1 %v11137_v13  ;;  %6179 = vrot.lane.b32.xlu0 %v6019_v40, %s8528_s2  ;;  %v5885_v13 = vcombine.low %v11284_v7, %v11287_v28  ;;  %v2790_v40 = vld [vmem:[#allocation3 + $0xb8] sm:$0xff] }
 0x400   :  { %v2420_v50 = vmax.f32 %v2286_v56, 0.0  ;;  %v3195_v15 = vpop.f32.mrb[59].mxu1  ;;  %3321 = vmatprep.mubr.f32.mxu1 %v2744_v30  ;;  %v11310_v60 = vrot.slane %v5458_v19, %v10490_v53  ;;  %v2795_v56 = vld [vmem:[#allocation3 + $0xe0] sm:$0xff] }
 0x401   :  { %2563 = vst [vmem:[#allocation3 + $0x279] sm:$0xff] %v2421_v3  ;;  %8197 = vmatmul.mubr.f32.gmra.mrb[94].mxu0 %v11042_v10  ;;  %6223 = vrot.lane.b32.xlu1 %v5478_v23, %s8531_s16  ;;  %v2793_v23 = vld [vmem:[#allocation3 + $0xd0] sm:$0xff]  ;;  %v2796_v3 = vld [vmem:[#allocation3 + $0xe8] sm:$0xff] }
 0x402   :  { %2562 = vst [vmem:[#allocation3 + $0x271] sm:$0xff] %v2420_v50  ;;  %8199 = vmatprep.mubr.f32.mxu0 %v11081_v38  ;;  %13773 = vst [vmem:[#allocation17_spill] sm:$0xff] %v11310_v60  ;;  %v5479_v38 = vcombine.low %v11307_v52, %v11310_v60  ;;  %v2799_v50 = vld [vmem:[#allocation3 + $0x100] sm:$0xff]  ;;  %v2800_v15 = vld [vmem:[#allocation3 + $0x108] sm:$0xff] }
 0x403   :  { %v11312_v34 = vpop.f32.mrb[60].mxu1  ;;  %3322 = vmatmul.mubr.f32.gmra.mrb[110].mxu1 %v11179_v55  ;;  %6237 = vrot.lane.b32.xlu0 %v5343_v0, %s8532_s19  ;;  %v2783_v55 = vld [vmem:[#allocation3 + $0x80] sm:$0xff]  ;;  %v2798_v0 = vld [vmem:[#allocation3 + $0xf8] sm:$0xff] }
 0x404   :  { %v3200_v10 = vpop.f32.mrb[61].mxu1 }
 0x405   :  { %8200 = vmatmul.mubr.f32.gmra.mrb[96].mxu0 %v11116_v21  ;;  %6209 = vrot.lane.b32.xlu1 %v5885_v13, %s8530_s0  ;;  %v2802_v10 = vld [vmem:[#allocation3 + $0x118] sm:$0xff] }
 0x406   :  { %8202 = vmatprep.mubr.f32.mxu0 %v11159_v44 }
 0x407   :  { %v11321_v43 = vpop.f32.mrb[62].mxu1 }
 0x408   :  { %v3205_v33 = vpop.f32.mrb[63].mxu1 }
 0x409   :  { %8203 = vmatmul.mubr.f32.gmra.mrb[98].mxu0 %v11193_v5  ;;  %v2745_v4 = vld [vmem:[#allocation3 + $0x270] sm:$0xff]  ;;  %6239 = vrot.lane.b32.xlu1 %v5479_v38, %s8532_s19  ;;  %v2746_v21 = vld [vmem:[#allocation3 + $0x278] sm:$0xff]  ;;  %v2747_v5 = vld [vmem:[#allocation3 + $0x280] sm:$0xff] }
 0x40a   :  { %3326 = vmatprep.mubr.f32.mxu1 %v2745_v4  ;;  %8205 = vmatprep.mubr.f32.mxu0 %v2783_v55  ;;  %v2803_v38 = vld [vmem:[#allocation3 + $0x120] sm:$0xff]  ;;  %v2804_v55 = vld [vmem:[#allocation3 + $0x128] sm:$0xff] }
 0x40b   :  { %3327 = vmatmul.mubr.f32.gmra.mrb[112].mxu1 %v2742_v20  ;;  %v2789_v20 = vld [vmem:[#allocation3 + $0xb0] sm:$0xff] }
 0x40c   :  { %3331 = vmatprep.mubr.f32.mxu1 %v2746_v21 }
 0x40d   :  { %v8136_v49 = vpop.f32.mrb[48].mxu0  ;;  %8206 = vmatmul.mubr.f32.gmra.mrb[100].mxu0 %v2784_v8 }
 0x40e   :  { %v2301_v44 = vadd.f32 %v11009_v32, %v8136_v49  ;;  %v2295_v12 = vpop.f32.mrb[49].mxu0  ;;  %8208 = vmatprep.mubr.f32.mxu0 %v2785_v27  ;;  %v2806_v27 = vld [vmem:[#allocation3 + $0x138] sm:$0xff] }
 0x40f   :  { %v2296_v39 = vadd.f32 %v11009_v32, %v2295_v12  ;;  %3332 = vmatmul.mubr.f32.gmra.mrb[114].mxu1 %v11268_v45 }
 0x410   :  { %v2423_v17 = vmax.f32 %v2301_v44, 0.0  ;;  %3336 = vmatprep.mubr.f32.mxu1 %v2747_v5  ;;  %v2807_v44 = vld [vmem:[#allocation3 + $0x140] sm:$0xff] }
 0x411   :  { %v2422_v48 = vmax.f32 %v2296_v39, 0.0  ;;  %8209 = vmatmul.mubr.f32.gmra.mrb[102].mxu0 %v2786_v9  ;;  %v2808_v39 = vld [vmem:[#allocation3 + $0x148] sm:$0xff]  ;;  %v2809_v9 = vld [vmem:[#allocation3 + $0x150] sm:$0xff] }
 0x412   :  { %2565 = vst [vmem:[#allocation3 + $0x291] sm:$0xff] %v2423_v17  ;;  %8211 = vmatprep.mubr.f32.mxu0 %v2787_v1 }
 0x413   :  { %2564 = vst [vmem:[#allocation3 + $0x289] sm:$0xff] %v2422_v48  ;;  %3337 = vmatmul.mubr.f32.gmra.mrb[116].mxu1 %v2744_v30  ;;  %v2797_v30 = vld [vmem:[#allocation3 + $0xf0] sm:$0xff] }
 0x415   :  { %8212 = vmatmul.mubr.f32.gmra.mrb[104].mxu0 %v2788_v31 }
 0x416   :  { %8214 = vmatprep.mubr.f32.mxu0 %v2789_v20  ;;  %v2810_v20 = vld [vmem:[#allocation3 + $0x158] sm:$0xff] }
 0x419   :  { %8215 = vmatmul.mubr.f32.gmra.mrb[106].mxu0 %v2790_v40  ;;  %v11334_v6 = vld [vmem:[#allocation3 + $0x298] sm:$0xff]  ;;  %v2811_v40 = vld [vmem:[#allocation3 + $0x160] sm:$0xff] }
 0x41a   :  { %v11328_v47 = vld [vmem:[#allocation3 + $0x288] sm:$0xff]  ;;  %8217 = vmatprep.mubr.f32.mxu0 %v2791_v11  ;;  %v11331_v45 = vld [vmem:[#allocation3 + $0x290] sm:$0xff] }
 0x41b   :  { %3341 = vmatprep.mubr.f32.mxu1 %v11328_v47  ;;  %v2812_v11 = vld [vmem:[#allocation3 + $0x168] sm:$0xff] }
 0x41c   :  { %3342 = vmatmul.mubr.f32.gmra.mrb[118].mxu1 %v2745_v4 }
 0x41d   :  { %3346 = vmatprep.mubr.f32.mxu1 %v11331_v45  ;;  %8218 = vmatmul.mubr.f32.gmra.mrb[108].mxu0 %v2792_v35  ;;  %v2813_v35 = vld [vmem:[#allocation3 + $0x170] sm:$0xff] }
 0x41e   :  { %8220 = vmatprep.mubr.f32.mxu0 %v2793_v23 }
 0x420   :  { %3347 = vmatmul.mubr.f32.gmra.mrb[120].mxu1 %v2746_v21  ;;  %v2805_v21 = vld [vmem:[#allocation3 + $0x130] sm:$0xff] }
 0x421   :  { %3351 = vmatprep.mubr.f32.mxu1 %v11334_v6  ;;  %8221 = vmatmul.mubr.f32.gmra.mrb[110].mxu0 %v2794_v51  ;;  %v2814_v51 = vld [vmem:[#allocation3 + $0x178] sm:$0xff] }
 0x422   :  { %8223 = vmatprep.mubr.f32.mxu0 %v2795_v56 }
 0x424   :  { %3352 = vmatmul.mubr.f32.gmra.mrb[122].mxu1 %v2747_v5 }
 0x425   :  { %8224 = vmatmul.mubr.f32.gmra.mrb[112].mxu0 %v2796_v3 }
 0x426   :  { %8226 = vmatprep.mubr.f32.mxu0 %v2797_v30  ;;  %v2815_v30 = vld [vmem:[#allocation3 + $0x180] sm:$0xff] }
 0x429   :  { %8227 = vmatmul.mubr.f32.gmra.mrb[114].mxu0 %v2798_v0 }
 0x42a   :  { %8229 = vmatprep.mubr.f32.mxu0 %v2799_v50 }
 0x42d   :  { %8230 = vmatmul.mubr.f32.gmra.mrb[116].mxu0 %v2800_v15  ;;  %v2816_v15 = vld [vmem:[#allocation3 + $0x188] sm:$0xff] }
 0x42e   :  { %v11337_v19 = vpop.f32.mrb[64].mxu1  ;;  %8232 = vmatprep.mubr.f32.mxu0 %v2801_v42 }
 0x42f   :  { %v3210_v13 = vpop.f32.mrb[65].mxu1 }
 0x430   :  { %v2817_v13 = vld [vmem:[#allocation3 + $0x190] sm:$0xff] }
 0x431   :  { %8233 = vmatmul.mubr.f32.gmra.mrb[118].mxu0 %v2802_v10 }
 0x432   :  { %v11339_v33 = vpop.f32.mrb[66].mxu1  ;;  %8235 = vmatprep.mubr.f32.mxu0 %v2803_v38 }
 0x433   :  { %v3215_v4 = vpop.f32.mrb[67].mxu1 }
 0x434   :  { %v11362_v4 = vld [vmem:[#allocation3] sm:$0xff] }
 0x435   :  { %8236 = vmatmul.mubr.f32.gmra.mrb[120].mxu0 %v2804_v55 }
 0x436   :  { %v11341_v8 = vpop.f32.mrb[68].mxu1  ;;  %8238 = vmatprep.mubr.f32.mxu0 %v2805_v21  ;;  %v2821_v21 = vld [vmem:[#allocation3 + $0x1e0] sm:$0xff] }
 0x437   :  { %v3220_v49 = vpop.f32.mrb[69].mxu1 }
 0x439   :  { %8239 = vmatmul.mubr.f32.gmra.mrb[122].mxu0 %v2806_v27 }
 0x43a   :  { %8241 = vmatprep.mubr.f32.mxu0 %v2807_v44 }
 0x43c   :  { %v8139_v12 = vpop.f32.mrb[50].mxu0 }
 0x43d   :  { %v2311_v5 = vadd.f32 %v11009_v32, %v8139_v12  ;;  %v2305_v17 = vpop.f32.mrb[51].mxu0  ;;  %8242 = vmatmul.mubr.f32.gmra.mrb[124].mxu0 %v2808_v39 }
 0x43e   :  { %v2306_v48 = vadd.f32 %v11009_v32, %v2305_v17  ;;  %8244 = vmatprep.mubr.f32.mxu0 %v2809_v9  ;;  %v2823_v9 = vld [vmem:[#allocation3 + $0x1f0] sm:$0xff] }
 0x43f   :  { %v2425_v1 = vmax.f32 %v2311_v5, 0.0  ;;  %v2822_v5 = vld [vmem:[#allocation3 + $0x1e8] sm:$0xff] }
 0x440   :  { %v2424_v31 = vmax.f32 %v2306_v48, 0.0 }
 0x441   :  { %2567 = vst [vmem:[#allocation3 + $0x2a9] sm:$0xff] %v2425_v1  ;;  %8245 = vmatmul.mubr.f32.gmra.mrb[126].mxu0 %v2810_v20  ;;  %v2824_v1 = vld [vmem:[#allocation3 + $0x1f8] sm:$0xff] }
 0x442   :  { %2566 = vst [vmem:[#allocation3 + $0x2a1] sm:$0xff] %v2424_v31  ;;  %8247 = vmatprep.mubr.f32.mxu0 %v2811_v40  ;;  %v2825_v31 = vld [vmem:[#allocation3 + $0x200] sm:$0xff] }
 0x445   :  { %8248 = vmatmul.mubr.f32.gmra.mrb[128].mxu0 %v2812_v11  ;;  %v2826_v11 = vld [vmem:[#allocation3 + $0x208] sm:$0xff] }
 0x446   :  { %8250 = vmatprep.mubr.f32.mxu0 %v2813_v35  ;;  %v2827_v35 = vld [vmem:[#allocation3 + $0x210] sm:$0xff] }
 0x447   :  { %v11345_v23 = vpop.f32.mrb[70].mxu1 }
 0x448   :  { %v3225_v56 = vpop.f32.mrb[71].mxu1  ;;  %v11357_v10 = vld [vmem:[#allocation3 + $0x2b0] sm:$0xff] }
 0x449   :  { %8251 = vmatmul.mubr.f32.gmra.mrb[130].mxu0 %v2814_v51  ;;  %v11347_v3 = vld [vmem:[#allocation3 + $0x2a0] sm:$0xff]  ;;  %v11351_v0 = vld [vmem:[#allocation3 + $0x2a8] sm:$0xff] }
 0x44a   :  { %3356 = vmatprep.mubr.f32.mxu1 %v11347_v3  ;;  %8253 = vmatprep.mubr.f32.mxu0 %v2815_v30  ;;  %v2828_v30 = vld [vmem:[#allocation3 + $0x218] sm:$0xff] }
 0x44b   :  { %3357 = vmatmul.mubr.f32.gmra.mrb[124].mxu1 %v11328_v47  ;;  %v11353_v50 = vpop.f32.mrb[72].mxu1 }
 0x44c   :  { %3361 = vmatprep.mubr.f32.mxu1 %v11351_v0  ;;  %v3230_v42 = vpop.f32.mrb[73].mxu1 }
 0x44d   :  { %8254 = vmatmul.mubr.f32.gmra.mrb[132].mxu0 %v2816_v15  ;;  %v2829_v42 = vld [vmem:[#allocation3 + $0x220] sm:$0xff] }
 0x44e   :  { %8256 = vmatprep.mubr.f32.mxu0 %v2817_v13 }
 0x44f   :  { %3362 = vmatmul.mubr.f32.gmra.mrb[126].mxu1 %v11331_v45  ;;  %v11359_v38 = vpop.f32.mrb[74].mxu1 }
 0x450   :  { %3366 = vmatprep.mubr.f32.mxu1 %v11357_v10  ;;  %v3235_v47 = vpop.f32.mrb[75].mxu1 }
 0x451   :  { %8257 = vmatmul.mubr.f32.gmra.mrb[134].mxu0 %v11362_v4 }
 0x452   :  { %8259 = vmatprep.mubr.f32.mxu0 %v11362_v4 }
 0x453   :  { %3367 = vmatmul.mubr.f32.gmra.mrb[128].mxu1 %v11334_v6 }
 0x455   :  { %v8142_v55 = vpop.f32.mrb[52].mxu0  ;;  %8260 = vmatmul.mubr.f32.gmra.mrb[136].mxu0 %v11362_v4 }
 0x456   :  { %v2321_v45 = vadd.f32 %v11009_v32, %v8142_v55  ;;  %v2315_v49 = vpop.f32.mrb[53].mxu0  ;;  %8262 = vmatprep.mubr.f32.mxu0 %v2821_v21 }
 0x457   :  { %v2316_v27 = vadd.f32 %v11009_v32, %v2315_v49  ;;  %v11370_v44 = vpop.f32.mrb[76].mxu1 }
 0x458   :  { %v2427_v12 = vmax.f32 %v2321_v45, 0.0  ;;  %v3240_v39 = vpop.f32.mrb[77].mxu1 }
 0x459   :  { %v2426_v17 = vmax.f32 %v2316_v27, 0.0  ;;  %8263 = vmatmul.mubr.f32.gmra.mrb[138].mxu0 %v2822_v5  ;;  %v2831_v5 = vld [vmem:[#allocation3 + $0x230] sm:$0xff] }
 0x45a   :  { %2569 = vst [vmem:[#allocation3 + $0x2c1] sm:$0xff] %v2427_v12  ;;  %8265 = vmatprep.mubr.f32.mxu0 %v2823_v9  ;;  %v2830_v12 = vld [vmem:[#allocation3 + $0x228] sm:$0xff] }
 0x45b   :  { %2568 = vst [vmem:[#allocation3 + $0x2b9] sm:$0xff] %v2426_v17  ;;  %v11372_v6 = vpop.f32.mrb[78].mxu1 }
 0x45c   :  { %v3245_v48 = vpop.f32.mrb[79].mxu1 }
 0x45d   :  { %8266 = vmatmul.mubr.f32.gmra.mrb[140].mxu0 %v2824_v1  ;;  %v2832_v48 = vld [vmem:[#allocation3 + $0x238] sm:$0xff]  ;;  %v2833_v1 = vld [vmem:[#allocation3 + $0x240] sm:$0xff] }
 0x45e   :  { %8268 = vmatprep.mubr.f32.mxu0 %v2825_v31 }
 0x45f   :  { %v11374_v20 = vpop.f32.mrb[80].mxu1 }
 0x460   :  { %v3250_v40 = vpop.f32.mrb[81].mxu1 }
 0x461   :  { %8269 = vmatmul.mubr.f32.gmra.mrb[142].mxu0 %v2826_v11  ;;  %v11388_v27 = vld [vmem:[#allocation3 + $0x2c8] sm:$0xff] }
 0x462   :  { %v11376_v51 = vld [vmem:[#allocation3 + $0x2b8] sm:$0xff]  ;;  %8271 = vmatprep.mubr.f32.mxu0 %v2827_v35  ;;  %v11380_v56 = vld [vmem:[#allocation3 + $0x2c0] sm:$0xff]  ;;  %v2834_v11 = vld [vmem:[#allocation3 + $0x248] sm:$0xff] }
 0x463   :  { %3371 = vmatprep.mubr.f32.mxu1 %v11376_v51  ;;  %v2835_v35 = vld [vmem:[#allocation3 + $0x250] sm:$0xff] }
 0x464   :  { %3372 = vmatmul.mubr.f32.gmra.mrb[130].mxu1 %v11347_v3 }
 0x465   :  { %v8145_v15 = vpop.f32.mrb[54].mxu0  ;;  %3376 = vmatprep.mubr.f32.mxu1 %v11380_v56  ;;  %8272 = vmatmul.mubr.f32.gmra.mrb[144].mxu0 %v2828_v30 }
 0x466   :  { %v2331_v13 = vadd.f32 %v11009_v32, %v8145_v15  ;;  %v2325_v47 = vpop.f32.mrb[55].mxu0  ;;  %8274 = vmatprep.mubr.f32.mxu0 %v2829_v42  ;;  %v2836_v42 = vld [vmem:[#allocation3 + $0x258] sm:$0xff] }
 0x467   :  { %v2326_v55 = vadd.f32 %v11009_v32, %v2325_v47  ;;  %v11385_v21 = vpop.f32.mrb[82].mxu1  ;;  %v2837_v47 = vld [vmem:[#allocation3 + $0x260] sm:$0xff] }
 0x468   :  { %v2429_v45 = vmax.f32 %v2331_v13, 0.0  ;;  %3377 = vmatmul.mubr.f32.gmra.mrb[132].mxu1 %v11351_v0  ;;  %v3255_v49 = vpop.f32.mrb[83].mxu1 }
 0x469   :  { %v2428_v39 = vmax.f32 %v2326_v55, 0.0  ;;  %3381 = vmatprep.mubr.f32.mxu1 %v11388_v27  ;;  %8275 = vmatmul.mubr.f32.gmra.mrb[146].mxu0 %v2830_v12 }
 0x46a   :  { %2571 = vst [vmem:[#allocation3 + $0x2d9] sm:$0xff] %v2429_v45  ;;  %8277 = vmatprep.mubr.f32.mxu0 %v2831_v5 }
 0x46b   :  { %2570 = vst [vmem:[#allocation3 + $0x2d1] sm:$0xff] %v2428_v39  ;;  %v11391_v17 = vpop.f32.mrb[84].mxu1 }
 0x46c   :  { %3382 = vmatmul.mubr.f32.gmra.mrb[134].mxu1 %v11357_v10  ;;  %v3260_v9 = vpop.f32.mrb[85].mxu1 }
 0x46d   :  { %8278 = vmatmul.mubr.f32.gmra.mrb[148].mxu0 %v2832_v48  ;;  %v2838_v48 = vld [vmem:[#allocation3 + $0x268] sm:$0xff] }
 0x46e   :  { %8280 = vmatprep.mubr.f32.mxu0 %v2833_v1 }
 0x46f   :  { %v11394_v31 = vpop.f32.mrb[86].mxu1 }
 0x470   :  { %v3265_v40 = vpop.f32.mrb[87].mxu1 }
 0x471   :  { %8281 = vmatmul.mubr.f32.gmra.mrb[150].mxu0 %v2834_v11  ;;  %v11408_v9 = vld [vmem:[#allocation3 + $0x2e0] sm:$0xff]  ;;  %v2839_v40 = vld [vmem:[#allocation3 + $0x270] sm:$0xff] }
 0x472   :  { %v11396_v30 = vld [vmem:[#allocation3 + $0x2d0] sm:$0xff]  ;;  %8283 = vmatprep.mubr.f32.mxu0 %v2835_v35  ;;  %v11400_v15 = vld [vmem:[#allocation3 + $0x2d8] sm:$0xff] }
 0x473   :  { %3386 = vmatprep.mubr.f32.mxu1 %v11396_v30 }
 0x474   :  { %3387 = vmatmul.mubr.f32.gmra.mrb[136].mxu1 %v11376_v51 }
 0x475   :  { %v8148_v13 = vpop.f32.mrb[56].mxu0  ;;  %3391 = vmatprep.mubr.f32.mxu1 %v11400_v15  ;;  %8284 = vmatmul.mubr.f32.gmra.mrb[152].mxu0 %v2836_v42  ;;  %v2840_v42 = vld [vmem:[#allocation3 + $0x278] sm:$0xff] }
 0x476   :  { %v2341_v55 = vadd.f32 %v11009_v32, %v8148_v13  ;;  %v2335_v45 = vpop.f32.mrb[57].mxu0  ;;  %8286 = vmatprep.mubr.f32.mxu0 %v2837_v47  ;;  %v2841_v13 = vld [vmem:[#allocation3 + $0x280] sm:$0xff] }
 0x477   :  { %v2336_v49 = vadd.f32 %v11009_v32, %v2335_v45  ;;  %v11405_v12 = vpop.f32.mrb[88].mxu1  ;;  %v2842_v45 = vld [vmem:[#allocation3 + $0x288] sm:$0xff] }
 0x478   :  { %v2431_v39 = vmax.f32 %v2341_v55, 0.0  ;;  %3392 = vmatmul.mubr.f32.gmra.mrb[138].mxu1 %v11380_v56  ;;  %v3270_v5 = vpop.f32.mrb[89].mxu1 }
 0x479   :  { %v2430_v1 = vmax.f32 %v2336_v49, 0.0  ;;  %3396 = vmatprep.mubr.f32.mxu1 %v11408_v9  ;;  %8287 = vmatmul.mubr.f32.gmra.mrb[154].mxu0 %v2838_v48  ;;  %v2843_v49 = vld [vmem:[#allocation3 + $0x290] sm:$0xff] }
 0x47a   :  { %2573 = vst [vmem:[#allocation3 + $0x2f1] sm:$0xff] %v2431_v39  ;;  %8289 = vmatprep.mubr.f32.mxu0 %v2839_v40 }
 0x47b   :  { %2572 = vst [vmem:[#allocation3 + $0x2e9] sm:$0xff] %v2430_v1  ;;  %v11411_v11 = vpop.f32.mrb[90].mxu1  ;;  %v2844_v1 = vld [vmem:[#allocation3 + $0x298] sm:$0xff] }
 0x47c   :  { %3397 = vmatmul.mubr.f32.gmra.mrb[140].mxu1 %v11388_v27  ;;  %v3275_v35 = vpop.f32.mrb[91].mxu1 }
 0x47d   :  { %8290 = vmatmul.mubr.f32.gmra.mrb[156].mxu0 %v2840_v42 }
 0x47e   :  { %8292 = vmatprep.mubr.f32.mxu0 %v2841_v13 }
 0x47f   :  { %v11414_v47 = vpop.f32.mrb[92].mxu1 }
 0x480   :  { %v3280_v55 = vpop.f32.mrb[93].mxu1 }
 0x481   :  { %8293 = vmatmul.mubr.f32.gmra.mrb[158].mxu0 %v2842_v45  ;;  %v2762_v45 = vld [vmem:[#allocation3 + $0x2f8] sm:$0xff] }
 0x482   :  { %v2760_v5 = vld [vmem:[#allocation3 + $0x2e8] sm:$0xff]  ;;  %8295 = vmatprep.mubr.f32.mxu0 %v2843_v49  ;;  %v2761_v48 = vld [vmem:[#allocation3 + $0x2f0] sm:$0xff] }
 0x483   :  { %3401 = vmatprep.mubr.f32.mxu1 %v2760_v5 }
 0x484   :  { %3402 = vmatmul.mubr.f32.gmra.mrb[142].mxu1 %v11396_v30  ;;  %v8151_v39 = vpop.f32.mrb[58].mxu0 }
 0x485   :  { %v2351_v40 = vadd.f32 %v11009_v32, %v8151_v39  ;;  %3406 = vmatprep.mubr.f32.mxu1 %v2761_v48  ;;  %v2345_v35 = vpop.f32.mrb[59].mxu0  ;;  %8296 = vmatmul.mubr.f32.gmra.mrb[160].mxu0 %v2844_v1 }
 0x486   :  { %v2346_v42 = vadd.f32 %v11009_v32, %v2345_v35  ;;  %8298 = vmatprep.mubr.f32.mxu0 %v11347_v3 }
 0x487   :  { %v2433_v13 = vmax.f32 %v2351_v40, 0.0 }
 0x488   :  { %v2432_v55 = vmax.f32 %v2346_v42, 0.0  ;;  %3407 = vmatmul.mubr.f32.gmra.mrb[144].mxu1 %v11400_v15 }
 0x489   :  { %2575 = vst [vmem:[#allocation3 + $0x309] sm:$0xff] %v2433_v13  ;;  %3411 = vmatprep.mubr.f32.mxu1 %v2762_v45  ;;  %8299 = vmatmul.mubr.f32.gmra.mrb[162].mxu0 %v11351_v0 }
 0x48a   :  { %2574 = vst [vmem:[#allocation3 + $0x301] sm:$0xff] %v2432_v55  ;;  %8301 = vmatprep.mubr.f32.mxu0 %v11357_v10 }
 0x48c   :  { %3412 = vmatmul.mubr.f32.gmra.mrb[146].mxu1 %v11408_v9  ;;  %v8154_v49 = vpop.f32.mrb[60].mxu0 }
 0x48d   :  { %v2361_v39 = vadd.f32 %v11009_v32, %v8154_v49  ;;  %v2355_v1 = vpop.f32.mrb[61].mxu0  ;;  %8302 = vmatmul.mubr.f32.gmra.mrb[164].mxu0 %v11376_v51 }
 0x48e   :  { %v2356_v3 = vadd.f32 %v11009_v32, %v2355_v1  ;;  %8304 = vmatprep.mubr.f32.mxu0 %v11380_v56 }
 0x48f   :  { %v2435_v40 = vmax.f32 %v2361_v39, 0.0 }
 0x490   :  { %v2434_v35 = vmax.f32 %v2356_v3, 0.0 }
 0x491   :  { %2577 = vst [vmem:[#allocation3 + $0x321] sm:$0xff] %v2435_v40  ;;  %8305 = vmatmul.mubr.f32.gmra.mrb[166].mxu0 %v11388_v27  ;;  %v2763_v0 = vld [vmem:[#allocation3 + $0x300] sm:$0xff]  ;;  %v2764_v10 = vld [vmem:[#allocation3 + $0x308] sm:$0xff]  ;;  %v2765_v27 = vld [vmem:[#allocation3 + $0x310] sm:$0xff] }
 0x492   :  { %2576 = vst [vmem:[#allocation3 + $0x319] sm:$0xff] %v2434_v35  ;;  %3416 = vmatprep.mubr.f32.mxu1 %v2763_v0  ;;  %8307 = vmatprep.mubr.f32.mxu0 %v11396_v30 }
 0x493   :  { %3417 = vmatmul.mubr.f32.gmra.mrb[148].mxu1 %v2760_v5 }
 0x494   :  { %v8157_v42 = vpop.f32.mrb[62].mxu0  ;;  %3421 = vmatprep.mubr.f32.mxu1 %v2764_v10 }
 0x495   :  { %v2371_v51 = vadd.f32 %v11009_v32, %v8157_v42  ;;  %v2365_v13 = vpop.f32.mrb[63].mxu0  ;;  %8308 = vmatmul.mubr.f32.gmra.mrb[168].mxu0 %v11400_v15 }
 0x496   :  { %v2366_v56 = vadd.f32 %v11009_v32, %v2365_v13  ;;  %8310 = vmatprep.mubr.f32.mxu0 %v11408_v9 }
 0x497   :  { %v2437_v55 = vmax.f32 %v2371_v51, 0.0  ;;  %3422 = vmatmul.mubr.f32.gmra.mrb[150].mxu1 %v2761_v48 }
 0x498   :  { %v2436_v49 = vmax.f32 %v2366_v56, 0.0  ;;  %v11434_v39 = vpop.f32.mrb[64].mxu0  ;;  %3426 = vmatprep.mubr.f32.mxu1 %v2765_v27 }
 0x499   :  { %2579 = vst [vmem:[#allocation3 + $0x339] sm:$0xff] %v2437_v55  ;;  %v2985_v30 = vpop.f32.mrb[65].mxu0  ;;  %8311 = vmatmul.mubr.f32.gmra.mrb[170].mxu0 %v2760_v5  ;;  %v2766_v1 = vld [vmem:[#allocation3 + $0x318] sm:$0xff]  ;;  %v2767_v15 = vld [vmem:[#allocation3 + $0x320] sm:$0xff]  ;;  %v2768_v5 = vld [vmem:[#allocation3 + $0x328] sm:$0xff] }
 0x49a   :  { %2578 = vst [vmem:[#allocation3 + $0x331] sm:$0xff] %v2436_v49  ;;  %8313 = vmatprep.mubr.f32.mxu0 %v2761_v48 }
 0x49b   :  { %3427 = vmatmul.mubr.f32.gmra.mrb[152].mxu1 %v2762_v45 }
 0x49c   :  { %v11436_v3 = vpop.f32.mrb[66].mxu0  ;;  %3431 = vmatprep.mubr.f32.mxu1 %v2766_v1 }
 0x49d   :  { %v2990_v32 = vpop.f32.mrb[67].mxu0  ;;  %8314 = vmatmul.mubr.f32.gmra.mrb[172].mxu0 %v2762_v45 }
 0x49e   :  { %8316 = vmatprep.mubr.f32.mxu0 %v2763_v0 }
 0x49f   :  { %3432 = vmatmul.mubr.f32.gmra.mrb[154].mxu1 %v2763_v0 }
 0x4a0   :  { %v11438_v9 = vpop.f32.mrb[68].mxu0  ;;  %3436 = vmatprep.mubr.f32.mxu1 %v2767_v15  ;;  %v2865_v32 = vld [vmem:[#allocation3 + $0x340] sm:$0xff] }
 0x4a1   :  { %v2995_v40 = vpop.f32.mrb[69].mxu0  ;;  %8317 = vmatmul.mubr.f32.gmra.mrb[174].mxu0 %v2764_v10  ;;  %v2769_v0 = vld [vmem:[#allocation3 + $0x330] sm:$0xff]  ;;  %v2770_v55 = vld [vmem:[#allocation3 + $0x338] sm:$0xff] }
 0x4a2   :  { %8319 = vmatprep.mubr.f32.mxu0 %v2765_v27 }
 0x4a3   :  { %3437 = vmatmul.mubr.f32.gmra.mrb[156].mxu1 %v2764_v10 }
 0x4a4   :  { %v11440_v35 = vpop.f32.mrb[70].mxu0  ;;  %3441 = vmatprep.mubr.f32.mxu1 %v2768_v5 }
 0x4a5   :  { %v3000_v48 = vpop.f32.mrb[71].mxu0  ;;  %8320 = vmatmul.mubr.f32.gmra.mrb[176].mxu0 %v2766_v1 }
 0x4a6   :  { %v11442_v42 = vpop.f32.mrb[94].mxu1  ;;  %8322 = vmatprep.mubr.f32.mxu0 %v2767_v15 }
 0x4a7   :  { %v3285_v45 = vpop.f32.mrb[95].mxu1  ;;  %3442 = vmatmul.mubr.f32.gmra.mrb[158].mxu1 %v2765_v27 }
 0x4a8   :  { %v11444_v51 = vpop.f32.mrb[72].mxu0  ;;  %3446 = vmatprep.mubr.f32.mxu1 %v2769_v0  ;;  %v11454_v45 = vpop.permute.xlu0 %6029 }
 0x4a9   :  { %v3005_v13 = vpop.f32.mrb[73].mxu0  ;;  %8323 = vmatmul.mubr.f32.gmra.mrb[178].mxu0 %v2768_v5  ;;  %13774 = vst [vmem:[#allocation15_spill] sm:$0xff] %v11454_v45 }
 0x4aa   :  { %v11446_v56 = vpop.f32.mrb[96].mxu1  ;;  %8325 = vmatprep.mubr.f32.mxu0 %v2769_v0  ;;  %v11460_v13 = vpop.permute.xlu1 %6031 }
 0x4ab   :  { %v3290_v10 = vpop.f32.mrb[97].mxu1  ;;  %3447 = vmatmul.mubr.f32.gmra.mrb[160].mxu1 %v2766_v1  ;;  %13775 = vst [vmem:[#allocation18_spill] sm:$0xff] %v11460_v13 }
 0x4ac   :  { %v11448_v49 = vpop.f32.mrb[74].mxu0  ;;  %3451 = vmatprep.mubr.f32.mxu1 %v2770_v55 }
 0x4ad   :  { %v3010_v30 = vpop.f32.mrb[75].mxu0  ;;  %8326 = vmatmul.mubr.f32.gmra.mrb[180].mxu0 %v2770_v55  ;;  %v11463_v55 = vpop.permute.xlu0 %6033 }
 0x4ae   :  { %v11450_v40 = vpop.f32.mrb[98].mxu1  ;;  %8328 = vmatprep.mubr.f32.mxu0 %v2865_v32  ;;  %13776 = vst [vmem:[#allocation16_spill] sm:$0xff] %v11463_v55 }
 0x4af   :  { %v3295_v27 = vpop.f32.mrb[99].mxu1  ;;  %3452 = vmatmul.mubr.f32.gmra.mrb[162].mxu1 %v2767_v15 }
 0x4b0   :  { %v11452_v48 = vpop.f32.mrb[76].mxu0  ;;  %3456 = vmatprep.mubr.f32.mxu1 %v2865_v32  ;;  %v11467_v32 = vpop.permute.xlu1 %6035 }
 0x4b1   :  { %v3015_v0 = vpop.f32.mrb[77].mxu0  ;;  %8329 = vmatmul.mubr.f32.gmra.mrb[182].mxu0 %v11362_v4  ;;  %13777 = vst [vmem:[#allocation21_spill] sm:$0xff] %v11467_v32 }
 0x4b2   :  { %8331 = vmatprep.mubr.f32.mxu0 %v11362_v4  ;;  %v11471_v0 = vpop.permute.xlu0 %6045 }
 0x4b3   :  { %3457 = vmatmul.mubr.f32.gmra.mrb[164].mxu1 %v2768_v5  ;;  %13778 = vst [vmem:[#allocation19_spill] sm:$0xff] %v11471_v0 }
 0x4b4   :  { %v11458_v1 = vpop.f32.mrb[78].mxu0 }
 0x4b5   :  { %v3020_v10 = vpop.f32.mrb[79].mxu0  ;;  %8332 = vmatmul.mubr.f32.gmra.mrb[184].mxu0 %v11362_v4 }
 0x4b6   :  { %v11477_v10 = vpop.permute.xlu1 %6047  ;;  %v11481_v55 = vpop.permute.xlu0 %6049 }
 0x4b7   :  { %13779 = vst [vmem:[#allocation22_spill] sm:$0xff] %v11477_v10  ;;  %13780 = vst [vmem:[#allocation20_spill] sm:$0xff] %v11481_v55 }
 0x4b8   :  { %v11465_v15 = vpop.f32.mrb[80].mxu0 }
 0x4b9   :  { %v3025_v30 = vpop.f32.mrb[81].mxu0 }
 0x4ba   :  { %v11487_v0 = vpop.permute.xlu1 %6051 }
 0x4bb   :  { %13781 = vst [vmem:[#allocation25_spill] sm:$0xff] %v11487_v0 }
 0x4bc   :  { %v11469_v27 = vpop.f32.mrb[82].mxu0 }
 0x4bd   :  { %v3030_v45 = vpop.f32.mrb[83].mxu0 }
 0x4be   :  { %v11473_v5 = vpop.f32.mrb[100].mxu1 }
 0x4bf   :  { %v3300_v52 = vpop.f32.mrb[101].mxu1 }
 0x4c0   :  { %v11475_v60 = vpop.f32.mrb[84].mxu0  ;;  %v11491_v52 = vpop.permute.xlu0 %6061 }
 0x4c1   :  { %v3035_v4 = vpop.f32.mrb[85].mxu0  ;;  %13782 = vst [vmem:[#allocation23_spill] sm:$0xff] %v11491_v52 }
 0x4c2   :  { %v11479_v13 = vpop.f32.mrb[102].mxu1  ;;  %v11493_v4 = vpop.permute.xlu1 %6063 }
 0x4c3   :  { %v3305_v30 = vpop.f32.mrb[103].mxu1  ;;  %13783 = vst [vmem:[#allocation26_spill] sm:$0xff] %v11493_v4 }
 0x4c4   :  { %v11483_v18 = vpop.f32.mrb[86].mxu0  ;;  %v11503_v16 = vpop.permute.xlu0 %6065 }
 0x4c5   :  { %v3040_v32 = vpop.f32.mrb[87].mxu0  ;;  %13786 = vst [vmem:[#allocation27_spill] sm:$0xff] %v11503_v16 }
 0x4c6   :  { %v11485_v57 = vpop.f32.mrb[104].mxu1  ;;  %v11516_v63 = vpop.permute.xlu1 %6067 }
 0x4c7   :  { %v3310_v45 = vpop.f32.mrb[105].mxu1  ;;  %13788 = vst [vmem:[#allocation28_spill] sm:$0xff] %v11516_v63 }
 0x4c8   :  { %v11489_v29 = vpop.f32.mrb[88].mxu0  ;;  %v11519_v7 = vpop.permute.xlu0 %6077 }
 0x4c9   :  { %v3045_v59 = vpop.f32.mrb[89].mxu0  ;;  %13789 = vst [vmem:[#allocation31_spill] sm:$0xff] %v11519_v7 }
 0x4cc   :  { %v8192_v10 = vpop.f32.mrb[90].mxu0 }
 0x4cd   :  { %v11496_v2 = vadd.f32 %v8192_v10, %v11436_v3  ;;  %v3528_v30 = vpop.f32.mrb[91].mxu0 }
 0x4ce   :  { %v11499_v55 = vadd.f32 %v3528_v30, %v11434_v39  ;;  %v11501_v32 = vpop.f32.mrb[106].mxu1 }
 0x4cf   :  { %13784 = vst [vmem:[#allocation24_spill] sm:$0xff] %v11496_v2  ;;  %v4105_v45 = vrot.slane %v11496_v2, 1  ;;  %v3315_v0 = vpop.f32.mrb[107].mxu1  ;;  %v4522_v10 = vrot.slane %v11496_v2, 2 }
 0x4d0   :  { %13785 = vst [vmem:[#allocation29_spill] sm:$0xff] %v11499_v55  ;;  %v4104_v59 = vrot.slane %v11499_v55, 1  ;;  %v8195_v52 = vpop.f32.mrb[92].mxu0  ;;  %v4521_v39 = vrot.slane %v11499_v55, 2 }
 0x4d1   :  { %v11508_v4 = vadd.f32 %v8195_v52, %v11440_v35  ;;  %v3538_v3 = vpop.f32.mrb[93].mxu0 }
 0x4d2   :  { %v3539_v30 = vadd.f32 %v3538_v3, %v11438_v9  ;;  %v11513_v25 = vpop.f32.mrb[108].mxu1  ;;  %v4106_v16 = vsel %vm4103_vm5, %v4104_v59, %v4105_v45 }
 0x4d3   :  { %13787 = vst [vmem:[#allocation30_spill] sm:$0xff] %v11508_v4  ;;  %v3320_v0 = vpop.f32.mrb[109].mxu1  ;;  %4264 = vrot.lane.b32.xlu0 %v4106_v16, %s8533_s21  ;;  %v4109_v16 = vrot.slane %v11508_v4, 1 }
 0x4d4   :  { %v4107_v35 = vrot.slane %v3539_v30, 1  ;;  %v8198_v52 = vpop.f32.mrb[94].mxu0  ;;  %v4524_v26 = vrot.slane %v3539_v30, 2  ;;  %v4523_v0 = vsel %vm4520_vm6, %v4521_v39, %v4522_v10  ;;  %v11533_v30 = vpop.permute.xlu1 %6079 }
 0x4d5   :  { %v3554_v28 = vadd.f32 %v8198_v52, %v11448_v49  ;;  %v3548_v41 = vpop.f32.mrb[95].mxu0  ;;  %13791 = vst [vmem:[#allocation78_spill] sm:$0xff] %v11533_v30 }
 0x4d6   :  { %v11523_v9 = vadd.f32 %v3548_v41, %v11444_v51  ;;  %v11525_v3 = vpop.f32.mrb[110].mxu1  ;;  %v4108_v59 = vsel %vm4103_vm5, %v4105_v45, %v4107_v35  ;;  %v4525_v39 = vsel %vm4520_vm6, %v4522_v10, %v4524_v26 }
 0x4d7   :  { %v3325_v63 = vpop.f32.mrb[111].mxu1  ;;  %4266 = vrot.lane.b32.xlu1 %v4108_v59, %s8533_s21  ;;  %4681 = vrot.lane.b32.xlu0 %v4523_v0, %s8532_s19  ;;  %v4112_v41 = vrot.slane %v3554_v28, 1  ;;  %v11544_v59 = vpop.permute.xlu0 %6081  ;;  %v4526_v0 = vrot.slane %v11508_v4, 2 }
 0x4d8   :  { %13790 = vst [vmem:[#allocation77_spill] sm:$0xff] %v11523_v9  ;;  %v4110_v49 = vrot.slane %v11523_v9, 1  ;;  %v8201_v52 = vpop.f32.mrb[96].mxu0  ;;  %v4527_v45 = vrot.slane %v11523_v9, 2  ;;  %13794 = vst [vmem:[#allocation81_spill] sm:$0xff] %v11544_v59 }
 0x4d9   :  { %v11536_v51 = vadd.f32 %v8201_v52, %v11458_v1  ;;  %v3558_v7 = vpop.f32.mrb[97].mxu0  ;;  %v4529_v52 = vrot.slane %v3554_v28, 2 }
 0x4da   :  { %v11540_v63 = vadd.f32 %v3558_v7, %v11452_v48  ;;  %v4111_v35 = vsel %vm4103_vm5, %v4109_v16, %v4110_v49  ;;  %v4113_v7 = vsel %vm4103_vm5, %v4110_v49, %v4112_v41 }
 0x4db   :  { %13792 = vst [vmem:[#allocation79_spill] sm:$0xff] %v11536_v51  ;;  %4683 = vrot.lane.b32.xlu1 %v4525_v39, %s8532_s19  ;;  %4268 = vrot.lane.b32.xlu0 %v4111_v35, %s8533_s21  ;;  %v4115_v26 = vrot.slane %v11536_v51, 1  ;;  %v4528_v39 = vsel %vm4520_vm6, %v4526_v0, %v4527_v45  ;;  %v11559_v35 = vpop.permute.xlu1 %6093  ;;  %v4532_v49 = vrot.slane %v11536_v51, 2 }
 0x4dc   :  { %13793 = vst [vmem:[#allocation80_spill] sm:$0xff] %v11540_v63  ;;  %v8204_v1 = vpop.f32.mrb[98].mxu0  ;;  %v4114_v48 = vrot.slane %v11540_v63, 1  ;;  %13796 = vst [vmem:[#allocation83_spill] sm:$0xff] %v11559_v35  ;;  %v4531_v41 = vrot.slane %v11540_v63, 2 }
 0x4dd   :  { %v11550_v30 = vadd.f32 %v8204_v1, %v11469_v27  ;;  %v3568_v46 = vpop.f32.mrb[99].mxu0  ;;  %v11563_v27 = vpop.permute.xlu0 %6095 }
 0x4de   :  { %v3569_v10 = vadd.f32 %v3568_v46, %v11465_v15  ;;  %v11556_v16 = vpop.f32.mrb[112].mxu1  ;;  %13797 = vst [vmem:[#allocation84_spill] sm:$0xff] %v11563_v27 }
 0x4df   :  { %13795 = vst [vmem:[#allocation82_spill] sm:$0xff] %v11550_v30  ;;  %v3330_v59 = vpop.f32.mrb[113].mxu1  ;;  %4270 = vrot.lane.b32.xlu1 %v4113_v7, %s8533_s21  ;;  %4685 = vrot.lane.b32.xlu0 %v4528_v39, %s8532_s19  ;;  %v4116_v7 = vsel %vm4103_vm5, %v4114_v48, %v4115_v26  ;;  %v11577_v61 = vpop.permute.xlu1 %6109 }
 0x4e0   :  { %v8207_v28 = vpop.f32.mrb[100].mxu0  ;;  %v4117_v1 = vrot.slane %v3569_v10, 1  ;;  %v4530_v59 = vsel %vm4520_vm6, %v4527_v45, %v4529_v52  ;;  %13799 = vst [vmem:[#allocation86_spill] sm:$0xff] %v11577_v61  ;;  %v13806_v61 = vld [vmem:[#allocation50_spill] sm:$0xff] }
 0x4e1   :  { %v3584_v46 = vadd.f32 %v8207_v28, %v11483_v18  ;;  %v3578_v15 = vpop.f32.mrb[101].mxu0  ;;  %v13800_v18 = vld [vmem:[#allocation48_spill] sm:$0xff] }
 0x4e2   :  { %v11569_v0 = vadd.f32 %v3578_v15, %v11475_v60  ;;  %v11571_v35 = vpop.f32.mrb[114].mxu1  ;;  %v4533_v60 = vsel %vm4520_vm6, %v4531_v41, %v4532_v49  ;;  %v4534_v15 = vrot.slane %v3569_v10, 2  ;;  %v4118_v48 = vsel %vm4103_vm5, %v4115_v26, %v4117_v1 }
 0x4e3   :  { %v3335_v39 = vpop.f32.mrb[115].mxu1  ;;  %4687 = vrot.lane.b32.xlu1 %v4530_v59, %s8532_s19  ;;  %4272 = vrot.lane.b32.xlu0 %v4116_v7, %s8533_s21  ;;  %v11590_v59 = vpop.permute.xlu0 %6111  ;;  %v4122_v10 = vrot.slane %v3584_v46, 1 }
 0x4e4   :  { %13798 = vst [vmem:[#allocation85_spill] sm:$0xff] %v11569_v0  ;;  %v8210_v27 = vpop.f32.mrb[102].mxu0  ;;  %v4120_v53 = vrot.slane %v11569_v0, 1  ;;  %13803 = vst [vmem:[#allocation88_spill] sm:$0xff] %v11590_v59  ;;  %v13804_v39 = vld [vmem:[#allocation52_spill] sm:$0xff]  ;;  %v4535_v26 = vsel %vm4520_vm6, %v4532_v49, %v4534_v15  ;;  %v13809_v59 = vld [vmem:[#allocation55_spill] sm:$0xff] }
 0x4e5   :  { %v11580_v28 = vadd.f32 %v8210_v27, %v13800_v18  ;;  %v3588_v54 = vpop.f32.mrb[103].mxu0  ;;  %v4119_v27 = vrot.slane %v11550_v30, 1 }
 0x4e6   :  { %v11585_v45 = vadd.f32 %v3588_v54, %v11489_v29  ;;  %v11587_v52 = vpop.f32.mrb[116].mxu1  ;;  %v4537_v29 = vrot.slane %v11569_v0, 2  ;;  %v4123_v49 = vsel %vm4103_vm5, %v4120_v53, %v4122_v10 }
 0x4e7   :  { %13801 = vst [vmem:[#allocation48_spill] sm:$0xff] %v11580_v28  ;;  %v3340_v7 = vpop.f32.mrb[117].mxu1  ;;  %4274 = vrot.lane.b32.xlu1 %v4118_v48, %s8533_s21  ;;  %4689 = vrot.lane.b32.xlu0 %v4533_v60, %s8532_s19  ;;  %v4121_v1 = vsel %vm4103_vm5, %v4119_v27, %v4120_v53  ;;  %v4536_v60 = vrot.slane %v11550_v30, 2  ;;  %v4125_v15 = vrot.slane %v11580_v28, 1  ;;  %v4542_v53 = vrot.slane %v11580_v28, 2 }
 0x4e8   :  { %13802 = vst [vmem:[#allocation87_spill] sm:$0xff] %v11585_v45  ;;  %v8213_v41 = vpop.f32.mrb[104].mxu0  ;;  %v11602_v7 = vpop.permute.xlu1 %6097  ;;  %v4124_v27 = vrot.slane %v11585_v45, 1  ;;  %v4541_v10 = vrot.slane %v11585_v45, 2 }
 0x4e9   :  { %v11596_v18 = vadd.f32 %v8213_v41, %v13804_v39  ;;  %v3598_v54 = vpop.f32.mrb[105].mxu0  ;;  %13807 = vst [vmem:[#allocation50_spill] sm:$0xff] %v11602_v7  ;;  %v11607_v41 = vpop.permute.xlu0 %6125  ;;  %v4539_v39 = vrot.slane %v3584_v46, 2 }
 0x4ea   :  { %v3599_v4 = vadd.f32 %v3598_v54, %v13806_v61  ;;  %13808 = vst [vmem:[#allocation89_spill] sm:$0xff] %v11607_v41  ;;  %v13810_v54 = vld [vmem:[#allocation53_spill] sm:$0xff] }
 0x4eb   :  { %13805 = vst [vmem:[#allocation52_spill] sm:$0xff] %v11596_v18  ;;  %4691 = vrot.lane.b32.xlu1 %v4535_v26, %s8532_s19  ;;  %4276 = vrot.lane.b32.xlu0 %v4121_v1, %s8533_s21  ;;  %v4538_v1 = vsel %vm4520_vm6, %v4536_v60, %v4537_v29  ;;  %v13813_v41 = vld [vmem:[#allocation57_spill] sm:$0xff]  ;;  %v13815_v60 = vld [vmem:[#allocation56_spill] sm:$0xff] }
 0x4ec   :  { %v8216_v48 = vpop.f32.mrb[106].mxu0 }
 0x4ed   :  { %v11610_v63 = vadd.f32 %v8216_v48, %v13809_v59  ;;  %v3608_v61 = vpop.f32.mrb[107].mxu0  ;;  %v11623_v48 = vpop.permute.xlu1 %6127 }
 0x4ee   :  { %v11616_v26 = vadd.f32 %v3608_v61, %v13810_v54  ;;  %13812 = vst [vmem:[#allocation53_spill] sm:$0xff] %v11623_v48  ;;  %v4127_v54 = vrot.slane %v3599_v4, 1 }
 0x4ef   :  { %v11619_v7 = vpop.f32.mrb[118].mxu1  ;;  %4278 = vrot.lane.b32.xlu1 %v4123_v49, %s8533_s21  ;;  %4693 = vrot.lane.b32.xlu0 %v4538_v1, %s8532_s19  ;;  %v4540_v49 = vsel %vm4520_vm6, %v4537_v29, %v4539_v39  ;;  %v4126_v1 = vsel %vm4103_vm5, %v4124_v27, %v4125_v15  ;;  %v13820_v39 = vld [vmem:[#allocation58_spill] sm:$0xff] }
 0x4f0   :  { %13811 = vst [vmem:[#allocation55_spill] sm:$0xff] %v11616_v26  ;;  %v3345_v46 = vpop.f32.mrb[119].mxu1  ;;  %v8219_v59 = vpop.f32.mrb[108].mxu0  ;;  %v4130_v29 = vrot.slane %v11616_v26, 1 }
 0x4f1   :  { %v11628_v30 = vadd.f32 %v8219_v59, %v13813_v41  ;;  %v3618_v61 = vpop.f32.mrb[109].mxu0  ;;  %v11635_v46 = vpop.permute.xlu0 %6083  ;;  %v13818_v59 = vld [vmem:[#allocation59_spill] sm:$0xff] }
 0x4f2   :  { %v11631_v55 = vadd.f32 %v3618_v61, %v13815_v60  ;;  %13817 = vst [vmem:[#allocation90_spill] sm:$0xff] %v11635_v46  ;;  %v4543_v61 = vsel %vm4520_vm6, %v4541_v10, %v4542_v53  ;;  %v4544_v60 = vrot.slane %v3599_v4, 2  ;;  %v4128_v46 = vsel %vm4103_vm5, %v4125_v15, %v4127_v54  ;;  %v11650_v0 = vpop.permute.xlu1 %6113 }
 0x4f3   :  { %13814 = vst [vmem:[#allocation57_spill] sm:$0xff] %v11628_v30  ;;  %v11637_v22 = vpop.f32.mrb[120].mxu1  ;;  %4695 = vrot.lane.b32.xlu1 %v4540_v49, %s8532_s19  ;;  %4280 = vrot.lane.b32.xlu0 %v4126_v1, %s8533_s21  ;;  %13821 = vst [vmem:[#allocation58_spill] sm:$0xff] %v11650_v0  ;;  %v4547_v54 = vrot.slane %v11616_v26, 2 }
 0x4f4   :  { %13816 = vst [vmem:[#allocation56_spill] sm:$0xff] %v11631_v55  ;;  %v3350_v48 = vpop.f32.mrb[121].mxu1  ;;  %v8222_v41 = vpop.f32.mrb[110].mxu0 }
 0x4f5   :  { %v11642_v28 = vadd.f32 %v8222_v41, %v13818_v59  ;;  %v3628_v45 = vpop.f32.mrb[111].mxu0  ;;  %v4129_v48 = vrot.slane %v11596_v18, 1  ;;  %v11657_v4 = vpop.permute.xlu0 %6141  ;;  %v4132_v41 = vrot.slane %v11610_v63, 1 }
 0x4f6   :  { %v11647_v27 = vadd.f32 %v3628_v45, %v13820_v39  ;;  %13823 = vst [vmem:[#allocation92_spill] sm:$0xff] %v11657_v4  ;;  %v13824_v45 = vld [vmem:[#allocation61_spill] sm:$0xff]  ;;  %v13825_v39 = vld [vmem:[#allocation60_spill] sm:$0xff]  ;;  %v11672_v9 = vpop.permute.xlu1 %6143 }
 0x4f7   :  { %13819 = vst [vmem:[#allocation59_spill] sm:$0xff] %v11642_v28  ;;  %v11652_v49 = vpop.f32.mrb[122].mxu1  ;;  %4282 = vrot.lane.b32.xlu1 %v4128_v46, %s8533_s21  ;;  %4697 = vrot.lane.b32.xlu0 %v4543_v61, %s8532_s19  ;;  %v4545_v46 = vsel %vm4520_vm6, %v4542_v53, %v4544_v60  ;;  %v4131_v61 = vsel %vm4103_vm5, %v4129_v48, %v4130_v29  ;;  %13827 = vst [vmem:[#allocation60_spill] sm:$0xff] %v11672_v9  ;;  %v4135_v53 = vrot.slane %v11628_v30, 1  ;;  %v13830_v48 = vld [vmem:[#allocation63_spill] sm:$0xff] }
 0x4f8   :  { %13822 = vst [vmem:[#allocation91_spill] sm:$0xff] %v11652_v49  ;;  %v3355_v1 = vpop.f32.mrb[123].mxu1  ;;  %v8225_v10 = vpop.f32.mrb[112].mxu0  ;;  %v4134_v60 = vrot.slane %v11631_v55, 1 }
 0x4f9   :  { %v11661_v59 = vadd.f32 %v8225_v10, %v13824_v45  ;;  %v3638_v15 = vpop.f32.mrb[113].mxu0  ;;  %v4546_v1 = vrot.slane %v11596_v18, 2  ;;  %v4549_v10 = vrot.slane %v11610_v63, 2  ;;  %v13828_v45 = vld [vmem:[#allocation64_spill] sm:$0xff]  ;;  %v11685_v18 = vpop.permute.xlu0 %6099 }
 0x4fa   :  { %v11665_v0 = vadd.f32 %v3638_v15, %v13825_v39  ;;  %v4133_v39 = vsel %vm4103_vm5, %v4130_v29, %v4132_v41  ;;  %13832 = vst [vmem:[#allocation93_spill] sm:$0xff] %v11685_v18  ;;  %v4551_v29 = vrot.slane %v11631_v55, 2  ;;  %v13833_v41 = vld [vmem:[#allocation66_spill] sm:$0xff]  ;;  %v11700_v18 = vpop.permute.xlu1 %6129 }
 0x4fb   :  { %4699 = vrot.lane.b32.xlu1 %v4545_v46, %s8532_s19  ;;  %4284 = vrot.lane.b32.xlu0 %v4131_v61, %s8533_s21  ;;  %v4548_v61 = vsel %vm4520_vm6, %v4546_v1, %v4547_v54  ;;  %v4550_v1 = vsel %vm4520_vm6, %v4547_v54, %v4549_v10  ;;  %v13839_v10 = vld [vmem:[#allocation67_spill] sm:$0xff] }
 0x4fc   :  { %13826 = vst [vmem:[#allocation61_spill] sm:$0xff] %v11665_v0  ;;  %v8228_v4 = vpop.f32.mrb[114].mxu0  ;;  %v4140_v54 = vrot.slane %v11665_v0, 1 }
 0x4fd   :  { %v11676_v26 = vadd.f32 %v8228_v4, %v13828_v45  ;;  %v3648_v15 = vpop.f32.mrb[115].mxu0  ;;  %v4552_v4 = vrot.slane %v11628_v30, 2  ;;  %v11704_v30 = vpop.permute.xlu0 %6157 }
 0x4fe   :  { %v11682_v46 = vadd.f32 %v3648_v15, %v13830_v48  ;;  %v4137_v15 = vrot.slane %v11647_v27, 1  ;;  %v13835_v48 = vld [vmem:[#allocation65_spill] sm:$0xff]  ;;  %13837 = vst [vmem:[#allocation94_spill] sm:$0xff] %v11704_v30 }
 0x4ff   :  { %13829 = vst [vmem:[#allocation64_spill] sm:$0xff] %v11676_v26  ;;  %4286 = vrot.lane.b32.xlu1 %v4133_v39, %s8533_s21  ;;  %4701 = vrot.lane.b32.xlu0 %v4548_v61, %s8532_s19  ;;  %v4136_v39 = vsel %vm4103_vm5, %v4134_v60, %v4135_v53  ;;  %13836 = vst [vmem:[#allocation65_spill] sm:$0xff] %v11700_v18  ;;  %v13842_v18 = vld [vmem:[#allocation76_spill] sm:$0xff] }
 0x500   :  { %13831 = vst [vmem:[#allocation63_spill] sm:$0xff] %v11682_v46  ;;  %v8231_v63 = vpop.f32.mrb[116].mxu0 }
 0x501   :  { %v11692_v45 = vadd.f32 %v8231_v63, %v13833_v41  ;;  %v3658_v9 = vpop.f32.mrb[117].mxu0  ;;  %v13838_v63 = vld [vmem:[#allocation68_spill] sm:$0xff] }
 0x502   :  { %v11696_v49 = vadd.f32 %v3658_v9, %v13835_v48  ;;  %v4553_v9 = vsel %vm4520_vm6, %v4551_v29, %v4552_v4  ;;  %v4554_v48 = vrot.slane %v11647_v27, 2  ;;  %v4142_v29 = vrot.slane %v11661_v59, 1 }
 0x503   :  { %13834 = vst [vmem:[#allocation66_spill] sm:$0xff] %v11692_v45  ;;  %4703 = vrot.lane.b32.xlu1 %v4550_v1, %s8532_s19  ;;  %4288 = vrot.lane.b32.xlu0 %v4136_v39, %s8533_s21  ;;  %v4138_v1 = vsel %vm4103_vm5, %v4135_v53, %v4137_v15  ;;  %v4139_v39 = vrot.slane %v11642_v28, 1 }
 0x504   :  { %v8234_v61 = vpop.f32.mrb[118].mxu0  ;;  %v4555_v53 = vsel %vm4520_vm6, %v4552_v4, %v4554_v48  ;;  %v4145_v4 = vrot.slane %v11676_v26, 1  ;;  %v4144_v48 = vrot.slane %v11682_v46, 1 }
 0x505   :  { %v11707_v41 = vadd.f32 %v8234_v61, %v13838_v63  ;;  %v3668_v55 = vpop.f32.mrb[119].mxu0  ;;  %v11719_v63 = vpop.permute.xlu1 %6159  ;;  %v4141_v15 = vsel %vm4103_vm5, %v4139_v39, %v4140_v54  ;;  %v13848_v39 = vld [vmem:[#allocation49_spill] sm:$0xff] }
 0x506   :  { %v11713_v60 = vadd.f32 %v3668_v55, %v13839_v10  ;;  %13841 = vst [vmem:[#allocation67_spill] sm:$0xff] %v11719_v63  ;;  %v4557_v55 = vrot.slane %v11665_v0, 2  ;;  %v13844_v10 = vld [vmem:[#allocation47_spill] sm:$0xff] }
 0x507   :  { %4290 = vrot.lane.b32.xlu1 %v4138_v1, %s8533_s21  ;;  %4705 = vrot.lane.b32.xlu0 %v4553_v9, %s8532_s19  ;;  %v11731_v9 = vpop.permute.xlu0 %6115  ;;  %v4556_v1 = vrot.slane %v11642_v28, 2  ;;  %v13847_v63 = vld [vmem:[#allocation51_spill] sm:$0xff] }
 0x508   :  { %13840 = vst [vmem:[#allocation68_spill] sm:$0xff] %v11713_v60  ;;  %v8237_v61 = vpop.f32.mrb[120].mxu0  ;;  %13846 = vst [vmem:[#allocation95_spill] sm:$0xff] %v11731_v9 }
 0x509   :  { %v11723_v27 = vadd.f32 %v8237_v61, %v13842_v18  ;;  %v3678_v30 = vpop.f32.mrb[121].mxu0  ;;  %v4559_v61 = vrot.slane %v11661_v59, 2 }
 0x50a   :  { %v11727_v2 = vadd.f32 %v3678_v30, %v13844_v10  ;;  %v4143_v10 = vsel %vm4103_vm5, %v4140_v54, %v4142_v29  ;;  %v4562_v54 = vrot.slane %v11676_v26, 2  ;;  %v4561_v29 = vrot.slane %v11682_v46, 2 }
 0x50b   :  { %13843 = vst [vmem:[#allocation76_spill] sm:$0xff] %v11723_v27  ;;  %4707 = vrot.lane.b32.xlu1 %v4555_v53, %s8532_s19  ;;  %4292 = vrot.lane.b32.xlu0 %v4141_v15, %s8533_s21  ;;  %v4558_v53 = vsel %vm4520_vm6, %v4556_v1, %v4557_v55  ;;  %v11747_v15 = vpop.permute.xlu1 %6145  ;;  %v13852_v1 = vld [vmem:[#allocation36_spill] sm:$0xff] }
 0x50c   :  { %13845 = vst [vmem:[#allocation47_spill] sm:$0xff] %v11727_v2  ;;  %v8240_v18 = vpop.f32.mrb[122].mxu0  ;;  %13849 = vst [vmem:[#allocation51_spill] sm:$0xff] %v11747_v15  ;;  %v4563_v26 = vsel %vm4520_vm6, %v4561_v29, %v4562_v54  ;;  %v4152_v29 = vrot.slane %v11707_v41, 1 }
 0x50d   :  { %v11738_v0 = vadd.f32 %v8240_v18, %v13847_v63  ;;  %v3688_v30 = vpop.f32.mrb[123].mxu0  ;;  %v11751_v63 = vpop.permute.xlu0 %6173  ;;  %v13851_v18 = vld [vmem:[#allocation33_spill] sm:$0xff] }
 0x50e   :  { %v11744_v9 = vadd.f32 %v3688_v30, %v13848_v39  ;;  %13850 = vst [vmem:[#allocation49_spill] sm:$0xff] %v11751_v63  ;;  %v4147_v39 = vrot.slane %v11696_v49, 1 }
 0x50f   :  { %4294 = vrot.lane.b32.xlu1 %v4143_v10, %s8533_s21  ;;  %4709 = vrot.lane.b32.xlu0 %v4558_v53, %s8532_s19  ;;  %v4560_v10 = vsel %vm4520_vm6, %v4557_v55, %v4559_v61  ;;  %v4146_v53 = vsel %vm4103_vm5, %v4144_v48, %v4145_v4  ;;  %v11766_v63 = vpop.permute.xlu1 %6175  ;;  %v13856_v55 = vld [vmem:[#allocation38_spill] sm:$0xff] }
 0x510   :  { %v8243_v59 = vpop.f32.mrb[124].mxu0  ;;  %13854 = vst [vmem:[#allocation36_spill] sm:$0xff] %v11766_v63  ;;  %v4148_v48 = vsel %vm4103_vm5, %v4145_v4, %v4147_v39  ;;  %v4569_v63 = vrot.slane %v11707_v41, 2 }
 0x511   :  { %v11756_v28 = vadd.f32 %v8243_v59, %v13851_v18  ;;  %v3698_v30 = vpop.f32.mrb[125].mxu0 }
 0x512   :  { %v11760_v51 = vadd.f32 %v3698_v30, %v13852_v1  ;;  %v4564_v30 = vrot.slane %v11696_v49, 2  ;;  %v4150_v1 = vrot.slane %v11713_v60, 1 }
 0x513   :  { %4711 = vrot.lane.b32.xlu1 %v4560_v10, %s8532_s19  ;;  %4296 = vrot.lane.b32.xlu0 %v4146_v53, %s8533_s21  ;;  %v11778_v10 = vpop.permute.xlu0 %6131 }
 0x514   :  { %13853 = vst [vmem:[#allocation33_spill] sm:$0xff] %v11760_v51  ;;  %v8246_v15 = vpop.f32.mrb[126].mxu0  ;;  %13858 = vst [vmem:[#allocation97_spill] sm:$0xff] %v11778_v10  ;;  %v4565_v4 = vsel %vm4520_vm6, %v4562_v54, %v4564_v30  ;;  %v4153_v54 = vsel %vm4103_vm5, %v4150_v1, %v4152_v29  ;;  %v4155_v30 = vrot.slane %v11723_v27, 1  ;;  %v4571_v29 = vrot.slane %v11727_v2, 2 }
 0x515   :  { %v11769_v59 = vadd.f32 %v8246_v15, %v11060_v62  ;;  %v3708_v18 = vpop.f32.mrb[127].mxu0  ;;  %v4149_v62 = vrot.slane %v11692_v45, 1 }
 0x516   :  { %v11775_v61 = vadd.f32 %v3708_v18, %v13856_v55  ;;  %v4567_v18 = vrot.slane %v11713_v60, 2 }
 0x517   :  { %13855 = vst [vmem:[#allocation96_spill] sm:$0xff] %v11769_v59  ;;  %4298 = vrot.lane.b32.xlu1 %v4148_v48, %s8533_s21  ;;  %4713 = vrot.lane.b32.xlu0 %v4563_v26, %s8532_s19  ;;  %v4151_v39 = vsel %vm4103_vm5, %v4149_v62, %v4150_v1  ;;  %v11793_v48 = vpop.permute.xlu1 %6161  ;;  %v4566_v26 = vrot.slane %v11692_v45, 2  ;;  %v4154_v62 = vrot.slane %v11727_v2, 1  ;;  %v4572_v1 = vrot.slane %v11723_v27, 2 }
 0x518   :  { %13857 = vst [vmem:[#allocation38_spill] sm:$0xff] %v11775_v61  ;;  %v8249_v15 = vpop.f32.mrb[128].mxu0  ;;  %13860 = vst [vmem:[#allocation99_spill] sm:$0xff] %v11793_v48 }
 0x519   :  { %v11785_v49 = vadd.f32 %v8249_v15, %v11176_v14  ;;  %v3718_v53 = vpop.f32.mrb[129].mxu0  ;;  %v11798_v15 = vpop.permute.xlu0 %6189  ;;  %v4568_v48 = vsel %vm4520_vm6, %v4566_v26, %v4567_v18 }
 0x51a   :  { %v11789_v55 = vadd.f32 %v3718_v53, %v11099_v24  ;;  %13861 = vst [vmem:[#allocation100_spill] sm:$0xff] %v11798_v15 }
 0x51b   :  { %13859 = vst [vmem:[#allocation98_spill] sm:$0xff] %v11785_v49  ;;  %4715 = vrot.lane.b32.xlu1 %v4565_v4, %s8532_s19  ;;  %4300 = vrot.lane.b32.xlu0 %v4151_v39, %s8533_s21  ;;  %v11815_v41 = vpop.permute.xlu1 %6191 }
 0x51c   :  { %v8252_v14 = vpop.f32.mrb[130].mxu0  ;;  %13863 = vst [vmem:[#allocation102_spill] sm:$0xff] %v11815_v41 }
 0x51d   :  { %v11802_v24 = vadd.f32 %v8252_v14, %v11231_v58  ;;  %v3728_v53 = vpop.f32.mrb[131].mxu0  ;;  %v11830_v41 = vpop.permute.xlu0 %6147 }
 0x51e   :  { %v11808_v4 = vadd.f32 %v3728_v53, %v11202_v36  ;;  %v11810_v39 = vpop.f32.mrb[124].mxu1  ;;  %v4157_v53 = vrot.slane %v11744_v9, 1  ;;  %13866 = vst [vmem:[#allocation105_spill] sm:$0xff] %v11830_v41 }
 0x51f   :  { %v3360_v15 = vpop.f32.mrb[125].mxu1  ;;  %4302 = vrot.lane.b32.xlu1 %v4153_v54, %s8533_s21  ;;  %4717 = vrot.lane.b32.xlu0 %v4568_v48, %s8532_s19  ;;  %v4570_v48 = vsel %vm4520_vm6, %v4567_v18, %v4569_v63  ;;  %v4156_v54 = vsel %vm4103_vm5, %v4154_v62, %v4155_v30  ;;  %v4160_v63 = vrot.slane %v11760_v51, 1 }
 0x520   :  { %13862 = vst [vmem:[#allocation101_spill] sm:$0xff] %v11808_v4  ;;  %v8255_v58 = vpop.f32.mrb[132].mxu0 }
 0x521   :  { %v11820_v14 = vadd.f32 %v8255_v58, %v11312_v34  ;;  %v3738_v36 = vpop.f32.mrb[133].mxu0 }
 0x522   :  { %v11824_v26 = vadd.f32 %v3738_v36, %v11291_v37  ;;  %v11826_v15 = vpop.f32.mrb[126].mxu1  ;;  %v4573_v37 = vsel %vm4520_vm6, %v4571_v29, %v4572_v1  ;;  %v4574_v36 = vrot.slane %v11744_v9, 2  ;;  %v11851_v9 = vpop.permute.xlu0 %6205 }
 0x523   :  { %13864 = vst [vmem:[#allocation103_spill] sm:$0xff] %v11820_v14  ;;  %v3365_v10 = vpop.f32.mrb[127].mxu1  ;;  %4719 = vrot.lane.b32.xlu1 %v4570_v48, %s8532_s19  ;;  %4304 = vrot.lane.b32.xlu0 %v4156_v54, %s8533_s21  ;;  %v11846_v48 = vpop.permute.xlu1 %6177  ;;  %13869 = vst [vmem:[#allocation108_spill] sm:$0xff] %v11851_v9 }
 0x524   :  { %13865 = vst [vmem:[#allocation104_spill] sm:$0xff] %v11824_v26  ;;  %v8258_v34 = vpop.f32.mrb[134].mxu0  ;;  %v4158_v10 = vsel %vm4103_vm5, %v4155_v30, %v4157_v53  ;;  %13868 = vst [vmem:[#allocation107_spill] sm:$0xff] %v11846_v48  ;;  %v4577_v30 = vrot.slane %v11760_v51, 2 }
 0x525   :  { %v11835_v58 = vadd.f32 %v8258_v34, %v11337_v19  ;;  %v3748_v27 = vpop.f32.mrb[135].mxu0  ;;  %v4159_v19 = vrot.slane %v11738_v0, 1  ;;  %v4162_v34 = vrot.slane %v11756_v28, 1 }
 0x526   :  { %v11841_v18 = vadd.f32 %v3748_v27, %v11321_v43  ;;  %v11843_v62 = vpop.f32.mrb[128].mxu1 }
 0x527   :  { %13867 = vst [vmem:[#allocation106_spill] sm:$0xff] %v11835_v58  ;;  %v3370_v54 = vpop.f32.mrb[129].mxu1  ;;  %4306 = vrot.lane.b32.xlu1 %v4158_v10, %s8533_s21  ;;  %4721 = vrot.lane.b32.xlu0 %v4573_v37, %s8532_s19  ;;  %v4575_v10 = vsel %vm4520_vm6, %v4572_v1, %v4574_v36  ;;  %v4161_v37 = vsel %vm4103_vm5, %v4159_v19, %v4160_v63  ;;  %v11866_v9 = vpop.permute.xlu1 %6207  ;;  %v4165_v1 = vrot.slane %v11769_v59, 1  ;;  %v4164_v36 = vrot.slane %v11775_v61, 1 }
 0x528   :  { %v8261_v29 = vpop.f32.mrb[136].mxu0  ;;  %v4576_v54 = vrot.slane %v11738_v0, 2  ;;  %13871 = vst [vmem:[#allocation110_spill] sm:$0xff] %v11866_v9 }
 0x529   :  { %v11855_v43 = vadd.f32 %v8261_v29, %v11341_v8  ;;  %v3758_v27 = vpop.f32.mrb[137].mxu0  ;;  %v4579_v8 = vrot.slane %v11756_v28, 2  ;;  %v4582_v28 = vrot.slane %v11769_v59, 2 }
 0x52a   :  { %v11859_v53 = vadd.f32 %v3758_v27, %v11339_v33  ;;  %v4163_v27 = vsel %vm4103_vm5, %v4160_v63, %v4162_v34  ;;  %v4581_v63 = vrot.slane %v11775_v61, 2 }
 0x52b   :  { %4723 = vrot.lane.b32.xlu1 %v4575_v10, %s8532_s19  ;;  %4308 = vrot.lane.b32.xlu0 %v4161_v37, %s8533_s21  ;;  %v4578_v10 = vsel %vm4520_vm6, %v4576_v54, %v4577_v30  ;;  %v11879_v37 = vpop.permute.xlu0 %6163  ;;  %v4580_v54 = vsel %vm4520_vm6, %v4577_v30, %v4579_v8  ;;  %v11894_v9 = vpop.permute.xlu1 %6193  ;;  %v4170_v30 = vrot.slane %v11808_v4, 1 }
 0x52c   :  { %13870 = vst [vmem:[#allocation109_spill] sm:$0xff] %v11859_v53  ;;  %v8264_v48 = vpop.f32.mrb[138].mxu0  ;;  %13874 = vst [vmem:[#allocation113_spill] sm:$0xff] %v11879_v37 }
 0x52d   :  { %v11870_v29 = vadd.f32 %v8264_v48, %v11353_v50  ;;  %v3768_v33 = vpop.f32.mrb[139].mxu0  ;;  %13876 = vst [vmem:[#allocation115_spill] sm:$0xff] %v11894_v9 }
 0x52e   :  { %v11876_v19 = vadd.f32 %v3768_v33, %v11345_v23  ;;  %v4167_v23 = vrot.slane %v11789_v55, 1 }
 0x52f   :  { %13872 = vst [vmem:[#allocation111_spill] sm:$0xff] %v11870_v29  ;;  %4310 = vrot.lane.b32.xlu1 %v4163_v27, %s8533_s21  ;;  %4725 = vrot.lane.b32.xlu0 %v4578_v10, %s8532_s19  ;;  %v4166_v27 = vsel %vm4103_vm5, %v4164_v36, %v4165_v1  ;;  %v11898_v37 = vpop.permute.xlu0 %6221 }
 0x530   :  { %13873 = vst [vmem:[#allocation112_spill] sm:$0xff] %v11876_v19  ;;  %v8267_v50 = vpop.f32.mrb[140].mxu0  ;;  %13877 = vst [vmem:[#allocation116_spill] sm:$0xff] %v11898_v37  ;;  %v4168_v36 = vsel %vm4103_vm5, %v4165_v1, %v4167_v23  ;;  %v4587_v1 = vrot.slane %v11808_v4, 2  ;;  %v4589_v37 = vrot.slane %v11802_v24, 2 }
 0x531   :  { %v11886_v48 = vadd.f32 %v8267_v50, %v11370_v44  ;;  %v3778_v34 = vpop.f32.mrb[141].mxu0 }
 0x532   :  { %v11890_v33 = vadd.f32 %v3778_v34, %v11359_v38  ;;  %v4583_v38 = vsel %vm4520_vm6, %v4581_v63, %v4582_v28  ;;  %v4584_v34 = vrot.slane %v11789_v55, 2  ;;  %v11915_v63 = vpop.permute.xlu1 %6223  ;;  %v4172_v55 = vrot.slane %v11802_v24, 1 }
 0x533   :  { %13875 = vst [vmem:[#allocation114_spill] sm:$0xff] %v11886_v48  ;;  %4727 = vrot.lane.b32.xlu1 %v4580_v54, %s8532_s19  ;;  %4312 = vrot.lane.b32.xlu0 %v4166_v27, %s8533_s21  ;;  %13879 = vst [vmem:[#allocation118_spill] sm:$0xff] %v11915_v63 }
 0x534   :  { %v8270_v10 = vpop.f32.mrb[142].mxu0 }
 0x535   :  { %v11901_v44 = vadd.f32 %v8270_v10, %v11374_v20  ;;  %v3788_v50 = vpop.f32.mrb[143].mxu0  ;;  %v4169_v20 = vrot.slane %v11785_v49, 1 }
 0x536   :  { %v11907_v8 = vadd.f32 %v3788_v50, %v11372_v6  ;;  %v4585_v50 = vsel %vm4520_vm6, %v4582_v28, %v4584_v34  ;;  %v4173_v34 = vsel %vm4103_vm5, %v4170_v30, %v4172_v55  ;;  %v4591_v55 = vrot.slane %v11824_v26, 2 }
 0x537   :  { %v11910_v54 = vpop.f32.mrb[130].mxu1  ;;  %4314 = vrot.lane.b32.xlu1 %v4168_v36, %s8533_s21  ;;  %4729 = vrot.lane.b32.xlu0 %v4583_v38, %s8532_s19  ;;  %v4171_v38 = vsel %vm4103_vm5, %v4169_v20, %v4170_v30  ;;  %v11927_v36 = vpop.permute.xlu0 %6179  ;;  %v4175_v20 = vrot.slane %v11820_v14, 1 }
 0x538   :  { %13878 = vst [vmem:[#allocation117_spill] sm:$0xff] %v11907_v8  ;;  %v3375_v27 = vpop.f32.mrb[131].mxu1  ;;  %v8273_v10 = vpop.f32.mrb[144].mxu0  ;;  %13882 = vst [vmem:[#allocation121_spill] sm:$0xff] %v11927_v36  ;;  %v4607_v61 = vrot.slane %v11907_v8, 2 }
 0x539   :  { %v11919_v9 = vadd.f32 %v8273_v10, %v11391_v17  ;;  %v3798_v6 = vpop.f32.mrb[145].mxu0  ;;  %v4586_v17 = vrot.slane %v11785_v49, 2  ;;  %v11945_v36 = vpop.permute.xlu1 %6209  ;;  %v4190_v49 = vrot.slane %v11907_v8, 1  ;;  %v4609_v8 = vrot.slane %v11901_v44, 2 }
 0x53a   :  { %v11923_v23 = vadd.f32 %v3798_v6, %v11385_v21  ;;  %v4174_v6 = vrot.slane %v11824_v26, 1  ;;  %13884 = vst [vmem:[#allocation123_spill] sm:$0xff] %v11945_v36 }
 0x53b   :  { %13880 = vst [vmem:[#allocation119_spill] sm:$0xff] %v11919_v9  ;;  %v11929_v27 = vpop.f32.mrb[132].mxu1  ;;  %4731 = vrot.lane.b32.xlu1 %v4585_v50, %s8532_s19  ;;  %4316 = vrot.lane.b32.xlu0 %v4171_v38, %s8533_s21  ;;  %v4588_v38 = vsel %vm4520_vm6, %v4586_v17, %v4587_v1  ;;  %v11951_v30 = vpop.permute.xlu0 %6237  ;;  %v4610_v45 = vsel %vm4520_vm6, %v4607_v61, %v4609_v8  ;;  %v13902_v8 = vld [vmem:[#allocation85_spill] sm:$0xff] }
 0x53c   :  { %13881 = vst [vmem:[#allocation120_spill] sm:$0xff] %v11923_v23  ;;  %v3380_v10 = vpop.f32.mrb[133].mxu1  ;;  %v8276_v63 = vpop.f32.mrb[146].mxu0  ;;  %13885 = vst [vmem:[#allocation124_spill] sm:$0xff] %v11951_v30 }
 0x53d   :  { %v11936_v21 = vadd.f32 %v8276_v63, %v11405_v12  ;;  %v3808_v28 = vpop.f32.mrb[147].mxu0  ;;  %v4592_v63 = vrot.slane %v11820_v14, 2 }
 0x53e   :  { %v11942_v50 = vadd.f32 %v3808_v28, %v11394_v31  ;;  %v4177_v28 = vrot.slane %v11841_v18, 1 }
 0x53f   :  { %13883 = vst [vmem:[#allocation122_spill] sm:$0xff] %v11936_v21  ;;  %v11947_v10 = vpop.f32.mrb[134].mxu1  ;;  %4318 = vrot.lane.b32.xlu1 %v4173_v34, %s8533_s21  ;;  %4733 = vrot.lane.b32.xlu0 %v4588_v38, %s8532_s19  ;;  %v4590_v34 = vsel %vm4520_vm6, %v4587_v1, %v4589_v37  ;;  %v4176_v38 = vsel %vm4103_vm5, %v4174_v6, %v4175_v20  ;;  %v4180_v37 = vrot.slane %v11859_v53, 1 }
 0x540   :  { %v3385_v12 = vpop.f32.mrb[135].mxu1  ;;  %v8279_v24 = vpop.f32.mrb[148].mxu0  ;;  %v4178_v6 = vsel %vm4103_vm5, %v4175_v20, %v4177_v28  ;;  %v4597_v20 = vrot.slane %v11859_v53, 2  ;;  %v4599_v53 = vrot.slane %v11855_v43, 2 }
 0x541   :  { %v11956_v31 = vadd.f32 %v8279_v24, %v11414_v47  ;;  %v3818_v17 = vpop.f32.mrb[149].mxu0  ;;  %v11966_v12 = vpop.permute.xlu1 %6239 }
 0x542   :  { %v11960_v36 = vadd.f32 %v3818_v17, %v11411_v11  ;;  %13887 = vst [vmem:[#allocation126_spill] sm:$0xff] %v11966_v12  ;;  %v4593_v11 = vsel %vm4520_vm6, %v4591_v55, %v4592_v63  ;;  %v4594_v17 = vrot.slane %v11841_v18, 2  ;;  %v4182_v55 = vrot.slane %v11855_v43, 1 }
 0x543   :  { %4735 = vrot.lane.b32.xlu1 %v4590_v34, %s8532_s19  ;;  %4320 = vrot.lane.b32.xlu0 %v4176_v38, %s8533_s21 }
 0x544   :  { %13886 = vst [vmem:[#allocation125_spill] sm:$0xff] %v11960_v36  ;;  %v8282_v30 = vpop.f32.mrb[150].mxu0 }
 0x545   :  { %v11969_v47 = vadd.f32 %v8282_v30, %v11446_v56  ;;  %v3828_v24 = vpop.f32.mrb[151].mxu0  ;;  %v11971_v41 = vpop.permute.xlu0 %4264  ;;  %v4179_v56 = vrot.slane %v11835_v58, 1 }
 0x546   :  { %v11977_v1 = vadd.f32 %v3828_v24, %v11442_v42 }
 0x547   :  { %13888 = vst [vmem:[#allocation127_spill] sm:$0xff] %v11969_v47  ;;  %v11980_v34 = vpop.f32.mrb[136].mxu1  ;;  %4322 = vrot.lane.b32.xlu1 %v4178_v6, %s8533_s21  ;;  %4737 = vrot.lane.b32.xlu0 %v4593_v11, %s8532_s19  ;;  %v4595_v11 = vsel %vm4520_vm6, %v4592_v63, %v4594_v17  ;;  %v4181_v6 = vsel %vm4103_vm5, %v4179_v56, %v4180_v37  ;;  %v4185_v17 = vrot.slane %v11870_v29, 1  ;;  %v4184_v56 = vrot.slane %v11876_v19, 1 }
 0x548   :  { %13889 = vst [vmem:[#allocation128_spill] sm:$0xff] %v11977_v1  ;;  %v3390_v30 = vpop.f32.mrb[137].mxu1  ;;  %v8285_v38 = vpop.f32.mrb[152].mxu0  ;;  %v4183_v63 = vsel %vm4103_vm5, %v4180_v37, %v4182_v55  ;;  %v4602_v37 = vrot.slane %v11870_v29, 2  ;;  %v4601_v55 = vrot.slane %v11876_v19, 2 }
 0x549   :  { %v11987_v18 = vadd.f32 %v8285_v38, %v11473_v5  ;;  %v3838_v12 = vpop.f32.mrb[153].mxu0  ;;  %v11989_v42 = vpop.permute.xlu1 %4266  ;;  %v4596_v5 = vrot.slane %v11835_v58, 2 }
 0x54a   :  { %v11993_v28 = vadd.f32 %v3838_v12, %v11450_v40  ;;  %v11995_v24 = vpop.permute.xlu0 %4681 }
 0x54b   :  { %13890 = vst [vmem:[#allocation129_spill] sm:$0xff] %v11987_v18  ;;  %v11999_v30 = vpop.f32.mrb[138].mxu1  ;;  %4739 = vrot.lane.b32.xlu1 %v4595_v11, %s8532_s19  ;;  %4324 = vrot.lane.b32.xlu0 %v4181_v6, %s8533_s21 }
 0x54c   :  { %v3395_v38 = vpop.f32.mrb[139].mxu1  ;;  %v8288_v4 = vpop.f32.mrb[154].mxu0 }
 0x54d   :  { %v12006_v40 = vadd.f32 %v8288_v4, %v11485_v57  ;;  %v3848_v12 = vpop.f32.mrb[155].mxu0  ;;  %v12008_v59 = vpop.permute.xlu1 %4683  ;;  %v4598_v38 = vsel %vm4520_vm6, %v4596_v5, %v4597_v20  ;;  %v4187_v5 = vrot.slane %v11890_v33, 1 }
 0x54e   :  { %v12014_v11 = vadd.f32 %v3848_v12, %v11479_v13  ;;  %v12016_v6 = vpop.permute.xlu0 %4268 }
 0x54f   :  { %v12019_v43 = vpop.f32.mrb[140].mxu1  ;;  %4326 = vrot.lane.b32.xlu1 %v4183_v63, %s8533_s21  ;;  %4741 = vrot.lane.b32.xlu0 %v4598_v38, %s8532_s19  ;;  %v4600_v38 = vsel %vm4520_vm6, %v4597_v20, %v4599_v53 }
 0x550   :  { %13891 = vst [vmem:[#allocation130_spill] sm:$0xff] %v12014_v11  ;;  %v3400_v57 = vpop.f32.mrb[141].mxu1  ;;  %v8291_v4 = vpop.f32.mrb[156].mxu0 }
 0x551   :  { %v12026_v58 = vadd.f32 %v8291_v4, %v11513_v25  ;;  %v3858_v13 = vpop.f32.mrb[157].mxu0  ;;  %v12028_v12 = vpop.permute.xlu1 %4270  ;;  %v4186_v57 = vsel %vm4103_vm5, %v4184_v56, %v4185_v17  ;;  %v4188_v56 = vsel %vm4103_vm5, %v4185_v17, %v4187_v5 }
 0x552   :  { %v12032_v14 = vadd.f32 %v3858_v13, %v11501_v32  ;;  %v12034_v63 = vpop.permute.xlu0 %4685  ;;  %v4603_v32 = vsel %vm4520_vm6, %v4601_v55, %v4602_v37  ;;  %v4604_v13 = vrot.slane %v11890_v33, 2  ;;  %v4192_v33 = vrot.slane %v11901_v44, 1 }
 0x553   :  { %13892 = vst [vmem:[#allocation131_spill] sm:$0xff] %v12026_v58  ;;  %4743 = vrot.lane.b32.xlu1 %v4600_v38, %s8532_s19  ;;  %4328 = vrot.lane.b32.xlu0 %v4186_v57, %s8533_s21 }
 0x554   :  { %13893 = vst [vmem:[#allocation132_spill] sm:$0xff] %v12032_v14  ;;  %v8294_v25 = vpop.f32.mrb[158].mxu0 }
 0x555   :  { %v12041_v4 = vadd.f32 %v8294_v25, %v11556_v16  ;;  %v3868_v19 = vpop.f32.mrb[159].mxu0  ;;  %v12043_v29 = vpop.permute.xlu1 %4687  ;;  %v4189_v16 = vrot.slane %v11886_v48, 1 }
 0x556   :  { %v12049_v53 = vadd.f32 %v3868_v19, %v11525_v3  ;;  %v12051_v20 = vpop.permute.xlu0 %4272 }
 0x557   :  { %13894 = vst [vmem:[#allocation133_spill] sm:$0xff] %v12041_v4  ;;  %v12054_v38 = vpop.f32.mrb[142].mxu1  ;;  %4330 = vrot.lane.b32.xlu1 %v4188_v56, %s8533_s21  ;;  %4745 = vrot.lane.b32.xlu0 %v4603_v32, %s8532_s19  ;;  %v4605_v32 = vsel %vm4520_vm6, %v4602_v37, %v4604_v13  ;;  %v4191_v56 = vsel %vm4103_vm5, %v4189_v16, %v4190_v49  ;;  %v4195_v13 = vrot.slane %v11919_v9, 1  ;;  %v4194_v16 = vrot.slane %v11923_v23, 1 }
 0x558   :  { %v3405_v55 = vpop.f32.mrb[143].mxu1  ;;  %v8297_v57 = vpop.f32.mrb[160].mxu0  ;;  %v4193_v37 = vsel %vm4103_vm5, %v4190_v49, %v4192_v33  ;;  %v13898_v49 = vld [vmem:[#allocation79_spill] sm:$0xff] }
 0x559   :  { %v12061_v25 = vadd.f32 %v8297_v57, %v11587_v52  ;;  %v3878_v3 = vpop.f32.mrb[161].mxu0  ;;  %v4275_v19 = vpop.permute.xlu1 %4274  ;;  %v4606_v52 = vrot.slane %v11886_v48, 2 }
 0x55a   :  { %v12065_v17 = vadd.f32 %v3878_v3, %v11571_v35  ;;  %v12067_v5 = vpop.permute.xlu0 %4689  ;;  %v4461_v44 = vadd.f32 %v4275_v19, %v13898_v49  ;;  %v4196_v49 = vsel %vm4103_vm5, %v4194_v16, %v4195_v13 }
 0x55b   :  { %v12071_v55 = vpop.f32.mrb[144].mxu1  ;;  %4747 = vrot.lane.b32.xlu1 %v4605_v32, %s8532_s19  ;;  %4332 = vrot.lane.b32.xlu0 %v4191_v56, %s8533_s21 }
 0x55c   :  { %13895 = vst [vmem:[#allocation134_spill] sm:$0xff] %v12065_v17  ;;  %v3410_v57 = vpop.f32.mrb[145].mxu1  ;;  %v8300_v51 = vpop.f32.mrb[162].mxu0 }
 0x55d   :  { %v12078_v35 = vadd.f32 %v8300_v51, %v11637_v22  ;;  %v3888_v3 = vpop.f32.mrb[163].mxu0  ;;  %v4692_v60 = vpop.permute.xlu1 %4691  ;;  %v4608_v57 = vsel %vm4520_vm6, %v4606_v52, %v4607_v61  ;;  %v4612_v22 = vrot.slane %v11919_v9, 2  ;;  %v4611_v51 = vrot.slane %v11923_v23, 2  ;;  %v13900_v9 = vld [vmem:[#allocation91_spill] sm:$0xff]  ;;  %v13901_v61 = vld [vmem:[#allocation77_spill] sm:$0xff] }
 0x55e   :  { %v12084_v32 = vadd.f32 %v3888_v3, %v11619_v7  ;;  %v12086_v56 = vpop.permute.xlu0 %4276  ;;  %v4197_v7 = vrot.slane %v11942_v50, 1  ;;  %v12103_v2 = vadd.f32 %v4692_v60, %v4461_v44  ;;  %v4614_v44 = vrot.slane %v11942_v50, 2 }
 0x55f   :  { %13896 = vst [vmem:[#allocation135_spill] sm:$0xff] %v12078_v35  ;;  %v12089_v48 = vpop.f32.mrb[146].mxu1  ;;  %4334 = vrot.lane.b32.xlu1 %v4193_v37, %s8533_s21  ;;  %4749 = vrot.lane.b32.xlu0 %v4608_v57, %s8532_s19  ;;  %v13899_v37 = vld [vmem:[#allocation24_spill] sm:$0xff] }
 0x560   :  { %13897 = vst [vmem:[#allocation136_spill] sm:$0xff] %v12084_v32  ;;  %v3415_v33 = vpop.f32.mrb[147].mxu1  ;;  %v8303_v26 = vpop.f32.mrb[164].mxu0  ;;  %v4457_v57 = vadd.f32 %v11989_v42, %v13899_v37 }
 0x561   :  { %v12098_v3 = vadd.f32 %v8303_v26, %v11810_v39  ;;  %v3898_v52 = vpop.f32.mrb[165].mxu0  ;;  %v4279_v46 = vpop.permute.xlu1 %4278  ;;  %v4459_v26 = vadd.f32 %v12028_v12, %v13901_v61  ;;  %v4200_v33 = vrot.slane %v11960_v36, 1 }
 0x562   :  { %v12106_v23 = vadd.f32 %v3898_v52, %v13900_v9  ;;  %v12108_v19 = vpop.permute.xlu0 %4693  ;;  %v12114_v39 = vadd.f32 %v12008_v59, %v4457_v57  ;;  %v4463_v60 = vadd.f32 %v4279_v46, %v13902_v8  ;;  %v4613_v9 = vsel %vm4520_vm6, %v4611_v51, %v4612_v22 }
 0x563   :  { %4751 = vrot.lane.b32.xlu1 %v4610_v45, %s8532_s19  ;;  %4336 = vrot.lane.b32.xlu0 %v4196_v49, %s8533_s21  ;;  %v4198_v59 = vsel %vm4103_vm5, %v4195_v13, %v4197_v7  ;;  %v12127_v37 = vadd.f32 %v12043_v29, %v4459_v26  ;;  %v4199_v29 = vrot.slane %v11936_v21, 1  ;;  %v4617_v49 = vrot.slane %v11960_v36, 2 }
 0x564   :  { %v8306_v42 = vpop.f32.mrb[166].mxu0  ;;  %v6608_v46 = vcombine.high %v12114_v39, %v12103_v2  ;;  %v4615_v8 = vsel %vm4520_vm6, %v4612_v22, %v4614_v44  ;;  %v4616_v22 = vrot.slane %v11936_v21, 2 }
 0x565   :  { %v12123_v16 = vadd.f32 %v8306_v42, %v11843_v62  ;;  %v3908_v45 = vpop.f32.mrb[167].mxu0  ;;  %v4696_v52 = vpop.permute.xlu1 %4695 }
 0x566   :  { %v12132_v12 = vadd.f32 %v3908_v45, %v11826_v15  ;;  %v12134_v51 = vadd.f32 %v4696_v52, %v4463_v60  ;;  %v12136_v50 = vpop.permute.xlu0 %4280  ;;  %v12138_v57 = vpop.f32.mrb[148].mxu1  ;;  %v4202_v15 = vrot.slane %v11956_v31, 1  ;;  %v13904_v60 = vld [vmem:[#allocation69_spill] sm:$0xff] }
 0x567   :  { %13903 = vst [vmem:[#allocation79_spill] sm:$0xff] %v12123_v16  ;;  %v3420_v62 = vpop.f32.mrb[149].mxu1  ;;  %4338 = vrot.lane.b32.xlu1 %v4198_v59, %s8533_s21  ;;  %4753 = vrot.lane.b32.xlu0 %v4613_v9, %s8532_s19  ;;  %v12151_v42 = vrot.slane %v6608_v46, %v13904_v60  ;;  %v4619_v46 = vrot.slane %v11956_v31, 2  ;;  %v4618_v31 = vsel %vm4520_vm6, %v4616_v22, %v4617_v49 }
 0x568   :  { %v6624_v13 = vcombine.high %v12127_v37, %v12134_v51  ;;  %v8309_v7 = vpop.f32.mrb[168].mxu0  ;;  %v4201_v62 = vsel %vm4103_vm5, %v4199_v29, %v4200_v33 }
 0x569   :  { %v3918_v61 = vpop.f32.mrb[169].mxu0  ;;  %v12147_v26 = vpop.permute.xlu1 %4282  ;;  %v12157_v45 = vadd.f32 %v8309_v7, %v11929_v27 }
 0x56a   :  { %v12154_v9 = vrot.slane %v6624_v13, %v13904_v60  ;;  %v12159_v52 = vpop.permute.xlu0 %4697  ;;  %v12161_v59 = vpop.f32.mrb[150].mxu1  ;;  %v12165_v36 = vadd.f32 %v3918_v61, %v11910_v54  ;;  %v4205_v13 = vrot.slane %v11969_v47, 1  ;;  %v4203_v54 = vsel %vm4103_vm5, %v4200_v33, %v4202_v15 }
 0x56b   :  { %v3425_v16 = vpop.f32.mrb[151].mxu1  ;;  %4755 = vrot.lane.b32.xlu1 %v4615_v8, %s8532_s19  ;;  %4340 = vrot.lane.b32.xlu0 %v4201_v62, %s8533_s21  ;;  %v4622_v15 = vrot.slane %v11969_v47, 2 }
 0x56c   :  { %v8312_v44 = vpop.f32.mrb[170].mxu0  ;;  %v4204_v16 = vrot.slane %v11977_v1, 1 }
 0x56d   :  { %v3928_v7 = vpop.f32.mrb[171].mxu0  ;;  %v12174_v29 = vpop.permute.xlu1 %4699  ;;  %v12179_v61 = vadd.f32 %v8312_v44, %v11980_v34  ;;  %v4621_v34 = vrot.slane %v11977_v1, 2 }
 0x56e   :  { %v12182_v8 = vadd.f32 %v3928_v7, %v11947_v10  ;;  %v12184_v62 = vpop.permute.xlu0 %4284  ;;  %v12186_v27 = vpop.f32.mrb[152].mxu1  ;;  %v4206_v47 = vsel %vm4103_vm5, %v4204_v16, %v4205_v13  ;;  %v4210_v16 = vrot.slane %v12014_v11, 1 }
 0x56f   :  { %13905 = vst [vmem:[#allocation24_spill] sm:$0xff] %v12179_v61  ;;  %v3430_v21 = vpop.f32.mrb[153].mxu1  ;;  %4342 = vrot.lane.b32.xlu1 %v4203_v54, %s8533_s21  ;;  %4757 = vrot.lane.b32.xlu0 %v4618_v31, %s8532_s19  ;;  %v4207_v61 = vrot.slane %v11993_v28, 1  ;;  %v4620_v31 = vsel %vm4520_vm6, %v4617_v49, %v4619_v46 }
 0x570   :  { %13906 = vst [vmem:[#allocation91_spill] sm:$0xff] %v12182_v8  ;;  %v8315_v33 = vpop.f32.mrb[172].mxu0 }
 0x571   :  { %v12194_v44 = vadd.f32 %v8315_v33, %v12019_v43  ;;  %v3938_v10 = vpop.f32.mrb[173].mxu0  ;;  %v12196_v7 = vpop.permute.xlu1 %4286  ;;  %v13909_v43 = vld [vmem:[#allocation29_spill] sm:$0xff] }
 0x572   :  { %v12200_v22 = vadd.f32 %v3938_v10, %v11999_v30  ;;  %v12202_v21 = vpop.permute.xlu0 %4701  ;;  %v12204_v54 = vpop.f32.mrb[154].mxu1  ;;  %v4456_v33 = vadd.f32 %v11971_v41, %v13909_v43  ;;  %v4624_v30 = vrot.slane %v11993_v28, 2  ;;  %v13910_v10 = vld [vmem:[#allocation80_spill] sm:$0xff] }
 0x573   :  { %13907 = vst [vmem:[#allocation77_spill] sm:$0xff] %v12194_v44  ;;  %v3435_v1 = vpop.f32.mrb[155].mxu1  ;;  %4759 = vrot.lane.b32.xlu1 %v4620_v31, %s8532_s19  ;;  %4344 = vrot.lane.b32.xlu0 %v4206_v47, %s8533_s21  ;;  %v13912_v47 = vld [vmem:[#allocation82_spill] sm:$0xff] }
 0x574   :  { %13908 = vst [vmem:[#allocation85_spill] sm:$0xff] %v12200_v22  ;;  %v8318_v44 = vpop.f32.mrb[174].mxu0  ;;  %v4460_v22 = vadd.f32 %v12051_v20, %v13910_v10  ;;  %v4623_v1 = vsel %vm4520_vm6, %v4621_v34, %v4622_v15  ;;  %v4462_v31 = vadd.f32 %v12086_v56, %v13912_v47  ;;  %v4208_v20 = vsel %vm4103_vm5, %v4205_v13, %v4207_v61 }
 0x575   :  { %v12216_v8 = vadd.f32 %v8318_v44, %v12071_v55  ;;  %v3948_v49 = vpop.f32.mrb[175].mxu0  ;;  %v12218_v46 = vpop.permute.xlu1 %4703  ;;  %v4209_v34 = vrot.slane %v11987_v18, 1  ;;  %v4873_v10 = vadd.f32 %v11995_v24, %v4456_v33  ;;  %v4212_v47 = vrot.slane %v12006_v40, 1 }
 0x576   :  { %v12225_v41 = vadd.f32 %v3948_v49, %v12054_v38  ;;  %v4289_v28 = vpop.permute.xlu0 %4288  ;;  %v3438_v43 = vpop.f32.mrb[156].mxu1  ;;  %v4877_v55 = vadd.f32 %v12067_v5, %v4460_v22  ;;  %v4879_v38 = vadd.f32 %v12108_v19, %v4462_v31  ;;  %v4629_v13 = vrot.slane %v12006_v40, 2 }
 0x577   :  { %13911 = vst [vmem:[#allocation69_spill] sm:$0xff] %v12216_v8  ;;  %v3440_v44 = vpop.f32.mrb[157].mxu1  ;;  %4346 = vrot.lane.b32.xlu1 %v4208_v20, %s8533_s21  ;;  %4761 = vrot.lane.b32.xlu0 %v4623_v1, %s8532_s19  ;;  %v13914_v8 = vld [vmem:[#allocation30_spill] sm:$0xff]  ;;  %v4625_v1 = vsel %vm4520_vm6, %v4622_v15, %v4624_v30  ;;  %v4627_v20 = vrot.slane %v12014_v11, 2  ;;  %v4211_v33 = vsel %vm4103_vm5, %v4209_v34, %v4210_v16 }
 0x578   :  { %13913 = vst [vmem:[#allocation29_spill] sm:$0xff] %v12225_v41  ;;  %v4458_v56 = vadd.f32 %v12016_v6, %v13914_v8  ;;  %v8321_v49 = vpop.f32.mrb[176].mxu0  ;;  %v6335_v40 = vcombine.low %v4873_v10, %v4877_v55  ;;  %v6336_v15 = vcombine.high %v4873_v10, %v4877_v55  ;;  %v4213_v34 = vsel %vm4103_vm5, %v4210_v16, %v4212_v47 }
 0x579   :  { %v12239_v5 = vadd.f32 %v8321_v49, %v12138_v57  ;;  %v3958_v61 = vpop.f32.mrb[177].mxu0  ;;  %v4291_v22 = vpop.permute.xlu1 %4290  ;;  %v4626_v57 = vrot.slane %v11987_v18, 2  ;;  %v4630_v55 = vsel %vm4520_vm6, %v4627_v20, %v4629_v13  ;;  %v13919_v13 = vld [vmem:[#allocation57_spill] sm:$0xff] }
 0x57a   :  { %v4875_v24 = vadd.f32 %v12034_v63, %v4458_v56  ;;  %v12245_v6 = vadd.f32 %v3958_v61, %v12089_v48  ;;  %v4706_v19 = vpop.permute.xlu0 %4705  ;;  %v12247_v8 = vpop.f32.mrb[158].mxu1  ;;  %v13916_v63 = vld [vmem:[#allocation56_spill] sm:$0xff]  ;;  %v12264_v10 = vrot.slane %v6335_v40, %v13904_v60 }
 0x57b   :  { %13915 = vst [vmem:[#allocation80_spill] sm:$0xff] %v12239_v5  ;;  %v3445_v31 = vpop.f32.mrb[159].mxu1  ;;  %4763 = vrot.lane.b32.xlu1 %v4625_v1, %s8532_s19  ;;  %4348 = vrot.lane.b32.xlu0 %v4211_v33, %s8533_s21  ;;  %v4468_v56 = vadd.f32 %v4289_v28, %v13916_v63  ;;  %v4628_v18 = vsel %vm4520_vm6, %v4626_v57, %v4627_v20  ;;  %v13918_v28 = vld [vmem:[#allocation87_spill] sm:$0xff] }
 0x57c   :  { %v6351_v30 = vcombine.low %v4875_v24, %v4879_v38  ;;  %v8324_v44 = vpop.f32.mrb[178].mxu0  ;;  %v6352_v11 = vcombine.high %v4875_v24, %v4879_v38  ;;  %v6607_v38 = vcombine.low %v12114_v39, %v12103_v2  ;;  %v4469_v20 = vadd.f32 %v4291_v22, %v13919_v13  ;;  %v13921_v57 = vld [vmem:[#allocation59_spill] sm:$0xff] }
 0x57d   :  { %v12255_v48 = vadd.f32 %v8324_v44, %v12186_v27  ;;  %v3968_v49 = vpop.f32.mrb[179].mxu0  ;;  %v4708_v61 = vpop.permute.xlu1 %4707  ;;  %v4464_v27 = vadd.f32 %v12136_v50, %v13918_v28  ;;  %v4885_v44 = vadd.f32 %v4706_v19, %v4468_v56  ;;  %v13920_v19 = vld [vmem:[#allocation52_spill] sm:$0xff] }
 0x57e   :  { %v12259_v31 = vadd.f32 %v3968_v49, %v12161_v59  ;;  %v4293_v1 = vpop.permute.xlu0 %4292  ;;  %v3448_v33 = vpop.f32.mrb[160].mxu1  ;;  %v12271_v59 = vrot.slane %v6336_v15, %v13904_v60  ;;  %v12276_v47 = vrot.slane %v6351_v30, %v13904_v60  ;;  %v4466_v40 = vadd.f32 %v12184_v62, %v13920_v19 }
 0x57f   :  { %4350 = vrot.lane.b32.xlu1 %v4213_v34, %s8533_s21  ;;  %v3450_v16 = vpop.f32.mrb[161].mxu1  ;;  %4765 = vrot.lane.b32.xlu0 %v4628_v18, %s8532_s19  ;;  %v4881_v50 = vadd.f32 %v12159_v52, %v4464_v27  ;;  %v4470_v63 = vadd.f32 %v4293_v1, %v13921_v57  ;;  %v12286_v49 = vrot.slane %v6352_v11, %v13904_v60  ;;  %v13923_v34 = vld [vmem:[#allocation48_spill] sm:$0xff] }
 0x580   :  { %13917 = vst [vmem:[#allocation82_spill] sm:$0xff] %v12259_v31  ;;  %v8327_v24 = vpop.f32.mrb[180].mxu0  ;;  %v4465_v30 = vadd.f32 %v12147_v26, %v13923_v34  ;;  %v4886_v28 = vadd.f32 %v4708_v61, %v4469_v20  ;;  %v6623_v62 = vcombine.low %v12127_v37, %v12134_v51  ;;  %v6399_v13 = vcombine.low %v12264_v10, %v12276_v47  ;;  %v13925_v61 = vld [vmem:[#allocation55_spill] sm:$0xff]  ;;  %v13926_v20 = vld [vmem:[#allocation61_spill] sm:$0xff] }
 0x581   :  { %v12283_v18 = vadd.f32 %v8327_v24, %v3438_v43  ;;  %v4295_v15 = vpop.permute.xlu1 %4294  ;;  %v3978_v56 = vpop.f32.mrb[181].mxu0  ;;  %v4883_v43 = vadd.f32 %v12202_v21, %v4466_v40  ;;  %v6367_v1 = vcombine.low %v4881_v50, %v4885_v44  ;;  %v6368_v57 = vcombine.high %v4881_v50, %v4885_v44 }
 0x582   :  { %v12291_v22 = vadd.f32 %v3978_v56, %v12204_v54  ;;  %v4710_v52 = vpop.permute.xlu0 %4709  ;;  %v3453_v27 = vpop.f32.mrb[162].mxu1  ;;  %v4882_v26 = vadd.f32 %v12174_v29, %v4465_v30  ;;  %v4467_v54 = vadd.f32 %v12196_v7, %v13925_v61  ;;  %v4471_v24 = vadd.f32 %v4295_v15, %v13926_v20 }
 0x583   :  { %13922 = vst [vmem:[#allocation30_spill] sm:$0xff] %v12283_v18  ;;  %v4887_v16 = vadd.f32 %v4710_v52, %v4470_v63  ;;  %4767 = vrot.lane.b32.xlu1 %v4630_v55, %s8532_s19  ;;  %v3455_v11 = vpop.f32.mrb[163].mxu1  ;;  %v6400_v15 = vcombine.high %v12264_v10, %v12276_v47  ;;  %v6375_v44 = vrot.slane %v6367_v1, %v13904_v60 }
 0x584   :  { %13924 = vst [vmem:[#allocation56_spill] sm:$0xff] %v12291_v22  ;;  %v8330_v19 = vpop.f32.mrb[182].mxu0  ;;  %v4884_v55 = vadd.f32 %v12218_v46, %v4467_v54  ;;  %v6640_v56 = vcombine.high %v4882_v26, %v4886_v28  ;;  %v6416_v46 = vcombine.high %v12271_v59, %v12286_v49  ;;  %v12319_v61 = vrot.slane %v6623_v62, %v13904_v60 }
 0x585   :  { %v6383_v37 = vcombine.low %v4883_v43, %v4887_v16  ;;  %v6384_v51 = vcombine.high %v4883_v43, %v4887_v16  ;;  %v12303_v21 = vadd.f32 %v8330_v19, %v3448_v33  ;;  %v4712_v40 = vpop.permute.xlu1 %4711  ;;  %v3988_v63 = vpop.f32.mrb[183].mxu0  ;;  %v6639_v43 = vcombine.low %v4882_v26, %v4886_v28 }
 0x586   :  { %v4888_v34 = vadd.f32 %v4712_v40, %v4471_v24  ;;  %v12307_v52 = vadd.f32 %v3988_v63, %v12247_v8  ;;  %v12309_v29 = vpop.permute.xlu0 %4296  ;;  %v3458_v7 = vpop.f32.mrb[164].mxu1  ;;  %v6382_v54 = vrot.slane %v6368_v57, %v13904_v60  ;;  %v12325_v24 = vrot.slane %v6640_v56, %v13904_v60  ;;  %v13930_v57 = vld [vmem:[#allocation70_spill] sm:$0xff] }
 0x587   :  { %13927 = vst [vmem:[#allocation87_spill] sm:$0xff] %v12303_v21  ;;  %v6391_v33 = vrot.slane %v6383_v37, %v13904_v60  ;;  %v6398_v50 = vrot.slane %v6384_v51, %v13904_v60  ;;  %v3460_v30 = vpop.f32.mrb[165].mxu1  ;;  %v6430_v2 = vrot.slane %v6416_v46, %v13930_v57  ;;  %v4217_v46 = vrot.slane %v12049_v53, 1 }
 0x588   :  { %v6655_v16 = vcombine.low %v4884_v55, %v4888_v34  ;;  %v6656_v8 = vcombine.high %v4884_v55, %v4888_v34  ;;  %v8333_v11 = vpop.f32.mrb[184].mxu0  ;;  %v6647_v55 = vrot.slane %v6639_v43, %v13904_v60  ;;  %v6414_v34 = vrot.slane %v6400_v15, %v13930_v57 }
 0x589   :  { %v6431_v10 = vcombine.low %v6375_v44, %v6391_v33  ;;  %v6432_v47 = vcombine.high %v6375_v44, %v6391_v33  ;;  %v12322_v1 = vpop.permute.xlu1 %4298  ;;  %v3998_v20 = vpop.f32.mrb[185].mxu0  ;;  %v12331_v26 = vadd.f32 %v8333_v11, %v3458_v7  ;;  %v6448_v62 = vcombine.high %v6382_v54, %v6398_v50 }
 0x58a   :  { %v6663_v19 = vrot.slane %v6655_v16, %v13904_v60  ;;  %v12329_v28 = vrot.slane %v6656_v8, %v13904_v60  ;;  %v12333_v37 = vpop.permute.xlu0 %4713  ;;  %v12335_v51 = vadd.f32 %v3998_v20, %v3453_v27  ;;  %v12346_v7 = vrot.slane %v6399_v13, %v13930_v57 }
 0x58b   :  { %13928 = vst [vmem:[#allocation57_spill] sm:$0xff] %v12331_v26  ;;  %v6446_v40 = vrot.slane %v6432_v47, %v13930_v57  ;;  %v12339_v63 = vrot.slane %v6431_v10, %v13930_v57  ;;  %v6615_v27 = vrot.slane %v6607_v38, %v13904_v60  ;;  %v6447_v33 = vcombine.low %v6382_v54, %v6398_v50 }
 0x58c   :  { %13929 = vst [vmem:[#allocation52_spill] sm:$0xff] %v12335_v51  ;;  %v6720_v56 = vcombine.high %v12325_v24, %v12329_v28  ;;  %v6703_v30 = vcombine.low %v6647_v55, %v6663_v19  ;;  %v6462_v15 = vrot.slane %v6448_v62, %v13930_v57  ;;  %v6415_v13 = vcombine.low %v12271_v59, %v12286_v49 }
 0x58d   :  { %13931 = vst [vmem:[#allocation59_spill] sm:$0xff] %v12339_v63  ;;  %v12352_v44 = vpop.permute.xlu1 %4715  ;;  %v6466_v43 = vcombine.high %v6414_v34, %v6446_v40  ;;  %v6464_v8 = vcombine.high %v12346_v7, %v12339_v63  ;;  %v6671_v11 = vcombine.low %v6615_v27, %v12319_v61  ;;  %v6465_v54 = vcombine.low %v6414_v34, %v6446_v40 }
 0x58e   :  { %v12354_v16 = vpop.permute.xlu0 %4300  ;;  %v6470_v50 = vcombine.high %v6430_v2, %v6462_v15  ;;  %v6711_v10 = vrot.slane %v6703_v30, %v13930_v57  ;;  %v6455_v47 = vrot.slane %v6447_v33, %v13930_v57  ;;  %v6423_v49 = vrot.slane %v6415_v13, %v13930_v57 }
 0x58f   :  { %7459 = vrot.lane.b32.xlu0 %v6466_v43, %s8518_s11  ;;  %7427 = vrot.lane.b32.xlu1 %v6464_v8, %s8516_s17  ;;  %v6679_v59 = vrot.slane %v6671_v11, %v13930_v57  ;;  %v13932_v62 = vcombine.high %v12151_v42, %v12154_v9  ;;  %v12386_v34 = vrot.slane %v6720_v56, %v13930_v57  ;;  %v4641_v26 = vrot.slane %v12084_v32, 2 }
 0x590   :  { %v6704_v33 = vcombine.high %v6647_v55, %v6663_v19  ;;  %v6467_v8 = vcombine.low %v6423_v49, %v6455_v47  ;;  %v6468_v55 = vcombine.high %v6423_v49, %v6455_v47  ;;  %v4215_v47 = vrot.slane %v12026_v58, 1 }
 0x591   :  { %v12365_v39 = vpop.permute.xlu1 %4302  ;;  %v12383_v40 = vrot.slane %v13932_v62, %v13930_v57  ;;  %13934 = vst [vmem:[#allocation55_spill] sm:$0xff] %v12386_v34  ;;  %v6735_v43 = vcombine.low %v6679_v59, %v6711_v10  ;;  %v6736_v19 = vcombine.high %v6679_v59, %v6711_v10  ;;  %v6687_v10 = vcombine.low %v12151_v42, %v12154_v9 }
 0x592   :  { %v12367_v38 = vpop.permute.xlu0 %4717  ;;  %v6718_v62 = vrot.slane %v6704_v33, %v13930_v57  ;;  %v4636_v9 = vrot.slane %v12041_v4, 2 }
 0x593   :  { %7523 = vrot.lane.b32.xlu0 %v6470_v50, %s8525_s14  ;;  %7443 = vrot.lane.b32.xlu1 %v6465_v54, %s8517_s18  ;;  %13933 = vst [vmem:[#allocation48_spill] sm:$0xff] %v12383_v40  ;;  %v6672_v50 = vcombine.high %v6615_v27, %v12319_v61  ;;  %v6719_v61 = vcombine.low %v12325_v24, %v12329_v28  ;;  %v4637_v28 = vrot.slane %v12065_v17, 2  ;;  %v13936_v40 = vld [vmem:[#allocation47_spill] sm:$0xff] }
 0x594   :  { %v6695_v42 = vrot.slane %v6687_v10, %v13930_v57  ;;  %v4639_v10 = vrot.slane %v12061_v25, 2 }
 0x595   :  { %v12377_v20 = vpop.permute.xlu1 %4719  ;;  %v6686_v11 = vrot.slane %v6672_v50, %v13930_v57  ;;  %v6727_v24 = vrot.slane %v6719_v61, %v13930_v57 }
 0x596   :  { %v12388_v30 = vpop.permute.xlu0 %4304 }
 0x597   :  { %7539 = vrot.lane.b32.xlu0 %v6735_v43, %s8526_s20  ;;  %7475 = vrot.lane.b32.xlu1 %v6467_v8, %s8523_s23  ;;  %v6737_v43 = vcombine.low %v6686_v11, %v6718_v62  ;;  %v6469_v8 = vcombine.low %v6430_v2, %v6462_v15  ;;  %v6738_v33 = vcombine.high %v6686_v11, %v6718_v62  ;;  %v4220_v62 = vrot.slane %v12065_v17, 1 }
 0x598   :  { %v4218_v15 = vsel %vm4103_vm5, %v4215_v47, %v4217_v46  ;;  %v4638_v11 = vsel %vm4520_vm6, %v4636_v9, %v4637_v28 }
 0x599   :  { %v12397_v54 = vpop.permute.xlu1 %4306 }
 0x59a   :  { %v12399_v56 = vpop.permute.xlu0 %4721 }
 0x59b   :  { %7555 = vrot.lane.b32.xlu0 %v6736_v19, %s8527_s12  ;;  %7491 = vrot.lane.b32.xlu1 %v6468_v55, %s8524_s28  ;;  %v6739_v19 = vcombine.low %v6695_v42, %v6727_v24  ;;  %v4222_v55 = vrot.slane %v12061_v25, 1  ;;  %v4640_v25 = vsel %vm4520_vm6, %v4637_v28, %v4639_v10  ;;  %v4219_v10 = vrot.slane %v12041_v4, 1 }
 0x59c   :  { %v4476_v4 = vadd.f32 %v12388_v30, %v13936_v40 }
 0x59d   :  { %v12405_v13 = vpop.permute.xlu1 %4723  ;;  %v4221_v30 = vsel %vm4103_vm5, %v4219_v10, %v4220_v62 }
 0x59e   :  { %v4309_v27 = vpop.permute.xlu0 %4308 }
 0x59f   :  { %7571 = vrot.lane.b32.xlu0 %v6737_v43, %s8528_s2  ;;  %7507 = vrot.lane.b32.xlu1 %v6469_v8, %s8519_s1  ;;  %v6740_v43 = vcombine.high %v6695_v42, %v6727_v24  ;;  %v4214_v8 = vrot.slane %v12032_v14, 1  ;;  %v4227_v42 = vrot.slane %v12106_v23, 1 }
 0x5a1   :  { %v12415_v59 = vpop.permute.xlu1 %4310  ;;  %v4216_v24 = vsel %vm4103_vm5, %v4214_v8, %v4215_v47  ;;  %v4647_v47 = vrot.slane %v12132_v12, 2 }
 0x5a2   :  { %v4726_v49 = vpop.permute.xlu0 %4725 }
 0x5a3   :  { %7587 = vrot.lane.b32.xlu0 %v6738_v33, %s8529_s15  ;;  %4354 = vrot.lane.b32.xlu1 %v4218_v15, %s8533_s21  ;;  %v4223_v33 = vsel %vm4103_vm5, %v4220_v62, %v4222_v55  ;;  %v13941_v62 = vld [vmem:[#allocation64_spill] sm:$0xff] }
 0x5a4   :  { %v4473_v10 = vadd.f32 %v12322_v1, %v13941_v62 }
 0x5a5   :  { %v12424_v2 = vpop.permute.xlu1 %4727 }
 0x5a6   :  { %v12426_v50 = vpop.permute.xlu0 %4312  ;;  %v12512_v1 = vadd.f32 %v12352_v44, %v4473_v10 }
 0x5a7   :  { %7603 = vrot.lane.b32.xlu0 %v6739_v19, %s8530_s0  ;;  %4773 = vrot.lane.b32.xlu1 %v4638_v11, %s8532_s19  ;;  %v4632_v19 = vrot.slane %v12026_v58, 2  ;;  %v4631_v11 = vrot.slane %v12032_v14, 2  ;;  %v4642_v58 = vrot.slane %v12078_v35, 2 }
 0x5a9   :  { %v12433_v46 = vpop.permute.xlu1 %4314  ;;  %v4633_v14 = vsel %vm4520_vm6, %v4631_v11, %v4632_v19  ;;  %v4224_v11 = vrot.slane %v12084_v32, 1 }
 0x5aa   :  { %v12435_v61 = vpop.permute.xlu0 %4729 }
 0x5ab   :  { %7619 = vrot.lane.b32.xlu0 %v6740_v43, %s8531_s16  ;;  %4358 = vrot.lane.b32.xlu1 %v4223_v33, %s8533_s21  ;;  %v4634_v43 = vrot.slane %v12049_v53, 2  ;;  %v4225_v33 = vrot.slane %v12078_v35, 1  ;;  %v4646_v53 = vrot.slane %v12098_v3, 2 }
 0x5ad   :  { %v12442_v15 = vpop.permute.xlu1 %4731  ;;  %v4228_v8 = vsel %vm4103_vm5, %v4225_v33, %v4227_v42  ;;  %v13935_v42 = vld [vmem:[#allocation79_spill] sm:$0xff]  ;;  %v4648_v21 = vsel %vm4520_vm6, %v4646_v53, %v4647_v47  ;;  %v4229_v53 = vrot.slane %v12098_v3, 1 }
 0x5ae   :  { %v12444_v9 = vpop.permute.xlu0 %4316  ;;  %v4232_v34 = vrot.slane %v13935_v42, 1 }
 0x5af   :  { %4352 = vrot.lane.b32.xlu0 %v4216_v24, %s8533_s21  ;;  %4775 = vrot.lane.b32.xlu1 %v4640_v25, %s8532_s19  ;;  %v4635_v25 = vsel %vm4520_vm6, %v4632_v19, %v4634_v43  ;;  %v4644_v19 = vrot.slane %v12106_v23, 2  ;;  %v13937_v43 = vld [vmem:[#allocation66_spill] sm:$0xff]  ;;  %v4649_v23 = vrot.slane %v13935_v42, 2  ;;  %v13942_v42 = vld [vmem:[#allocation68_spill] sm:$0xff] }
 0x5b0   :  { %v4474_v35 = vadd.f32 %v12354_v16, %v13937_v43  ;;  %v4226_v16 = vsel %vm4103_vm5, %v4224_v11, %v4225_v33 }
 0x5b1   :  { %v12453_v55 = vpop.permute.xlu1 %4318 }
 0x5b2   :  { %v12457_v17 = vpop.permute.xlu0 %4733 }
 0x5b3   :  { %4769 = vrot.lane.b32.xlu0 %v4633_v14, %s8532_s19  ;;  %4362 = vrot.lane.b32.xlu1 %v4228_v8, %s8533_s21  ;;  %v4478_v14 = vadd.f32 %v4309_v27, %v11738_v0  ;;  %v13938_v27 = vld [vmem:[#allocation63_spill] sm:$0xff]  ;;  %v12486_v8 = vadd.f32 %v12399_v56, %v4476_v4  ;;  %v13940_v4 = vrot.slane %v12132_v12, 1  ;;  %v4643_v56 = vsel %vm4520_vm6, %v4641_v26, %v4642_v58 }
 0x5b4   :  { %v4472_v32 = vadd.f32 %v12309_v29, %v13938_v27 }
 0x5b5   :  { %v12464_v28 = vpop.permute.xlu1 %4735  ;;  %v4895_v63 = vadd.f32 %v4726_v49, %v4478_v14  ;;  %v13939_v49 = vld [vmem:[#allocation104_spill] sm:$0xff]  ;;  %v4233_v29 = vsel %vm4103_vm5, %v13940_v4, %v4232_v34  ;;  %v13944_v34 = vld [vmem:[#allocation38_spill] sm:$0xff] }
 0x5b6   :  { %v4321_v24 = vpop.permute.xlu0 %4320  ;;  %v4480_v26 = vadd.f32 %v12426_v50, %v13944_v34 }
 0x5b7   :  { %4771 = vrot.lane.b32.xlu0 %v4635_v25, %s8532_s19  ;;  %4781 = vrot.lane.b32.xlu1 %v4648_v21, %s8532_s19  ;;  %v4891_v25 = vadd.f32 %v12367_v38, %v4474_v35  ;;  %v4889_v21 = vadd.f32 %v12333_v37, %v4472_v32  ;;  %v4484_v14 = vadd.f32 %v4321_v24, %v13939_v49  ;;  %v13943_v24 = vld [vmem:[#allocation33_spill] sm:$0xff] }
 0x5b8   :  { %v4475_v35 = vadd.f32 %v12365_v39, %v13942_v42  ;;  %v4645_v37 = vsel %vm4520_vm6, %v4642_v58, %v4644_v19  ;;  %v4479_v11 = vadd.f32 %v12415_v59, %v13943_v24  ;;  %v4650_v58 = vsel %vm4520_vm6, %v4647_v47, %v4649_v23 }
 0x5b9   :  { %v4323_v0 = vpop.permute.xlu1 %4322  ;;  %v6487_v38 = vcombine.low %v4891_v25, %v4895_v63  ;;  %v6471_v33 = vcombine.low %v4889_v21, %v12486_v8  ;;  %v6472_v19 = vcombine.high %v4889_v21, %v12486_v8  ;;  %v6488_v4 = vcombine.high %v4891_v25, %v4895_v63 }
 0x5ba   :  { %v4738_v40 = vpop.permute.xlu0 %4737  ;;  %v12515_v39 = vadd.f32 %v12377_v20, %v4475_v35  ;;  %v12522_v59 = vadd.f32 %v12424_v2, %v4479_v11  ;;  %v4897_v50 = vadd.f32 %v12435_v61, %v4480_v26  ;;  %v13949_v61 = vld [vmem:[#allocation96_spill] sm:$0xff]  ;;  %v13950_v35 = vld [vmem:[#allocation101_spill] sm:$0xff] }
 0x5bb   :  { %4356 = vrot.lane.b32.xlu0 %v4221_v30, %s8533_s21  ;;  %4366 = vrot.lane.b32.xlu1 %v4233_v29, %s8533_s21  ;;  %v4901_v43 = vadd.f32 %v4738_v40, %v4484_v14  ;;  %v13945_v30 = vld [vmem:[#allocation76_spill] sm:$0xff]  ;;  %v6495_v44 = vrot.slane %v6487_v38, %v13904_v60  ;;  %v13946_v40 = vld [vmem:[#allocation98_spill] sm:$0xff]  ;;  %v13947_v14 = vld [vmem:[#allocation103_spill] sm:$0xff]  ;;  %v6479_v63 = vrot.slane %v6471_v33, %v13904_v60 }
 0x5bc   :  { %v4477_v49 = vadd.f32 %v12397_v54, %v13945_v30  ;;  %v4482_v20 = vadd.f32 %v12444_v9, %v13946_v40  ;;  %v4485_v29 = vadd.f32 %v4323_v0, %v13947_v14  ;;  %v13948_v54 = vld [vmem:[#allocation106_spill] sm:$0xff]  ;;  %v4481_v8 = vadd.f32 %v12433_v46, %v13949_v61  ;;  %v13951_v38 = vld [vmem:[#allocation109_spill] sm:$0xff] }
 0x5bd   :  { %v4740_v32 = vpop.permute.xlu1 %4739  ;;  %v6503_v23 = vcombine.low %v4897_v50, %v4901_v43  ;;  %v6504_v9 = vcombine.high %v4897_v50, %v4901_v43  ;;  %v6502_v10 = vrot.slane %v6488_v4, %v13904_v60  ;;  %v6759_v42 = vcombine.low %v12515_v39, %v12522_v59 }
 0x5be   :  { %v4325_v27 = vpop.permute.xlu0 %4324  ;;  %v12534_v2 = vadd.f32 %v12405_v13, %v4477_v49  ;;  %v12539_v21 = vadd.f32 %v4740_v32, %v4485_v29  ;;  %v4483_v13 = vadd.f32 %v12453_v55, %v13950_v35  ;;  %v6535_v46 = vcombine.low %v6479_v63, %v6495_v44 }
 0x5bf   :  { %4360 = vrot.lane.b32.xlu0 %v4226_v16, %s8533_s21  ;;  %v4486_v62 = vadd.f32 %v4325_v27, %v13948_v54  ;;  %4783 = vrot.lane.b32.xlu1 %v4650_v58, %s8532_s19  ;;  %v4899_v16 = vadd.f32 %v12457_v17, %v4482_v20  ;;  %v12549_v24 = vadd.f32 %v12442_v15, %v4481_v8  ;;  %v13952_v14 = vrot.slane %v12132_v12, 1 }
 0x5c0   :  { %v6536_v34 = vcombine.high %v6479_v63, %v6495_v44  ;;  %v12552_v26 = vadd.f32 %v12464_v28, %v4483_v13  ;;  %v6511_v43 = vrot.slane %v6503_v23, %v13904_v60  ;;  %v6518_v55 = vrot.slane %v6504_v9, %v13904_v60 }
 0x5c1   :  { %v4327_v47 = vpop.permute.xlu1 %4326  ;;  %v6486_v58 = vrot.slane %v6472_v19, %v13904_v60  ;;  %v6743_v28 = vcombine.low %v12512_v1, %v12534_v2  ;;  %v4231_v29 = vsel %vm4103_vm5, %v4229_v53, %v13952_v14  ;;  %v6767_v19 = vrot.slane %v6759_v42, %v13904_v60 }
 0x5c2   :  { %v4742_v25 = vpop.permute.xlu0 %4741  ;;  %v4487_v33 = vadd.f32 %v4327_v47, %v13951_v38  ;;  %v12582_v8 = vrot.slane %v6535_v46, %v13930_v57 }
 0x5c3   :  { %v4903_v0 = vadd.f32 %v4742_v25, %v4486_v62  ;;  %4777 = vrot.lane.b32.xlu0 %v4643_v56, %s8532_s19  ;;  %v6775_v56 = vcombine.low %v12549_v24, %v12539_v21  ;;  %v6552_v54 = vcombine.high %v6486_v58, %v6502_v10  ;;  %v6751_v53 = vrot.slane %v6743_v28, %v13904_v60 }
 0x5c4   :  { %v6551_v46 = vcombine.low %v6486_v58, %v6502_v10 }
 0x5c5   :  { %v6519_v17 = vcombine.low %v4899_v16, %v4903_v0  ;;  %v6520_v32 = vcombine.high %v4899_v16, %v4903_v0  ;;  %v4744_v11 = vpop.permute.xlu1 %4743  ;;  %v6783_v63 = vrot.slane %v6775_v56, %v13904_v60  ;;  %v6807_v38 = vcombine.low %v6751_v53, %v6767_v19 }
 0x5c6   :  { %v4904_v27 = vadd.f32 %v4744_v11, %v4487_v33  ;;  %v12555_v30 = vpop.permute.xlu0 %4328  ;;  %v6566_v33 = vrot.slane %v6552_v54, %v13930_v57  ;;  %v6559_v10 = vrot.slane %v6551_v46, %v13930_v57  ;;  %v6808_v14 = vcombine.high %v6751_v53, %v6767_v19 }
 0x5c7   :  { %v6527_v15 = vrot.slane %v6519_v17, %v13904_v60  ;;  %v6534_v49 = vrot.slane %v6520_v32, %v13904_v60  ;;  %4779 = vrot.lane.b32.xlu0 %v4645_v37, %s8532_s19  ;;  %v6550_v37 = vrot.slane %v6536_v34, %v13930_v57 }
 0x5c8   :  { %v6791_v4 = vcombine.low %v12552_v26, %v4904_v27 }
 0x5c9   :  { %v6567_v50 = vcombine.low %v6511_v43, %v6527_v15  ;;  %v6568_v44 = vcombine.high %v6511_v43, %v6527_v15  ;;  %v6584_v40 = vcombine.high %v6518_v55, %v6534_v49  ;;  %v12567_v20 = vpop.permute.xlu1 %4330  ;;  %v6583_v35 = vcombine.low %v6518_v55, %v6534_v49 }
 0x5ca   :  { %v6799_v62 = vrot.slane %v6791_v4, %v13904_v60  ;;  %v12576_v47 = vpop.permute.xlu0 %4745  ;;  %v6815_v15 = vrot.slane %v6807_v38, %v13930_v57  ;;  %v6792_v49 = vcombine.high %v12552_v26, %v4904_v27  ;;  %v6744_v26 = vcombine.high %v12512_v1, %v12534_v2 }
 0x5cb   :  { %v6582_v61 = vrot.slane %v6568_v44, %v13930_v57  ;;  %v12585_v23 = vrot.slane %v6567_v50, %v13930_v57  ;;  %4364 = vrot.lane.b32.xlu0 %v4231_v29, %s8533_s21  ;;  %v6598_v42 = vrot.slane %v6584_v40, %v13930_v57  ;;  %v6591_v55 = vrot.slane %v6583_v35, %v13930_v57 }
 0x5cc   :  { %v6839_v25 = vcombine.low %v6783_v63, %v6799_v62  ;;  %v6840_v58 = vcombine.high %v6783_v63, %v6799_v62  ;;  %v6760_v40 = vcombine.high %v12515_v39, %v12522_v59  ;;  %v6776_v29 = vcombine.high %v12549_v24, %v12539_v21 }
 0x5cd   :  { %v12589_v16 = vpop.permute.xlu1 %4747  ;;  %v6602_v9 = vcombine.high %v6550_v37, %v6582_v61  ;;  %v6600_v0 = vcombine.high %v12582_v8, %v12585_v23  ;;  %v6606_v32 = vcombine.high %v6566_v33, %v6598_v42  ;;  %v6601_v43 = vcombine.low %v6550_v37, %v6582_v61 }
 0x5ce   :  { %v12594_v13 = vpop.permute.xlu0 %4332  ;;  %v6847_v11 = vrot.slane %v6839_v25, %v13930_v57  ;;  %v6603_v44 = vcombine.low %v6559_v10, %v6591_v55  ;;  %v12625_v27 = vrot.slane %v6792_v49, %v13904_v60  ;;  %v6854_v37 = vrot.slane %v6840_v58, %v13930_v57  ;;  %v13953_v49 = vld [vmem:[#allocation91_spill] sm:$0xff] }
 0x5cf   :  { %7461 = vrot.lane.b32.xlu1 %v6602_v9, %s8518_s11  ;;  %7429 = vrot.lane.b32.xlu0 %v6600_v0, %s8516_s17  ;;  %v6604_v59 = vcombine.high %v6559_v10, %v6591_v55  ;;  %v12633_v21 = vrot.slane %v6760_v40, %v13904_v60  ;;  %v12636_v24 = vrot.slane %v6776_v29, %v13904_v60  ;;  %v4235_v25 = vrot.slane %v12157_v45, 1 }
 0x5d0   :  { %v6871_v4 = vcombine.low %v6815_v15, %v6847_v11  ;;  %v6872_v62 = vcombine.high %v6815_v15, %v6847_v11  ;;  %v6822_v1 = vrot.slane %v6808_v14, %v13930_v57  ;;  %v12642_v2 = vrot.slane %v6744_v26, %v13904_v60  ;;  %v13954_v14 = vld [vmem:[#allocation85_spill] sm:$0xff] }
 0x5d1   :  { %v12599_v17 = vpop.permute.xlu1 %4334  ;;  %v6855_v19 = vcombine.low %v12636_v24, %v12625_v27  ;;  %v6605_v53 = vcombine.low %v6566_v33, %v6598_v42  ;;  %v4234_v9 = vrot.slane %v12165_v36, 1  ;;  %v4652_v42 = vrot.slane %v12157_v45, 2 }
 0x5d2   :  { %v12602_v34 = vpop.permute.xlu0 %4749  ;;  %v6873_v61 = vcombine.low %v6822_v1, %v6854_v37  ;;  %v6823_v0 = vcombine.low %v12642_v2, %v12633_v21  ;;  %v6874_v46 = vcombine.high %v6822_v1, %v6854_v37  ;;  %v4651_v33 = vrot.slane %v12165_v36, 2 }
 0x5d3   :  { %7525 = vrot.lane.b32.xlu1 %v6606_v32, %s8525_s14  ;;  %7445 = vrot.lane.b32.xlu0 %v6601_v43, %s8517_s18  ;;  %v6863_v32 = vrot.slane %v6855_v19, %v13930_v57  ;;  %v4236_v11 = vsel %vm4103_vm5, %v4234_v9, %v4235_v25  ;;  %v4654_v58 = vrot.slane %v13953_v49, 2  ;;  %v4237_v40 = vrot.slane %v13953_v49, 1 }
 0x5d4   :  { %v6831_v43 = vrot.slane %v6823_v0, %v13930_v57  ;;  %v4240_v29 = vrot.slane %v13954_v14, 1  ;;  %v4657_v19 = vrot.slane %v13954_v14, 2  ;;  %v4244_v0 = vrot.slane %v12225_v41, 1 }
 0x5d5   :  { %v12612_v28 = vpop.permute.xlu1 %4751  ;;  %v4655_v26 = vsel %vm4520_vm6, %v4652_v42, %v4654_v58  ;;  %v4661_v49 = vrot.slane %v12225_v41, 2 }
 0x5d6   :  { %v12614_v50 = vpop.permute.xlu0 %4336  ;;  %v6875_v55 = vcombine.low %v6831_v43, %v6863_v32 }
 0x5d7   :  { %7541 = vrot.lane.b32.xlu1 %v6871_v4, %s8526_s20  ;;  %7477 = vrot.lane.b32.xlu0 %v6603_v44, %s8523_s23  ;;  %v4653_v4 = vsel %vm4520_vm6, %v4651_v33, %v4652_v42  ;;  %v6876_v44 = vcombine.high %v6831_v43, %v6863_v32  ;;  %v13957_v42 = vld [vmem:[#allocation77_spill] sm:$0xff] }
 0x5d8   :  { %v4242_v33 = vrot.slane %v13957_v42, 1 }
 0x5d9   :  { %v12627_v54 = vpop.permute.xlu1 %4338 }
 0x5da   :  { %v12630_v39 = vpop.permute.xlu0 %4753 }
 0x5db   :  { %7557 = vrot.lane.b32.xlu1 %v6872_v62, %s8527_s12  ;;  %7493 = vrot.lane.b32.xlu0 %v6604_v59, %s8524_s28  ;;  %v13955_v59 = vld [vmem:[#allocation24_spill] sm:$0xff] }
 0x5dc   :  { %v4239_v1 = vrot.slane %v13955_v59, 1  ;;  %v4656_v32 = vrot.slane %v13955_v59, 2 }
 0x5dd   :  { %v12646_v63 = vpop.permute.xlu1 %4755 }
 0x5de   :  { %v12653_v35 = vpop.permute.xlu0 %4340 }
 0x5df   :  { %7573 = vrot.lane.b32.xlu1 %v6873_v61, %s8528_s2  ;;  %7509 = vrot.lane.b32.xlu0 %v6605_v53, %s8519_s1  ;;  %v4238_v61 = vsel %vm4103_vm5, %v4235_v25, %v4237_v40  ;;  %v13956_v53 = vld [vmem:[#allocation69_spill] sm:$0xff]  ;;  %v4658_v25 = vsel %vm4520_vm6, %v4656_v32, %v4657_v19  ;;  %v4664_v40 = vrot.slane %v12245_v6, 2  ;;  %v4250_v32 = vrot.slane %v12259_v31, 1 }
 0x5e0   :  { %v4245_v9 = vrot.slane %v13956_v53, 1 }
 0x5e1   :  { %v12656_v38 = vpop.permute.xlu1 %4342 }
 0x5e2   :  { %v12665_v15 = vpop.permute.xlu0 %4757  ;;  %v4246_v58 = vsel %vm4103_vm5, %v4244_v0, %v4245_v9  ;;  %v4247_v0 = vrot.slane %v12245_v6, 1 }
 0x5e3   :  { %7589 = vrot.lane.b32.xlu1 %v6874_v46, %s8529_s15  ;;  %4368 = vrot.lane.b32.xlu0 %v4236_v11, %s8533_s21  ;;  %v4241_v46 = vsel %vm4103_vm5, %v4239_v1, %v4240_v29 }
 0x5e4   :  { %v4248_v6 = vsel %vm4103_vm5, %v4245_v9, %v4247_v0  ;;  %v4672_v9 = vrot.slane %v12283_v18, 2  ;;  %v4671_v0 = vrot.slane %v12291_v22, 2 }
 0x5e5   :  { %v12667_v10 = vpop.permute.xlu1 %4759 }
 0x5e6   :  { %v12677_v62 = vpop.permute.xlu0 %4344 }
 0x5e7   :  { %7605 = vrot.lane.b32.xlu1 %v6875_v55, %s8530_s0  ;;  %4785 = vrot.lane.b32.xlu0 %v4653_v4, %s8532_s19  ;;  %v4662_v55 = vrot.slane %v13956_v53, 2  ;;  %v4659_v4 = vrot.slane %v13957_v42, 2  ;;  %v4249_v42 = vrot.slane %v12239_v5, 1  ;;  %v4674_v53 = vrot.slane %v12307_v52, 2 }
 0x5e9   :  { %v12679_v37 = vpop.permute.xlu1 %4346 }
 0x5ea   :  { %v12692_v11 = vpop.permute.xlu0 %4761 }
 0x5eb   :  { %7621 = vrot.lane.b32.xlu1 %v6876_v44, %s8531_s16  ;;  %4787 = vrot.lane.b32.xlu0 %v4655_v26, %s8532_s19  ;;  %v4243_v44 = vsel %vm4103_vm5, %v4240_v29, %v4242_v33  ;;  %v4663_v26 = vsel %vm4520_vm6, %v4661_v49, %v4662_v55  ;;  %v4665_v29 = vsel %vm4520_vm6, %v4662_v55, %v4664_v40  ;;  %v4667_v33 = vrot.slane %v12259_v31, 2 }
 0x5ec   :  { %v4251_v55 = vsel %vm4103_vm5, %v4249_v42, %v4250_v32  ;;  %v4669_v42 = vrot.slane %v12255_v48, 2 }
 0x5ed   :  { %v12694_v43 = vpop.permute.xlu1 %4763 }
 0x5ee   :  { %v12707_v1 = vpop.permute.xlu0 %4348 }
 0x5ef   :  { %4370 = vrot.lane.b32.xlu1 %v4238_v61, %s8533_s21  ;;  %4372 = vrot.lane.b32.xlu0 %v4241_v46, %s8533_s21  ;;  %v4660_v46 = vsel %vm4520_vm6, %v4657_v19, %v4659_v4  ;;  %v4255_v19 = vrot.slane %v12283_v18, 1  ;;  %v4666_v4 = vrot.slane %v12239_v5, 2  ;;  %v13630_v18 = vrot.slane %v12335_v51, 1 }
 0x5f1   :  { %v12709_v61 = vpop.permute.xlu1 %4350 }
 0x5f3   :  { %4789 = vrot.lane.b32.xlu1 %v4658_v25, %s8532_s19  ;;  %4376 = vrot.lane.b32.xlu0 %v4246_v58, %s8533_s21  ;;  %v12720_v25 = vpop.permute.xlu0 %4765  ;;  %v4254_v58 = vrot.slane %v12291_v22, 1  ;;  %v13986_v22 = vld [vmem:[#allocation125_spill] sm:$0xff] }
 0x5f5   :  { %v12722_v49 = vpop.permute.xlu1 %4767 }
 0x5f7   :  { %4374 = vrot.lane.b32.xlu1 %v4243_v44, %s8533_s21  ;;  %4793 = vrot.lane.b32.xlu0 %v4663_v26, %s8532_s19  ;;  %v4252_v44 = vrot.slane %v12255_v48, 1  ;;  %v4670_v48 = vsel %vm4520_vm6, %v4667_v33, %v4669_v42 }
 0x5f9   :  { %v4253_v56 = vsel %vm4103_vm5, %v4250_v32, %v4252_v44  ;;  %v6824_v32 = vcombine.high %v12642_v2, %v12633_v21  ;;  %v13958_v44 = vld [vmem:[#allocation59_spill] sm:$0xff] }
 0x5fb   :  { %4791 = vrot.lane.b32.xlu1 %v4660_v46, %s8532_s19  ;;  %4795 = vrot.lane.b32.xlu0 %v4665_v29, %s8532_s19  ;;  %v4668_v46 = vsel %vm4520_vm6, %v4666_v4, %v4667_v33  ;;  %v4256_v29 = vsel %vm4103_vm5, %v4254_v58, %v4255_v19  ;;  %v4673_v4 = vsel %vm4520_vm6, %v4671_v0, %v4672_v9  ;;  %v4257_v58 = vrot.slane %v12307_v52, 1  ;;  %v13960_v52 = vld [vmem:[#allocation87_spill] sm:$0xff] }
 0x5fc   :  { %v13959_v0 = vcombine.low %v12346_v7, %v13958_v44  ;;  %v13966_v44 = vld [vmem:[#allocation39_spill] sm:$0xff] }
 0x5fd   :  { %v4258_v2 = vsel %vm4103_vm5, %v4255_v19, %v4257_v58  ;;  %v13965_v58 = vld [vmem:[#allocation43_spill] sm:$0xff] }
 0x5ff   :  { %4378 = vrot.lane.b32.xlu1 %v4248_v6, %s8533_s21  ;;  %4380 = vrot.lane.b32.xlu0 %v4251_v55, %s8533_s21 }
 0x601   :  { %v7428_v40 = vpop.permute.xlu1 %7427  ;;  %v7460_v26 = vpop.permute.xlu0 %7459 }
 0x603   :  { %4797 = vrot.lane.b32.xlu1 %v4668_v46, %s8532_s19  ;;  %4384 = vrot.lane.b32.xlu0 %v4256_v29, %s8533_s21  ;;  %v6856_v46 = vcombine.high %v12636_v24, %v12625_v27  ;;  %v7663_v27 = vsel %vm87_vm0, %v13959_v0, %v7428_v40  ;;  %v4259_v24 = vrot.slane %v13960_v52, 1  ;;  %v13961_v40 = vld [vmem:[#allocation35_spill] sm:$0xff]  ;;  %v5922_v0 = vcombine.high %v13966_v44, %v13965_v58  ;;  %v13972_v44 = vld [vmem:[#allocation9_spill] sm:$0xff] }
 0x604   :  { %v13971_v58 = vld [vmem:[#allocation7_spill] sm:$0xff] }
 0x605   :  { %v7444_v6 = vpop.permute.xlu1 %7443  ;;  %v7524_v55 = vpop.permute.xlu0 %7523  ;;  %v12761_v42 = vrot.slane %v6856_v46, %v13930_v57  ;;  %v4261_v7 = vsel %vm4103_vm5, %v4259_v24, %v13630_v18 }
 0x606   :  { %v7667_v33 = vsel %vm1125_vm1, %v7663_v27, %v7444_v6  ;;  %v13967_v27 = vld [vmem:[#allocation45_spill] sm:$0xff] }
 0x607   :  { %4382 = vrot.lane.b32.xlu1 %v4253_v56, %s8533_s21  ;;  %4801 = vrot.lane.b32.xlu0 %v4673_v4, %s8532_s19  ;;  %v4675_v56 = vsel %vm4520_vm6, %v4672_v9, %v4674_v53  ;;  %v12769_v53 = vrot.slane %v6824_v32, %v13930_v57  ;;  %v13962_v9 = vld [vmem:[#allocation32_spill] sm:$0xff]  ;;  %v7671_v46 = vsel %vm1650_vm2, %v7667_v33, %v7460_v26 }
 0x608   :  { %v5890_v6 = vcombine.high %v13962_v9, %v13961_v40  ;;  %v13969_v9 = vld [vmem:[#allocation62_spill] sm:$0xff] }
 0x609   :  { %v7476_v29 = vpop.permute.xlu1 %7475  ;;  %v7540_v31 = vpop.permute.xlu0 %7539  ;;  %v6877_v24 = vcombine.low %v12769_v53, %v12761_v42 }
 0x60a   :  { %v7675_v32 = vsel %vm6277_vm7, %v7671_v46, %v7476_v29  ;;  %v12792_v29 = vrot.slane %v5890_v6, %v13904_v60  ;;  %v4677_v6 = vrot.slane %v12335_v51, 2 }
 0x60b   :  { %4799 = vrot.lane.b32.xlu1 %v4670_v48, %s8532_s19  ;;  %4803 = vrot.lane.b32.xlu0 %v4675_v56, %s8532_s19  ;;  %v13963_v48 = vld [vmem:[#allocation37_spill] sm:$0xff]  ;;  %v13964_v56 = vld [vmem:[#allocation34_spill] sm:$0xff] }
 0x60c   :  { %v5906_v19 = vcombine.high %v13964_v56, %v13963_v48  ;;  %v13970_v48 = vld [vmem:[#allocation46_spill] sm:$0xff] }
 0x60d   :  { %v7492_v4 = vpop.permute.xlu1 %7491  ;;  %v7556_v21 = vpop.permute.xlu0 %7555  ;;  %v5886_v56 = vcombine.high %v13970_v48, %v13969_v9 }
 0x60e   :  { %v7679_v26 = vsel %vm6282_vm8, %v7675_v32, %v7492_v4  ;;  %v13974_v4 = vld [vmem:[#allocation55_spill] sm:$0xff] }
 0x60f   :  { %4386 = vrot.lane.b32.xlu1 %v4258_v2, %s8533_s21  ;;  %4388 = vrot.lane.b32.xlu0 %v4261_v7, %s8533_s21  ;;  %v13968_v2 = vld [vmem:[#allocation41_spill] sm:$0xff] }
 0x610   :  { %v5938_v5 = vcombine.high %v13968_v2, %v13967_v27  ;;  %v6020_v27 = vcombine.high %v13972_v44, %v13971_v58  ;;  %v13973_v2 = vld [vmem:[#allocation48_spill] sm:$0xff]  ;;  %v13977_v58 = vld [vmem:[#allocation14_spill] sm:$0xff] }
 0x611   :  { %v7508_v33 = vpop.permute.xlu1 %7507  ;;  %v7572_v7 = vpop.permute.xlu0 %7571  ;;  %v13975_v32 = vcombine.low %v13973_v2, %v13974_v4 }
 0x612   :  { %v7683_v40 = vsel %vm1715_vm3, %v7679_v26, %v7508_v33  ;;  %v12800_v26 = vrot.slane %v5906_v19, %v13904_v60  ;;  %v12806_v33 = vrot.slane %v5938_v5, %v13904_v60  ;;  %v4676_v19 = vrot.slane %v13960_v52, 2 }
 0x613   :  { %7637 = vrot.lane.b32.xlu1 %v6877_v24, %s8532_s19  ;;  %v7687_v46 = vsel %vm6291_vm9, %v7683_v40, %v7524_v55  ;;  %7635 = vrot.lane.b32.xlu0 %v13975_v32, %s8532_s19  ;;  %v12803_v24 = vrot.slane %v5922_v0, %v13904_v60  ;;  %v13976_v0 = vld [vmem:[#allocation12_spill] sm:$0xff] }
 0x614   :  { %v7691_v9 = vsel %vm6296_vm10, %v7687_v46, %v7540_v31  ;;  %v5344_v44 = vcombine.high %v13977_v58, %v13976_v0  ;;  %v5969_v5 = vcombine.low %v12792_v29, %v12800_v26  ;;  %v13978_v46 = vld [vmem:[#allocation57_spill] sm:$0xff]  ;;  %v4678_v18 = vsel %vm4520_vm6, %v4676_v19, %v4677_v6 }
 0x615   :  { %v12810_v48 = vpop.permute.xlu1 %4354  ;;  %v7588_v55 = vpop.permute.xlu0 %7587  ;;  %v7695_v40 = vsel %vm1796_vm4, %v7691_v9, %v7556_v21  ;;  %v6001_v31 = vcombine.low %v12803_v24, %v12806_v33  ;;  %v4262_v32 = vrot.slane %v13978_v46, 1  ;;  %v13979_v19 = vrot.slane %v12335_v51, 1  ;;  %v13984_v51 = vld [vmem:[#allocation11_spill] sm:$0xff] }
 0x616   :  { %v7699_v21 = vsel %vm6305_vm11, %v7695_v40, %v7572_v7  ;;  %v4679_v7 = vrot.slane %v13978_v46, 2 }
 0x617   :  { %6225 = vrot.lane.b32.xlu1 %v5886_v56, %s8531_s16  ;;  %6195 = vrot.lane.b32.xlu0 %v6020_v27, %s8529_s15  ;;  %v5977_v27 = vrot.slane %v5969_v5, %v13930_v57  ;;  %v6009_v0 = vrot.slane %v6001_v31, %v13930_v57  ;;  %v7703_v58 = vsel %vm6310_vm12, %v7699_v21, %v7588_v55  ;;  %v13982_v21 = vld [vmem:[#allocation8_spill] sm:$0xff] }
 0x618   :  { %v13981_v55 = vcombine.high %v13973_v2, %v13974_v4  ;;  %v4680_v46 = vsel %vm4520_vm6, %v4677_v6, %v4679_v7  ;;  %v13989_v4 = vld [vmem:[#allocation119_spill] sm:$0xff] }
 0x619   :  { %v12824_v9 = vpop.permute.xlu1 %4773  ;;  %v7604_v56 = vpop.permute.xlu0 %7603  ;;  %v6021_v5 = vcombine.low %v5977_v27, %v6009_v0  ;;  %v6022_v6 = vcombine.high %v5977_v27, %v6009_v0  ;;  %v13990_v7 = vld [vmem:[#allocation111_spill] sm:$0xff] }
 0x61a   :  { %v7707_v40 = vsel %vm6315_vm13, %v7703_v58, %v7604_v56  ;;  %v13983_v56 = vld [vmem:[#allocation10_spill] sm:$0xff] }
 0x61b   :  { %4805 = vrot.lane.b32.xlu1 %v4678_v18, %s8532_s19  ;;  %6253 = vrot.lane.b32.xlu0 %v5344_v44, %s8533_s21  ;;  %v4263_v18 = vsel %vm4103_vm5, %v13979_v19, %v4262_v32  ;;  %v5834_v58 = vcombine.high %v13983_v56, %v13982_v21  ;;  %v13985_v32 = vld [vmem:[#allocation13_spill] sm:$0xff]  ;;  %v4489_v21 = vadd.f32 %v12567_v20, %v13990_v7  ;;  %vm6330_vm5 = vcmask 982016  }
 0x61c   :  { %v5866_v19 = vcombine.high %v13985_v32, %v13984_v51  ;;  %v13991_v56 = vld [vmem:[#allocation117_spill] sm:$0xff] }
 0x61d   :  { %v7620_v52 = vpop.permute.xlu0 %7619  ;;  %v4359_v41 = vpop.permute.xlu1 %4358  ;;  %v4491_v51 = vadd.f32 %v12599_v17, %v13991_v56  ;;  %v12872_v27 = vrot.slane %v5834_v58, %v13930_v57  ;;  %v12878_v17 = vadd.f32 %v12589_v16, %v4489_v21  ;;  %v14000_v56 = vld [vmem:[#allocation132_spill] sm:$0xff] }
 0x61e   :  { %v12838_v44 = vsel %vm6320_vm14, %v7707_v40, %v7620_v52  ;;  %v4495_v52 = vadd.f32 %v12656_v38, %v13986_v22  ;;  %v13992_v38 = vld [vmem:[#allocation134_spill] sm:$0xff]  ;;  %v12875_v20 = vrot.slane %v5866_v19, %v13930_v57  ;;  %v13996_v19 = vld [vmem:[#allocation120_spill] sm:$0xff] }
 0x61f   :  { %13980 = vst [vmem:[#allocation61_spill] sm:$0xff] %v12838_v44  ;;  %4390 = vrot.lane.b32.xlu1 %v4263_v18, %s8533_s21  ;;  %7651 = vrot.lane.b32.xlu0 %v13981_v55, %s8533_s21  ;;  %v13987_v18 = vld [vmem:[#allocation17_spill] sm:$0xff]  ;;  %v13988_v44 = vld [vmem:[#allocation54_spill] sm:$0xff]  ;;  %v4493_v55 = vadd.f32 %v12627_v54, %v13989_v4 }
 0x620   :  { %v5480_v2 = vcombine.high %v13988_v44, %v13987_v18  ;;  %v12863_v22 = vadd.f32 %v12667_v10, %v4495_v52  ;;  %v13993_v44 = vld [vmem:[#allocation122_spill] sm:$0xff]  ;;  %v12881_v10 = vadd.f32 %v12612_v28, %v4491_v51  ;;  %v4492_v52 = vadd.f32 %v12614_v50, %v13996_v19  ;;  %v13999_v50 = vld [vmem:[#allocation112_spill] sm:$0xff] }
 0x621   :  { %v4353_v31 = vpop.permute.xlu0 %4352  ;;  %v4776_v40 = vpop.permute.xlu1 %4775  ;;  %v12867_v32 = vadd.f32 %v12646_v63, %v4493_v55  ;;  %v4494_v54 = vadd.f32 %v12653_v35, %v13993_v44  ;;  %v13995_v35 = vld [vmem:[#allocation114_spill] sm:$0xff]  ;;  %v6878_v28 = vcombine.high %v12769_v53, %v12761_v42  ;;  %v5887_v7 = vcombine.low %v12872_v27, %v12875_v20 }
 0x622   :  { %v4490_v58 = vadd.f32 %v12594_v13, %v13995_v35  ;;  %v13998_v13 = vld [vmem:[#allocation131_spill] sm:$0xff]  ;;  %v4500_v51 = vadd.f32 %v4353_v31, %v14000_v56 }
 0x623   :  { %4807 = vrot.lane.b32.xlu1 %v4680_v46, %s8532_s19  ;;  %6211 = vrot.lane.b32.xlu0 %v6021_v5, %s8530_s0  ;;  %v4503_v46 = vadd.f32 %v4359_v41, %v13992_v38  ;;  %v13994_v41 = vld [vmem:[#allocation130_spill] sm:$0xff]  ;;  %v4911_v16 = vadd.f32 %v12665_v15, %v4494_v54  ;;  %v4501_v55 = vadd.f32 %v12810_v48, %v13998_v13  ;;  %v14001_v54 = vld [vmem:[#allocation128_spill] sm:$0xff] }
 0x624   :  { %v4499_v63 = vadd.f32 %v12709_v61, %v13994_v41  ;;  %v7168_v61 = vcombine.high %v12881_v10, %v12863_v22  ;;  %v4488_v15 = vadd.f32 %v12555_v30, %v13999_v50  ;;  %v7152_v42 = vcombine.high %v12878_v17, %v12867_v32 }
 0x625   :  { %v4770_v18 = vpop.permute.xlu0 %4769  ;;  %v12885_v0 = vadd.f32 %v4776_v40, %v4503_v46  ;;  %v12887_v5 = vpop.permute.xlu1 %4362  ;;  %v13997_v40 = vld [vmem:[#allocation127_spill] sm:$0xff]  ;;  %v4496_v41 = vadd.f32 %v12677_v62, %v14001_v54  ;;  %v14004_v54 = vld [vmem:[#allocation136_spill] sm:$0xff] }
 0x626   :  { %v4497_v4 = vadd.f32 %v12679_v37, %v13997_v40  ;;  %v4907_v37 = vadd.f32 %v12602_v34, %v4490_v58  ;;  %v12928_v46 = vrot.slane %v7168_v61, %v13904_v60  ;;  %v12933_v44 = vrot.slane %v7152_v42, %v13904_v60  ;;  %v14002_v58 = vld [vmem:[#allocation129_spill] sm:$0xff] }
 0x627   :  { %6255 = vrot.lane.b32.xlu1 %v5480_v2, %s8533_s21  ;;  %6227 = vrot.lane.b32.xlu0 %v6022_v6, %s8531_s16  ;;  %v12903_v2 = vadd.f32 %v12722_v49, %v4499_v63  ;;  %v4909_v6 = vadd.f32 %v12630_v39, %v4492_v52  ;;  %v4905_v39 = vadd.f32 %v12576_v47, %v4488_v15 }
 0x628   :  { %v12916_v49 = vadd.f32 %v12694_v43, %v4497_v4  ;;  %v6895_v38 = vcombine.low %v4907_v37, %v4911_v16  ;;  %v4917_v63 = vadd.f32 %v4770_v18, %v4500_v51  ;;  %v4498_v47 = vadd.f32 %v12707_v1, %v14002_v58 }
 0x629   :  { %v4772_v53 = vpop.permute.xlu0 %4771  ;;  %v7200_v48 = vcombine.high %v12903_v2, %v12885_v0  ;;  %v12920_v21 = vpop.permute.xlu1 %4781  ;;  %v6879_v43 = vcombine.low %v4905_v39, %v4909_v6  ;;  %v6896_v40 = vcombine.high %v4907_v37, %v4911_v16  ;;  %v4913_v4 = vadd.f32 %v12692_v11, %v4496_v41 }
 0x62a   :  { %v12922_v30 = vadd.f32 %v4772_v53, %v4501_v55  ;;  %v6903_v62 = vrot.slane %v6895_v38, %v13904_v60  ;;  %v7232_v18 = vcombine.high %v12933_v44, %v12928_v46  ;;  %v4915_v1 = vadd.f32 %v12720_v25, %v4498_v47 }
 0x62b   :  { %7653 = vrot.lane.b32.xlu1 %v6878_v28, %s8533_s21  ;;  %v12940_v31 = vrot.slane %v7200_v48, %v13904_v60  ;;  %v14003_v28 = vld [vmem:[#allocation133_spill] sm:$0xff]  ;;  %v6911_v55 = vcombine.low %v4913_v4, %v4917_v63  ;;  %v6912_v50 = vcombine.high %v4913_v4, %v4917_v63  ;;  %v6880_v16 = vcombine.high %v4905_v39, %v4909_v6  ;;  %v14005_v4 = vld [vmem:[#allocation135_spill] sm:$0xff] }
 0x62c   :  { %v7184_v34 = vcombine.high %v12916_v49, %v12922_v30  ;;  %v6887_v11 = vrot.slane %v6879_v43, %v13904_v60  ;;  %v6910_v48 = vrot.slane %v6896_v40, %v13904_v60 }
 0x62d   :  { %v4357_v35 = vpop.permute.xlu0 %4356  ;;  %v4367_v52 = vpop.permute.xlu1 %4366  ;;  %v6919_v6 = vrot.slane %v6911_v55, %v13904_v60  ;;  %v6926_v39 = vrot.slane %v6912_v50, %v13904_v60 }
 0x62e   :  { %v12943_v19 = vrot.slane %v7184_v34, %v13904_v60  ;;  %v4502_v61 = vadd.f32 %v4357_v35, %v14003_v28  ;;  %v4507_v15 = vadd.f32 %v4367_v52, %v12132_v12  ;;  %v6943_v38 = vcombine.low %v6887_v11, %v6903_v62 }
 0x62f   :  { %6241 = vrot.lane.b32.xlu1 %v5887_v7, %s8532_s19  ;;  %v6944_v34 = vcombine.high %v6887_v11, %v6903_v62  ;;  %v6894_v35 = vrot.slane %v6880_v16, %v13904_v60  ;;  %v4505_v62 = vadd.f32 %v12887_v5, %v14005_v4 }
 0x630   :  { %v7264_v13 = vcombine.high %v12943_v19, %v12940_v31  ;;  %v4919_v42 = vadd.f32 %v12824_v9, %v4502_v61  ;;  %v12965_v9 = vrot.slane %v7232_v18, %v13930_v57  ;;  %v12981_v55 = vrot.slane %v6943_v38, %v13930_v57 }
 0x631   :  { %v4361_v53 = vpop.permute.xlu0 %4360  ;;  %v4784_v37 = vpop.permute.xlu1 %4783  ;;  %v6959_v40 = vcombine.low %v6894_v35, %v6910_v48  ;;  %v7199_v38 = vcombine.low %v12903_v2, %v12885_v0 }
 0x632   :  { %v12958_v7 = vrot.slane %v7264_v13, %v13930_v57  ;;  %v6927_v25 = vcombine.low %v4915_v1, %v4919_v42  ;;  %v6928_v56 = vcombine.high %v4915_v1, %v4919_v42  ;;  %v12961_v51 = vadd.f32 %v4784_v37, %v4507_v15 }
 0x633   :  { %v4504_v12 = vadd.f32 %v4361_v53, %v14004_v54  ;;  %v6958_v1 = vrot.slane %v6944_v34, %v13930_v57  ;;  %v7183_v15 = vcombine.low %v12916_v49, %v12922_v30  ;;  %v7167_v37 = vcombine.low %v12881_v10, %v12863_v22 }
 0x634   :  { %v6935_v43 = vrot.slane %v6927_v25, %v13904_v60  ;;  %v6942_v41 = vrot.slane %v6928_v56, %v13904_v60  ;;  %v7286_v47 = vcombine.high %v12965_v9, %v12958_v7  ;;  %v5970_v25 = vcombine.high %v12792_v29, %v12800_v26 }
 0x635   :  { %v4778_v63 = vpop.permute.xlu0 %4777  ;;  %v6002_v56 = vcombine.high %v12803_v24, %v12806_v33  ;;  %v6960_v30 = vcombine.high %v6894_v35, %v6910_v48  ;;  %v6967_v22 = vrot.slane %v6959_v40, %v13930_v57  ;;  %v7151_v29 = vcombine.low %v12878_v17, %v12867_v32 }
 0x636   :  { %v12972_v58 = vadd.f32 %v4778_v63, %v4504_v12  ;;  %v6975_v52 = vcombine.low %v6919_v6, %v6935_v43  ;;  %v6976_v28 = vcombine.high %v6919_v6, %v6935_v43  ;;  %v6991_v61 = vcombine.low %v6926_v39, %v6942_v41 }
 0x637   :  { %v6992_v53 = vcombine.high %v6926_v39, %v6942_v41  ;;  %v7191_v24 = vrot.slane %v7183_v15, %v13904_v60  ;;  %v13015_v54 = vrot.slane %v5970_v25, %v13930_v57  ;;  %v13018_v12 = vrot.slane %v6002_v56, %v13930_v57 }
 0x638   :  { %v6990_v13 = vrot.slane %v6976_v28, %v13930_v57  ;;  %v12984_v50 = vrot.slane %v6975_v52, %v13930_v57  ;;  %v6999_v11 = vrot.slane %v6991_v61, %v13930_v57  ;;  %v7175_v32 = vrot.slane %v7167_v37, %v13904_v60 }
 0x639   :  { %v4780_v18 = vpop.permute.xlu0 %4779  ;;  %v7006_v48 = vrot.slane %v6992_v53, %v13930_v57  ;;  %v6974_v6 = vrot.slane %v6960_v30, %v13930_v57  ;;  %v7159_v43 = vrot.slane %v7151_v29, %v13904_v60  ;;  %v6023_v40 = vcombine.low %v13015_v54, %v13018_v12 }
 0x63a   :  { %v12988_v42 = vadd.f32 %v4780_v18, %v4505_v62  ;;  %v7009_v16 = vcombine.low %v6958_v1, %v6990_v13  ;;  %v7008_v5 = vcombine.high %v12981_v55, %v12984_v50  ;;  %v7010_v33 = vcombine.high %v6958_v1, %v6990_v13 }
 0x63b   :  { %v7012_v10 = vcombine.high %v6967_v22, %v6999_v11  ;;  %v7011_v63 = vcombine.low %v6967_v22, %v6999_v11  ;;  %v7013_v35 = vcombine.low %v6974_v6, %v7006_v48  ;;  %v7215_v28 = vcombine.low %v7159_v43, %v7175_v32 }
 0x63c   :  { %7447 = vrot.lane.b32.xlu0 %v7009_v16, %s8517_s18  ;;  %7431 = vrot.lane.b32.xlu1 %v7008_v5, %s8516_s17  ;;  %v7216_v11 = vcombine.high %v7159_v43, %v7175_v32 }
 0x63d   :  { %v4365_v34 = vpop.permute.xlu0 %4364  ;;  %v7223_v13 = vrot.slane %v7215_v28, %v13930_v57 }
 0x63e   :  { %v4506_v26 = vadd.f32 %v4365_v34, %v12098_v3  ;;  %v7207_v3 = vrot.slane %v7199_v38, %v13904_v60  ;;  %v7230_v22 = vrot.slane %v7216_v11, %v13930_v57 }
 0x640   :  { %v13012_v0 = vadd.f32 %v12920_v21, %v4506_v26  ;;  %7463 = vrot.lane.b32.xlu0 %v7010_v33, %s8518_s11  ;;  %7495 = vrot.lane.b32.xlu1 %v7012_v10, %s8524_s28  ;;  %v14006_v21 = vcombine.low %v12582_v8, %v12585_v23  ;;  %v7247_v41 = vcombine.low %v7191_v24, %v7207_v3 }
 0x641   :  { %v7462_v2 = vpop.permute.xlu1 %7461  ;;  %v7430_v17 = vpop.permute.xlu0 %7429  ;;  %v7014_v23 = vcombine.high %v6974_v6, %v7006_v48  ;;  %v7248_v53 = vcombine.high %v7191_v24, %v7207_v3  ;;  %v7263_v26 = vcombine.low %v12943_v19, %v12940_v31 }
 0x642   :  { %v7664_v39 = vsel %vm87_vm0, %v14006_v21, %v7430_v17  ;;  %v7255_v8 = vrot.slane %v7247_v41, %v13930_v57 }
 0x643   :  { %v7262_v56 = vrot.slane %v7248_v53, %v13930_v57  ;;  %v7271_v6 = vrot.slane %v7263_v26, %v13930_v57  ;;  %v14012_v26 = vld [vmem:[#allocation18_spill] sm:$0xff] }
 0x644   :  { %7479 = vrot.lane.b32.xlu0 %v7011_v63, %s8523_s23  ;;  %7511 = vrot.lane.b32.xlu1 %v7013_v35, %s8519_s1  ;;  %v7279_v16 = vcombine.low %v7223_v13, %v7255_v8  ;;  %v7280_v30 = vcombine.high %v7223_v13, %v7255_v8  ;;  %v14008_v8 = vld [vmem:[#allocation71_spill] sm:$0xff] }
 0x645   :  { %v7526_v52 = vpop.permute.xlu1 %7525  ;;  %v7446_v61 = vpop.permute.xlu0 %7445  ;;  %v7281_v33 = vcombine.low %v7230_v22, %v7262_v56  ;;  %v7282_v19 = vcombine.high %v7230_v22, %v7262_v56 }
 0x646   :  { %v7668_v4 = vsel %vm1125_vm1, %v7664_v39, %v7446_v61 }
 0x647   :  { %v7672_v62 = vsel %vm1650_vm2, %v7668_v4, %v7462_v2  ;;  %v7231_v2 = vcombine.low %v12933_v44, %v12928_v46  ;;  %v14007_v4 = vld [vmem:[#allocation72_spill] sm:$0xff] }
 0x648   :  { %6243 = vrot.lane.b32.xlu0 %v6023_v40, %s8532_s19  ;;  %7527 = vrot.lane.b32.xlu1 %v7014_v23, %s8525_s14  ;;  %v5065_v23 = vcombine.low %v14008_v8, %v14007_v4 }
 0x649   :  { %v7542_v18 = vpop.permute.xlu1 %7541  ;;  %v7478_v1 = vpop.permute.xlu0 %7477  ;;  %v7239_v46 = vrot.slane %v7231_v2, %v13930_v57 }
 0x64a   :  { %v7676_v15 = vsel %vm6277_vm7, %v7672_v62, %v7478_v1 }
 0x64b   :  { %v7283_v44 = vcombine.low %v7239_v46, %v7271_v6 }
 0x64c   :  { %7543 = vrot.lane.b32.xlu1 %v7279_v16, %s8526_s20  ;;  %v14009_v16 = vld [vmem:[#allocation75_spill] sm:$0xff] }
 0x64d   :  { %v7558_v5 = vpop.permute.xlu1 %7557  ;;  %v7494_v37 = vpop.permute.xlu0 %7493 }
 0x64e   :  { %v7680_v25 = vsel %vm6282_vm8, %v7676_v15, %v7494_v37 }
 0x650   :  { %7559 = vrot.lane.b32.xlu1 %v7280_v30, %s8527_s12 }
 0x651   :  { %v7574_v38 = vpop.permute.xlu1 %7573  ;;  %v7510_v34 = vpop.permute.xlu0 %7509 }
 0x652   :  { %v7684_v29 = vsel %vm1715_vm3, %v7680_v25, %v7510_v34  ;;  %v14011_v25 = vld [vmem:[#allocation15_spill] sm:$0xff] }
 0x653   :  { %v7688_v24 = vsel %vm6291_vm9, %v7684_v29, %v7526_v52  ;;  %v7284_v52 = vcombine.high %v7239_v46, %v7271_v6 }
 0x654   :  { %v7692_v10 = vsel %vm6296_vm10, %v7688_v24, %v7542_v18  ;;  %7575 = vrot.lane.b32.xlu1 %v7281_v33, %s8528_s2  ;;  %v7285_v18 = vcombine.low %v12965_v9, %v12958_v7  ;;  %v14013_v33 = vld [vmem:[#allocation19_spill] sm:$0xff] }
 0x655   :  { %v7590_v48 = vpop.permute.xlu1 %7589  ;;  %v7696_v32 = vsel %vm1796_vm4, %v7692_v10, %v7558_v5  ;;  %v4369_v3 = vpop.permute.xlu0 %4368  ;;  %v14010_v5 = vld [vmem:[#allocation74_spill] sm:$0xff] }
 0x656   :  { %v7700_v17 = vsel %vm6305_vm11, %v7696_v32, %v7574_v38  ;;  %v4508_v35 = vadd.f32 %v4369_v3, %v12165_v36  ;;  %v5201_v11 = vcombine.low %v14010_v5, %v14009_v16  ;;  %v14020_v16 = vld [vmem:[#allocation21_spill] sm:$0xff]  ;;  %v14021_v5 = vld [vmem:[#allocation78_spill] sm:$0xff] }
 0x657   :  { %v7704_v31 = vsel %vm6310_vm12, %v7700_v17, %v7590_v48 }
 0x658   :  { %7591 = vrot.lane.b32.xlu1 %v7282_v19, %s8529_s15  ;;  %v6266_v24 = vsel %vm87_vm0, %v5201_v11, %v14012_v26 }
 0x659   :  { %v7606_v21 = vpop.permute.xlu1 %7605  ;;  %v4786_v43 = vpop.permute.xlu0 %4785 }
 0x65a   :  { %v13060_v39 = vsel %vm6315_vm13, %v7704_v31, %v7606_v21  ;;  %v4925_v61 = vadd.f32 %v4786_v43, %v4508_v35  ;;  %v14014_v31 = vld [vmem:[#allocation22_spill] sm:$0xff]  ;;  %v14015_v43 = vld [vmem:[#allocation23_spill] sm:$0xff] }
 0x65b   :  { %v6270_v19 = vsel %vm1125_vm1, %v6266_v24, %v14014_v31 }
 0x65c   :  { %7607 = vrot.lane.b32.xlu1 %v7283_v44, %s8530_s0  ;;  %v7015_v13 = vcombine.low %v12972_v58, %v4925_v61  ;;  %v7016_v15 = vcombine.high %v12972_v58, %v4925_v61 }
 0x65d   :  { %v13063_v41 = vpop.permute.xlu1 %7621  ;;  %v4788_v63 = vpop.permute.xlu0 %4787 }
 0x65e   :  { %v13086_v58 = vrot.slane %v7015_v13, %v13904_v60  ;;  %v13089_v34 = vrot.slane %v7016_v15, %v13904_v60 }
 0x660   :  { %7623 = vrot.lane.b32.xlu1 %v7284_v52, %s8531_s16  ;;  %v14016_v52 = vld [vmem:[#allocation40_spill] sm:$0xff] }
 0x661   :  { %v4371_v28 = vpop.permute.xlu1 %4370  ;;  %v4373_v40 = vpop.permute.xlu0 %4372 }
 0x662   :  { %v4510_v62 = vadd.f32 %v4373_v40, %v13955_v59  ;;  %v4509_v37 = vadd.f32 %v4371_v28, %v12157_v45  ;;  %v6265_v59 = vsel %vm87_vm0, %v5065_v23, %v14011_v25  ;;  %v14017_v28 = vld [vmem:[#allocation44_spill] sm:$0xff]  ;;  %v14018_v40 = vld [vmem:[#allocation26_spill] sm:$0xff] }
 0x663   :  { %v5745_v61 = vcombine.low %v14017_v28, %v14016_v52  ;;  %v14028_v52 = vld [vmem:[#allocation89_spill] sm:$0xff] }
 0x664   :  { %7639 = vrot.lane.b32.xlu1 %v7285_v18, %s8532_s19  ;;  %v4926_v10 = vadd.f32 %v4788_v63, %v4509_v37 }
 0x665   :  { %v4790_v1 = vpop.permute.xlu1 %4789  ;;  %v13076_v53 = vpop.permute.xlu0 %4376 }
 0x666   :  { %v4927_v36 = vadd.f32 %v4790_v1, %v4510_v62  ;;  %v7287_v44 = vcombine.low %v12988_v42, %v4926_v10  ;;  %v7288_v63 = vcombine.high %v12988_v42, %v4926_v10  ;;  %v14019_v62 = vld [vmem:[#allocation31_spill] sm:$0xff]  ;;  %v14024_v10 = vld [vmem:[#allocation84_spill] sm:$0xff] }
 0x668   :  { %v7031_v56 = vcombine.low %v13012_v0, %v4927_v36  ;;  %v7032_v30 = vcombine.high %v13012_v0, %v4927_v36  ;;  %v6269_v0 = vsel %vm1125_vm1, %v6265_v59, %v14013_v33  ;;  %v13131_v13 = vrot.slane %v7287_v44, %v13904_v60  ;;  %v14023_v33 = vld [vmem:[#allocation25_spill] sm:$0xff] }
 0x669   :  { %v4375_v38 = vpop.permute.xlu1 %4374  ;;  %v13097_v45 = vpop.permute.xlu0 %4793  ;;  %v6273_v46 = vsel %vm1650_vm2, %v6269_v0, %v14015_v43  ;;  %v13134_v42 = vrot.slane %v7288_v63, %v13904_v60  ;;  %v14027_v63 = vld [vmem:[#allocation88_spill] sm:$0xff] }
 0x66a   :  { %v13092_v22 = vrot.slane %v7031_v56, %v13904_v60  ;;  %v13095_v29 = vrot.slane %v7032_v30, %v13904_v60  ;;  %v4511_v17 = vadd.f32 %v4375_v38, %v13954_v14  ;;  %v6274_v14 = vsel %vm1650_vm2, %v6270_v19, %v14018_v40  ;;  %v14022_v38 = vld [vmem:[#allocation83_spill] sm:$0xff]  ;;  %v14029_v40 = vld [vmem:[#allocation90_spill] sm:$0xff] }
 0x66b   :  { %v6278_v18 = vsel %vm6277_vm7, %v6273_v46, %v14019_v62  ;;  %v6279_v11 = vsel %vm6277_vm7, %v6274_v14, %v14021_v5  ;;  %v14026_v46 = vld [vmem:[#allocation28_spill] sm:$0xff] }
 0x66c   :  { %v7079_v48 = vcombine.low %v13086_v58, %v13092_v22  ;;  %v7080_v2 = vcombine.high %v13086_v58, %v13092_v22  ;;  %v7095_v32 = vcombine.low %v13089_v34, %v13095_v29  ;;  %v7096_v3 = vcombine.high %v13089_v34, %v13095_v29 }
 0x66d   :  { %v4792_v6 = vpop.permute.xlu1 %4791  ;;  %v13114_v21 = vpop.permute.xlu0 %4795  ;;  %v6283_v26 = vsel %vm6282_vm8, %v6278_v18, %v14022_v38  ;;  %v14031_v18 = vld [vmem:[#allocation92_spill] sm:$0xff] }
 0x66e   :  { %v4928_v35 = vadd.f32 %v4792_v6, %v4511_v17  ;;  %v6284_v17 = vsel %vm6282_vm8, %v6279_v11, %v14024_v10  ;;  %v14025_v6 = vld [vmem:[#allocation86_spill] sm:$0xff]  ;;  %v14033_v11 = vld [vmem:[#allocation60_spill] sm:$0xff] }
 0x66f   :  { %v6287_v31 = vsel %vm1715_vm3, %v6283_v26, %v14025_v6 }
 0x670   :  { %v7303_v4 = vcombine.low %v12961_v51, %v4928_v35  ;;  %v7304_v8 = vcombine.high %v12961_v51, %v4928_v35  ;;  %v6268_v51 = vsel %vm87_vm0, %v5745_v61, %v14020_v16  ;;  %v6288_v35 = vsel %vm1715_vm3, %v6284_v17, %v14027_v63  ;;  %v14035_v17 = vld [vmem:[#allocation95_spill] sm:$0xff] }
 0x671   :  { %v13126_v23 = vpop.permute.xlu1 %4378  ;;  %v4381_v1 = vpop.permute.xlu0 %4380  ;;  %v6272_v0 = vsel %vm1125_vm1, %v6268_v51, %v14023_v33  ;;  %v6292_v28 = vsel %vm6291_vm9, %v6287_v31, %v14028_v52  ;;  %v14032_v51 = vld [vmem:[#allocation93_spill] sm:$0xff]  ;;  %v14034_v33 = vld [vmem:[#allocation94_spill] sm:$0xff]  ;;  %v14036_v31 = vld [vmem:[#allocation67_spill] sm:$0xff] }
 0x672   :  { %v13137_v15 = vrot.slane %v7303_v4, %v13904_v60  ;;  %v13140_v36 = vrot.slane %v7304_v8, %v13904_v60  ;;  %v6276_v44 = vsel %vm1650_vm2, %v6272_v0, %v14026_v46  ;;  %v14030_v4 = vld [vmem:[#allocation53_spill] sm:$0xff]  ;;  %v6297_v16 = vsel %vm6296_vm10, %v6292_v28, %v14031_v18 }
 0x673   :  { %v6281_v14 = vsel %vm6277_vm7, %v6276_v44, %v14029_v40  ;;  %v6293_v8 = vsel %vm6291_vm9, %v6288_v35, %v14030_v4  ;;  %v6301_v0 = vsel %vm1796_vm4, %v6297_v16, %v14034_v33  ;;  %v14037_v44 = vld [vmem:[#allocation49_spill] sm:$0xff]  ;;  %v14041_v16 = vld [vmem:[#allocation100_spill] sm:$0xff] }
 0x674   :  { %v7351_v37 = vcombine.low %v13131_v13, %v13137_v15  ;;  %v7352_v25 = vcombine.high %v13131_v13, %v13137_v15  ;;  %v7367_v59 = vcombine.low %v13134_v42, %v13140_v36  ;;  %v7368_v56 = vcombine.high %v13134_v42, %v13140_v36  ;;  %v14038_v28 = vld [vmem:[#allocation97_spill] sm:$0xff]  ;;  %v14060_v36 = vld [vmem:[#allocation42_spill] sm:$0xff] }
 0x675   :  { %v4798_v30 = vpop.permute.xlu1 %4797  ;;  %v4385_v24 = vpop.permute.xlu0 %4384  ;;  %v6286_v5 = vsel %vm6282_vm8, %v6281_v14, %v14032_v51  ;;  %v6298_v38 = vsel %vm6296_vm10, %v6293_v8, %v14033_v11  ;;  %v6306_v63 = vsel %vm6305_vm11, %v6301_v0, %v14037_v44  ;;  %v14039_v14 = vld [vmem:[#allocation36_spill] sm:$0xff]  ;;  %v14043_v0 = vld [vmem:[#allocation105_spill] sm:$0xff]  ;;  %v6024_v15 = vcombine.high %v13015_v54, %v13018_v12 }
 0x676   :  { %v6290_v6 = vsel %vm1715_vm3, %v6286_v5, %v14035_v17  ;;  %v6302_v46 = vsel %vm1796_vm4, %v6298_v38, %v14036_v31  ;;  %v14040_v8 = vld [vmem:[#allocation56_spill] sm:$0xff]  ;;  %v6311_v51 = vsel %vm6310_vm12, %v6306_v63, %v14041_v16  ;;  %v14042_v5 = vld [vmem:[#allocation29_spill] sm:$0xff]  ;;  %v14044_v31 = vld [vmem:[#allocation102_spill] sm:$0xff]  ;;  %v7382_v34 = vrot.slane %v7368_v56, %v13930_v57 }
 0x677   :  { %v6295_v40 = vsel %vm6291_vm9, %v6290_v6, %v14038_v28  ;;  %v6307_v4 = vsel %vm6305_vm11, %v6302_v46, %v14039_v14  ;;  %v4516_v18 = vadd.f32 %v4385_v24, %v14040_v8  ;;  %v4512_v11 = vadd.f32 %v13076_v53, %v14042_v5  ;;  %v14045_v28 = vld [vmem:[#allocation108_spill] sm:$0xff]  ;;  %v14047_v8 = vld [vmem:[#allocation87_spill] sm:$0xff]  ;;  %v14048_v53 = vld [vmem:[#allocation113_spill] sm:$0xff] }
 0x678   :  { %v6300_v17 = vsel %vm6296_vm10, %v6295_v40, %v14043_v0  ;;  %v6312_v6 = vsel %vm6310_vm12, %v6307_v4, %v14044_v31  ;;  %v6316_v46 = vsel %vm6315_vm13, %v6311_v51, %v14045_v28  ;;  %v14046_v14 = vld [vmem:[#allocation80_spill] sm:$0xff]  ;;  %v7359_v56 = vrot.slane %v7351_v37, %v13930_v57 }
 0x679   :  { %v4383_v19 = vpop.permute.xlu1 %4382  ;;  %v4802_v43 = vpop.permute.xlu0 %4801  ;;  %v4929_v24 = vadd.f32 %v13097_v45, %v4512_v11  ;;  %v4514_v63 = vadd.f32 %v4381_v1, %v14046_v14  ;;  %v14050_v4 = vld [vmem:[#allocation116_spill] sm:$0xff]  ;;  %v14051_v1 = vld [vmem:[#allocation121_spill] sm:$0xff]  ;;  %v14052_v11 = vld [vmem:[#allocation118_spill] sm:$0xff] }
 0x67a   :  { %v4933_v38 = vadd.f32 %v4802_v43, %v4516_v18  ;;  %v6304_v43 = vsel %vm1796_vm4, %v6300_v17, %v14048_v53  ;;  %v14049_v18 = vld [vmem:[#allocation110_spill] sm:$0xff]  ;;  %v6321_v31 = vsel %vm6320_vm14, %v6316_v46, %v14050_v4 }
 0x67b   :  { %v6317_v5 = vsel %vm6315_vm13, %v6312_v6, %v14049_v18  ;;  %v4931_v51 = vadd.f32 %v4798_v30, %v4514_v63  ;;  %v14053_v6 = vld [vmem:[#allocation124_spill] sm:$0xff]  ;;  %v14054_v30 = vld [vmem:[#allocation30_spill] sm:$0xff] }
 0x67c   :  { %v7047_v40 = vcombine.low %v4929_v24, %v4933_v38  ;;  %v7048_v0 = vcombine.high %v4929_v24, %v4933_v38  ;;  %v6322_v17 = vsel %vm6320_vm14, %v6317_v5, %v14052_v11  ;;  %v6326_v38 = vsel %vm6325_vm15, %v6321_v31, %v14053_v6  ;;  %v13237_v4 = vld [vmem:[%s13453_s4] ss:$0 sm:$0xff]  ;;  %v14058_v6 = vld [vmem:[#allocation52_spill] sm:$0xff] }
 0x67d   :  { %v13168_v61 = vpop.permute.xlu1 %4799  ;;  %v13174_v62 = vpop.permute.xlu0 %4803 }
 0x67e   :  { %v7055_v24 = vrot.slane %v7047_v40, %v13904_v60  ;;  %v13226_v46 = vrot.slane %v7048_v0, %v13904_v60  ;;  %v14056_v0 = vld [vmem:[#allocation82_spill] sm:$0xff] }
 0x67f   :  { %v4515_v31 = vadd.f32 %v4383_v19, %v14056_v0  ;;  %v14059_v0 = vld [vmem:[#allocation126_spill] sm:$0xff] }
 0x681   :  { %v4387_v26 = vpop.permute.xlu1 %4386  ;;  %v4389_v10 = vpop.permute.xlu0 %4388 }
 0x682   :  { %v4518_v16 = vadd.f32 %v4389_v10, %v14047_v8  ;;  %v6309_v10 = vsel %vm6305_vm11, %v6304_v43, %v14051_v1 }
 0x685   :  { %v13190_v35 = vpop.permute.xlu1 %7637  ;;  %v7636_v52 = vpop.permute.xlu0 %7635 }
 0x689   :  { %v13201_v33 = vpop.permute.xlu1 %6225  ;;  %v6196_v44 = vpop.permute.xlu0 %6195 }
 0x68d   :  { %v4806_v49 = vpop.permute.xlu1 %4805  ;;  %v6254_v45 = vpop.permute.xlu0 %6253 }
 0x68e   :  { %v4935_v28 = vadd.f32 %v4806_v49, %v4518_v16  ;;  %v4517_v49 = vadd.f32 %v4387_v26, %v14054_v30  ;;  %v14055_v16 = vld [vmem:[#allocation61_spill] sm:$0xff]  ;;  %v6331_v5 = vsel %vm6330_vm5, %v6326_v38, %v6254_v45  ;;  %v13243_v26 = vrot.slane %v7079_v48, %v13930_v57 }
 0x68f   :  { %v7715_v53 = vsel %vm6325_vm15, %v14055_v16, %v7636_v52  ;;  %v7094_v52 = vrot.slane %v7080_v2, %v13930_v57  ;;  %v7734_v48 = vand.u32 2147483647, %v6331_v5  ;;  %v6314_v2 = vsel %vm6310_vm12, %v6309_v10, %v6196_v44 }
 0x690   :  { %v7063_v14 = vcombine.low %v4931_v51, %v4935_v28  ;;  %v7064_v8 = vcombine.high %v4931_v51, %v4935_v28  ;;  %v14057_v28 = vld [vmem:[#allocation69_spill] sm:$0xff]  ;;  %v4934_v22 = vadd.f32 %v13174_v62, %v4517_v49  ;;  %v7103_v44 = vrot.slane %v7095_v32, %v13930_v57 }
 0x691   :  { %v4391_v63 = vpop.permute.xlu1 %4390  ;;  %v7652_v40 = vpop.permute.xlu0 %7651  ;;  %v4513_v45 = vadd.f32 %v13126_v23, %v14057_v28  ;;  %v13276_v28 = vld [vmem:[#allocation3] sm:$0xff] }
 0x692   :  { %v7071_v43 = vrot.slane %v7063_v14, %v13904_v60  ;;  %v7078_v18 = vrot.slane %v7064_v8, %v13904_v60  ;;  %v7719_v51 = vsel %vm6330_vm5, %v7715_v53, %v7652_v40  ;;  %v4932_v8 = vadd.f32 %v13168_v61, %v4515_v31 }
 0x693   :  { %v4519_v38 = vadd.f32 %v4391_v63, %v14058_v6  ;;  %v7730_v30 = vadd.f32 %v13237_v4, %v7719_v51  ;;  %v4930_v63 = vadd.f32 %v13114_v21, %v4513_v45  ;;  %v6327_v31 = vsel %vm6325_vm15, %v6322_v17, %v14059_v0 }
 0x694   :  { %v7111_v1 = vcombine.low %v7055_v24, %v7071_v43  ;;  %v7112_v11 = vcombine.high %v7055_v24, %v7071_v43  ;;  %v7127_v14 = vcombine.low %v13226_v46, %v7078_v18  ;;  %v7712_v45 = vsel %vm6320_vm14, %v13060_v39, %v13063_v41 }
 0x695   :  { %v4808_v58 = vpop.permute.xlu1 %4807  ;;  %v6212_v24 = vpop.permute.xlu0 %6211  ;;  %v7738_v53 = vadd.f32 %v7734_v48, %v7730_v30  ;;  %v7320_v51 = vcombine.high %v4930_v63, %v4934_v22  ;;  %v7128_v32 = vcombine.high %v13226_v46, %v7078_v18  ;;  %v5888_v46 = vcombine.high %v12872_v27, %v12875_v20 }
 0x696   :  { %v13260_v19 = vrot.slane %v7111_v1, %v13930_v57  ;;  %v7126_v23 = vrot.slane %v7112_v11, %v13930_v57  ;;  %v7135_v16 = vrot.slane %v7127_v14, %v13930_v57  ;;  %v4936_v61 = vadd.f32 %v4808_v58, %v4519_v38 }
 0x697   :  { %v13265_v43 = vsel %vm6315_vm13, %v6314_v2, %v6212_v24  ;;  %vm7742_vm6 = vcmp.gt.f32.partialorder %v7738_v53, 0.0  ;;  %v7716_v38 = vsel %vm6325_vm15, %v7712_v45, %v13190_v35  ;;  %v7319_v18 = vcombine.low %v4930_v63, %v4934_v22 }
 0x698   :  { %v7146_v40 = vcombine.high %v7094_v52, %v7126_v23  ;;  %v7144_v62 = vcombine.high %v13243_v26, %v13260_v19  ;;  %v7336_v10 = vcombine.high %v4932_v8, %v4936_v61  ;;  %v7746_v21 = vsel %vm7742_vm6, 1.0, %v13276_v28 }
 0x699   :  { %v6256_v49 = vpop.permute.xlu1 %6255  ;;  %v7750_v1 = vmul.f32 %v7746_v21, %v6331_v5  ;;  %v7147_v11 = vcombine.low %v7103_v44, %v7135_v16  ;;  %v7335_v14 = vcombine.low %v4932_v8, %v4936_v61  ;;  %v7145_v48 = vcombine.low %v7094_v52, %v7126_v23 }
 0x69a   :  { %7465 = vrot.lane.b32.xlu0 %v7146_v40, %s8518_s11  ;;  %7433 = vrot.lane.b32.xlu1 %v7144_v62, %s8516_s17  ;;  %v7350_v17 = vrot.slane %v7336_v10, %v13904_v60  ;;  %v7143_v6 = vcombine.low %v13243_v26, %v13260_v19  ;;  %v6332_v39 = vsel %vm6330_vm5, %v6327_v31, %v6256_v49 }
 0x69b   :  { %7754 = vst [vmem:[%s13454_s5] sm:$0xff] %v7750_v1  ;;  %v7334_v5 = vrot.slane %v7320_v51, %v13904_v60  ;;  %v7142_v35 = vrot.slane %v7128_v32, %v13930_v57  ;;  %v7148_v8 = vcombine.high %v7103_v44, %v7135_v16  ;;  %v7343_v30 = vrot.slane %v7335_v14, %v13904_v60 }
 0x69c   :  { %v7735_v2 = vand.u32 2147483647, %v6332_v39  ;;  %v7110_v27 = vrot.slane %v7096_v3, %v13930_v57  ;;  %v7327_v20 = vrot.slane %v7319_v18, %v13904_v60  ;;  %v7366_v10 = vrot.slane %v7352_v25, %v13930_v57  ;;  %v14064_v18 = vld [vmem:[#allocation27_spill] sm:$0xff] }
 0x69d   :  { %v7654_v41 = vpop.permute.xlu1 %7653  ;;  %v7400_v58 = vcombine.high %v7334_v5, %v7350_v17  ;;  %v7399_v37 = vcombine.low %v7334_v5, %v7350_v17  ;;  %v7375_v51 = vrot.slane %v7367_v59, %v13930_v57  ;;  %v14061_v59 = vld [vmem:[#allocation73_spill] sm:$0xff] }
 0x69e   :  { %v7720_v52 = vsel %vm6330_vm5, %v7716_v38, %v7654_v41  ;;  %7481 = vrot.lane.b32.xlu0 %v7147_v11, %s8523_s23  ;;  %7449 = vrot.lane.b32.xlu1 %v7145_v48, %s8517_s18  ;;  %v7383_v24 = vcombine.low %v7327_v20, %v7343_v30  ;;  %v7149_v53 = vcombine.low %v7110_v27, %v7142_v35  ;;  %v13355_v48 = vpop.permute.xlu0 %6227  ;;  %v14062_v38 = vld [vmem:[#allocation16_spill] sm:$0xff] }
 0x69f   :  { %v7731_v23 = vadd.f32 %v13237_v4, %v7720_v52  ;;  %v7414_v16 = vrot.slane %v7400_v58, %v13930_v57  ;;  %v7150_v63 = vcombine.high %v7110_v27, %v7142_v35  ;;  %v7384_v62 = vcombine.high %v7327_v20, %v7343_v30  ;;  %v14063_v41 = vld [vmem:[#allocation20_spill] sm:$0xff]  ;;  %v14065_v52 = vld [vmem:[#allocation81_spill] sm:$0xff]  ;;  %v14066_v58 = vld [vmem:[#allocation50_spill] sm:$0xff] }
 0x6a0   :  { %v7391_v60 = vrot.slane %v7383_v24, %v13930_v57  ;;  %v7407_v0 = vrot.slane %v7399_v37, %v13930_v57  ;;  %v5609_v14 = vcombine.low %v14061_v59, %v14060_v36  ;;  %v14068_v24 = vcombine.low %v12981_v55, %v12984_v50 }
 0x6a1   :  { %v7739_v22 = vadd.f32 %v7735_v2, %v7731_v23  ;;  %v7421_v40 = vcombine.low %v7382_v34, %v7414_v16  ;;  %v7422_v9 = vcombine.high %v7382_v34, %v7414_v16  ;;  %v6242_v25 = vpop.permute.xlu1 %6241  ;;  %v14067_v23 = vld [vmem:[#allocation58_spill] sm:$0xff] }
 0x6a2   :  { %7497 = vrot.lane.b32.xlu0 %v7148_v8, %s8524_s28  ;;  %6257 = vrot.lane.b32.xlu1 %v5888_v46, %s8533_s21  ;;  %v7415_v7 = vcombine.low %v7359_v56, %v7391_v60  ;;  %v7416_v44 = vcombine.high %v7359_v56, %v7391_v60  ;;  %v7420_v13 = vcombine.high %v7375_v51, %v7407_v0  ;;  %v14070_v60 = vld [vmem:[#allocation51_spill] sm:$0xff] }
 0x6a3   :  { %vm7743_vm6 = vcmp.gt.f32.partialorder %v7739_v22, 0.0 }
 0x6a4   :  { %v7747_v61 = vsel %vm7743_vm6, 1.0, %v13276_v28 }
 0x6a5   :  { %v7751_v29 = vmul.f32 %v7747_v61, %v6332_v39  ;;  %v13316_v3 = vadd.f32 %v7747_v61, %v7746_v21  ;;  %v7419_v21 = vcombine.low %v7375_v51, %v7407_v0  ;;  %v6267_v39 = vsel %vm87_vm0, %v5609_v14, %v14062_v38 }
 0x6a6   :  { %7513 = vrot.lane.b32.xlu0 %v7149_v53, %s8519_s1  ;;  %7655 = vrot.lane.b32.xlu1 %v7286_v47, %s8533_s21  ;;  %v7398_v47 = vrot.slane %v7384_v62, %v13930_v57  ;;  %v6271_v54 = vsel %vm1125_vm1, %v6267_v39, %v14063_v41  ;;  %v14069_v53 = vld [vmem:[#allocation65_spill] sm:$0xff] }
 0x6a7   :  { %7755 = vst [vmem:[%s13454_s5 + $0x8] sm:$0xff] %v7751_v29  ;;  %v6275_v5 = vsel %vm1650_vm2, %v6271_v54, %v14064_v18 }
 0x6a8   :  { %v7417_v49 = vcombine.low %v7366_v10, %v7398_v47  ;;  %v7418_v31 = vcombine.high %v7366_v10, %v7398_v47  ;;  %v6280_v35 = vsel %vm6277_vm7, %v6275_v5, %v14065_v52 }
 0x6a9   :  { %v6285_v2 = vsel %vm6282_vm8, %v6280_v35, %v14066_v58 }
 0x6aa   :  { %7529 = vrot.lane.b32.xlu0 %v7150_v63, %s8525_s14  ;;  %7641 = vrot.lane.b32.xlu1 %v7421_v40, %s8532_s19  ;;  %v6289_v27 = vsel %vm1715_vm3, %v6285_v2, %v14067_v23 }
 0x6ab   :  { %v6294_v61 = vsel %vm6291_vm9, %v6289_v27, %v14069_v53 }
 0x6ac   :  { %v6299_v63 = vsel %vm6296_vm10, %v6294_v61, %v14070_v60 }
 0x6ae   :  { %7545 = vrot.lane.b32.xlu0 %v7415_v7, %s8526_s20  ;;  %7657 = vrot.lane.b32.xlu1 %v7422_v9, %s8533_s21  ;;  %v7432_v45 = vpop.permute.xlu1 %7431  ;;  %v7448_v12 = vpop.permute.xlu0 %7447  ;;  %v14071_v7 = vld [vmem:[#allocation99_spill] sm:$0xff] }
 0x6af   :  { %v7665_v16 = vsel %vm87_vm0, %v14068_v24, %v7432_v45  ;;  %v6303_v9 = vsel %vm1796_vm4, %v6299_v63, %v14071_v7  ;;  %v14074_v45 = vld [vmem:[#allocation123_spill] sm:$0xff]  ;;  %v6324_v7 = vsel %vm6320_vm14, %v13265_v43, %v13355_v48 }
 0x6b0   :  { %v7669_v34 = vsel %vm1125_vm1, %v7665_v16, %v7448_v12 }
 0x6b2   :  { %7561 = vrot.lane.b32.xlu0 %v7416_v44, %s8527_s12  ;;  %v7496_v32 = vpop.permute.xlu1 %7495  ;;  %v7464_v8 = vpop.permute.xlu0 %7463  ;;  %v14072_v44 = vld [vmem:[#allocation107_spill] sm:$0xff] }
 0x6b3   :  { %v7673_v29 = vsel %vm1650_vm2, %v7669_v34, %v7464_v8  ;;  %v6308_v10 = vsel %vm6305_vm11, %v6303_v9, %v14072_v44 }
 0x6b6   :  { %7577 = vrot.lane.b32.xlu0 %v7417_v49, %s8528_s2  ;;  %v7512_v1 = vpop.permute.xlu1 %7511  ;;  %v7480_v20 = vpop.permute.xlu0 %7479 }
 0x6b7   :  { %v7677_v40 = vsel %vm6277_vm7, %v7673_v29, %v7480_v20 }
 0x6b8   :  { %v7681_v55 = vsel %vm6282_vm8, %v7677_v40, %v7496_v32 }
 0x6b9   :  { %v7685_v37 = vsel %vm1715_vm3, %v7681_v55, %v7512_v1 }
 0x6ba   :  { %7593 = vrot.lane.b32.xlu0 %v7418_v31, %s8529_s15  ;;  %v7528_v11 = vpop.permute.xlu1 %7527  ;;  %v6244_v56 = vpop.permute.xlu0 %6243  ;;  %v14073_v31 = vld [vmem:[#allocation115_spill] sm:$0xff] }
 0x6bb   :  { %v6313_v51 = vsel %vm6310_vm12, %v6308_v10, %v14073_v31  ;;  %v6329_v55 = vsel %vm6325_vm15, %v6324_v7, %v6244_v56 }
 0x6bc   :  { %v6318_v32 = vsel %vm6315_vm13, %v6313_v51, %v14074_v45 }
 0x6bd   :  { %v6323_v1 = vsel %vm6320_vm14, %v6318_v32, %v13201_v33 }
 0x6be   :  { %7609 = vrot.lane.b32.xlu0 %v7419_v21, %s8530_s0  ;;  %v7544_v42 = vpop.permute.xlu1 %7543  ;;  %v7689_v21 = vsel %vm6291_vm9, %v7685_v37, %v7528_v11  ;;  %v6328_v39 = vsel %vm6325_vm15, %v6323_v1, %v6242_v25 }
 0x6c2   :  { %7625 = vrot.lane.b32.xlu0 %v7420_v13, %s8531_s16  ;;  %v7560_v57 = vpop.permute.xlu1 %7559  ;;  %v7693_v13 = vsel %vm6296_vm10, %v7689_v21, %v7544_v42 }
 0x6c6   :  { %6259 = vrot.lane.b32.xlu0 %v6024_v15, %s8533_s21  ;;  %v7576_v17 = vpop.permute.xlu1 %7575  ;;  %v7697_v15 = vsel %vm1796_vm4, %v7693_v13, %v7560_v57 }
 0x6c7   :  { %v7701_v36 = vsel %vm6305_vm11, %v7697_v15, %v7576_v17 }
 0x6ca   :  { %v7592_v46 = vpop.permute.xlu1 %7591 }
 0x6cb   :  { %v7705_v38 = vsel %vm6310_vm12, %v7701_v36, %v7592_v46 }
 0x6ce   :  { %v7608_v30 = vpop.permute.xlu1 %7607 }
 0x6cf   :  { %v7709_v11 = vsel %vm6315_vm13, %v7705_v38, %v7608_v30 }
 0x6d2   :  { %v7624_v22 = vpop.permute.xlu1 %7623 }
 0x6d3   :  { %v7713_v42 = vsel %vm6320_vm14, %v7709_v11, %v7624_v22 }
 0x6d6   :  { %v7640_v62 = vpop.permute.xlu1 %7639 }
 0x6d7   :  { %v7717_v41 = vsel %vm6325_vm15, %v7713_v42, %v7640_v62 }
 0x70c   :  { %v7434_v50 = vpop.permute.xlu1 %7433  ;;  %v7466_v47 = vpop.permute.xlu0 %7465 }
 0x70d   :  { %v7666_v30 = vsel %vm87_vm0, %v7143_v6, %v7434_v50 }
 0x710   :  { %v7450_v49 = vpop.permute.xlu1 %7449  ;;  %v7482_v0 = vpop.permute.xlu0 %7481 }
 0x711   :  { %v7670_v58 = vsel %vm1125_vm1, %v7666_v30, %v7450_v49 }
 0x712   :  { %v7674_v23 = vsel %vm1650_vm2, %v7670_v58, %v7466_v47 }
 0x713   :  { %v7678_v20 = vsel %vm6277_vm7, %v7674_v23, %v7482_v0 }
 0x714   :  { %v6258_v59 = vpop.permute.xlu1 %6257  ;;  %v7498_v14 = vpop.permute.xlu0 %7497 }
 0x715   :  { %v6333_v57 = vsel %vm6330_vm5, %v6328_v39, %v6258_v59 }
 0x716   :  { %v7736_v18 = vand.u32 2147483647, %v6333_v57 }
 0x718   :  { %v7656_v54 = vpop.permute.xlu1 %7655  ;;  %v7514_v12 = vpop.permute.xlu0 %7513 }
 0x719   :  { %v7721_v17 = vsel %vm6330_vm5, %v7717_v41, %v7656_v54 }
 0x71a   :  { %v7732_v5 = vadd.f32 %v13237_v4, %v7721_v17 }
 0x71c   :  { %v7740_v33 = vadd.f32 %v7736_v18, %v7732_v5  ;;  %v7530_v52 = vpop.permute.xlu0 %7529  ;;  %v7642_v53 = vpop.permute.xlu1 %7641 }
 0x71e   :  { %vm7744_vm6 = vcmp.gt.f32.partialorder %v7740_v33, 0.0 }
 0x71f   :  { %v7748_v25 = vsel %vm7744_vm6, 1.0, %v13276_v28 }
 0x720   :  { %v7752_v46 = vmul.f32 %v7748_v25, %v6333_v57  ;;  %v7546_v35 = vpop.permute.xlu0 %7545  ;;  %v7759_v8 = vadd.f32 %v13316_v3, %v7748_v25  ;;  %v7682_v3 = vsel %vm6282_vm8, %v7678_v20, %v7498_v14  ;;  %v7658_v40 = vpop.permute.xlu1 %7657 }
 0x721   :  { %v7686_v24 = vsel %vm1715_vm3, %v7682_v3, %v7514_v12 }
 0x722   :  { %7756 = vst [vmem:[%s13454_s5 + $0x10] sm:$0xff] %v7752_v46  ;;  %v7690_v16 = vsel %vm6291_vm9, %v7686_v24, %v7530_v52 }
 0x723   :  { %v7694_v26 = vsel %vm6296_vm10, %v7690_v16, %v7546_v35 }
 0x724   :  { %v7562_v2 = vpop.permute.xlu0 %7561 }
 0x725   :  { %v7698_v6 = vsel %vm1796_vm4, %v7694_v26, %v7562_v2 }
 0x728   :  { %v7578_v27 = vpop.permute.xlu0 %7577 }
 0x729   :  { %v7702_v61 = vsel %vm6305_vm11, %v7698_v6, %v7578_v27 }
 0x72c   :  { %v7594_v22 = vpop.permute.xlu0 %7593 }
 0x72d   :  { %v7706_v34 = vsel %vm6310_vm12, %v7702_v61, %v7594_v22 }
 0x730   :  { %v7610_v19 = vpop.permute.xlu0 %7609 }
 0x731   :  { %v7710_v29 = vsel %vm6315_vm13, %v7706_v34, %v7610_v19 }
 0x734   :  { %v7626_v60 = vpop.permute.xlu0 %7625 }
 0x735   :  { %v7714_v63 = vsel %vm6320_vm14, %v7710_v29, %v7626_v60 }
 0x736   :  { %v7718_v62 = vsel %vm6325_vm15, %v7714_v63, %v7642_v53 }
 0x737   :  { %v7722_v9 = vsel %vm6330_vm5, %v7718_v62, %v7658_v40 }
 0x738   :  { %v6260_v50 = vpop.permute.xlu0 %6259  ;;  %v7733_v44 = vadd.f32 %v13237_v4, %v7722_v9 }
 0x739   :  { %v6334_v47 = vsel %vm6330_vm5, %v6329_v55, %v6260_v50 }
 0x73a   :  { %v7737_v10 = vand.u32 2147483647, %v6334_v47 }
 0x73c   :  { %v7741_v37 = vadd.f32 %v7737_v10, %v7733_v44 }
 0x73e   :  { %vm7745_vm0 = vcmp.gt.f32.partialorder %v7741_v37, 0.0 }
 0x73f   :  { %v7749_v49 = vsel %vm7745_vm0, 1.0, %v13276_v28 }
 0x740   :  { %v7753_v0 = vmul.f32 %v7749_v49, %v6334_v47  ;;  %v7760_v31 = vadd.f32 %v7759_v8, %v7749_v49 }
 0x742   :  { %7757 = vst [vmem:[%s13454_s5 + $0x18] sm:$0xff] %v7753_v0  ;;  %7761 = vadd.xlane.f32.xlu0 %v7760_v31  ;;  %s8495_s5 = scalar_lea.vmem %s7784_s27, 32 }
 0x743   :  { %p8497_p2 = scmp.lt.s32.totalorder %s8495_s5, %s8491_s29 }
 0x745   :  { %p8498_p3 = por %p8497_p2, %p8496_p1 }
 0x747   :  { %p8499_p4 = pnand %p8498_p3, %p8492_p0 }
 0x7cf   :  { %v7762_v43 = vpop.xlane.xlu0 %7761 }
 0x7d0   :  { %v7763_v48 = vrot.slane %v7762_v43, 4 }
 0x7d2   :  { %v7764_v56 = vadd.f32 %v7763_v48, %v7762_v43 }
 0x7d4   :  { %v7765_v51 = vrot.slane %v7764_v56, 2 }
 0x7d6   :  { %v7766_v21 = vadd.f32 %v7765_v51, %v7764_v56 }
 0x7d8   :  { %v7767_v13 = vrot.slane %v7766_v21, 1 }
 0x7da   :  { %v7768_v15 = vadd.f32 %v7767_v13, %v7766_v21 }
 0x7dc   :  { %8462 = vpush %v7768_v15 }
 0x80d   :  { %s8463_s20 = spop %8462 }
 0x80e   :  { %s7770_s25 = ssub.f32 4096.0, %s8463_s20 }
 0x810   :  { %v7771_v4 = vstv %s7770_s25 }
 0x811   :  { %v8464_v28 = vtrunc.f32 %v7771_v4 }
 0x813   :  { %v8465_v45 = vcvt.f32.s32 %v8464_v28 }
 0x815   :  { %7774 = vst [vmem:[#allocation4] sm:$0x1] %v8465_v45 }
 0x816   :  { %8502 = shalt.err (!%p8499_p4)
}
 0x817   :  { %s8503_s8 = scalar_lea.hbm %s13455_s6, 16 }
 0x818   :  { %p8504_p5 = scmp.ne.s32.totalorder %s13455_s6, %s8503_s8  ;;  %p8507_p6 = scmp.lt.u32.totalorder %s8503_s8, %s13455_s6 }
 0x81a   :  { %p8509_p7 = pnand %p8507_p6, %p8504_p5 }
 0x81c   :  { %8512 = shalt.err (!%p8509_p7)
}
 0x81d   :  { %7786 = dma.vmem_to_hbm [thread:$0]  %s7784_s27, 16, %s13455_s6, [#allocation5]  }
 0x81e   :  { %8513 = dma.done.wait [#allocation5], 16  }
 0x81f   :  { %8514 = vsyncadd [#allocation5], 4294967280 }
 0x820   :  { %7792 = vsyncpa [#allocation5], 1 }

</bundles_post_ra>
